<compile_context>
chip_gen: v5e
topology: v5e:2x2
jax: 0.10.0
libtpu: 0.0.40
codegen_flags: <defaults>
</compile_context>

<pallas_src>
import functools

import jax
import jax.numpy as jnp
from jax import lax
from jax.experimental import pallas as pl
from jax.experimental.pallas import tpu as pltpu


# --------------------------------------------------------------------------
# Log-step (doubling) sliding-window max along one axis of a value.
# For k=5: 3 maxima instead of 4 consecutive shifts.
# --------------------------------------------------------------------------
def _window_max(a, k, axis):
    """Max over a size-k stride-1 window along `axis` (VALID), log-step."""
    def sl(v, start, length):
        idx = [slice(None)] * v.ndim
        idx[axis] = slice(start, start + length)
        return v[tuple(idx)]

    out_len = a.shape[axis] - k + 1
    r, span = a, 1
    while span * 2 <= k:
        length = r.shape[axis] - span
        r = jnp.maximum(sl(r, 0, length), sl(r, span, length))
        span *= 2
    if span < k:
        # r covers `span` >= k - span, so one overlapping combine finishes k.
        r = jnp.maximum(sl(r, 0, out_len), sl(r, k - span, out_len))
    else:
        r = sl(r, 0, out_len)
    return r


# --------------------------------------------------------------------------
# Fused SPPF kernel: cv1 + 3x separable max pool + cv2, one batch element/step
# --------------------------------------------------------------------------
def _sppf_fused_kernel(x_ref, w1_ref, b1_ref, w2_ref, b2_ref, o_ref,
                       pbuf_ref, cat_ref, *, k):
    """
    x_ref : (1, H, W, C1)   bf16  input block (NHWC)
    w1_ref: (C1, C_)        bf16  cv1 weight, BN scale folded in
    b1_ref: (1, C_)         f32   cv1 folded BN bias
    w2_ref: (4*C_, C2)      bf16  cv2 weight (rows ordered [t|y1|y2|y3])
    b2_ref: (1, C2)         f32   cv2 folded BN bias
    o_ref : (1, H, W, C2)   bf16  output block (NHWC)
    pbuf_ref: (H+2p, W+2p, C_) f32  -inf-padded pool buffer (both axes)
    cat_ref : (H*W, 4*C_)   bf16  virtual-concat buffer feeding cv2's MXU dot
    """
    _, H, W, C1 = x_ref.shape
    C_ = w1_ref.shape[1]
    C2 = w2_ref.shape[1]
    p = k // 2

    # ---- -inf borders (interior is overwritten by every pool pass). -------
    # Rewritten every step: with a core-parallel batch axis each TensorCore
    # owns a private scratch copy, so "only at program_id==0" would be unsafe.
    ninf_rows = jnp.full((p, W + 2 * p, C_), -jnp.inf, jnp.float32)
    pbuf_ref[0:p, :, :] = ninf_rows
    pbuf_ref[H + p:H + 2 * p, :, :] = ninf_rows
    ninf_cols = jnp.full((H, p, C_), -jnp.inf, jnp.float32)
    pbuf_ref[p:p + H, 0:p, :] = ninf_cols
    pbuf_ref[p:p + H, W + p:W + 2 * p, :] = ninf_cols

    # ---- cv1: 1x1 conv (MXU, bf16 in / f32 acc) + folded BN bias + SiLU ----
    x2d = x_ref[0].reshape(H * W, C1)
    t = jnp.dot(x2d, w1_ref[...], preferred_element_type=jnp.float32)
    t = t + b1_ref[...]
    t = t * jax.nn.sigmoid(t)                          # SiLU, (H*W, C_) f32

    cat_ref[:, 0:C_] = t.astype(cat_ref.dtype)

    def pool(v3):
        """Separable k x k / stride-1 / pad-(k//2) max pool of (H, W, C_)."""
        pbuf_ref[p:p + H, p:p + W, :] = v3
        a = pbuf_ref[...]                              # (H+2p, W+2p, C_)
        a = _window_max(a, k, axis=1)                  # W pass (sublane shifts)
        return _window_max(a, k, axis=0)               # H pass (row selects)

    y = t.reshape(H, W, C_)
    for j in range(1, 4):
        y = pool(y)
        cat_ref[:, j * C_:(j + 1) * C_] = y.reshape(H * W, C_).astype(cat_ref.dtype)

    # ---- cv2: ONE long-K MXU dot on the virtual concat + bias + SiLU -------
    acc = jnp.dot(cat_ref[...], w2_ref[...], preferred_element_type=jnp.float32)
    acc = acc + b2_ref[...]
    out = acc * jax.nn.sigmoid(acc)                    # SiLU, f32
    o_ref[0] = out.reshape(H, W, C2).astype(o_ref.dtype)


# --------------------------------------------------------------------------
# Generation-aware VMEM budget
# --------------------------------------------------------------------------
def _vmem_cap_bytes():
    # v5e/v6e: 128 MiB per core; v7x: 64 MiB. Keep 1/8 headroom for
    # compiler-internal scratch either way.
    try:
        cap = pltpu.get_tpu_info().vmem_capacity_bytes
    except Exception:
        cap = 64 * 1024 * 1024
    return int(cap) * 7 // 8


def _vmem_limit_bytes(h, w, c1, c_, c2, k):
    p = k // 2
    bf16, f32 = 2, 4
    io_tiles = 2 * h * w * (c1 + c2) * bf16                       # dbl-buffered I/O
    weights = 2 * (c1 * c_ + 4 * c_ * c2) * bf16 + 2 * (c_ + c2) * f32
    scratch = (h + 2 * p) * (w + 2 * p) * c_ * f32 + h * w * 4 * c_ * bf16
    # live values: padded-buffer load + window-max temps + t/acc/out
    live = (3 * (h + 2 * p) * (w + 2 * p) * c_ + h * w * (c_ + 2 * c2)) * f32
    need = io_tiles + weights + scratch + live
    return int(min(max(2 * need, 32 * 1024 * 1024), _vmem_cap_bytes()))


def _fold_bn(params):
    """Fold the eval-mode BN scale into the 1x1-conv weights (bf16 storage)."""
    w1, s1, b1, w2, s2, b2 = params
    c_ = w1.shape[1]
    c2 = w2.shape[1]
    w1f = (w1 * s1[None, :]).astype(jnp.bfloat16)                  # (C1, C_)
    w2f = (w2 * s2[None, :]).astype(jnp.bfloat16)                  # (4*C_, C2)
    return (w1f, b1.reshape(1, c_).astype(jnp.float32),
            w2f, b2.reshape(1, c2).astype(jnp.float32))


# --------------------------------------------------------------------------
# SPPF forward (NHWC core + NCHW wrapper matching the PyTorch module)
# --------------------------------------------------------------------------
def sppf_forward_nhwc(x_nhwc, params, *, k=5):
    assert k % 2 == 1, "SPPF pool assumes odd k (same-size output)"
    n, h, w, c1 = x_nhwc.shape
    w1f, b1r, w2f, b2r = _fold_bn(params)
    c_ = w1f.shape[1]
    c2 = w2f.shape[1]
    p = k // 2

    x_bf = x_nhwc.astype(jnp.bfloat16)

    return pl.pallas_call(
        functools.partial(_sppf_fused_kernel, k=k),
        out_shape=jax.ShapeDtypeStruct((n, h, w, c2), jnp.bfloat16),
        grid_spec=pltpu.PrefetchScalarGridSpec(
            num_scalar_prefetch=0,
            grid=(n,),
            in_specs=[
                pl.BlockSpec((1, h, w, c1), lambda b: (b, 0, 0, 0)),
                pl.BlockSpec((c1, c_), lambda b: (0, 0)),
                pl.BlockSpec((1, c_), lambda b: (0, 0)),
                pl.BlockSpec((4 * c_, c2), lambda b: (0, 0)),
                pl.BlockSpec((1, c2), lambda b: (0, 0)),
            ],
            out_specs=pl.BlockSpec((1, h, w, c2), lambda b: (b, 0, 0, 0)),
            scratch_shapes=[
                pltpu.VMEM((h + 2 * p, w + 2 * p, c_), jnp.float32),  # pool buffer
                pltpu.VMEM((h * w, 4 * c_), jnp.bfloat16),            # cv2 concat
            ],
        ),
        compiler_params=pltpu.CompilerParams(
            dimension_semantics=("parallel",),
            vmem_limit_bytes=_vmem_limit_bytes(h, w, c1, c_, c2, k),
        ),
    )(x_bf, w1f, b1r, w2f, b2r)


def sppf_forward(x_nchw, params, *, k=5):
    # NCHW <-> NHWC glue to match the PyTorch module's layout (bf16 output).
    x_nhwc = jnp.transpose(x_nchw, (0, 2, 3, 1))
    o = sppf_forward_nhwc(x_nhwc, params, k=k)
    return jnp.transpose(o, (0, 3, 1, 2))


# --------------------------------------------------------------------------
# Deterministic parameter init (BN folded into scale/bias, eval semantics)
# --------------------------------------------------------------------------
def init_params(key, c1, c2):
    c_ = c1 // 2
    k1, k2, k3, k4 = jax.random.split(key, 4)

    # 1x1 conv weights stored as (Cin, Cout) (== PyTorch (Cout, Cin, 1, 1).T)
    w1 = 0.1 * jax.random.normal(k1, (c1, c_), jnp.float32)
    w2 = 0.1 * jax.random.normal(k2, (4 * c_, c2), jnp.float32)

    def make_bn(key_bn, c):
        kg, kb, km, kv = jax.random.split(key_bn, 4)
        gamma = 1.0 + 0.1 * jax.random.normal(kg, (c,), jnp.float32)
        beta = 0.1 * jax.random.normal(kb, (c,), jnp.float32)
        mean = 0.1 * jax.random.normal(km, (c,), jnp.float32)
        var = jnp.abs(jax.random.normal(kv, (c,), jnp.float32)) + 0.5
        eps = 1e-5
        scale = gamma / jnp.sqrt(var + eps)
        bias = beta - mean * scale
        return scale, bias

    s1, b1 = make_bn(k3, c_)
    s2, b2 = make_bn(k4, c2)
    return w1, s1, b1, w2, s2, b2


# --------------------------------------------------------------------------
# Pure-JAX f32 reference (mirrors the PyTorch forward) for validation
# --------------------------------------------------------------------------
def ref_sppf(x_nchw, params, *, k=5):
    w1, s1, b1, w2, s2, b2 = params

    def conv_bn_silu(x, w, s, b):
        y = jnp.einsum("nchw,co->nohw", x, w)
        y = y * s[None, :, None, None] + b[None, :, None, None]
        return y * jax.nn.sigmoid(y)

    def maxpool(x):
        p = k // 2
        return lax.reduce_window(
            x, -jnp.inf, lax.max,
            (1, 1, k, k), (1, 1, 1, 1),
            ((0, 0), (0, 0), (p, p), (p, p)),
        )

    t = conv_bn_silu(x_nchw, w1, s1, b1)
    y1 = maxpool(t)
    y2 = maxpool(y1)
    y3 = maxpool(y2)
    return conv_bn_silu(jnp.concatenate([t, y1, y2, y3], axis=1), w2, s2, b2)


if __name__ == "__main__":
    N, C1, C2, H, W = 2, 8, 8, 16, 16

    key = jax.random.PRNGKey(0)
    kx, kp = jax.random.split(key)
    x = jax.random.normal(kx, (N, C1, H, W), jnp.float32)
    params = init_params(kp, C1, C2)

    out = jax.block_until_ready(sppf_forward(x, params, k=5))
    ref = jax.block_until_ready(ref_sppf(x, params, k=5))

    assert out.shape == (N, C2, H, W), out.shape
    out_f32 = out.astype(jnp.float32)
    max_err = float(jnp.max(jnp.abs(out_f32 - ref)))
    # bf16 activation/weight rounding vs the f32 reference -> loose tolerance.
    assert jnp.allclose(out_f32, ref, atol=5e-2, rtol=5e-2), max_err
    print("KERNEL_OK")
</pallas_src>

<mosaic_0001>
module attributes {stable_mosaic.version = 11 : i64} {
  func.func @_sppf_fused_kernel(%arg0: i32, %arg1: memref<1x16x16x8xbf16, #tpu.memory_space<vmem>>, %arg2: memref<8x4xbf16, #tpu.memory_space<vmem>>, %arg3: memref<1x4xf32, #tpu.memory_space<vmem>>, %arg4: memref<16x8xbf16, #tpu.memory_space<vmem>>, %arg5: memref<1x8xf32, #tpu.memory_space<vmem>>, %arg6: memref<1x16x16x8xbf16, #tpu.memory_space<vmem>>, %arg7: memref<20x20x4xf32, #tpu.memory_space<vmem>>, %arg8: memref<256x16xbf16, #tpu.memory_space<vmem>>) attributes {dimension_semantics = [#tpu.dimension_semantics<parallel>], iteration_bounds = array<i64: 2>, scalar_prefetch = 0 : i64, scratch_operands = 2 : i64, tpu.core_type = #tpu.core_type<tc>, window_params = [{transform_indices = @transform_0, window_bounds = array<i64: 1, 16, 16, 8>}, {pipeline_mode = #tpu.pipeline_mode<synchronous>, transform_indices = @transform_1, window_bounds = array<i64: 8, 4>}, {pipeline_mode = #tpu.pipeline_mode<synchronous>, transform_indices = @transform_2, window_bounds = array<i64: 1, 4>}, {pipeline_mode = #tpu.pipeline_mode<synchronous>, transform_indices = @transform_3, window_bounds = array<i64: 16, 8>}, {pipeline_mode = #tpu.pipeline_mode<synchronous>, transform_indices = @transform_4, window_bounds = array<i64: 1, 8>}, {transform_indices = @transform_5, window_bounds = array<i64: 1, 16, 16, 8>}]} {
    %cst = arith.constant 0xFF800000 : f32
    %0 = vector.broadcast %cst : f32 to vector<2x20x4xf32>
    %c0 = arith.constant 0 : index
    %c0_0 = arith.constant 0 : index
    %c0_1 = arith.constant 0 : index
    %1 = vector.load %arg7[%c0, %c0_0, %c0_1] : memref<20x20x4xf32, #tpu.memory_space<vmem>>, vector<2x20x4xf32>
    tpu.vector_store %arg7[%c0, %c0_0, %c0_1], %0 {strides = array<i32>} : memref<20x20x4xf32, #tpu.memory_space<vmem>>, vector<2x20x4xf32>,
    %c18 = arith.constant 18 : index
    %c0_2 = arith.constant 0 : index
    %c0_3 = arith.constant 0 : index
    %2 = vector.load %arg7[%c18, %c0_2, %c0_3] : memref<20x20x4xf32, #tpu.memory_space<vmem>>, vector<2x20x4xf32>
    tpu.vector_store %arg7[%c18, %c0_2, %c0_3], %0 {strides = array<i32>} : memref<20x20x4xf32, #tpu.memory_space<vmem>>, vector<2x20x4xf32>,
    %cst_4 = arith.constant 0xFF800000 : f32
    %3 = vector.broadcast %cst_4 : f32 to vector<16x2x4xf32>
    %c2 = arith.constant 2 : index
    %c0_5 = arith.constant 0 : index
    %c0_6 = arith.constant 0 : index
    %4 = vector.load %arg7[%c2, %c0_5, %c0_6] : memref<20x20x4xf32, #tpu.memory_space<vmem>>, vector<16x2x4xf32>
    tpu.vector_store %arg7[%c2, %c0_5, %c0_6], %3 {strides = array<i32>} : memref<20x20x4xf32, #tpu.memory_space<vmem>>, vector<16x2x4xf32>,
    %c2_7 = arith.constant 2 : index
    %c18_8 = arith.constant 18 : index
    %c0_9 = arith.constant 0 : index
    %5 = vector.load %arg7[%c2_7, %c18_8, %c0_9] : memref<20x20x4xf32, #tpu.memory_space<vmem>>, vector<16x2x4xf32>
    tpu.vector_store %arg7[%c2_7, %c18_8, %c0_9], %3 {strides = array<i32>} : memref<20x20x4xf32, #tpu.memory_space<vmem>>, vector<16x2x4xf32>,
    %c0_10 = arith.constant 0 : index
    %c0_11 = arith.constant 0 : index
    %c0_12 = arith.constant 0 : index
    %c0_13 = arith.constant 0 : index
    %6 = vector.load %arg1[%c0_10, %c0_11, %c0_12, %c0_13] : memref<1x16x16x8xbf16, #tpu.memory_space<vmem>>, vector<1x16x16x8xbf16>
    %7 = vector.shape_cast %6 : vector<1x16x16x8xbf16> to vector<16x16x8xbf16>
    %8 = vector.shape_cast %7 : vector<16x16x8xbf16> to vector<256x8xbf16>
    %c0_14 = arith.constant 0 : index
    %c0_15 = arith.constant 0 : index
    %9 = vector.load %arg2[%c0_14, %c0_15] : memref<8x4xbf16, #tpu.memory_space<vmem>>, vector<8x4xbf16>
    %cst_16 = arith.constant dense<0.000000e+00> : vector<256x4xf32>
    %10 = tpu.matmul %8, %9, %cst_16 {dimension_numbers = #tpu.dot_dimension_numbers<[1], [0], [0], [1], [0, 0, 1, 1], [], []>} : vector<256x8xbf16>, vector<8x4xbf16>, vector<256x4xf32> -> vector<256x4xf32>
    %c0_17 = arith.constant 0 : index
    %c0_18 = arith.constant 0 : index
    %11 = vector.load %arg3[%c0_17, %c0_18] : memref<1x4xf32, #tpu.memory_space<vmem>>, vector<1x4xf32>
    %12 = vector.broadcast %11 : vector<1x4xf32> to vector<256x4xf32>
    %13 = arith.addf %10, %12 : vector<256x4xf32>
    %14 = arith.negf %13 : vector<256x4xf32>
    %15 = math.exp %14 : vector<256x4xf32>
    %cst_19 = arith.constant 1.000000e+00 : f32
    %16 = vector.broadcast %cst_19 : f32 to vector<256x4xf32>
    %17 = arith.addf %16, %15 : vector<256x4xf32>
    %18 = arith.divf %16, %17 : vector<256x4xf32>
    %19 = arith.mulf %13, %18 : vector<256x4xf32>
    %20 = arith.truncf %19 : vector<256x4xf32> to vector<256x4xbf16>
    %c0_20 = arith.constant 0 : index
    %c0_21 = arith.constant 0 : index
    %21 = vector.load %arg8[%c0_20, %c0_21] : memref<256x16xbf16, #tpu.memory_space<vmem>>, vector<256x4xbf16>
    tpu.vector_store %arg8[%c0_20, %c0_21], %20 {strides = array<i32>} : memref<256x16xbf16, #tpu.memory_space<vmem>>, vector<256x4xbf16>,
    %22 = vector.shape_cast %19 : vector<256x4xf32> to vector<16x16x4xf32>
    %c2_22 = arith.constant 2 : index
    %c2_23 = arith.constant 2 : index
    %c0_24 = arith.constant 0 : index
    %23 = vector.load %arg7[%c2_22, %c2_23, %c0_24] : memref<20x20x4xf32, #tpu.memory_space<vmem>>, vector<16x16x4xf32>
    tpu.vector_store %arg7[%c2_22, %c2_23, %c0_24], %22 {strides = array<i32>} : memref<20x20x4xf32, #tpu.memory_space<vmem>>, vector<16x16x4xf32>,
    %c0_25 = arith.constant 0 : index
    %c0_26 = arith.constant 0 : index
    %c0_27 = arith.constant 0 : index
    %24 = vector.load %arg7[%c0_25, %c0_26, %c0_27] : memref<20x20x4xf32, #tpu.memory_space<vmem>>, vector<20x20x4xf32>
    %25 = vector.extract_strided_slice %24 {offsets = [0, 0, 0], sizes = [20, 19, 4], strides = [1, 1, 1]} : vector<20x20x4xf32> to vector<20x19x4xf32>
    %26 = vector.extract_strided_slice %24 {offsets = [0, 1, 0], sizes = [20, 19, 4], strides = [1, 1, 1]} : vector<20x20x4xf32> to vector<20x19x4xf32>
    %27 = arith.maximumf %25, %26 : vector<20x19x4xf32>
    %28 = vector.extract_strided_slice %27 {offsets = [0, 0, 0], sizes = [20, 17, 4], strides = [1, 1, 1]} : vector<20x19x4xf32> to vector<20x17x4xf32>
    %29 = vector.extract_strided_slice %27 {offsets = [0, 2, 0], sizes = [20, 17, 4], strides = [1, 1, 1]} : vector<20x19x4xf32> to vector<20x17x4xf32>
    %30 = arith.maximumf %28, %29 : vector<20x17x4xf32>
    %31 = vector.extract_strided_slice %30 {offsets = [0, 0, 0], sizes = [20, 16, 4], strides = [1, 1, 1]} : vector<20x17x4xf32> to vector<20x16x4xf32>
    %32 = vector.extract_strided_slice %30 {offsets = [0, 1, 0], sizes = [20, 16, 4], strides = [1, 1, 1]} : vector<20x17x4xf32> to vector<20x16x4xf32>
    %33 = arith.maximumf %31, %32 : vector<20x16x4xf32>
    %34 = vector.extract_strided_slice %33 {offsets = [0, 0, 0], sizes = [19, 16, 4], strides = [1, 1, 1]} : vector<20x16x4xf32> to vector<19x16x4xf32>
    %35 = vector.extract_strided_slice %33 {offsets = [1, 0, 0], sizes = [19, 16, 4], strides = [1, 1, 1]} : vector<20x16x4xf32> to vector<19x16x4xf32>
    %36 = arith.maximumf %34, %35 : vector<19x16x4xf32>
    %37 = vector.extract_strided_slice %36 {offsets = [0, 0, 0], sizes = [17, 16, 4], strides = [1, 1, 1]} : vector<19x16x4xf32> to vector<17x16x4xf32>
    %38 = vector.extract_strided_slice %36 {offsets = [2, 0, 0], sizes = [17, 16, 4], strides = [1, 1, 1]} : vector<19x16x4xf32> to vector<17x16x4xf32>
    %39 = arith.maximumf %37, %38 : vector<17x16x4xf32>
    %40 = vector.extract_strided_slice %39 {offsets = [0, 0, 0], sizes = [16, 16, 4], strides = [1, 1, 1]} : vector<17x16x4xf32> to vector<16x16x4xf32>
    %41 = vector.extract_strided_slice %39 {offsets = [1, 0, 0], sizes = [16, 16, 4], strides = [1, 1, 1]} : vector<17x16x4xf32> to vector<16x16x4xf32>
    %42 = arith.maximumf %40, %41 : vector<16x16x4xf32>
    %43 = vector.shape_cast %42 : vector<16x16x4xf32> to vector<256x4xf32>
    %44 = arith.truncf %43 : vector<256x4xf32> to vector<256x4xbf16>
    %c0_28 = arith.constant 0 : index
    %c4 = arith.constant 4 : index
    %45 = vector.load %arg8[%c0_28, %c4] : memref<256x16xbf16, #tpu.memory_space<vmem>>, vector<256x4xbf16>
    tpu.vector_store %arg8[%c0_28, %c4], %44 {strides = array<i32>} : memref<256x16xbf16, #tpu.memory_space<vmem>>, vector<256x4xbf16>,
    %c2_29 = arith.constant 2 : index
    %c2_30 = arith.constant 2 : index
    %c0_31 = arith.constant 0 : index
    %46 = vector.load %arg7[%c2_29, %c2_30, %c0_31] : memref<20x20x4xf32, #tpu.memory_space<vmem>>, vector<16x16x4xf32>
    tpu.vector_store %arg7[%c2_29, %c2_30, %c0_31], %42 {strides = array<i32>} : memref<20x20x4xf32, #tpu.memory_space<vmem>>, vector<16x16x4xf32>,
    %c0_32 = arith.constant 0 : index
    %c0_33 = arith.constant 0 : index
    %c0_34 = arith.constant 0 : index
    %47 = vector.load %arg7[%c0_32, %c0_33, %c0_34] : memref<20x20x4xf32, #tpu.memory_space<vmem>>, vector<20x20x4xf32>
    %48 = vector.extract_strided_slice %47 {offsets = [0, 0, 0], sizes = [20, 19, 4], strides = [1, 1, 1]} : vector<20x20x4xf32> to vector<20x19x4xf32>
    %49 = vector.extract_strided_slice %47 {offsets = [0, 1, 0], sizes = [20, 19, 4], strides = [1, 1, 1]} : vector<20x20x4xf32> to vector<20x19x4xf32>
    %50 = arith.maximumf %48, %49 : vector<20x19x4xf32>
    %51 = vector.extract_strided_slice %50 {offsets = [0, 0, 0], sizes = [20, 17, 4], strides = [1, 1, 1]} : vector<20x19x4xf32> to vector<20x17x4xf32>
    %52 = vector.extract_strided_slice %50 {offsets = [0, 2, 0], sizes = [20, 17, 4], strides = [1, 1, 1]} : vector<20x19x4xf32> to vector<20x17x4xf32>
    %53 = arith.maximumf %51, %52 : vector<20x17x4xf32>
    %54 = vector.extract_strided_slice %53 {offsets = [0, 0, 0], sizes = [20, 16, 4], strides = [1, 1, 1]} : vector<20x17x4xf32> to vector<20x16x4xf32>
    %55 = vector.extract_strided_slice %53 {offsets = [0, 1, 0], sizes = [20, 16, 4], strides = [1, 1, 1]} : vector<20x17x4xf32> to vector<20x16x4xf32>
    %56 = arith.maximumf %54, %55 : vector<20x16x4xf32>
    %57 = vector.extract_strided_slice %56 {offsets = [0, 0, 0], sizes = [19, 16, 4], strides = [1, 1, 1]} : vector<20x16x4xf32> to vector<19x16x4xf32>
    %58 = vector.extract_strided_slice %56 {offsets = [1, 0, 0], sizes = [19, 16, 4], strides = [1, 1, 1]} : vector<20x16x4xf32> to vector<19x16x4xf32>
    %59 = arith.maximumf %57, %58 : vector<19x16x4xf32>
    %60 = vector.extract_strided_slice %59 {offsets = [0, 0, 0], sizes = [17, 16, 4], strides = [1, 1, 1]} : vector<19x16x4xf32> to vector<17x16x4xf32>
    %61 = vector.extract_strided_slice %59 {offsets = [2, 0, 0], sizes = [17, 16, 4], strides = [1, 1, 1]} : vector<19x16x4xf32> to vector<17x16x4xf32>
    %62 = arith.maximumf %60, %61 : vector<17x16x4xf32>
    %63 = vector.extract_strided_slice %62 {offsets = [0, 0, 0], sizes = [16, 16, 4], strides = [1, 1, 1]} : vector<17x16x4xf32> to vector<16x16x4xf32>
    %64 = vector.extract_strided_slice %62 {offsets = [1, 0, 0], sizes = [16, 16, 4], strides = [1, 1, 1]} : vector<17x16x4xf32> to vector<16x16x4xf32>
    %65 = arith.maximumf %63, %64 : vector<16x16x4xf32>
    %66 = vector.shape_cast %65 : vector<16x16x4xf32> to vector<256x4xf32>
    %67 = arith.truncf %66 : vector<256x4xf32> to vector<256x4xbf16>
    %c0_35 = arith.constant 0 : index
    %c8 = arith.constant 8 : index
    %68 = vector.load %arg8[%c0_35, %c8] : memref<256x16xbf16, #tpu.memory_space<vmem>>, vector<256x4xbf16>
    tpu.vector_store %arg8[%c0_35, %c8], %67 {strides = array<i32>} : memref<256x16xbf16, #tpu.memory_space<vmem>>, vector<256x4xbf16>,
    %c2_36 = arith.constant 2 : index
    %c2_37 = arith.constant 2 : index
    %c0_38 = arith.constant 0 : index
    %69 = vector.load %arg7[%c2_36, %c2_37, %c0_38] : memref<20x20x4xf32, #tpu.memory_space<vmem>>, vector<16x16x4xf32>
    tpu.vector_store %arg7[%c2_36, %c2_37, %c0_38], %65 {strides = array<i32>} : memref<20x20x4xf32, #tpu.memory_space<vmem>>, vector<16x16x4xf32>,
    %c0_39 = arith.constant 0 : index
    %c0_40 = arith.constant 0 : index
    %c0_41 = arith.constant 0 : index
    %70 = vector.load %arg7[%c0_39, %c0_40, %c0_41] : memref<20x20x4xf32, #tpu.memory_space<vmem>>, vector<20x20x4xf32>
    %71 = vector.extract_strided_slice %70 {offsets = [0, 0, 0], sizes = [20, 19, 4], strides = [1, 1, 1]} : vector<20x20x4xf32> to vector<20x19x4xf32>
    %72 = vector.extract_strided_slice %70 {offsets = [0, 1, 0], sizes = [20, 19, 4], strides = [1, 1, 1]} : vector<20x20x4xf32> to vector<20x19x4xf32>
    %73 = arith.maximumf %71, %72 : vector<20x19x4xf32>
    %74 = vector.extract_strided_slice %73 {offsets = [0, 0, 0], sizes = [20, 17, 4], strides = [1, 1, 1]} : vector<20x19x4xf32> to vector<20x17x4xf32>
    %75 = vector.extract_strided_slice %73 {offsets = [0, 2, 0], sizes = [20, 17, 4], strides = [1, 1, 1]} : vector<20x19x4xf32> to vector<20x17x4xf32>
    %76 = arith.maximumf %74, %75 : vector<20x17x4xf32>
    %77 = vector.extract_strided_slice %76 {offsets = [0, 0, 0], sizes = [20, 16, 4], strides = [1, 1, 1]} : vector<20x17x4xf32> to vector<20x16x4xf32>
    %78 = vector.extract_strided_slice %76 {offsets = [0, 1, 0], sizes = [20, 16, 4], strides = [1, 1, 1]} : vector<20x17x4xf32> to vector<20x16x4xf32>
    %79 = arith.maximumf %77, %78 : vector<20x16x4xf32>
    %80 = vector.extract_strided_slice %79 {offsets = [0, 0, 0], sizes = [19, 16, 4], strides = [1, 1, 1]} : vector<20x16x4xf32> to vector<19x16x4xf32>
    %81 = vector.extract_strided_slice %79 {offsets = [1, 0, 0], sizes = [19, 16, 4], strides = [1, 1, 1]} : vector<20x16x4xf32> to vector<19x16x4xf32>
    %82 = arith.maximumf %80, %81 : vector<19x16x4xf32>
    %83 = vector.extract_strided_slice %82 {offsets = [0, 0, 0], sizes = [17, 16, 4], strides = [1, 1, 1]} : vector<19x16x4xf32> to vector<17x16x4xf32>
    %84 = vector.extract_strided_slice %82 {offsets = [2, 0, 0], sizes = [17, 16, 4], strides = [1, 1, 1]} : vector<19x16x4xf32> to vector<17x16x4xf32>
    %85 = arith.maximumf %83, %84 : vector<17x16x4xf32>
    %86 = vector.extract_strided_slice %85 {offsets = [0, 0, 0], sizes = [16, 16, 4], strides = [1, 1, 1]} : vector<17x16x4xf32> to vector<16x16x4xf32>
    %87 = vector.extract_strided_slice %85 {offsets = [1, 0, 0], sizes = [16, 16, 4], strides = [1, 1, 1]} : vector<17x16x4xf32> to vector<16x16x4xf32>
    %88 = arith.maximumf %86, %87 : vector<16x16x4xf32>
    %89 = vector.shape_cast %88 : vector<16x16x4xf32> to vector<256x4xf32>
    %90 = arith.truncf %89 : vector<256x4xf32> to vector<256x4xbf16>
    %c0_42 = arith.constant 0 : index
    %c12 = arith.constant 12 : index
    %91 = vector.load %arg8[%c0_42, %c12] : memref<256x16xbf16, #tpu.memory_space<vmem>>, vector<256x4xbf16>
    tpu.vector_store %arg8[%c0_42, %c12], %90 {strides = array<i32>} : memref<256x16xbf16, #tpu.memory_space<vmem>>, vector<256x4xbf16>,
    %c0_43 = arith.constant 0 : index
    %c0_44 = arith.constant 0 : index
    %92 = vector.load %arg8[%c0_43, %c0_44] : memref<256x16xbf16, #tpu.memory_space<vmem>>, vector<256x16xbf16>
    %c0_45 = arith.constant 0 : index
    %c0_46 = arith.constant 0 : index
    %93 = vector.load %arg4[%c0_45, %c0_46] : memref<16x8xbf16, #tpu.memory_space<vmem>>, vector<16x8xbf16>
    %cst_47 = arith.constant dense<0.000000e+00> : vector<256x8xf32>
    %94 = tpu.matmul %92, %93, %cst_47 {dimension_numbers = #tpu.dot_dimension_numbers<[1], [0], [0], [1], [0, 0, 1, 1], [], []>} : vector<256x16xbf16>, vector<16x8xbf16>, vector<256x8xf32> -> vector<256x8xf32>
    %c0_48 = arith.constant 0 : index
    %c0_49 = arith.constant 0 : index
    %95 = vector.load %arg5[%c0_48, %c0_49] : memref<1x8xf32, #tpu.memory_space<vmem>>, vector<1x8xf32>
    %96 = vector.broadcast %95 : vector<1x8xf32> to vector<256x8xf32>
    %97 = arith.addf %94, %96 : vector<256x8xf32>
    %98 = arith.negf %97 : vector<256x8xf32>
    %99 = math.exp %98 : vector<256x8xf32>
    %cst_50 = arith.constant 1.000000e+00 : f32
    %100 = vector.broadcast %cst_50 : f32 to vector<256x8xf32>
    %101 = arith.addf %100, %99 : vector<256x8xf32>
    %102 = arith.divf %100, %101 : vector<256x8xf32>
    %103 = arith.mulf %97, %102 : vector<256x8xf32>
    %104 = vector.shape_cast %103 : vector<256x8xf32> to vector<16x16x8xf32>
    %105 = arith.truncf %104 : vector<16x16x8xf32> to vector<16x16x8xbf16>
    %c0_51 = arith.constant 0 : index
    %c0_52 = arith.constant 0 : index
    %c0_53 = arith.constant 0 : index
    %c0_54 = arith.constant 0 : index
    %106 = vector.load %arg6[%c0_51, %c0_52, %c0_53, %c0_54] : memref<1x16x16x8xbf16, #tpu.memory_space<vmem>>, vector<1x16x16x8xbf16>
    %107 = vector.shape_cast %106 : vector<1x16x16x8xbf16> to vector<16x16x8xbf16>
    %108 = vector.shape_cast %105 : vector<16x16x8xbf16> to vector<1x16x16x8xbf16>
    tpu.vector_store %arg6[%c0_51, %c0_52, %c0_53, %c0_54], %108 {strides = array<i32>} : memref<1x16x16x8xbf16, #tpu.memory_space<vmem>>, vector<1x16x16x8xbf16>,
    return
  }
  func.func @transform_0(%arg0: i32) -> (i32, i32, i32, i32) {
    %c0_i32 = arith.constant 0 : i32
    %c0_i32_0 = arith.constant 0 : i32
    %c0_i32_1 = arith.constant 0 : i32
    %c0_i32_2 = arith.constant 0 : i32
    return %arg0, %c0_i32, %c0_i32_0, %c0_i32_1 : i32, i32, i32, i32
  }
  func.func @transform_1(%arg0: i32) -> (i32, i32) {
    %c0_i32 = arith.constant 0 : i32
    %c0_i32_0 = arith.constant 0 : i32
    %c0_i32_1 = arith.constant 0 : i32
    return %c0_i32, %c0_i32_0 : i32, i32
  }
  func.func @transform_2(%arg0: i32) -> (i32, i32) {
    %c0_i32 = arith.constant 0 : i32
    %c0_i32_0 = arith.constant 0 : i32
    %c0_i32_1 = arith.constant 0 : i32
    return %c0_i32, %c0_i32_0 : i32, i32
  }
  func.func @transform_3(%arg0: i32) -> (i32, i32) {
    %c0_i32 = arith.constant 0 : i32
    %c0_i32_0 = arith.constant 0 : i32
    %c0_i32_1 = arith.constant 0 : i32
    return %c0_i32, %c0_i32_0 : i32, i32
  }
  func.func @transform_4(%arg0: i32) -> (i32, i32) {
    %c0_i32 = arith.constant 0 : i32
    %c0_i32_0 = arith.constant 0 : i32
    %c0_i32_1 = arith.constant 0 : i32
    return %c0_i32, %c0_i32_0 : i32, i32
  }
  func.func @transform_5(%arg0: i32) -> (i32, i32, i32, i32) {
    %c0_i32 = arith.constant 0 : i32
    %c0_i32_0 = arith.constant 0 : i32
    %c0_i32_1 = arith.constant 0 : i32
    %c0_i32_2 = arith.constant 0 : i32
    return %arg0, %c0_i32, %c0_i32_0, %c0_i32_1 : i32, i32, i32, i32
  }
}

</mosaic_0001>

<bundles_post_ra>
// kernel: tpu_custom_call.1
= control target key start
LH: loop header
LB: loop body
LE: loop exit
PB: predicated region body
PF: predicated region fallthrough
CT: control target
= control target key end

     0   :  { %s6421_s18 = smov 0   ;;  %s10647_s0 = inlined_call_operand.vmem [shape: bf16[2,16,16,8], index: 0, kind: input, shape index: {}]   ;;  %s10648_s1 = inlined_call_operand.vmem [shape: bf16[8,4], index: 1, kind: input, shape index: {}]   ;;  %s10649_s2 = inlined_call_operand.vmem [shape: f32[1,4], index: 2, kind: input, shape index: {}]   ;;  %s10650_s3 = inlined_call_operand.vmem [shape: bf16[16,8], index: 3, kind: input, shape index: {}]   ;;  %s10651_s4 = inlined_call_operand.vmem [shape: f32[1,8], index: 4, kind: input, shape index: {}]   ;;  %s10652_s5 = inlined_call_operand.vmem [shape: bf16[2,16,16,8], index: 5, kind: output, shape index: {}]  }
   0x1 LB: > { %s5829_s19 = sadd.s32 4294967295, %s6385_s18   ;;  %p5833_p0 = scmp.ge.s32.totalorder %s6385_s18, 1  ;;  %s6385_s18 = sphi %s6421_s18, %s15_s18  }
   0x2   : > { %p187_p1 = scmp.lt.s32.totalorder %s6385_s18, 3 }
   0x4   : > { %p188_p2 = pnand %p5833_p0, %p187_p1 }
   0x6   : > { %191 = sbr.rel (%p188_p2) target bundleno = 1142 (0x476), region = 40 }
   0xb   : > { %v307_v0 = vld [vmem:[%s10648_s1] sm:$0xf]  ;;  %vm441_vm0 = vcmask 1043456   ;;  %p215_p3 = scmp.lt.s32.totalorder %s5829_s19, 1  ;;  %vm392_vm1 = vcmask 64512   ;;  %vm226_vm2 = vcmask 31744  }
   0xc   : > { %v443_v1 = vsel %vm441_vm0, %v307_v0, 0  ;;  %v6477_v18 = vld [vmem:[%s10649_s2] ss:$0 sm:$0xff]  ;;  %v6387_v62 = vmov -inf   ;;  %s6388_s30 = smov 4   ;;  %s6389_s6 = smov 8  }
   0xd   : > { %452 = vmatpush.bf16.msra.mxu0 %v443_v1  ;;  %6103 = vmatpush.bf16.msra.mxu2 %v443_v1  ;;  %s11038_s19 = smov (!%p215_p3, %s5829_s19), 1  ;;  %228 = vst.msk [vmem:[#allocation2 + $0x8] sm:$0xff] %vm226_vm2, %v6387_v62  ;;  %s6390_s7 = smov 12  }
   0xe   : > { %s6068_s22 = sshll.u32 %s11038_s19, 7  ;;  %232 = vst.msk [vmem:[#allocation2 + $0x20] sm:$0xff] %vm226_vm2, %v6387_v62 }
   0xf   : > { %s6440_s25 = scalar_lea.vmem %s10647_s0, %s6068_s22  ;;  %227 = vst.msk [vmem:[#allocation2] sm:$0xff] %vm226_vm2, %v6387_v62  ;;  %s10247_s14 = scalar_lea.vmem %s10652_s5, %s6068_s22 }
  0x10   : > { %v6070_v2 = vld [vmem:[%s6440_s25] sm:$0xff]  ;;  %v6071_v4 = vld [vmem:[%s6440_s25 + $0x8] sm:$0xff]  ;;  %v6072_v6 = vld [vmem:[%s6440_s25 + $0x10] sm:$0xff]  ;;  %231 = vst.msk [vmem:[#allocation2 + $0x18] sm:$0xff] %vm226_vm2, %v6387_v62 }
  0x11   : > { %v6078_v3 = vld [vmem:[%s6440_s25 + $0x40] sm:$0xff]  ;;  %5902 = vmatmul.msk.bf16.vlgmr.msra.gmra.mxu0 %vm392_vm1, %v6070_v2  ;;  %v6079_v5 = vld [vmem:[%s6440_s25 + $0x48] sm:$0xff]  ;;  %v6080_v7 = vld [vmem:[%s6440_s25 + $0x50] sm:$0xff]  ;;  %235 = vst.msk [vmem:[#allocation2 + $0x1b0] sm:$0xff] %vm226_vm2, %v6387_v62 }
  0x12   : > { %5910 = vmatmul.msk.bf16.vlgmr.msra.gmra.mxu2 %vm392_vm1, %v6078_v3  ;;  %v6073_v8 = vld [vmem:[%s6440_s25 + $0x18] sm:$0xff]  ;;  %v6074_v10 = vld [vmem:[%s6440_s25 + $0x20] sm:$0xff]  ;;  %v6075_v12 = vld [vmem:[%s6440_s25 + $0x28] sm:$0xff]  ;;  %236 = vst.msk [vmem:[#allocation2 + $0x1b8] sm:$0xff] %vm226_vm2, %v6387_v62 }
  0x13   : > { %v6081_v9 = vld [vmem:[%s6440_s25 + $0x58] sm:$0xff]  ;;  %v6082_v11 = vld [vmem:[%s6440_s25 + $0x60] sm:$0xff]  ;;  %v6083_v13 = vld [vmem:[%s6440_s25 + $0x68] sm:$0xff]  ;;  %238 = vst.msk [vmem:[#allocation2 + $0x1c8] sm:$0xff] %vm226_vm2, %v6387_v62 }
  0x14   : > { %v6076_v14 = vld [vmem:[%s6440_s25 + $0x30] sm:$0xff]  ;;  %v6077_v16 = vld [vmem:[%s6440_s25 + $0x38] sm:$0xff]  ;;  %239 = vst.msk [vmem:[#allocation2 + $0x1d0] sm:$0xff] %vm226_vm2, %v6387_v62 }
  0x15   : > { %v6084_v15 = vld [vmem:[%s6440_s25 + $0x70] sm:$0xff]  ;;  %v6085_v17 = vld [vmem:[%s6440_s25 + $0x78] sm:$0xff] }
  0x21   : > { %5903 = vmatmul.msk.bf16.gmra.mxu0 %vm392_vm1, %v6071_v4 }
  0x22   : > { %5911 = vmatmul.msk.bf16.gmra.mxu2 %vm392_vm1, %v6079_v5 }
  0x31   : > { %5904 = vmatmul.msk.bf16.gmra.mxu0 %vm392_vm1, %v6072_v6 }
  0x32   : > { %5912 = vmatmul.msk.bf16.gmra.mxu2 %vm392_vm1, %v6080_v7 }
  0x41   : > { %5905 = vmatmul.msk.bf16.gmra.mxu0 %vm392_vm1, %v6073_v8 }
  0x42   : > { %5913 = vmatmul.msk.bf16.gmra.mxu2 %vm392_vm1, %v6081_v9 }
  0x51   : > { %5906 = vmatmul.msk.bf16.gmra.mxu0 %vm392_vm1, %v6074_v10 }
  0x52   : > { %5914 = vmatmul.msk.bf16.gmra.mxu2 %vm392_vm1, %v6082_v11 }
  0x61   : > { %5907 = vmatmul.msk.bf16.gmra.mxu0 %vm392_vm1, %v6075_v12 }
  0x62   : > { %5915 = vmatmul.msk.bf16.gmra.mxu2 %vm392_vm1, %v6083_v13 }
  0x71   : > { %5908 = vmatmul.msk.bf16.gmra.mxu0 %vm392_vm1, %v6076_v14 }
  0x72   : > { %5916 = vmatmul.msk.bf16.gmra.mxu2 %vm392_vm1, %v6084_v15 }
  0x81   : > { %5909 = vmatmul.msk.bf16.gmra.mxu0 %vm392_vm1, %v6077_v16 }
  0x82   : > { %5917 = vmatmul.msk.bf16.gmra.mxu2 %vm392_vm1, %v6085_v17  ;;  %vm229_vm1 = vcmask 27648  }
  0x83   : > { %230 = vst.msk [vmem:[#allocation2 + $0x10] sm:$0xf] %vm229_vm1, %v6387_v62 }
  0x84   : > { %233 = vst.msk [vmem:[#allocation2 + $0x28] sm:$0xf] %vm229_vm1, %v6387_v62 }
  0x85   : > { %237 = vst.msk [vmem:[#allocation2 + $0x1c0] sm:$0xf] %vm229_vm1, %v6387_v62 }
  0x86   : > { %240 = vst.msk [vmem:[#allocation2 + $0x1d8] sm:$0xf] %vm229_vm1, %v6387_v62 }
  0x8e   : > { %v454_v19 = vpop.f32.mrf.mxu0 }
  0x8f   : > { %v6480_v20 = vadd.f32 %v6477_v18, %v454_v19 }
  0x91   : > { %v5918_v21 = vmul.f32 -1.442695, %v6480_v20 }
  0x93   : > { %6119 = vpow2.f32 %v5918_v21 }
  0x95   : > { %v494_v22 = vpop.f32.mrf.mxu2 }
  0x96   : > { %v6484_v23 = vadd.f32 %v6477_v18, %v494_v22  ;;  %v456_v24 = vpop.f32.mrf.mxu0 }
  0x97   : > { %v6488_v26 = vadd.f32 %v6477_v18, %v456_v24 }
  0x98   : > { %v5934_v25 = vmul.f32 -1.442695, %v6484_v23 }
  0x99   : > { %v6120_v27 = vpop.eup %6119  ;;  %v5919_v28 = vmul.f32 -1.442695, %v6488_v26 }
  0x9a   : > { %6121 = vpow2.f32 %v5934_v25  ;;  %v630_v29 = vadd.f32 1.0, %v6120_v27 }
  0x9b   : > { %6123 = vpow2.f32 %v5919_v28 }
  0x9c   : > { %6125 = vrcp.f32 %v630_v29  ;;  %v671_v40 = vand.u32 2147483647, %v630_v29  ;;  %v673_v41 = vand.u32 2147483648, %v630_v29  ;;  %vm667_vm3 = vweird.f32 %v630_v29 }
  0x9d   : > { %v496_v30 = vpop.f32.mrf.mxu2 }
  0x9e   : > { %v6492_v31 = vadd.f32 %v6477_v18, %v496_v30  ;;  %v459_v32 = vpop.f32.mrf.mxu0  ;;  %vm6502_vm4 = vcmp.eq.f32.partialorder %v671_v40, 8.507059e+37  ;;  %v674_v47 = vor.u32 1.1754944e-38, %v673_v41 }
  0x9f   : > { %v6496_v35 = vadd.f32 %v6477_v18, %v459_v32 }
  0xa0   : > { %v6122_v33 = vpop.eup %6121  ;;  %v5935_v34 = vmul.f32 -1.442695, %v6492_v31 }
  0xa1   : > { %v646_v36 = vadd.f32 1.0, %v6122_v33  ;;  %v6124_v37 = vpop.eup %6123  ;;  %v5920_v38 = vmul.f32 -1.442695, %v6496_v35 }
  0xa2   : > { %6127 = vpow2.f32 %v5935_v34  ;;  %v6126_v39 = vpop.eup %6125  ;;  %v6499_v43 = vadd.f32 1.0, %v6124_v37 }
  0xa3   : > { %6129 = vrcp.f32 %v646_v36  ;;  %v663_v42 = vmul.f32 %v6126_v39, %v630_v29  ;;  %vm668_vm5 = vweird.f32 %v6126_v39  ;;  %v911_v52 = vand.u32 2147483647, %v646_v36 }
  0xa4   : > { %6131 = vpow2.f32 %v5920_v38  ;;  %v913_v55 = vand.u32 2147483648, %v646_v36  ;;  %vm907_vm6 = vweird.f32 %v646_v36  ;;  %v686_v61 = vand.u32 2147483647, %v6499_v43  ;;  %vm669_vm7 = vmor %vm667_vm3, %vm668_vm5 }
  0xa5   : > { %v499_v44 = vpop.f32.mrf.mxu2  ;;  %v664_v45 = vsub.f32 1.0, %v663_v42  ;;  %6133 = vrcp.f32 %v6499_v43  ;;  %v688_v63 = vand.u32 2147483648, %v6499_v43  ;;  %vm6530_vm9 = vcmp.eq.f32.partialorder %v911_v52, 8.507059e+37 }
  0xa6   : > { %v6507_v48 = vadd.f32 %v6477_v18, %v499_v44  ;;  %v461_v49 = vpop.f32.mrf.mxu0  ;;  %v914_v7 = vor.u32 1.1754944e-38, %v913_v55  ;;  %vm682_vm11 = vweird.f32 %v6499_v43  ;;  %vm6551_vm12 = vcmp.eq.f32.partialorder %v686_v61, 8.507059e+37 }
  0xa7   : > { %v665_v51 = vmul.f32 %v6126_v39, %v664_v45  ;;  %v6510_v53 = vadd.f32 %v6477_v18, %v461_v49  ;;  %v689_v16 = vor.u32 1.1754944e-38, %v688_v63 }
  0xa8   : > { %v6128_v50 = vpop.eup %6127  ;;  %v5936_v57 = vmul.f32 -1.442695, %v6507_v48 }
  0xa9   : > { %v6130_v54 = vpop.eup %6129  ;;  %v6512_v56 = vadd.f32 1.0, %v6128_v50  ;;  %v666_v59 = vadd.f32 %v6126_v39, %v665_v51  ;;  %v5921_v0 = vmul.f32 -1.442695, %v6510_v53 }
  0xaa   : > { %v6132_v58 = vpop.eup %6131  ;;  %v903_v60 = vmul.f32 %v6130_v54, %v646_v36  ;;  %vm908_vm8 = vweird.f32 %v6130_v54 }
  0xab   : > { %6135 = vrcp.f32 %v6512_v56  ;;  %v6134_v1 = vpop.eup %6133  ;;  %v670_v2 = vsel %vm669_vm7, %v6126_v39, %v666_v59  ;;  %v6524_v4 = vadd.f32 1.0, %v6132_v58  ;;  %v926_v12 = vand.u32 2147483647, %v6512_v56  ;;  %vm6546_vm10 = vmor %vm907_vm6, %vm908_vm8 }
  0xac   : > { %v904_v3 = vsub.f32 1.0, %v903_v60  ;;  %6137 = vpow2.f32 %v5936_v57  ;;  %v675_v5 = vsel %vm6502_vm4, %v674_v47, %v670_v2  ;;  %v678_v8 = vmul.f32 %v6134_v1, %v6499_v43 }
  0xad   : > { %v501_v9 = vpop.f32.mrf.mxu2  ;;  %v6538_v10 = vmul.f32 %v675_v5, %v6480_v20  ;;  %6139 = vrcp.f32 %v6524_v4  ;;  %vm922_vm13 = vweird.f32 %v6512_v56  ;;  %vm683_vm14 = vweird.f32 %v6134_v1 }
  0xae   : > { %v905_v11 = vmul.f32 %v6130_v54, %v904_v3  ;;  %v679_v14 = vsub.f32 1.0, %v678_v8  ;;  %v464_v17 = vpop.f32.mrf.mxu0  ;;  %6141 = vpow2.f32 %v5921_v0  ;;  %v6561_v20 = vadd.f32 %v6477_v18, %v501_v9  ;;  %vm684_vm0 = vmor %vm682_vm11, %vm683_vm14 }
  0xaf   : > { %1238 = vst.msk [vmem:[#allocation2 + $0x32] sm:$0xff] %vm226_vm2, %v6538_v10  ;;  %v928_v24 = vand.u32 2147483648, %v6512_v56  ;;  %v6565_v25 = vadd.f32 %v6477_v18, %v464_v17  ;;  %vm6572_vm15 = vcmp.eq.f32.partialorder %v926_v12, 8.507059e+37  ;;  %v701_v44 = vand.u32 2147483647, %v6524_v4 }
  0xb0   : > { %v906_v19 = vadd.f32 %v6130_v54, %v905_v11  ;;  %v680_v22 = vmul.f32 %v6134_v1, %v679_v14  ;;  %v5937_v32 = vmul.f32 -1.442695, %v6561_v20  ;;  %v703_v47 = vand.u32 2147483648, %v6524_v4 }
  0xb1   : > { %v6136_v21 = vpop.eup %6135  ;;  %v5922_v37 = vmul.f32 -1.442695, %v6565_v25  ;;  %v1174_v49 = vpack.c.bf16 %v6538_v10, %v6538_v10  ;;  %v929_v51 = vor.u32 1.1754944e-38, %v928_v24  ;;  %vm697_vm4 = vweird.f32 %v6524_v4 }
  0xb2   : > { %v6138_v27 = vpop.eup %6137  ;;  %v910_v28 = vsel %vm6546_vm10, %v6130_v54, %v906_v19  ;;  %v918_v29 = vmul.f32 %v6136_v21, %v6512_v56  ;;  %v681_v34 = vadd.f32 %v6134_v1, %v680_v22  ;;  %6143 = vpow2.f32 %v5937_v32 }
  0xb3   : > { %v915_v33 = vsel %vm6530_vm9, %v914_v7, %v910_v28  ;;  %v6581_v36 = vadd.f32 1.0, %v6138_v27  ;;  %v6584_v38 = vpop.eup %6139  ;;  %vm923_vm3 = vweird.f32 %v6136_v21  ;;  %vm6616_vm7 = vcmp.eq.f32.partialorder %v701_v44, 8.507059e+37  ;;  %1206 = vst.msk [vmem:[#allocation3] sm:$0xf] %vm229_vm1, %v1174_v49 }
  0xb4   : > { %v1158_v39 = vmul.f32 %v915_v33, %v6484_v23  ;;  %v919_v40 = vsub.f32 1.0, %v918_v29  ;;  %v685_v41 = vsel %vm684_vm0, %v6134_v1, %v681_v34  ;;  %v693_v42 = vmul.f32 %v6584_v38, %v6524_v4  ;;  %v6142_v23 = vpop.eup %6141  ;;  %vm924_vm5 = vmor %vm922_vm13, %vm923_vm3 }
  0xb5   : > { %6145 = vrcp.f32 %v6581_v36  ;;  %v504_v45 = vpop.f32.mrf.mxu2  ;;  %v690_v43 = vsel %vm6551_vm12, %v689_v16, %v685_v41  ;;  %v6606_v57 = vadd.f32 1.0, %v6142_v23  ;;  %vm698_vm6 = vweird.f32 %v6584_v38 }
  0xb6   : > { %1254 = vst.msk [vmem:[#allocation2 + $0xf2] sm:$0xff] %vm226_vm2, %v1158_v39  ;;  %v920_v46 = vmul.f32 %v6136_v21, %v919_v40  ;;  %v1143_v50 = vmul.f32 %v690_v43, %v6488_v26  ;;  %v694_v52 = vsub.f32 1.0, %v693_v42  ;;  %v466_v54 = vpop.f32.mrf.mxu0  ;;  %6147 = vpow2.f32 %v5922_v37  ;;  %vm699_vm8 = vmor %vm697_vm4, %vm698_vm6 }
  0xb7   : > { %v1190_v58 = vpack.c.bf16 %v1158_v39, %v1158_v39  ;;  %v704_v0 = vor.u32 1.1754944e-38, %v703_v47  ;;  %6149 = vrcp.f32 %v6606_v57  ;;  %v6629_v5 = vadd.f32 %v6477_v18, %v504_v45 }
  0xb8   : > { %v921_v55 = vadd.f32 %v6136_v21, %v920_v46  ;;  %v1175_v59 = vpack.c.bf16 %v1143_v50, %v1143_v50  ;;  %1239 = vst.msk [vmem:[#allocation2 + $0x3a] sm:$0xff] %vm226_vm2, %v1143_v50  ;;  %v695_v26 = vmul.f32 %v6584_v38, %v694_v52  ;;  %v6144_v60 = vpop.eup %6143  ;;  %vm937_vm9 = vweird.f32 %v6581_v36 }
  0xb9   : > { %v6626_v3 = vadd.f32 1.0, %v6144_v60  ;;  %v941_v8 = vand.u32 2147483647, %v6581_v36  ;;  %v943_v10 = vand.u32 2147483648, %v6581_v36  ;;  %v716_v11 = vand.u32 2147483647, %v6606_v57 }
  0xba   : > { %v925_v61 = vsel %vm924_vm5, %v6136_v21, %v921_v55  ;;  %v696_v2 = vadd.f32 %v6584_v38, %v695_v26  ;;  %1207 = vst.msk [vmem:[#allocation3 + $0x4] sm:$0xf] %vm229_vm1, %v1175_v59  ;;  %v718_v16 = vand.u32 2147483648, %v6606_v57  ;;  %v5938_v19 = vmul.f32 -1.442695, %v6629_v5 }
  0xbb   : > { %v6146_v1 = vpop.eup %6145  ;;  %v930_v56 = vsel %vm6572_vm15, %v929_v51, %v925_v61  ;;  %6151 = vrcp.f32 %v6626_v3  ;;  %1222 = vst.msk [vmem:[#allocation3 + $0x40] sm:$0xf] %vm229_vm1, %v1190_v58  ;;  %vm6652_vm11 = vcmp.eq.f32.partialorder %v941_v8, 8.507059e+37  ;;  %v6657_v28 = vadd.f32 %v6477_v18, %v466_v54 }
  0xbc   : > { %v1159_v6 = vmul.f32 %v930_v56, %v6492_v31  ;;  %v933_v7 = vmul.f32 %v6146_v1, %v6581_v36  ;;  %v700_v9 = vsel %vm699_vm8, %v6584_v38, %v696_v2  ;;  %v6148_v4 = vpop.eup %6147  ;;  %vm938_vm10 = vweird.f32 %v6146_v1 }
  0xbd   : > { %v506_v31 = vpop.f32.mrf.mxu2  ;;  %v705_v13 = vsel %vm6616_vm7, %v704_v0, %v700_v9  ;;  %v6649_v17 = vadd.f32 1.0, %v6148_v4  ;;  %v6150_v22 = vpop.eup %6149  ;;  %vm6663_vm12 = vmor %vm937_vm9, %vm938_vm10  ;;  %v944_v30 = vor.u32 1.1754944e-38, %v943_v10  ;;  %vm712_vm13 = vweird.f32 %v6606_v57 }
  0xbe   : > { %v1191_v12 = vpack.c.bf16 %v1159_v6, %v1159_v6  ;;  %1255 = vst.msk [vmem:[#allocation2 + $0xfa] sm:$0xff] %vm226_vm2, %v1159_v6  ;;  %v934_v14 = vsub.f32 1.0, %v933_v7  ;;  %v1144_v15 = vmul.f32 %v705_v13, %v6496_v35  ;;  %v469_v21 = vpop.f32.mrf.mxu0  ;;  %v708_v32 = vmul.f32 %v6150_v22, %v6606_v57 }
  0xbf   : > { %vm6669_vm14 = vcmp.eq.f32.partialorder %v716_v11, 8.507059e+37  ;;  %6153 = vrcp.f32 %v6649_v17  ;;  %v6675_v37 = vadd.f32 %v6477_v18, %v506_v31  ;;  %v719_v39 = vor.u32 1.1754944e-38, %v718_v16 }
  0xc0   : > { %v935_v24 = vmul.f32 %v6146_v1, %v934_v14  ;;  %1223 = vst.msk [vmem:[#allocation3 + $0x44] sm:$0xf] %vm229_vm1, %v1191_v12  ;;  %v1176_v29 = vpack.c.bf16 %v1144_v15, %v1144_v15  ;;  %v709_v38 = vsub.f32 1.0, %v708_v32  ;;  %6155 = vpow2.f32 %v5938_v19 }
  0xc1   : > { %1240 = vst.msk [vmem:[#allocation2 + $0x4a] sm:$0xff] %vm226_vm2, %v1144_v15  ;;  %v6152_v36 = vpop.eup %6151  ;;  %v5923_v40 = vmul.f32 -1.442695, %v6657_v28  ;;  %vm952_vm15 = vweird.f32 %v6626_v3  ;;  %v956_v44 = vand.u32 2147483647, %v6626_v3  ;;  %vm713_vm0 = vweird.f32 %v6150_v22 }
  0xc2   : > { %v936_v33 = vadd.f32 %v6146_v1, %v935_v24  ;;  %1208 = vst.msk [vmem:[#allocation3 + $0x8] sm:$0xf] %vm229_vm1, %v1176_v29  ;;  %v948_v42 = vmul.f32 %v6152_v36, %v6626_v3  ;;  %v710_v23 = vmul.f32 %v6150_v22, %v709_v38  ;;  %v5939_v49 = vmul.f32 -1.442695, %v6675_v37  ;;  %vm714_vm4 = vmor %vm712_vm13, %vm713_vm0 }
  0xc3   : > { %6157 = vpow2.f32 %v5923_v40  ;;  %v6691_v50 = vadd.f32 %v6477_v18, %v469_v21  ;;  %vm953_vm3 = vweird.f32 %v6152_v36  ;;  %v958_v52 = vand.u32 2147483648, %v6626_v3 }
  0xc4   : > { %v940_v41 = vsel %vm6663_vm12, %v6146_v1, %v936_v33  ;;  %v949_v47 = vsub.f32 1.0, %v948_v42  ;;  %v711_v51 = vadd.f32 %v6150_v22, %v710_v23  ;;  %6159 = vpow2.f32 %v5939_v49  ;;  %vm954_vm7 = vmor %vm952_vm15, %vm953_vm3 }
  0xc5   : > { %v945_v45 = vsel %vm6652_vm11, %v944_v30, %v940_v41  ;;  %v509_v43 = vpop.f32.mrf.mxu2  ;;  %v6697_v58 = vpop.eup %6153  ;;  %v5924_v59 = vmul.f32 -1.442695, %v6691_v50  ;;  %vm242_vm5 = vcmask 25600   ;;  %vm6704_vm6 = vcmp.eq.f32.partialorder %v956_v44, 8.507059e+37 }
  0xc6   : > { %v6687_v46 = vmul.f32 %v945_v45, %v6507_v48  ;;  %v6695_v54 = vadd.f32 %v6477_v18, %v509_v43  ;;  %v471_v55 = vpop.f32.mrf.mxu0  ;;  %v950_v48 = vmul.f32 %v6152_v36, %v949_v47  ;;  %v6156_v26 = vpop.eup %6155  ;;  %v715_v60 = vsel %vm714_vm4, %v6150_v22, %v711_v51  ;;  %259 = vst.msk [vmem:[#allocation2 + $0x42] sm:$0x3] %vm242_vm5, %v6387_v62 }
  0xc7   : > { %v723_v63 = vmul.f32 %v6697_v58, %v6649_v17  ;;  %v720_v57 = vsel %vm6669_vm14, %v719_v39, %v715_v60  ;;  %v6715_v56 = vadd.f32 1.0, %v6156_v26  ;;  %6161 = vpow2.f32 %v5924_v59  ;;  %260 = vst.msk [vmem:[#allocation2 + $0x5a] sm:$0x3] %vm242_vm5, %v6387_v62 }
  0xc8   : > { %1256 = vst.msk [vmem:[#allocation2 + $0x10a] sm:$0xff] %vm226_vm2, %v6687_v46  ;;  %v5940_v0 = vmul.f32 -1.442695, %v6695_v54  ;;  %v951_v1 = vadd.f32 %v6152_v36, %v950_v48  ;;  %v6720_v6 = vmul.f32 %v720_v57, %v6510_v53  ;;  %v959_v7 = vor.u32 1.1754944e-38, %v958_v52 }
  0xc9   : > { %v6158_v2 = vpop.eup %6157  ;;  %v724_v8 = vsub.f32 1.0, %v723_v63  ;;  %261 = vst.msk [vmem:[#allocation2 + $0x72] sm:$0x3] %vm242_vm5, %v6387_v62  ;;  %v731_v10 = vand.u32 2147483647, %v6649_v17  ;;  %v733_v11 = vand.u32 2147483648, %v6649_v17  ;;  %vm728_vm8 = vweird.f32 %v6697_v58 }
  0xca   : > { %6163 = vpow2.f32 %v5940_v0  ;;  %v955_v9 = vsel %vm954_vm7, %v6152_v36, %v951_v1  ;;  %243 = vst.msk [vmem:[#allocation2 + $0x30] sm:$0x3] %vm242_vm5, %v6387_v62  ;;  %v6739_v31 = vadd.f32 %v6477_v18, %v471_v55  ;;  %v6160_v12 = vpop.eup %6159  ;;  %v971_v14 = vand.u32 2147483647, %v6715_v56 }
  0xcb   : > { %6165 = vrcp.f32 %v6715_v56  ;;  %1241 = vst.msk [vmem:[#allocation2 + $0x52] sm:$0xff] %vm226_vm2, %v6720_v6  ;;  %v960_v53 = vsel %vm6704_vm6, %v959_v7, %v955_v9  ;;  %v725_v3 = vmul.f32 %v6697_v58, %v724_v8  ;;  %v6745_v15 = vadd.f32 1.0, %v6158_v2 }
  0xcc   : > { %v6742_v13 = vmul.f32 %v960_v53, %v6561_v20  ;;  %244 = vst.msk [vmem:[#allocation2 + $0x48] sm:$0x3] %vm242_vm5, %v6387_v62  ;;  %vm727_vm9 = vweird.f32 %v6649_v17  ;;  %v973_v19 = vand.u32 2147483648, %v6715_v56  ;;  %v6752_v21 = vadd.f32 1.0, %v6160_v12 }
  0xcd   : > { %v511_v4 = vpop.f32.mrf.mxu2  ;;  %v726_v16 = vadd.f32 %v6697_v58, %v725_v3  ;;  %245 = vst.msk [vmem:[#allocation2 + $0x60] sm:$0x3] %vm242_vm5, %v6387_v62  ;;  %v6162_v20 = vpop.eup %6161  ;;  %v1192_v24 = vpack.c.bf16 %v6687_v46, %v6687_v46  ;;  %vm729_vm10 = vmor %vm727_vm9, %vm728_vm8  ;;  %vm732_vm11 = vcmp.eq.f32.partialorder %v731_v10, 8.507059e+37  ;;  %v734_v17 = vor.u32 1.1754944e-38, %v733_v11 }
  0xce   : > { %v6754_v22 = vpop.f32.mrf.mxu0  ;;  %1257 = vst.msk [vmem:[#allocation2 + $0x112] sm:$0xff] %vm226_vm2, %v6742_v13  ;;  %6167 = vrcp.f32 %v6745_v15  ;;  %vm967_vm12 = vweird.f32 %v6715_v56  ;;  %v5925_v35 = vmul.f32 -1.442695, %v6739_v31  ;;  %v1177_v32 = vpack.c.bf16 %v6720_v6, %v6720_v6 }
  0xcf   : > { %v730_v29 = vsel %vm729_vm10, %v6697_v58, %v726_v16  ;;  %6169 = vrcp.f32 %v6752_v21  ;;  %246 = vst.msk [vmem:[#allocation2 + $0x78] sm:$0x3] %vm242_vm5, %v6387_v62  ;;  %vm6773_vm13 = vcmp.eq.f32.partialorder %v971_v14, 8.507059e+37  ;;  %v6778_v36 = vadd.f32 %v6477_v18, %v511_v4 }
  0xd0   : > { %v6164_v27 = vpop.eup %6163  ;;  %v735_v33 = vsel %vm732_vm11, %v734_v17, %v730_v29  ;;  %247 = vst.msk [vmem:[#allocation2 + $0x90] sm:$0x3] %vm242_vm5, %v6387_v62  ;;  %v974_v40 = vor.u32 1.1754944e-38, %v973_v19  ;;  %v746_v41 = vand.u32 2147483647, %v6745_v15  ;;  %v748_v42 = vand.u32 2147483648, %v6745_v15 }
  0xd1   : > { %v6166_v30 = vpop.eup %6165  ;;  %v6783_v38 = vmul.f32 %v735_v33, %v6565_v25  ;;  %248 = vst.msk [vmem:[#allocation2 + $0xa8] sm:$0x3] %vm242_vm5, %v6387_v62  ;;  %v986_v44 = vand.u32 2147483647, %v6752_v21  ;;  %v6791_v45 = vadd.f32 1.0, %v6162_v20  ;;  %v6793_v23 = vadd.f32 1.0, %v6164_v27 }
  0xd2   : > { %v963_v39 = vmul.f32 %v6166_v30, %v6715_v56  ;;  %vm968_vm14 = vweird.f32 %v6166_v30  ;;  %v988_v43 = vand.u32 2147483648, %v6752_v21  ;;  %6171 = vpow2.f32 %v5925_v35  ;;  %249 = vst.msk [vmem:[#allocation2 + $0xc0] sm:$0x3] %vm242_vm5, %v6387_v62 }
  0xd3   : > { %1242 = vst.msk [vmem:[#allocation2 + $0x62] sm:$0xff] %vm226_vm2, %v6783_v38  ;;  %v1193_v51 = vpack.c.bf16 %v6742_v13, %v6742_v13  ;;  %vm742_vm15 = vweird.f32 %v6745_v15  ;;  %6173 = vrcp.f32 %v6791_v45  ;;  %v5941_v52 = vmul.f32 -1.442695, %v6778_v36  ;;  %vm6822_vm3 = vmor %vm967_vm12, %vm968_vm14 }
  0xd4   : > { %v964_v25 = vsub.f32 1.0, %v963_v39  ;;  %v6800_v49 = vpop.eup %6167  ;;  %vm982_vm0 = vweird.f32 %v6752_v21  ;;  %6175 = vrcp.f32 %v6793_v23  ;;  %250 = vst.msk [vmem:[#allocation2 + $0xd8] sm:$0x3] %vm242_vm5, %v6387_v62  ;;  %vm6826_vm4 = vcmp.eq.f32.partialorder %v746_v41, 8.507059e+37 }
  0xd5   : > { %v6798_v47 = vpop.f32.mrf.mxu2  ;;  %v6809_v55 = vpop.eup %6169  ;;  %v738_v48 = vmul.f32 %v6800_v49, %v6745_v15  ;;  %v749_v61 = vor.u32 1.1754944e-38, %v748_v42  ;;  %v763_v0 = vand.u32 2147483648, %v6791_v45  ;;  %251 = vst.msk [vmem:[#allocation2 + $0xf0] sm:$0x3] %vm242_vm5, %v6387_v62  ;;  %vm6835_vm6 = vcmp.eq.f32.partialorder %v986_v44, 8.507059e+37 }
  0xd6   : > { %v965_v58 = vmul.f32 %v6166_v30, %v964_v25  ;;  %v6815_v59 = vpop.f32.mrf.mxu0  ;;  %v978_v63 = vmul.f32 %v6809_v55, %v6752_v21  ;;  %v989_v2 = vor.u32 1.1754944e-38, %v988_v43  ;;  %252 = vst.msk [vmem:[#allocation2 + $0x108] sm:$0x3] %vm242_vm5, %v6387_v62  ;;  %v1178_v7 = vpack.c.bf16 %v6783_v38, %v6783_v38 }
  0xd7   : > { %v739_v1 = vsub.f32 1.0, %v738_v48  ;;  %v761_v9 = vand.u32 2147483647, %v6791_v45  ;;  %6177 = vpow2.f32 %v5941_v52  ;;  %253 = vst.msk [vmem:[#allocation2 + $0x120] sm:$0x3] %vm242_vm5, %v6387_v62  ;;  %vm743_vm7 = vweird.f32 %v6800_v49 }
  0xd8   : > { %v966_v57 = vadd.f32 %v6166_v30, %v965_v58  ;;  %v979_v8 = vsub.f32 1.0, %v978_v63  ;;  %v6172_v10 = vpop.eup %6171  ;;  %vm983_vm8 = vweird.f32 %v6809_v55  ;;  %vm757_vm9 = vweird.f32 %v6791_v45  ;;  %254 = vst.msk [vmem:[#allocation2 + $0x138] sm:$0x3] %vm242_vm5, %v6387_v62  ;;  %vm744_vm11 = vmor %vm742_vm15, %vm743_vm7 }
  0xd9   : > { %v740_v53 = vmul.f32 %v6800_v49, %v739_v1  ;;  %v6854_v3 = vpop.eup %6173  ;;  %v764_v14 = vor.u32 1.1754944e-38, %v763_v0  ;;  %v6859_v16 = vadd.f32 1.0, %v6172_v10  ;;  %255 = vst.msk [vmem:[#allocation2 + $0x150] sm:$0x3] %vm242_vm5, %v6387_v62  ;;  %vm997_vm10 = vweird.f32 %v6793_v23  ;;  %vm984_vm12 = vmor %vm982_vm0, %vm983_vm8 }
  0xda   : > { %v970_v11 = vsel %vm6822_vm3, %v6166_v30, %v966_v57  ;;  %v980_v12 = vmul.f32 %v6809_v55, %v979_v8  ;;  %v6863_v19 = vpop.eup %6175  ;;  %v753_v27 = vmul.f32 %v6854_v3, %v6791_v45  ;;  %256 = vst.msk [vmem:[#allocation2 + $0x168] sm:$0x3] %vm242_vm5, %v6387_v62  ;;  %v1001_v30 = vand.u32 2147483647, %v6793_v23 }
  0xdb   : > { %v975_v4 = vsel %vm6773_vm13, %v974_v40, %v970_v11  ;;  %v741_v17 = vadd.f32 %v6800_v49, %v740_v53  ;;  %v993_v35 = vmul.f32 %v6863_v19, %v6793_v23  ;;  %6179 = vrcp.f32 %v6859_v16  ;;  %257 = vst.msk [vmem:[#allocation2 + $0x180] sm:$0x3] %vm242_vm5, %v6387_v62 }
  0xdc   : > { %v6866_v20 = vmul.f32 %v975_v4, %v6629_v5  ;;  %v981_v5 = vadd.f32 %v6809_v55, %v980_v12  ;;  %v754_v15 = vsub.f32 1.0, %v753_v27  ;;  %v1003_v34 = vand.u32 2147483648, %v6793_v23  ;;  %258 = vst.msk [vmem:[#allocation2 + $0x198] sm:$0x3] %vm242_vm5, %v6387_v62 }
  0xdd   : > { %v6872_v29 = vpop.f32.mrf.mxu2  ;;  %v745_v33 = vsel %vm744_vm11, %v6800_v49, %v741_v17  ;;  %v6897_v39 = vadd.f32 %v6477_v18, %v6754_v22  ;;  %v6178_v41 = vpop.eup %6177  ;;  %v994_v25 = vsub.f32 1.0, %v993_v35  ;;  %vm998_vm13 = vweird.f32 %v6863_v19  ;;  %262 = vst.msk [vmem:[#allocation2 + $0x8a] sm:$0x3] %vm242_vm5, %v6387_v62 }
  0xde   : > { %1258 = vst.msk [vmem:[#allocation2 + $0x122] sm:$0xff] %vm226_vm2, %v6866_v20  ;;  %v479_v40 = vpop.f32.mrf.mxu0  ;;  %v750_v42 = vsel %vm6826_vm4, %v749_v61, %v745_v33  ;;  %v985_v44 = vsel %vm984_vm12, %v6809_v55, %v981_v5  ;;  %v755_v43 = vmul.f32 %v6854_v3, %v754_v15  ;;  %vm758_vm14 = vweird.f32 %v6854_v3  ;;  %vm6931_vm0 = vmor %vm997_vm10, %vm998_vm13 }
  0xdf   : > { %v6906_v21 = vmul.f32 %v750_v42, %v6657_v28  ;;  %v990_v22 = vsel %vm6835_vm6, %v989_v2, %v985_v44  ;;  %v995_v52 = vmul.f32 %v6863_v19, %v994_v25  ;;  %vm6918_vm15 = vcmp.eq.f32.partialorder %v1001_v30, 8.507059e+37  ;;  %263 = vst.msk [vmem:[#allocation2 + $0xa2] sm:$0x3] %vm242_vm5, %v6387_v62  ;;  %vm759_vm3 = vmor %vm757_vm9, %vm758_vm14 }
  0xe0   : > { %v6915_v49 = vmul.f32 %v990_v22, %v6675_v37  ;;  %v6922_v28 = vadd.f32 1.0, %v6178_v41  ;;  %v756_v58 = vadd.f32 %v6854_v3, %v755_v43  ;;  %v1004_v48 = vor.u32 1.1754944e-38, %v1003_v34  ;;  %264 = vst.msk [vmem:[#allocation2 + $0xba] sm:$0x3] %vm242_vm5, %v6387_v62 }
  0xe1   : > { %1243 = vst.msk [vmem:[#allocation2 + $0x6a] sm:$0xff] %vm226_vm2, %v6906_v21  ;;  %v776_v26 = vand.u32 2147483647, %v6859_v16  ;;  %v5926_v60 = vmul.f32 -1.442695, %v6897_v39  ;;  %v6180_v61 = vpop.eup %6179  ;;  %v996_v23 = vadd.f32 %v6863_v19, %v995_v52  ;;  %v778_v63 = vand.u32 2147483648, %v6859_v16 }
  0xe2   : > { %1259 = vst.msk [vmem:[#allocation2 + $0x12a] sm:$0xff] %vm226_vm2, %v6915_v49  ;;  %6181 = vrcp.f32 %v6922_v28  ;;  %v6948_v0 = vadd.f32 %v6477_v18, %v6798_v47  ;;  %v1194_v57 = vpack.c.bf16 %v6866_v20, %v6866_v20  ;;  %v760_v1 = vsel %vm759_vm3, %v6854_v3, %v756_v58 }
  0xe3   : > { %vm762_vm4 = vcmp.eq.f32.partialorder %v761_v9, 8.507059e+37  ;;  %v768_v56 = vmul.f32 %v6180_v61, %v6859_v16  ;;  %v1000_v47 = vsel %vm6931_vm0, %v6863_v19, %v996_v23  ;;  %vm772_vm6 = vweird.f32 %v6859_v16  ;;  %265 = vst.msk [vmem:[#allocation2 + $0xd2] sm:$0x3] %vm242_vm5, %v6387_v62 }
  0xe4   : > { %v765_v8 = vsel %vm762_vm4, %v764_v14, %v760_v1  ;;  %6183 = vpow2.f32 %v5926_v60  ;;  %v1005_v9 = vsel %vm6918_vm15, %v1004_v48, %v1000_v47  ;;  %vm6969_vm7 = vcmp.eq.f32.partialorder %v776_v26, 8.507059e+37  ;;  %266 = vst.msk [vmem:[#allocation2 + $0xea] sm:$0x3] %vm242_vm5, %v6387_v62 }
  0xe5   : > { %v519_v2 = vpop.f32.mrf.mxu2  ;;  %v6965_v45 = vmul.f32 %v765_v8, %v6691_v50  ;;  %v769_v10 = vsub.f32 1.0, %v768_v56  ;;  %v6976_v3 = vmul.f32 %v1005_v9, %v6695_v54  ;;  %v779_v4 = vor.u32 1.1754944e-38, %v778_v63  ;;  %267 = vst.msk [vmem:[#allocation2 + $0x102] sm:$0x3] %vm242_vm5, %v6387_v62 }
  0xe6   : > { %v481_v53 = vpop.f32.mrf.mxu0  ;;  %v5942_v12 = vmul.f32 -1.442695, %v6948_v0  ;;  %v6981_v50 = vadd.f32 %v6477_v18, %v6815_v59  ;;  %vm773_vm8 = vweird.f32 %v6180_v61  ;;  %v6989_v19 = vadd.f32 %v6477_v18, %v6872_v29  ;;  %268 = vst.msk [vmem:[#allocation2 + $0x11a] sm:$0x3] %vm242_vm5, %v6387_v62 }
  0xe7   : > { %1244 = vst.msk [vmem:[#allocation2 + $0x7a] sm:$0xff] %vm226_vm2, %v6965_v45  ;;  %v770_v14 = vmul.f32 %v6180_v61, %v769_v10  ;;  %v6992_v54 = vadd.f32 %v6477_v18, %v479_v40  ;;  %vm1012_vm9 = vweird.f32 %v6922_v28  ;;  %v6999_v27 = vadd.f32 %v6477_v18, %v519_v2  ;;  %vm774_vm10 = vmor %vm772_vm6, %vm773_vm8 }
  0xe8   : > { %v6182_v17 = vpop.eup %6181  ;;  %1260 = vst.msk [vmem:[#allocation2 + $0x13a] sm:$0xff] %vm226_vm2, %v6976_v3  ;;  %6185 = vpow2.f32 %v5942_v12  ;;  %v5927_v59 = vmul.f32 -1.442695, %v6981_v50  ;;  %v1016_v29 = vand.u32 2147483647, %v6922_v28  ;;  %v1018_v15 = vand.u32 2147483648, %v6922_v28 }
  0xe9   : > { %v771_v5 = vadd.f32 %v6180_v61, %v770_v14  ;;  %v1008_v35 = vmul.f32 %v6182_v17, %v6922_v28  ;;  %v5943_v30 = vmul.f32 -1.442695, %v6989_v19  ;;  %v5928_v34 = vmul.f32 -1.442695, %v6992_v54  ;;  %269 = vst.msk [vmem:[#allocation2 + $0x132] sm:$0x3] %vm242_vm5, %v6387_v62 }
  0xea   : > { %v6184_v33 = vpop.eup %6183  ;;  %6187 = vpow2.f32 %v5927_v59  ;;  %v7012_v40 = vadd.f32 %v6477_v18, %v481_v53  ;;  %270 = vst.msk [vmem:[#allocation2 + $0x14a] sm:$0x3] %vm242_vm5, %v6387_v62  ;;  %vm1013_vm11 = vweird.f32 %v6182_v17  ;;  %v5944_v22 = vmul.f32 -1.442695, %v6999_v27 }
  0xeb   : > { %v775_v41 = vsel %vm774_vm10, %v6180_v61, %v771_v5  ;;  %v1009_v42 = vsub.f32 1.0, %v1008_v35  ;;  %v7016_v44 = vadd.f32 1.0, %v6184_v33  ;;  %6189 = vpow2.f32 %v5943_v30  ;;  %271 = vst.msk [vmem:[#allocation2 + $0x162] sm:$0x3] %vm242_vm5, %v6387_v62  ;;  %vm1014_vm13 = vmor %vm1012_vm9, %vm1013_vm11 }
  0xec   : > { %v780_v16 = vsel %vm6969_vm7, %v779_v4, %v775_v41  ;;  %6191 = vpow2.f32 %v5928_v34  ;;  %272 = vst.msk [vmem:[#allocation2 + $0x17a] sm:$0x3] %vm242_vm5, %v6387_v62  ;;  %v1179_v37 = vpack.c.bf16 %v6906_v21, %v6906_v21  ;;  %v1195_v48 = vpack.c.bf16 %v6915_v49, %v6915_v49 }
  0xed   : > { %v521_v25 = vpop.f32.mrf.mxu2  ;;  %v7026_v43 = vmul.f32 %v780_v16, %v6739_v31  ;;  %v1010_v52 = vmul.f32 %v6182_v17, %v1009_v42  ;;  %6193 = vrcp.f32 %v7016_v44  ;;  %vm7038_vm12 = vcmp.eq.f32.partialorder %v1016_v29, 8.507059e+37  ;;  %273 = vst.msk [vmem:[#allocation2 + $0x192] sm:$0x3] %vm242_vm5, %v6387_v62 }
  0xee   : > { %v7030_v55 = vadd.f32 %v6477_v18, %v521_v25  ;;  %v6186_v58 = vpop.eup %6185  ;;  %v1019_v31 = vor.u32 1.1754944e-38, %v1018_v15  ;;  %v484_v60 = vpop.f32.mrf.mxu0  ;;  %v1180_v61 = vpack.c.bf16 %v6965_v45, %v6965_v45  ;;  %v5929_v21 = vmul.f32 -1.442695, %v7012_v40  ;;  %274 = vst.msk [vmem:[#allocation2 + $0x1aa] sm:$0x3] %vm242_vm5, %v6387_v62 }
  0xef   : > { %1245 = vst.msk [vmem:[#allocation2 + $0x82] sm:$0xff] %vm226_vm2, %v7026_v43  ;;  %v1011_v23 = vadd.f32 %v6182_v17, %v1010_v52  ;;  %v7046_v63 = vadd.f32 1.0, %v6186_v58  ;;  %v1196_v56 = vpack.c.bf16 %v6976_v3, %v6976_v3  ;;  %v791_v2 = vand.u32 2147483647, %v7016_v44 }
  0xf0   : > { %v6188_v1 = vpop.eup %6187  ;;  %v793_v8 = vand.u32 2147483648, %v7016_v44  ;;  %6195 = vpow2.f32 %v5944_v22  ;;  %v5945_v9 = vmul.f32 -1.442695, %v7030_v55  ;;  %v7061_v10 = vadd.f32 %v6477_v18, %v484_v60  ;;  %1209 = vst.msk [vmem:[#allocation3 + $0xc] sm:$0xf] %vm229_vm1, %v1177_v32 }
  0xf1   : > { %v6190_v47 = vpop.eup %6189  ;;  %v1015_v45 = vsel %vm1014_vm13, %v6182_v17, %v1011_v23  ;;  %6197 = vrcp.f32 %v7046_v63  ;;  %v1031_v53 = vand.u32 2147483647, %v7046_v63  ;;  %v7068_v4 = vadd.f32 1.0, %v6188_v1  ;;  %1210 = vst.msk [vmem:[#allocation3 + $0x10] sm:$0xf] %vm229_vm1, %v1178_v7 }
  0xf2   : > { %v6192_v28 = vpop.eup %6191  ;;  %v1020_v11 = vsel %vm7038_vm12, %v1019_v31, %v1015_v45  ;;  %v7070_v12 = vadd.f32 1.0, %v6190_v47  ;;  %v1181_v14 = vpack.c.bf16 %v7026_v43, %v7026_v43  ;;  %6199 = vpow2.f32 %v5929_v21  ;;  %1211 = vst.msk [vmem:[#allocation3 + $0x14] sm:$0xf] %vm229_vm1, %v1179_v37  ;;  %v7253_v1 = vld [vmem:[#allocation2 + $0x40] sm:$0xf] }
  0xf3   : > { %v6194_v18 = vpop.eup %6193  ;;  %v7079_v62 = vmul.f32 %v1020_v11, %v6778_v36  ;;  %v7081_v17 = vadd.f32 1.0, %v6192_v28  ;;  %vm787_vm5 = vweird.f32 %v7016_v44  ;;  %v1033_v6 = vand.u32 2147483648, %v7046_v63  ;;  %1212 = vst.msk [vmem:[#allocation3 + $0x18] sm:$0xf] %vm229_vm1, %v1180_v61 }
  0xf4   : > { %v783_v59 = vmul.f32 %v6194_v18, %v7016_v44  ;;  %6201 = vrcp.f32 %v7068_v4  ;;  %vm7094_vm14 = vcmp.eq.f32.partialorder %v791_v2, 8.507059e+37  ;;  %v794_v36 = vor.u32 1.1754944e-38, %v793_v8  ;;  %1213 = vst.msk [vmem:[#allocation3 + $0x1c] sm:$0xf] %vm229_vm1, %v1181_v14 }
  0xf5   : > { %1261 = vst.msk [vmem:[#allocation2 + $0x142] sm:$0xff] %vm226_vm2, %v7079_v62  ;;  %vm1027_vm15 = vweird.f32 %v7046_v63  ;;  %6203 = vpow2.f32 %v5945_v9  ;;  %vm7099_vm0 = vcmp.eq.f32.partialorder %v1031_v53, 8.507059e+37  ;;  %v7105_v35 = vmul.f32 -1.442695, %v7061_v10 }
  0xf6   : > { %v6196_v38 = vpop.eup %6195  ;;  %v784_v7 = vsub.f32 1.0, %v783_v59  ;;  %6205 = vrcp.f32 %v7070_v12  ;;  %v806_v30 = vand.u32 2147483647, %v7068_v4  ;;  %v808_v33 = vand.u32 2147483648, %v7068_v4  ;;  %1224 = vst.msk [vmem:[#allocation3 + $0x48] sm:$0xf] %vm229_vm1, %v1192_v24 }
  0xf7   : > { %v6198_v29 = vpop.eup %6197  ;;  %v1048_v15 = vand.u32 2147483648, %v7070_v12  ;;  %6207 = vrcp.f32 %v7081_v17  ;;  %vm788_vm3 = vweird.f32 %v6194_v18  ;;  %v1034_v42 = vor.u32 1.1754944e-38, %v1033_v6  ;;  %1225 = vst.msk [vmem:[#allocation3 + $0x4c] sm:$0xf] %vm229_vm1, %v1193_v51 }
  0xf8   : > { %v785_v34 = vmul.f32 %v6194_v18, %v784_v7  ;;  %v1023_v41 = vmul.f32 %v6198_v29, %v7046_v63  ;;  %v6200_v25 = vpop.eup %6199  ;;  %v1197_v16 = vpack.c.bf16 %v7079_v62, %v7079_v62  ;;  %vm802_vm4 = vweird.f32 %v7068_v4  ;;  %1226 = vst.msk [vmem:[#allocation3 + $0x50] sm:$0xf] %vm229_vm1, %v1194_v57  ;;  %vm789_vm8 = vmor %vm787_vm5, %vm788_vm3 }
  0xf9   : > { %vm1042_vm6 = vweird.f32 %v7070_v12  ;;  %v1046_v22 = vand.u32 2147483647, %v7070_v12  ;;  %vm1028_vm7 = vweird.f32 %v6198_v29  ;;  %v7127_v24 = vadd.f32 1.0, %v6196_v38  ;;  %1227 = vst.msk [vmem:[#allocation3 + $0x54] sm:$0xf] %vm229_vm1, %v1195_v48 }
  0xfa   : > { %v6202_v43 = vpop.eup %6201  ;;  %v786_v52 = vadd.f32 %v6194_v18, %v785_v34  ;;  %v1024_v46 = vsub.f32 1.0, %v1023_v41  ;;  %vm7139_vm9 = vcmp.eq.f32.partialorder %v806_v30, 8.507059e+37  ;;  %v809_v37 = vor.u32 1.1754944e-38, %v808_v33  ;;  %1228 = vst.msk [vmem:[#allocation3 + $0x58] sm:$0xf] %vm229_vm1, %v1196_v56  ;;  %vm7160_vm10 = vmor %vm1027_vm15, %vm1028_vm7 }
  0xfb   : > { %v7133_v58 = vpop.eup %6203  ;;  %v798_v13 = vmul.f32 %v6202_v43, %v7068_v4  ;;  %v1049_v26 = vor.u32 1.1754944e-38, %v1048_v15  ;;  %v823_v31 = vand.u32 2147483648, %v7081_v17  ;;  %6209 = vrcp.f32 %v7127_v24  ;;  %1229 = vst.msk [vmem:[#allocation3 + $0x5c] sm:$0xf] %vm229_vm1, %v1197_v16 }
  0xfc   : > { %v6206_v20 = vpop.eup %6205  ;;  %v790_v57 = vsel %vm789_vm8, %v6194_v18, %v786_v52  ;;  %v1025_v60 = vmul.f32 %v6198_v29, %v1024_v46  ;;  %v7149_v44 = vadd.f32 1.0, %v6200_v25  ;;  %vm7165_vm11 = vcmp.eq.f32.partialorder %v1046_v22, 8.507059e+37 }
  0xfd   : > { %v6208_v61 = vpop.eup %6207  ;;  %v795_v23 = vsel %vm7094_vm14, %v794_v36, %v790_v57  ;;  %v799_v48 = vsub.f32 1.0, %v798_v13  ;;  %v1038_v21 = vmul.f32 %v6206_v20, %v7070_v12  ;;  %vm817_vm12 = vweird.f32 %v7081_v17 }
  0xfe   : > { %v1150_v3 = vmul.f32 %v795_v23, %v6897_v39  ;;  %v1026_v56 = vadd.f32 %v6198_v29, %v1025_v60  ;;  %v813_v63 = vmul.f32 %v6208_v61, %v7081_v17  ;;  %v821_v2 = vand.u32 2147483647, %v7081_v17  ;;  %v7243_v23 = vld [vmem:[#allocation2 + $0x10] sm:$0xf] }
  0xff   : > { %v800_v8 = vmul.f32 %v6202_v43, %v799_v48  ;;  %vm803_vm13 = vweird.f32 %v6202_v43  ;;  %v1039_v47 = vsub.f32 1.0, %v1038_v21  ;;  %v824_v45 = vor.u32 1.1754944e-38, %v823_v31  ;;  %v7251_v21 = vld [vmem:[#allocation2 + $0x28] sm:$0xf] }
 0x100   : > { %v1182_v9 = vpack.c.bf16 %v1150_v3, %v1150_v3  ;;  %1246 = vst.msk [vmem:[#allocation2 + $0x92] sm:$0xff] %vm226_vm2, %v1150_v3  ;;  %v1030_v28 = vsel %vm7160_vm10, %v6198_v29, %v1026_v56  ;;  %v814_v11 = vsub.f32 1.0, %v813_v63  ;;  %6211 = vrcp.f32 %v7149_v44  ;;  %vm804_vm14 = vmor %vm802_vm4, %vm803_vm13 }
 0x101   : > { %v1035_v39 = vsel %vm7099_vm0, %v1034_v42, %v1030_v28  ;;  %v801_v53 = vadd.f32 %v6202_v43, %v800_v8  ;;  %v1040_v18 = vmul.f32 %v6206_v20, %v1039_v47  ;;  %vm1043_vm5 = vweird.f32 %v6206_v20  ;;  %v6210_v14 = vpop.eup %6209  ;;  %v7263_v8 = vld [vmem:[#allocation2 + $0x20] sm:$0xff] }
 0x102   : > { %v1166_v62 = vmul.f32 %v1035_v39, %v6948_v0  ;;  %v815_v59 = vmul.f32 %v6208_v61, %v814_v11  ;;  %vm818_vm15 = vweird.f32 %v6208_v61  ;;  %vm1057_vm3 = vweird.f32 %v7127_v24  ;;  %1214 = vst.msk [vmem:[#allocation3 + $0x20] sm:$0xf] %vm229_vm1, %v1182_v9  ;;  %vm1044_vm0 = vmor %vm1042_vm6, %vm1043_vm5  ;;  %v7266_v9 = vld [vmem:[#allocation2 + $0x38] sm:$0xff] }
 0x103   : > { %v805_v6 = vsel %vm804_vm14, %v6202_v43, %v801_v53  ;;  %v1041_v32 = vadd.f32 %v6206_v20, %v1040_v18  ;;  %v1053_v36 = vmul.f32 %v6210_v14, %v7127_v24  ;;  %v1061_v38 = vand.u32 2147483647, %v7127_v24  ;;  %vm819_vm4 = vmor %vm817_vm12, %vm818_vm15  ;;  %v7278_v18 = vld [vmem:[#allocation2 + $0x50] sm:$0xff] }
 0x104   : > { %v1198_v7 = vpack.c.bf16 %v1166_v62, %v1166_v62  ;;  %1262 = vst.msk [vmem:[#allocation2 + $0x152] sm:$0xff] %vm226_vm2, %v1166_v62  ;;  %v810_v0 = vsel %vm7139_vm9, %v809_v37, %v805_v6  ;;  %v816_v4 = vadd.f32 %v6208_v61, %v815_v59  ;;  %v1063_v5 = vand.u32 2147483648, %v7127_v24  ;;  %v7286_v6 = vld [vmem:[#allocation2 + $0x58] sm:$0xf] }
 0x105   : > { %v1151_v29 = vmul.f32 %v810_v0, %v6981_v50  ;;  %v1045_v30 = vsel %vm1044_vm0, %v6206_v20, %v1041_v32  ;;  %v1054_v33 = vsub.f32 1.0, %v1053_v36  ;;  %vm1058_vm7 = vweird.f32 %v6210_v14  ;;  %v7233_v20 = vld [vmem:[%s10649_s2] ss:$0 sm:$0xff]  ;;  %v7290_v32 = vld [vmem:[#allocation2 + $0x70] sm:$0xf] }
 0x106   : > { %v7198_v15 = vpop.eup %6211  ;;  %v1050_v34 = vsel %vm7165_vm11, %v1049_v26, %v1045_v30  ;;  %v820_v41 = vsel %vm819_vm4, %v6208_v61, %v816_v4  ;;  %vm822_vm8 = vcmp.eq.f32.partialorder %v821_v2, 8.507059e+37  ;;  %v7203_v12 = vadd.f32 1.0, %v7133_v58  ;;  %1230 = vst.msk [vmem:[#allocation3 + $0x60] sm:$0xf] %vm229_vm1, %v1198_v7  ;;  %vm7211_vm6 = vmor %vm1057_vm3, %vm1058_vm7  ;;  %v524_v58 = vpop.f32.mrf.mxu2  ;;  %v7241_v61 = vld [vmem:[#allocation2 + $0x8] sm:$0xff] }
 0x107   : > { %v1183_v50 = vpack.c.bf16 %v1151_v29, %v1151_v29  ;;  %1247 = vst.msk [vmem:[#allocation2 + $0x9a] sm:$0xff] %vm226_vm2, %v1151_v29  ;;  %v1167_v17 = vmul.f32 %v1050_v34, %v6989_v19  ;;  %v825_v42 = vsel %vm822_vm8, %v824_v45, %v820_v41  ;;  %v1055_v25 = vmul.f32 %v6210_v14, %v1054_v33  ;;  %v486_v19 = vpop.f32.mrf.mxu0 }
 0x108   : > { %v1152_v16 = vmul.f32 %v825_v42, %v6992_v54  ;;  %vm7215_vm9 = vcmp.eq.f32.partialorder %v1061_v38, 8.507059e+37  ;;  %v1064_v52 = vor.u32 1.1754944e-38, %v1063_v5  ;;  %v828_v46 = vmul.f32 %v7198_v15, %v7149_v44 }
 0x109   : > { %1263 = vst.msk [vmem:[#allocation2 + $0x15a] sm:$0xff] %vm226_vm2, %v1167_v17  ;;  %v1056_v13 = vadd.f32 %v6210_v14, %v1055_v25  ;;  %vm832_vm10 = vweird.f32 %v7149_v44  ;;  %v836_v54 = vand.u32 2147483647, %v7149_v44  ;;  %6213 = vrcp.f32 %v7203_v12 }
 0x10a   : > { %vm1390_vm11 = vcmask 1046528   ;;  %v1199_v24 = vpack.c.bf16 %v1167_v17, %v1167_v17  ;;  %v1184_v51 = vpack.c.bf16 %v1152_v16, %v1152_v16  ;;  %1248 = vst.msk [vmem:[#allocation2 + $0xaa] sm:$0xff] %vm226_vm2, %v1152_v16  ;;  %v829_v37 = vsub.f32 1.0, %v828_v46 }
 0x10b   : > { %v838_v26 = vand.u32 2147483648, %v7149_v44  ;;  %v1060_v31 = vsel %vm7211_vm6, %v6210_v14, %v1056_v13  ;;  %6215 = vpow2.f32 %v7105_v35  ;;  %v7236_v57 = vadd.f32 %v7233_v20, %v524_v58  ;;  %1215 = vst.msk [vmem:[#allocation3 + $0x24] sm:$0xf] %vm229_vm1, %v1183_v50  ;;  %v7288_v44 = vld [vmem:[#allocation2 + $0x68] sm:$0xff] }
 0x10c   : > { %v7239_v60 = vadd.f32 %v7233_v20, %v486_v19  ;;  %v1065_v35 = vsel %vm7215_vm9, %v1064_v52, %v1060_v31  ;;  %v830_v49 = vmul.f32 %v7198_v15, %v829_v37  ;;  %vm833_vm12 = vweird.f32 %v7198_v15  ;;  %1216 = vst.msk [vmem:[#allocation3 + $0x28] sm:$0xf] %vm229_vm1, %v1184_v51 }
 0x10d   : > { %v1076_v48 = vand.u32 2147483647, %v7203_v12  ;;  %v1168_v3 = vmul.f32 %v1065_v35, %v6999_v27  ;;  %vm7257_vm13 = vcmp.eq.f32.partialorder %v836_v54, 8.507059e+37  ;;  %v5946_v63 = vmul.f32 -1.442695, %v7236_v57  ;;  %vm834_vm5 = vmor %vm832_vm10, %vm833_vm12 }
 0x10e   : > { %v5931_v2 = vmul.f32 -1.442695, %v7239_v60  ;;  %v831_v47 = vadd.f32 %v7198_v15, %v830_v49  ;;  %v839_v45 = vor.u32 1.1754944e-38, %v838_v26  ;;  %v1392_v28 = vrot.slane %v7241_v61, 1  ;;  %1231 = vst.msk [vmem:[#allocation3 + $0x64] sm:$0xf] %vm229_vm1, %v1199_v24 }
 0x10f   : > { %v1394_v11 = vrot.slane %v7243_v23, 1  ;;  %v6214_v27 = vpop.eup %6213  ;;  %v1200_v39 = vpack.c.bf16 %v1168_v3, %v1168_v3  ;;  %1264 = vst.msk [vmem:[#allocation2 + $0x16a] sm:$0xff] %vm226_vm2, %v1168_v3  ;;  %vm1072_vm14 = vweird.f32 %v7203_v12  ;;  %v1078_v53 = vand.u32 2147483648, %v7203_v12 }
 0x110   : > { %6217 = vpow2.f32 %v5946_v63  ;;  %v835_v14 = vsel %vm834_vm5, %v7198_v15, %v831_v47  ;;  %v1068_v62 = vmul.f32 %v6214_v27, %v7203_v12  ;;  %vm7282_vm15 = vcmp.eq.f32.partialorder %v1076_v48, 8.507059e+37 }
 0x111   : > { %6219 = vpow2.f32 %v5931_v2  ;;  %v1397_v36 = vrot.slane %v7263_v8, 1  ;;  %v6216_v38 = vpop.eup %6215  ;;  %v840_v7 = vsel %vm7257_vm13, %v839_v45, %v835_v14  ;;  %v1399_v0 = vrot.slane %v7251_v21, 1  ;;  %1232 = vst.msk [vmem:[#allocation3 + $0x68] sm:$0xf] %vm229_vm1, %v1200_v39 }
 0x112   : > { %v1402_v4 = vrot.slane %v7266_v9, 1  ;;  %v1404_v5 = vrot.slane %v7253_v1, 1  ;;  %v1153_v29 = vmul.f32 %v840_v7, %v7012_v40  ;;  %v1069_v30 = vsub.f32 1.0, %v1068_v62 }
 0x113   : > { %v7300_v33 = vadd.f32 1.0, %v6216_v38  ;;  %v1395_v15 = vsel %vm1390_vm11, %v1392_v28, %v1394_v11  ;;  %v1407_v34 = vrot.slane %v7278_v18, 1  ;;  %v1409_v41 = vrot.slane %v7286_v6, 1 }
 0x114   : > { %v1412_v50 = vrot.slane %v7288_v44, 1  ;;  %v1414_v17 = vrot.slane %v7290_v32, 1  ;;  %v1185_v42 = vpack.c.bf16 %v1153_v29, %v1153_v29  ;;  %1249 = vst.msk [vmem:[#allocation2 + $0xb2] sm:$0xff] %vm226_vm2, %v1153_v29  ;;  %v1070_v25 = vmul.f32 %v6214_v27, %v1069_v30 }
 0x115   : > { %vm1073_vm3 = vweird.f32 %v6214_v27  ;;  %6221 = vrcp.f32 %v7300_v33  ;;  %v1079_v16 = vor.u32 1.1754944e-38, %v1078_v53  ;;  %v853_v22 = vand.u32 2147483648, %v7300_v33 }
 0x116   : > { %v6218_v40 = vpop.eup %6217  ;;  %v1400_v43 = vsel %vm1390_vm11, %v1397_v36, %v1399_v0  ;;  %v1405_v52 = vsel %vm1390_vm11, %v1402_v4, %v1404_v5  ;;  %v1071_v58 = vadd.f32 %v6214_v27, %v1070_v25  ;;  %v851_v19 = vand.u32 2147483647, %v7300_v33  ;;  %1217 = vst.msk [vmem:[#allocation3 + $0x2c] sm:$0xf] %vm229_vm1, %v1185_v42  ;;  %vm1074_vm0 = vmor %vm1072_vm14, %vm1073_vm3 }
 0x117   : > { %v6220_v46 = vpop.eup %6219  ;;  %v7319_v13 = vadd.f32 1.0, %v6218_v40  ;;  %v7322_v54 = vmax.f32 %v7241_v61, %v1395_v15  ;;  %v1410_v51 = vsel %vm1390_vm11, %v1407_v34, %v1409_v41  ;;  %v1415_v37 = vsel %vm1390_vm11, %v1412_v50, %v1414_v17 }
 0x118   : > { %v7327_v24 = vadd.f32 1.0, %v6220_v46  ;;  %v7336_v26 = vmax.f32 %v7243_v23, %v1394_v11  ;;  %v1075_v31 = vsel %vm1074_vm0, %v6214_v27, %v1071_v58  ;;  %v854_v35 = vor.u32 1.1754944e-38, %v853_v22 }
 0x119   : > { %6223 = vrcp.f32 %v7319_v13  ;;  %v7340_v12 = vmax.f32 %v7263_v8, %v1400_v43  ;;  %v1080_v49 = vsel %vm7282_vm15, %v1079_v16, %v1075_v31  ;;  %vm847_vm4 = vweird.f32 %v7300_v33 }
 0x11a   : > { %v1091_v48 = vand.u32 2147483647, %v7319_v13  ;;  %v1093_v3 = vand.u32 2147483648, %v7319_v13  ;;  %6225 = vrcp.f32 %v7327_v24  ;;  %v1169_v56 = vmul.f32 %v1080_v49, %v7030_v55 }
 0x11b   : > { %v6222_v23 = vpop.eup %6221  ;;  %vm1087_vm7 = vweird.f32 %v7319_v13  ;;  %v868_v63 = vand.u32 2147483648, %v7327_v24  ;;  %v1556_v2 = vmax.f32 %v7251_v21, %v1399_v0  ;;  %vm7353_vm6 = vcmp.eq.f32.partialorder %v851_v19, 8.507059e+37 }
 0x11c   : > { %v843_v47 = vmul.f32 %v6222_v23, %v7300_v33  ;;  %vm848_vm8 = vweird.f32 %v6222_v23  ;;  %v1094_v11 = vor.u32 1.1754944e-38, %v1093_v3  ;;  %v866_v27 = vand.u32 2147483647, %v7327_v24  ;;  %1265 = vst.msk [vmem:[#allocation2 + $0x172] sm:$0xff] %vm226_vm2, %v1169_v56 }
 0x11d   : > { %v1201_v39 = vpack.c.bf16 %v1169_v56, %v1169_v56  ;;  %v7359_v55 = vor.u32 1.1754944e-38, %v868_v63  ;;  %v7362_v53 = vmax.f32 %v7266_v9, %v1405_v52  ;;  %v1559_v21 = vmax.f32 %v7253_v1, %v1404_v5  ;;  %vm849_vm15 = vmor %vm847_vm4, %vm848_vm8 }
 0x11e   : > { %v844_v14 = vsub.f32 1.0, %v843_v47  ;;  %vm7365_vm9 = vcmp.eq.f32.partialorder %v1091_v48, 8.507059e+37  ;;  %v7370_v59 = vmax.f32 %v7278_v18, %v1410_v51  ;;  %v1562_v38 = vmax.f32 %v7286_v6, %v1409_v41 }
 0x11f   : > { %v7374_v7 = vmax.f32 %v7288_v44, %v1415_v37  ;;  %v6224_v0 = vpop.eup %6223  ;;  %vm862_vm10 = vweird.f32 %v7327_v24  ;;  %v1565_v29 = vmax.f32 %v7290_v32, %v1414_v17  ;;  %vm1671_vm12 = vcmask 1045504   ;;  %1233 = vst.msk [vmem:[#allocation3 + $0x6c] sm:$0xf] %vm229_vm1, %v1201_v39 }
 0x120   : > { %v1673_v1 = vrot.slane %v7322_v54, 2  ;;  %v1675_v5 = vrot.slane %v7336_v26, 2  ;;  %v6226_v30 = vpop.eup %6225  ;;  %v845_v15 = vmul.f32 %v6222_v23, %v844_v14  ;;  %v1083_v42 = vmul.f32 %v6224_v0, %v7319_v13 }
 0x121   : > { %vm1088_vm13 = vweird.f32 %v6224_v0  ;;  %v1678_v6 = vrot.slane %v7340_v12, 2  ;;  %v858_v41 = vmul.f32 %v6226_v30, %v7327_v24  ;;  %vm863_vm5 = vweird.f32 %v6226_v30 }
 0x122   : > { %vm7384_vm14 = vcmp.eq.f32.partialorder %v866_v27, 8.507059e+37  ;;  %v1676_v32 = vsel %vm1671_vm12, %v1673_v1, %v1675_v5  ;;  %v1680_v17 = vrot.slane %v1556_v2, 2  ;;  %v846_v40 = vadd.f32 %v6222_v23, %v845_v15  ;;  %vm7408_vm3 = vmor %vm1087_vm7, %vm1088_vm13 }
 0x123   : > { %v1084_v16 = vsub.f32 1.0, %v1083_v42  ;;  %v1683_v22 = vrot.slane %v7362_v53, 2  ;;  %v1685_v43 = vrot.slane %v1559_v21, 2  ;;  %v859_v52 = vsub.f32 1.0, %v858_v41  ;;  %vm864_vm0 = vmor %vm862_vm10, %vm863_vm5 }
 0x124   : > { %v1681_v46 = vsel %vm1671_vm12, %v1678_v6, %v1680_v17  ;;  %v1688_v58 = vrot.slane %v7370_v59, 2  ;;  %v1690_v19 = vrot.slane %v1562_v38, 2  ;;  %v850_v51 = vsel %vm849_vm15, %v6222_v23, %v846_v40 }
 0x125   : > { %v1085_v37 = vmul.f32 %v6224_v0, %v1084_v16  ;;  %v1686_v31 = vsel %vm1671_vm12, %v1683_v22, %v1685_v43  ;;  %v1693_v49 = vrot.slane %v7374_v7, 2  ;;  %v855_v33 = vsel %vm7353_vm6, %v854_v35, %v850_v51 }
 0x126   : > { %v860_v3 = vmul.f32 %v6226_v30, %v859_v52  ;;  %v1691_v23 = vsel %vm1671_vm12, %v1688_v58, %v1690_v19  ;;  %v1695_v56 = vrot.slane %v1565_v29, 2  ;;  %v1154_v63 = vmul.f32 %v855_v33, %v7061_v10  ;;  %v7458_v52 = vld [vmem:[#allocation2] sm:$0xff]  ;;  %v1276_v33 = vld [vmem:[#allocation2 + $0x30] sm:$0xff] }
 0x127   : > { %v1086_v47 = vadd.f32 %v6224_v0, %v1085_v37  ;;  %v7417_v27 = vmax.f32 %v7322_v54, %v1676_v32  ;;  %v1834_v35 = vmax.f32 %v7336_v26, %v1675_v5  ;;  %v7424_v39 = vmax.f32 %v7340_v12, %v1681_v46  ;;  %v7460_v46 = vld [vmem:[#allocation2 + $0x18] sm:$0xff] }
 0x128   : > { %v861_v45 = vadd.f32 %v6226_v30, %v860_v3  ;;  %v1696_v13 = vsel %vm1671_vm12, %v1693_v49, %v1695_v56  ;;  %v1837_v14 = vmax.f32 %v1556_v2, %v1680_v17  ;;  %v1186_v15 = vpack.c.bf16 %v1154_v63, %v1154_v63  ;;  %1250 = vst.msk [vmem:[#allocation2 + $0xc2] sm:$0xff] %vm226_vm2, %v1154_v63  ;;  %v1279_v63 = vld [vmem:[#allocation2 + $0x48] sm:$0xff] }
 0x129   : > { %v1090_v10 = vsel %vm7408_vm3, %v6224_v0, %v1086_v47  ;;  %v7433_v26 = vmax.f32 %v7362_v53, %v1686_v31  ;;  %v1840_v5 = vmax.f32 %v1559_v21, %v1685_v43  ;;  %v7438_v2 = vmax.f32 %v7370_v59, %v1691_v23 }
 0x12a   : > { %v1095_v42 = vsel %vm7365_vm9, %v1094_v11, %v1090_v10  ;;  %v865_v41 = vsel %vm864_vm0, %v6226_v30, %v861_v45  ;;  %v1843_v32 = vmax.f32 %v1562_v38, %v1690_v19  ;;  %v7445_v24 = vmax.f32 %v7374_v7, %v1696_v13  ;;  %1218 = vst.msk [vmem:[#allocation3 + $0x30] sm:$0xf] %vm229_vm1, %v1186_v15  ;;  %v1282_v45 = vld [vmem:[#allocation2 + $0x60] sm:$0xff] }
 0x12b   : > { %v1170_v17 = vmul.f32 %v1095_v42, %v7236_v57  ;;  %v870_v0 = vsel %vm7384_vm14, %v7359_v55, %v865_v41  ;;  %v1846_v40 = vmax.f32 %v1565_v29, %v1695_v56  ;;  %v1953_v11 = vrot.slane %v7417_v27, 1 }
 0x12c   : > { %v1155_v21 = vmul.f32 %v870_v0, %v7239_v60  ;;  %v1955_v62 = vrot.slane %v1834_v35, 1  ;;  %v1958_v30 = vrot.slane %v7424_v39, 1  ;;  %v1960_v57 = vrot.slane %v1837_v14, 1 }
 0x12d   : > { %v1202_v38 = vpack.c.bf16 %v1170_v17, %v1170_v17  ;;  %1266 = vst.msk [vmem:[#allocation2 + $0x182] sm:$0xff] %vm226_vm2, %v1170_v17  ;;  %v1963_v25 = vrot.slane %v7433_v26, 1  ;;  %v1965_v55 = vrot.slane %v1840_v5, 1  ;;  %v1968_v60 = vrot.slane %v7438_v2, 1 }
 0x12e   : > { %v1187_v16 = vpack.c.bf16 %v1155_v21, %v1155_v21  ;;  %1251 = vst.msk [vmem:[#allocation2 + $0xca] sm:$0xff] %vm226_vm2, %v1155_v21  ;;  %v1956_v29 = vsel %vm1390_vm11, %v1953_v11, %v1955_v62  ;;  %v1970_v43 = vrot.slane %v1843_v32, 1  ;;  %v1961_v19 = vsel %vm1390_vm11, %v1958_v30, %v1960_v57 }
 0x12f   : > { %v1966_v51 = vsel %vm1390_vm11, %v1963_v25, %v1965_v55  ;;  %v1973_v37 = vrot.slane %v7445_v24, 1  ;;  %v1975_v31 = vrot.slane %v1846_v40, 1  ;;  %1234 = vst.msk [vmem:[#allocation3 + $0x70] sm:$0xf] %vm229_vm1, %v1202_v38  ;;  %v2093_v3 = vmax.f32 %v7417_v27, %v1956_v29  ;;  %v526_v38 = vpop.f32.mrf.mxu2 }
 0x130   : > { %v1971_v48 = vsel %vm1390_vm11, %v1968_v60, %v1970_v43  ;;  %v2095_v23 = vmax.f32 %v7424_v39, %v1961_v19  ;;  %v2097_v56 = vmax.f32 %v7433_v26, %v1966_v51  ;;  %1219 = vst.msk [vmem:[#allocation3 + $0x34] sm:$0xf] %vm229_vm1, %v1187_v16  ;;  %v1391_v13 = vrot.slane %v7458_v52, 1 }
 0x131   : > { %v1976_v47 = vsel %vm1390_vm11, %v1973_v37, %v1975_v31  ;;  %v2099_v35 = vmax.f32 %v7438_v2, %v1971_v48  ;;  %v10653_v14 = vrot.slane %v7460_v46, 1  ;;  %v1401_v42 = vrot.slane %v1276_v33, 1  ;;  %v7566_v2 = vld [vmem:[#allocation2 + $0x128] sm:$0xff] }
 0x132   : > { %v7484_v15 = vmax.f32 %v7445_v24, %v1976_v47  ;;  %v2133_v10 = vmax.f32 %v2093_v3, %v2095_v23  ;;  %v2135_v5 = vmax.f32 %v2095_v23, %v2097_v56  ;;  %v1393_v32 = vsel %vm1390_vm11, %v1391_v13, %v1392_v28 }
 0x133   : > { %v7486_v41 = vmax.f32 %v2097_v56, %v2099_v35  ;;  %v1398_v17 = vsel %vm1390_vm11, %v10653_v14, %v1397_v36  ;;  %v1406_v0 = vrot.slane %v1279_v63, 1  ;;  %v1403_v21 = vsel %vm1390_vm11, %v1401_v42, %v1402_v4 }
 0x134   : > { %v7499_v40 = vmax.f32 %v2099_v35, %v7484_v15  ;;  %v1411_v62 = vrot.slane %v1282_v45, 1  ;;  %v1551_v61 = vmax.f32 %v7458_v52, %v1393_v32  ;;  %v1554_v36 = vmax.f32 %v7460_v46, %v1398_v17  ;;  %v1302_v32 = vld [vmem:[#allocation2 + $0x100] sm:$0xf] }
 0x135   : > { %v2171_v28 = vmax.f32 %v2133_v10, %v7486_v41  ;;  %v1408_v8 = vsel %vm1390_vm11, %v1406_v0, %v1407_v34  ;;  %v1557_v57 = vmax.f32 %v1276_v33, %v1403_v21  ;;  %v7517_v51 = vadd.f32 %v7233_v20, %v526_v38 }
 0x136   : > { %v7511_v55 = vmax.f32 %v2135_v5, %v7499_v40  ;;  %v1413_v9 = vsel %vm1390_vm11, %v1411_v62, %v1412_v50  ;;  %v1560_v4 = vmax.f32 %v1279_v63, %v1408_v8  ;;  %v1672_v16 = vrot.slane %v1551_v61, 2  ;;  %v7556_v62 = vld [vmem:[#allocation2 + $0x110] sm:$0xff] }
 0x137   : > { %v1563_v29 = vmax.f32 %v1282_v45, %v1413_v9  ;;  %v1677_v43 = vrot.slane %v1554_v36, 2  ;;  %v1682_v19 = vrot.slane %v1557_v57, 2  ;;  %v5947_v53 = vmul.f32 -1.442695, %v7517_v51  ;;  %v529_v21 = vpop.f32.mrf.mxu2 }
 0x138   : > { %v2205_v18 = vmax.f32 %v2171_v28, %v7511_v55  ;;  %v1674_v34 = vsel %vm1671_vm12, %v1672_v16, %v1673_v1  ;;  %v1687_v31 = vrot.slane %v1560_v4, 2  ;;  %v1444_v8 = vrot.slane %v1302_v32, 1 }
 0x139   : > { %v1679_v44 = vsel %vm1671_vm12, %v1677_v43, %v1678_v6  ;;  %v1684_v50 = vsel %vm1671_vm12, %v1682_v19, %v1683_v22  ;;  %v1692_v33 = vrot.slane %v1563_v29, 2  ;;  %v1832_v48 = vmax.f32 %v1551_v61, %v1674_v34  ;;  %v489_v22 = vpop.f32.mrf.mxu0 }
 0x13a   : > { %v2237_v3 = vpack.c.bf16 %v2205_v18, %v2205_v18  ;;  %2430 = vst.msk [vmem:[#allocation2 + $0x3a] sm:$0xff] %vm226_vm2, %v2205_v18  ;;  %v1689_v54 = vsel %vm1671_vm12, %v1687_v31, %v1688_v58  ;;  %v1835_v23 = vmax.f32 %v1554_v36, %v1679_v44  ;;  %v1838_v1 = vmax.f32 %v1557_v57, %v1684_v50 }
 0x13b   : > { %v1694_v12 = vsel %vm1671_vm12, %v1692_v33, %v1693_v49  ;;  %v1841_v6 = vmax.f32 %v1560_v4, %v1689_v54  ;;  %v1952_v56 = vrot.slane %v1832_v48, 1  ;;  %v7539_v59 = vadd.f32 %v7233_v20, %v489_v22  ;;  %v7544_v49 = vld [vmem:[#allocation2 + $0xf8] sm:$0xff] }
 0x13c   : > { %2302 = vrot.lane.b32.xlu1 %v2237_v3, %s6388_s30  ;;  %v1844_v63 = vmax.f32 %v1563_v29, %v1694_v12  ;;  %v1957_v47 = vrot.slane %v1835_v23, 1  ;;  %v1962_v35 = vrot.slane %v1838_v1, 1  ;;  %6227 = vpow2.f32 %v5947_v53  ;;  %v1285_v29 = vld [vmem:[#allocation2 + $0x78] sm:$0xff]  ;;  %v1287_v12 = vld [vmem:[#allocation2 + $0x88] sm:$0xf] }
 0x13d   : > { %v1954_v7 = vsel %vm1390_vm11, %v1952_v56, %v1953_v11  ;;  %v1967_v58 = vrot.slane %v1841_v6, 1  ;;  %v5932_v0 = vmul.f32 -1.442695, %v7539_v59  ;;  %v1442_v61 = vrot.slane %v7544_v49, 1 }
 0x13e   : > { %v1959_v45 = vsel %vm1390_vm11, %v1957_v47, %v1958_v30  ;;  %v1964_v10 = vsel %vm1390_vm11, %v1962_v35, %v1963_v25  ;;  %v1972_v5 = vrot.slane %v1844_v63, 1  ;;  %v2092_v42 = vmax.f32 %v1832_v48, %v1954_v7  ;;  %v7564_v25 = vld [vmem:[#allocation2 + $0x118] sm:$0xf] }
 0x13f   : > { %v1969_v27 = vsel %vm1390_vm11, %v1967_v58, %v1968_v60  ;;  %v2094_v11 = vmax.f32 %v1835_v23, %v1959_v45  ;;  %v2096_v17 = vmax.f32 %v1838_v1, %v1964_v10  ;;  %v7562_v30 = vadd.f32 %v7233_v20, %v529_v21  ;;  %v7568_v60 = vld [vmem:[#allocation2 + $0x130] sm:$0xf]  ;;  %v1286_v1 = vld [vmem:[#allocation2 + $0x80] sm:$0xff]  ;;  %v531_v45 = vpop.f32.mrf.mxu2 }
 0x140   : > { %v1974_v39 = vsel %vm1390_vm11, %v1972_v5, %v1973_v37  ;;  %v2098_v26 = vmax.f32 %v1841_v6, %v1969_v27  ;;  %6229 = vpow2.f32 %v5932_v0  ;;  %v1447_v57 = vrot.slane %v7556_v62, 1 }
 0x141   : > { %v7571_v38 = vmax.f32 %v1844_v63, %v1974_v39  ;;  %v2132_v28 = vmax.f32 %v2092_v42, %v2094_v11  ;;  %v2134_v24 = vmax.f32 %v2094_v11, %v2096_v17  ;;  %v5948_v37 = vmul.f32 -1.442695, %v7562_v30  ;;  %v491_v16 = vpop.f32.mrf.mxu0 }
 0x142   : > { %v7573_v36 = vmax.f32 %v2096_v17, %v2098_v26  ;;  %v6228_v9 = vpop.eup %6227  ;;  %v1449_v43 = vrot.slane %v7564_v25, 1  ;;  %v1452_v19 = vrot.slane %v7566_v2, 1  ;;  %v1454_v18 = vrot.slane %v7568_v60, 1 }
 0x143   : > { %v7578_v4 = vmax.f32 %v2098_v26, %v7571_v38  ;;  %v7583_v34 = vadd.f32 1.0, %v6228_v9  ;;  %6231 = vpow2.f32 %v5948_v37  ;;  %v7586_v31 = vadd.f32 %v7233_v20, %v491_v16 }
 0x144   : > { %v2170_v44 = vmax.f32 %v2132_v28, %v7573_v36  ;;  %v1445_v33 = vsel %vm1390_vm11, %v1442_v61, %v1444_v8  ;;  %v1416_v48 = vrot.slane %v1285_v29, 1  ;;  %v1450_v6 = vsel %vm1390_vm11, %v1447_v57, %v1449_v43 }
 0x145   : > { %v7590_v50 = vmax.f32 %v2134_v24, %v7578_v4  ;;  %6233 = vrcp.f32 %v7583_v34  ;;  %v5933_v23 = vmul.f32 -1.442695, %v7586_v31  ;;  %v7608_v56 = vsel %vm1390_vm11, %v1452_v19, %v1454_v18 }
 0x146   : > { %v6230_v3 = vpop.eup %6229  ;;  %v1106_v53 = vand.u32 2147483647, %v7583_v34  ;;  %v1417_v63 = vrot.slane %v1286_v1, 1  ;;  %v7614_v47 = vmax.f32 %v7544_v49, %v1445_v33  ;;  %v1108_v7 = vand.u32 2147483648, %v7583_v34 }
 0x147   : > { %v2204_v54 = vmax.f32 %v2170_v44, %v7590_v50  ;;  %v7611_v22 = vadd.f32 1.0, %v6230_v3  ;;  %6235 = vpow2.f32 %v5933_v23  ;;  %v1419_v58 = vrot.slane %v1287_v12, 1 }
 0x148   : > { %vm1102_vm4 = vweird.f32 %v7583_v34  ;;  %v7621_v42 = vmax.f32 %v1302_v32, %v1444_v8  ;;  %v1418_v0 = vsel %vm1390_vm11, %v1416_v48, %v1417_v63  ;;  %v7629_v28 = vadd.f32 %v7233_v20, %v531_v45 }
 0x149   : > { %v2236_v35 = vpack.c.bf16 %v2204_v54, %v2204_v54  ;;  %2429 = vst.msk [vmem:[#allocation2 + $0x32] sm:$0xff] %vm226_vm2, %v2204_v54  ;;  %v6232_v10 = vpop.eup %6231  ;;  %6237 = vrcp.f32 %v7611_v22  ;;  %v883_v5 = vand.u32 2147483648, %v7611_v22  ;;  %v1420_v11 = vsel %vm1390_vm11, %v1417_v63, %v1419_v58 }
 0x14a   : > { %v7624_v27 = vadd.f32 1.0, %v6232_v10  ;;  %v1568_v17 = vmax.f32 %v1287_v12, %v1419_v58  ;;  %v1567_v39 = vmax.f32 %v1286_v1, %v1420_v11  ;;  %v1566_v26 = vmax.f32 %v1285_v29, %v1418_v0 }
 0x14b   : > { %2300 = vrot.lane.b32.xlu0 %v2236_v35, %s6388_s30  ;;  %v6234_v21 = vpop.eup %6233  ;;  %v7632_v24 = vmax.f32 %v7556_v62, %v1450_v6  ;;  %vm7635_vm7 = vcmp.eq.f32.partialorder %v1106_v53, 8.507059e+37  ;;  %v1109_v37 = vor.u32 1.1754944e-38, %v1108_v7  ;;  %v881_v9 = vand.u32 2147483647, %v7611_v22 }
 0x14c   : > { %v1098_v32 = vmul.f32 %v6234_v21, %v7583_v34  ;;  %6239 = vrcp.f32 %v7624_v27  ;;  %v1121_v16 = vand.u32 2147483647, %v7624_v27  ;;  %v1123_v29 = vand.u32 2147483648, %v7624_v27 }
 0x14d   : > { %v1698_v20 = vrot.slane %v1567_v39, 2  ;;  %v1700_v44 = vrot.slane %v1568_v17, 2  ;;  %v6236_v33 = vpop.eup %6235  ;;  %vm1103_vm8 = vweird.f32 %v6234_v21  ;;  %vm877_vm6 = vweird.f32 %v7611_v22 }
 0x14e   : > { %v1099_v48 = vsub.f32 1.0, %v1098_v32  ;;  %v884_v3 = vor.u32 1.1754944e-38, %v883_v5  ;;  %vm1117_vm9 = vweird.f32 %v7624_v27  ;;  %v7645_v23 = vadd.f32 1.0, %v6236_v33  ;;  %vm1104_vm14 = vmor %vm1102_vm4, %vm1103_vm8 }
 0x14f   : > { %v6238_v54 = vpop.eup %6237  ;;  %v1701_v1 = vsel %vm1671_vm12, %v1698_v20, %v1700_v44  ;;  %v1697_v12 = vrot.slane %v1566_v26, 2  ;;  %v5949_v6 = vmul.f32 -1.442695, %v7629_v28  ;;  %vm7650_vm10 = vcmp.eq.f32.partialorder %v881_v9, 8.507059e+37 }
 0x150   : > { %v1100_v53 = vmul.f32 %v6234_v21, %v1099_v48  ;;  %v873_v63 = vmul.f32 %v6238_v54, %v7611_v22  ;;  %v1848_v7 = vmax.f32 %v1567_v39, %v1701_v1  ;;  %v7657_v58 = vmax.f32 %v7564_v25, %v1449_v43  ;;  %v7671_v1 = vld [vmem:[#allocation2 + $0x98] sm:$0xff] }
 0x151   : > { %vm878_vm13 = vweird.f32 %v6238_v54  ;;  %vm7659_vm5 = vcmp.eq.f32.partialorder %v1121_v16, 8.507059e+37  ;;  %v1124_v10 = vor.u32 1.1754944e-38, %v1123_v29  ;;  %6241 = vrcp.f32 %v7645_v23 }
 0x152   : > { %v6240_v5 = vpop.eup %6239  ;;  %v1101_v11 = vadd.f32 %v6234_v21, %v1100_v53  ;;  %v874_v0 = vsub.f32 1.0, %v873_v63  ;;  %v1849_v32 = vmax.f32 %v1568_v17, %v1700_v44  ;;  %v1978_v9 = vrot.slane %v1848_v7, 1  ;;  %v1290_v17 = vld [vmem:[#allocation2 + $0xa0] sm:$0xf]  ;;  %vm879_vm0 = vmor %vm877_vm6, %vm878_vm13 }
 0x153   : > { %v1113_v25 = vmul.f32 %v6240_v5, %v7624_v27  ;;  %vm1118_vm15 = vweird.f32 %v6240_v5  ;;  %v896_v43 = vand.u32 2147483647, %v7645_v23  ;;  %v898_v39 = vand.u32 2147483648, %v7645_v23 }
 0x154   : > { %v1105_v16 = vsel %vm1104_vm14, %v6234_v21, %v1101_v11  ;;  %v875_v29 = vmul.f32 %v6238_v54, %v874_v0  ;;  %v1980_v33 = vrot.slane %v1849_v32, 1  ;;  %v1699_v48 = vsel %vm1671_vm12, %v1697_v12, %v1698_v20  ;;  %vm7688_vm4 = vmor %vm1117_vm9, %vm1118_vm15 }
 0x155   : > { %v1110_v44 = vsel %vm7635_vm7, %v1109_v37, %v1105_v16  ;;  %v1114_v34 = vsub.f32 1.0, %v1113_v25  ;;  %v1847_v53 = vmax.f32 %v1566_v26, %v1699_v48  ;;  %6243 = vpow2.f32 %v5949_v6 }
 0x156   : > { %v1171_v63 = vmul.f32 %v1110_v44, %v7517_v51  ;;  %v876_v14 = vadd.f32 %v6238_v54, %v875_v29  ;;  %vm892_vm3 = vweird.f32 %v7645_v23  ;;  %v1981_v21 = vsel %vm1390_vm11, %v1978_v9, %v1980_v33 }
 0x157   : > { %v1422_v11 = vrot.slane %v7671_v1, 1  ;;  %v6242_v0 = vpop.eup %6241  ;;  %v1115_v20 = vmul.f32 %v6240_v5, %v1114_v34  ;;  %v7682_v8 = vmax.f32 %v1848_v7, %v1981_v21  ;;  %v1977_v37 = vrot.slane %v1847_v53, 1 }
 0x158   : > { %v1424_v26 = vrot.slane %v1290_v17, 1  ;;  %v1203_v12 = vpack.c.bf16 %v1171_v63, %v1171_v63  ;;  %1267 = vst.msk [vmem:[#allocation2 + $0x18a] sm:$0xff] %vm226_vm2, %v1171_v63  ;;  %v880_v51 = vsel %vm879_vm0, %v6238_v54, %v876_v14  ;;  %v888_v32 = vmul.f32 %v6242_v0, %v7645_v23 }
 0x159   : > { %vm893_vm7 = vweird.f32 %v6242_v0  ;;  %vm7693_vm8 = vcmp.eq.f32.partialorder %v896_v43, 8.507059e+37  ;;  %v885_v7 = vsel %vm7650_vm10, %v884_v3, %v880_v51  ;;  %v1116_v25 = vadd.f32 %v6240_v5, %v1115_v20  ;;  %v7738_v20 = vld [vmem:[#allocation2 + $0x140] sm:$0xff]  ;;  %v1311_v51 = vld [vmem:[#allocation2 + $0x148] sm:$0xf] }
 0x15a   : > { %v7701_v14 = vmax.f32 %v7484_v15, %v7682_v8  ;;  %v1979_v27 = vsel %vm1390_vm11, %v1977_v37, %v1978_v9  ;;  %1235 = vst.msk [vmem:[#allocation3 + $0x74] sm:$0xf] %vm229_vm1, %v1203_v12  ;;  %v1156_v54 = vmul.f32 %v885_v7, %v7539_v59  ;;  %v889_v16 = vsub.f32 1.0, %v888_v32  ;;  %vm894_vm6 = vmor %vm892_vm3, %vm893_vm7  ;;  %v7755_v32 = vld [vmem:[#allocation2 + $0x158] sm:$0xff]  ;;  %v1314_v7 = vld [vmem:[#allocation2 + $0x160] sm:$0xf] }
 0x15b   : > { %v7706_v29 = vmax.f32 %v1847_v53, %v1979_v27  ;;  %v1425_v43 = vsel %vm1390_vm11, %v1422_v11, %v1424_v26  ;;  %v6244_v35 = vpop.eup %6243  ;;  %v1120_v3 = vsel %vm7688_vm4, %v6240_v5, %v1116_v25  ;;  %v1571_v33 = vmax.f32 %v1290_v17, %v1424_v26  ;;  %v1288_v5 = vld [vmem:[#allocation2 + $0x90] sm:$0xff] }
 0x15c   : > { %v7715_v15 = vmax.f32 %v7486_v41, %v7701_v14  ;;  %v7718_v9 = vmax.f32 %v7671_v1, %v1425_v43  ;;  %v1188_v59 = vpack.c.bf16 %v1156_v54, %v1156_v54  ;;  %1252 = vst.msk [vmem:[#allocation2 + $0xda] sm:$0xff] %vm226_vm2, %v1156_v54  ;;  %v1125_v48 = vsel %vm7659_vm5, %v1124_v10, %v1120_v3 }
 0x15d   : > { %v890_v44 = vmul.f32 %v6242_v0, %v889_v16  ;;  %v7725_v34 = vmax.f32 %v7571_v38, %v7706_v29  ;;  %v1172_v53 = vmul.f32 %v1125_v48, %v7562_v30  ;;  %v7730_v63 = vadd.f32 1.0, %v6244_v35 }
 0x15e   : > { %v2207_v41 = vmax.f32 %v7511_v55, %v7715_v15  ;;  %v1703_v17 = vrot.slane %v7718_v9, 2  ;;  %1220 = vst.msk [vmem:[#allocation3 + $0x38] sm:$0xf] %vm229_vm1, %v1188_v59  ;;  %v899_v45 = vor.u32 1.1754944e-38, %v898_v39  ;;  %v1705_v38 = vrot.slane %v1571_v33, 2 }
 0x15f   : > { %v891_v21 = vadd.f32 %v6242_v0, %v890_v44  ;;  %v7736_v10 = vmax.f32 %v7573_v36, %v7725_v34  ;;  %v1204_v37 = vpack.c.bf16 %v1172_v53, %v1172_v53  ;;  %1268 = vst.msk [vmem:[#allocation2 + $0x19a] sm:$0xff] %vm226_vm2, %v1172_v53  ;;  %6245 = vrcp.f32 %v7730_v63 }
 0x160   : > { %v2239_v55 = vpack.c.bf16 %v2207_v41, %v2207_v41  ;;  %v1421_v30 = vrot.slane %v1288_v5, 1  ;;  %2432 = vst.msk [vmem:[#allocation2 + $0x52] sm:$0xff] %vm226_vm2, %v2207_v41  ;;  %v1136_v39 = vand.u32 2147483647, %v7730_v63  ;;  %v1138_v12 = vand.u32 2147483648, %v7730_v63 }
 0x161   : > { %v895_v26 = vsel %vm894_vm6, %v6242_v0, %v891_v21  ;;  %v2206_v36 = vmax.f32 %v7590_v50, %v7736_v10  ;;  %1236 = vst.msk [vmem:[#allocation3 + $0x78] sm:$0xf] %vm229_vm1, %v1204_v37  ;;  %v1706_v6 = vsel %vm1671_vm12, %v1703_v17, %v1705_v38  ;;  %v1852_v0 = vmax.f32 %v1571_v33, %v1705_v38 }
 0x162   : > { %v900_v23 = vsel %vm7693_vm8, %v899_v45, %v895_v26  ;;  %2306 = vrot.lane.b32.xlu1 %v2239_v55, %s6388_s30  ;;  %v1457_v50 = vrot.slane %v7738_v20, 1  ;;  %vm1132_vm9 = vweird.f32 %v7730_v63  ;;  %v1139_v54 = vor.u32 1.1754944e-38, %v1138_v12 }
 0x163   : > { %v1157_v25 = vmul.f32 %v900_v23, %v7586_v31  ;;  %v2238_v27 = vpack.c.bf16 %v2206_v36, %v2206_v36  ;;  %2431 = vst.msk [vmem:[#allocation2 + $0x4a] sm:$0xff] %vm226_vm2, %v2206_v36  ;;  %v1851_v22 = vmax.f32 %v7718_v9, %v1706_v6  ;;  %v1985_v16 = vrot.slane %v1852_v0, 1 }
 0x164   : > { %v1423_v43 = vsel %vm1390_vm11, %v1421_v30, %v1422_v11  ;;  %v1459_v35 = vrot.slane %v1311_v51, 1  ;;  %vm7767_vm10 = vcmp.eq.f32.partialorder %v1136_v39, 8.507059e+37  ;;  %v1462_v59 = vrot.slane %v7755_v32, 1 }
 0x165   : > { %v1189_v3 = vpack.c.bf16 %v1157_v25, %v1157_v25  ;;  %1253 = vst.msk [vmem:[#allocation2 + $0xe2] sm:$0xff] %vm226_vm2, %v1157_v25  ;;  %2304 = vrot.lane.b32.xlu0 %v2238_v27, %s6388_s30  ;;  %v1569_v33 = vmax.f32 %v1288_v5, %v1423_v43  ;;  %v1464_v48 = vrot.slane %v1314_v7, 1  ;;  %v6246_v9 = vpop.eup %6245  ;;  %v1983_v44 = vrot.slane %v1851_v22, 1 }
 0x166   : > { %v1460_v1 = vsel %vm1390_vm11, %v1457_v50, %v1459_v35  ;;  %v7777_v11 = vmax.f32 %v7566_v2, %v7608_v56  ;;  %v1589_v53 = vmax.f32 %v7568_v60, %v1454_v18  ;;  %v1128_v5 = vmul.f32 %v6246_v9, %v7730_v63 }
 0x167   : > { %1221 = vst.msk [vmem:[#allocation3 + $0x3c] sm:$0xf] %vm229_vm1, %v1189_v3  ;;  %vm1133_vm13 = vweird.f32 %v6246_v9  ;;  %v1702_v41 = vrot.slane %v1569_v33, 2  ;;  %v1465_v21 = vsel %vm1390_vm11, %v1462_v59, %v1464_v48  ;;  %v1986_v45 = vsel %vm1390_vm11, %v1983_v44, %v1985_v16 }
 0x168   : > { %v7789_v38 = vmax.f32 %v7738_v20, %v1460_v1  ;;  %v1592_v56 = vmax.f32 %v1311_v51, %v1459_v35  ;;  %v7792_v37 = vmax.f32 %v7755_v32, %v1465_v21  ;;  %v1129_v60 = vsub.f32 1.0, %v1128_v5  ;;  %vm7809_vm5 = vmor %vm1132_vm9, %vm1133_vm13 }
 0x169   : > { %v7794_v18 = vmax.f32 %v1851_v22, %v1986_v45  ;;  %v1704_v55 = vsel %vm1671_vm12, %v1702_v41, %v1703_v17  ;;  %v1595_v30 = vmax.f32 %v1314_v7, %v1464_v48  ;;  %v1723_v36 = vrot.slane %v7614_v47, 2 }
 0x16a   : > { %v1850_v26 = vmax.f32 %v1569_v33, %v1704_v55  ;;  %v1725_v39 = vrot.slane %v7621_v42, 2  ;;  %v1728_v12 = vrot.slane %v7632_v24, 2  ;;  %v1130_v23 = vmul.f32 %v6246_v9, %v1129_v60 }
 0x16b   : > { %v7802_v51 = vmax.f32 %v7682_v8, %v7794_v18  ;;  %v1730_v6 = vrot.slane %v7657_v58, 2  ;;  %v1733_v0 = vrot.slane %v7777_v11, 2  ;;  %v1735_v27 = vrot.slane %v1589_v53, 2 }
 0x16c   : > { %v1982_v7 = vrot.slane %v1850_v26, 1  ;;  %v1726_v25 = vsel %vm1671_vm12, %v1723_v36, %v1725_v39  ;;  %v1738_v8 = vrot.slane %v7789_v38, 2  ;;  %v1131_v22 = vadd.f32 %v6246_v9, %v1130_v23 }
 0x16d   : > { %v7819_v16 = vmax.f32 %v7499_v40, %v7802_v51  ;;  %v1731_v63 = vsel %vm1671_vm12, %v1728_v12, %v1730_v6  ;;  %v1740_v43 = vrot.slane %v1592_v56, 2  ;;  %v1736_v3 = vsel %vm1671_vm12, %v1733_v0, %v1735_v27 }
 0x16e   : > { %v1984_v35 = vsel %vm1390_vm11, %v1982_v7, %v1983_v44  ;;  %v1743_v33 = vrot.slane %v7792_v37, 2  ;;  %v1745_v48 = vrot.slane %v1595_v30, 2  ;;  %v1135_v1 = vsel %vm7809_vm5, %v6246_v9, %v1131_v22 }
 0x16f   : > { %v2209_v40 = vmax.f32 %v7715_v15, %v7819_v16  ;;  %v7833_v5 = vmax.f32 %v1850_v26, %v1984_v35  ;;  %v1741_v41 = vsel %vm1671_vm12, %v1738_v8, %v1740_v43  ;;  %v1140_v44 = vsel %vm7767_vm10, %v1139_v54, %v1135_v1  ;;  %v1300_v35 = vld [vmem:[#allocation2 + $0xf0] sm:$0xff] }
 0x170   : > { %v1746_v21 = vsel %vm1671_vm12, %v1743_v33, %v1745_v48  ;;  %v7844_v45 = vmax.f32 %v7614_v47, %v1726_v25  ;;  %v1864_v9 = vmax.f32 %v7621_v42, %v1725_v39  ;;  %v1173_v15 = vmul.f32 %v1140_v44, %v7629_v28 }
 0x171   : > { %v2241_v60 = vpack.c.bf16 %v2209_v40, %v2209_v40  ;;  %2434 = vst.msk [vmem:[#allocation2 + $0x6a] sm:$0xff] %vm226_vm2, %v2209_v40  ;;  %v7851_v55 = vmax.f32 %v7706_v29, %v7833_v5  ;;  %v7854_v54 = vmax.f32 %v7632_v24, %v1731_v63  ;;  %v1867_v31 = vmax.f32 %v7657_v58, %v1730_v6 }
 0x172   : > { %v7858_v26 = vmax.f32 %v7777_v11, %v1736_v3  ;;  %v1870_v23 = vmax.f32 %v1589_v53, %v1735_v27  ;;  %v7861_v42 = vmax.f32 %v7789_v38, %v1741_v41  ;;  %v1205_v28 = vpack.c.bf16 %v1173_v15, %v1173_v15  ;;  %1269 = vst.msk [vmem:[#allocation2 + $0x1a2] sm:$0xff] %vm226_vm2, %v1173_v15  ;;  %v1303_v3 = vld [vmem:[#allocation2 + $0x108] sm:$0xff]  ;;  %v1306_v41 = vld [vmem:[#allocation2 + $0x120] sm:$0xff] }
 0x173   : > { %2310 = vrot.lane.b32.xlu1 %v2241_v60, %s6388_s30  ;;  %v7867_v29 = vmax.f32 %v7578_v4, %v7851_v55  ;;  %v1873_v39 = vmax.f32 %v1592_v56, %v1740_v43  ;;  %v2003_v17 = vrot.slane %v7844_v45, 1  ;;  %v7871_v58 = vmax.f32 %v7792_v37, %v1746_v21  ;;  %v1309_v60 = vld [vmem:[#allocation2 + $0x138] sm:$0xff] }
 0x174   : > { %v1876_v6 = vmax.f32 %v1595_v30, %v1745_v48  ;;  %v2005_v53 = vrot.slane %v1864_v9, 1  ;;  %v2008_v7 = vrot.slane %v7854_v54, 1  ;;  %1237 = vst.msk [vmem:[#allocation3 + $0x7c] sm:$0xf] %vm229_vm1, %v1205_v28  ;;  %v2010_v27 = vrot.slane %v1867_v31, 1  ;;  %v1312_v28 = vld [vmem:[#allocation2 + $0x150] sm:$0xff] }
 0x175   : > { %v2208_v25 = vmax.f32 %v7736_v10, %v7867_v29  ;;  %v2013_v22 = vrot.slane %v7858_v26, 1  ;;  %v2015_v4 = vrot.slane %v1870_v23, 1  ;;  %v2018_v63 = vrot.slane %v7861_v42, 1 }
 0x176   : > { %v2006_v56 = vsel %vm1390_vm11, %v2003_v17, %v2005_v53  ;;  %v2020_v43 = vrot.slane %v1873_v39, 1  ;;  %v2023_v30 = vrot.slane %v7871_v58, 1  ;;  %v2011_v10 = vsel %vm1390_vm11, %v2008_v7, %v2010_v27 }
 0x177   : > { %v2240_v48 = vpack.c.bf16 %v2208_v25, %v2208_v25  ;;  %2433 = vst.msk [vmem:[#allocation2 + $0x62] sm:$0xff] %vm226_vm2, %v2208_v25  ;;  %v2016_v1 = vsel %vm1390_vm11, %v2013_v22, %v2015_v4  ;;  %v2025_v40 = vrot.slane %v1876_v6, 1  ;;  %v7894_v21 = vmax.f32 %v7844_v45, %v2006_v56 }
 0x178   : > { %v2021_v44 = vsel %vm1390_vm11, %v2018_v63, %v2020_v43  ;;  %v2115_v9 = vmax.f32 %v7854_v54, %v2011_v10  ;;  %v2117_v15 = vmax.f32 %v7858_v26, %v2016_v1  ;;  %v1441_v39 = vrot.slane %v1300_v35, 1 }
 0x179   : > { %2308 = vrot.lane.b32.xlu0 %v2240_v48, %s6388_s30  ;;  %v2026_v31 = vsel %vm1390_vm11, %v2023_v30, %v2025_v40  ;;  %v2119_v23 = vmax.f32 %v7861_v42, %v2021_v44  ;;  %v1446_v6 = vrot.slane %v1303_v3, 1  ;;  %v1451_v4 = vrot.slane %v1306_v41, 1 }
 0x17a   : > { %v7904_v53 = vmax.f32 %v7871_v58, %v2026_v31  ;;  %v7907_v25 = vmax.f32 %v7894_v21, %v2115_v9  ;;  %v7909_v27 = vmax.f32 %v2115_v9, %v2117_v15  ;;  %v1443_v43 = vsel %vm1390_vm11, %v1441_v39, %v1442_v61  ;;  %v1293_v31 = vld [vmem:[#allocation2 + $0xb8] sm:$0xf] }
 0x17b   : > { %v7911_v56 = vmax.f32 %v2117_v15, %v2119_v23  ;;  %v1448_v48 = vsel %vm1390_vm11, %v1446_v6, %v1447_v57  ;;  %v1456_v10 = vrot.slane %v1309_v60, 1  ;;  %v1453_v40 = vsel %vm1390_vm11, %v1451_v4, %v1452_v19  ;;  %v1292_v15 = vld [vmem:[#allocation2 + $0xb0] sm:$0xff] }
 0x17c   : > { %v7920_v1 = vmax.f32 %v2119_v23, %v7904_v53  ;;  %v1461_v44 = vrot.slane %v1312_v28, 1  ;;  %v1581_v9 = vmax.f32 %v1300_v35, %v1443_v43  ;;  %v1584_v61 = vmax.f32 %v1303_v3, %v1448_v48 }
 0x17d   : > { %v7927_v49 = vmax.f32 %v7907_v25, %v7911_v56  ;;  %v1458_v62 = vsel %vm1390_vm11, %v1456_v10, %v1457_v50  ;;  %v1587_v57 = vmax.f32 %v1306_v41, %v1453_v40  ;;  %v1427_v43 = vrot.slane %v1292_v15, 1  ;;  %v1291_v40 = vld [vmem:[#allocation2 + $0xa8] sm:$0xff] }
 0x17e   : > { %v7934_v23 = vmax.f32 %v7909_v27, %v7920_v1  ;;  %v1463_v2 = vsel %vm1390_vm11, %v1461_v44, %v1462_v59  ;;  %v1590_v19 = vmax.f32 %v1309_v60, %v1458_v62  ;;  %v1722_v35 = vrot.slane %v1581_v9, 2 }
 0x17f   : > { %v1593_v39 = vmax.f32 %v1312_v28, %v1463_v2  ;;  %v1727_v6 = vrot.slane %v1584_v61, 2  ;;  %v1732_v4 = vrot.slane %v1587_v57, 2  ;;  %v1429_v41 = vrot.slane %v1293_v31, 1 }
 0x180   : > { %v2225_v20 = vmax.f32 %v7927_v49, %v7934_v23  ;;  %v1724_v50 = vsel %vm1671_vm12, %v1722_v35, %v1723_v36  ;;  %v1737_v3 = vrot.slane %v1590_v19, 2  ;;  %vm2396_vm1 = vcmask 60448  }
 0x181   : > { %v1729_v32 = vsel %vm1671_vm12, %v1727_v6, %v1728_v12  ;;  %v1734_v59 = vsel %vm1671_vm12, %v1732_v4, %v1733_v0  ;;  %v1742_v60 = vrot.slane %v1593_v39, 2  ;;  %v1862_v28 = vmax.f32 %v1581_v9, %v1724_v50  ;;  %v1315_v50 = vld [vmem:[#allocation2 + $0x168] sm:$0xff] }
 0x182   : > { %v2257_v48 = vpack.c.bf16 %v2225_v20, %v2225_v20  ;;  %2450 = vst.msk [vmem:[#allocation2 + $0x12a] sm:$0xff] %vm226_vm2, %v2225_v20  ;;  %v1739_v47 = vsel %vm1671_vm12, %v1737_v3, %v1738_v8  ;;  %v1865_v36 = vmax.f32 %v1584_v61, %v1729_v32  ;;  %v1868_v10 = vmax.f32 %v1587_v57, %v1734_v59  ;;  %v7984_v3 = vld [vmem:[#allocation2 + $0x8] sm:$0xff] }
 0x183   : > { %v1744_v24 = vsel %vm1671_vm12, %v1742_v60, %v1743_v33  ;;  %v1871_v12 = vmax.f32 %v1590_v19, %v1739_v47  ;;  %v2002_v11 = vrot.slane %v1862_v28, 1  ;;  %v1430_v0 = vsel %vm1390_vm11, %v1427_v43, %v1429_v41 }
 0x184   : > { %2342 = vrot.lane.b32.xlu1 %v2257_v48, %s6388_s30  ;;  %v1874_v44 = vmax.f32 %v1593_v39, %v1744_v24  ;;  %v2007_v9 = vrot.slane %v1865_v36, 1  ;;  %v2012_v62 = vrot.slane %v1868_v10, 1  ;;  %v1573_v2 = vmax.f32 %v1292_v15, %v1430_v0 }
 0x185   : > { %v2004_v38 = vsel %vm1390_vm11, %v2002_v11, %v2003_v17  ;;  %v2017_v8 = vrot.slane %v1871_v12, 1  ;;  %v1574_v61 = vmax.f32 %v1293_v31, %v1429_v41  ;;  %v1426_v57 = vrot.slane %v1291_v40, 1  ;;  %v1316_v31 = vld [vmem:[#allocation2 + $0x170] sm:$0xff] }
 0x186   : > { %v2009_v37 = vsel %vm1390_vm11, %v2007_v9, %v2008_v7  ;;  %v2014_v33 = vsel %vm1390_vm11, %v2012_v62, %v2013_v22  ;;  %v2022_v19 = vrot.slane %v1874_v44, 1  ;;  %v7968_v35 = vmax.f32 %v1862_v28, %v2004_v38  ;;  %v1317_v22 = vld [vmem:[#allocation2 + $0x178] sm:$0xf]  ;;  %v8006_v38 = vld [vmem:[#allocation2 + $0x20] sm:$0xff] }
 0x187   : > { %v2019_v45 = vsel %vm1390_vm11, %v2017_v8, %v2018_v63  ;;  %v2114_v15 = vmax.f32 %v1865_v36, %v2009_v37  ;;  %v2116_v17 = vmax.f32 %v1868_v10, %v2014_v33  ;;  %v1708_v39 = vrot.slane %v1573_v2, 2 }
 0x188   : > { %10848 = vst [vmem:[#allocation4_spill] sm:$0xff] %v7968_v35  ;;  %v2024_v54 = vsel %vm1390_vm11, %v2022_v19, %v2023_v30  ;;  %v2118_v7 = vmax.f32 %v1871_v12, %v2019_v45  ;;  %v1710_v6 = vrot.slane %v1574_v61, 2  ;;  %v1428_v26 = vsel %vm1390_vm11, %v1426_v57, %v1427_v43 }
 0x189   : > { %v7977_v4 = vmax.f32 %v1874_v44, %v2024_v54  ;;  %v7980_v20 = vmax.f32 %v7968_v35, %v2114_v15  ;;  %v7982_v42 = vmax.f32 %v2114_v15, %v2116_v17  ;;  %v1572_v63 = vmax.f32 %v1291_v40, %v1428_v26  ;;  %v8027_v26 = vld [vmem:[#allocation2 + $0x28] sm:$0xf] }
 0x18a   : > { %v7986_v41 = vmax.f32 %v2116_v17, %v2118_v7  ;;  %v1711_v58 = vsel %vm1671_vm12, %v1708_v39, %v1710_v6  ;;  %v1855_v30 = vmax.f32 %v1574_v61, %v1710_v6  ;;  %v1467_v32 = vrot.slane %v1316_v31, 1 }
 0x18b   : > { %10849 = vst [vmem:[#allocation5_spill] sm:$0xff] %v7980_v20  ;;  %v7990_v43 = vmax.f32 %v2118_v7, %v7977_v4  ;;  %v1854_v59 = vmax.f32 %v1573_v2, %v1711_v58  ;;  %v1707_v60 = vrot.slane %v1572_v63, 2  ;;  %v1469_v28 = vrot.slane %v1317_v22, 1  ;;  %v8004_v2 = vld [vmem:[#allocation2 + $0x10] sm:$0xf] }
 0x18c   : > { %10850 = vst [vmem:[#allocation6_spill] sm:$0xff] %v7982_v42  ;;  %v7994_v48 = vmax.f32 %v7980_v20, %v7986_v41  ;;  %v1990_v47 = vrot.slane %v1855_v30, 1  ;;  %v1466_v36 = vrot.slane %v1315_v50, 1  ;;  %v2582_v10 = vrot.slane %v7984_v3, 1  ;;  %v2468_v30 = vld [vmem:[#allocation2 + $0x38] sm:$0xff] }
 0x18d   : > { %v7999_v40 = vmax.f32 %v7982_v42, %v7990_v43  ;;  %v1988_v24 = vrot.slane %v1854_v59, 1  ;;  %v1709_v12 = vsel %vm1671_vm12, %v1707_v60, %v1708_v39  ;;  %v1470_v11 = vsel %vm1390_vm11, %v1467_v32, %v1469_v28 }
 0x18e   : > { %10851 = vst [vmem:[#allocation7_spill] sm:$0xff] %v7994_v48  ;;  %v1853_v0 = vmax.f32 %v1572_v63, %v1709_v12  ;;  %v1597_v44 = vmax.f32 %v1316_v31, %v1470_v11  ;;  %v1598_v9 = vmax.f32 %v1317_v22, %v1469_v28  ;;  %v1468_v62 = vsel %vm1390_vm11, %v1466_v36, %v1467_v32  ;;  %v8029_v22 = vld [vmem:[#allocation2 + $0x30] sm:$0xff]  ;;  %v2469_v32 = vld [vmem:[#allocation2 + $0x40] sm:$0xf] }
 0x18f   : > { %v2224_v8 = vmax.f32 %v7994_v48, %v7999_v40  ;;  %v1991_v61 = vsel %vm1390_vm11, %v1988_v24, %v1990_v47  ;;  %v1596_v57 = vmax.f32 %v1315_v50, %v1468_v62  ;;  %v8014_v37 = vsel %vm1390_vm11, %v1391_v13, %v2582_v10  ;;  %v2470_v47 = vld [vmem:[#allocation2 + $0x48] sm:$0xff] }
 0x190   : > { %v8016_v33 = vmax.f32 %v1854_v59, %v1991_v61  ;;  %v1987_v19 = vrot.slane %v1853_v0, 1  ;;  %v1748_v45 = vrot.slane %v1597_v44, 2  ;;  %v1750_v15 = vrot.slane %v1598_v9, 2 }
 0x191   : > { %v2256_v17 = vpack.c.bf16 %v2224_v8, %v2224_v8  ;;  %2449 = vst.msk [vmem:[#allocation2 + $0x122] sm:$0xff] %vm226_vm2, %v2224_v8  ;;  %v1747_v39 = vrot.slane %v1596_v57, 2  ;;  %v2584_v31 = vrot.slane %v8004_v2, 1  ;;  %v2587_v54 = vrot.slane %v8006_v38, 1 }
 0x192   : > { %v8023_v7 = vmax.f32 %v7794_v18, %v8016_v33  ;;  %v1989_v52 = vsel %vm1390_vm11, %v1987_v19, %v1988_v24  ;;  %v1751_v13 = vsel %vm1671_vm12, %v1748_v45, %v1750_v15  ;;  %v1879_v6 = vmax.f32 %v1598_v9, %v1750_v15  ;;  %v2471_v9 = vld [vmem:[#allocation2 + $0x50] sm:$0xff]  ;;  %v2474_v19 = vld [vmem:[#allocation2 + $0x68] sm:$0xff] }
 0x193   : > { %2340 = vrot.lane.b32.xlu0 %v2256_v17, %s6388_s30  ;;  %v8032_v63 = vmax.f32 %v1853_v0, %v1989_v52  ;;  %v1878_v50 = vmax.f32 %v1597_v44, %v1751_v13  ;;  %v1749_v58 = vsel %vm1671_vm12, %v1747_v39, %v1748_v45  ;;  %v2585_v18 = vsel %vm1390_vm11, %v2582_v10, %v2584_v31  ;;  %v2475_v52 = vld [vmem:[#allocation2 + $0x70] sm:$0xf] }
 0x194   : > { %v8040_v59 = vmax.f32 %v7701_v14, %v8023_v7  ;;  %v2030_v60 = vrot.slane %v1879_v6, 1  ;;  %v1877_v28 = vmax.f32 %v1596_v57, %v1749_v58  ;;  %v10852_v36 = vrot.slane %v7460_v46, 1  ;;  %v2473_v57 = vld [vmem:[#allocation2 + $0x60] sm:$0xff] }
 0x195   : > { %v8047_v12 = vmax.f32 %v7833_v5, %v8032_v63  ;;  %v2028_v11 = vrot.slane %v1878_v50, 1  ;;  %v2589_v0 = vrot.slane %v8027_v26, 1  ;;  %v2591_v10 = vrot.slane %v8029_v22, 1  ;;  %v2472_v5 = vld [vmem:[#allocation2 + $0x58] sm:$0xf] }
 0x196   : > { %v2588_v24 = vsel %vm1390_vm11, %v10852_v36, %v2587_v54  ;;  %v2211_v14 = vmax.f32 %v7819_v16, %v8040_v59  ;;  %v2027_v44 = vrot.slane %v1877_v28, 1  ;;  %v2592_v62 = vrot.slane %v2468_v30, 1 }
 0x197   : > { %10853 = vst [vmem:[#allocation8_spill] sm:$0xff] %v8047_v12  ;;  %v2594_v8 = vrot.slane %v2469_v32, 1  ;;  %v8055_v46 = vmax.f32 %v7725_v34, %v8047_v12  ;;  %v2031_v61 = vsel %vm1390_vm11, %v2028_v11, %v2030_v60  ;;  %v2590_v45 = vsel %vm1390_vm11, %v2587_v54, %v2589_v0 }
 0x198   : > { %v2596_v15 = vrot.slane %v2470_v47, 1  ;;  %v2243_v17 = vpack.c.bf16 %v2211_v14, %v2211_v14  ;;  %2436 = vst.msk [vmem:[#allocation2 + $0x82] sm:$0xff] %vm226_vm2, %v2211_v14  ;;  %v8060_v16 = vmax.f32 %v1878_v50, %v2031_v61  ;;  %v2029_v39 = vsel %vm1390_vm11, %v2027_v44, %v2028_v11  ;;  %v6376_v61 = vld [vmem:[#allocation2] sm:$0xff] }
 0x199   : > { %v2593_v13 = vsel %vm1390_vm11, %v2591_v10, %v2592_v62  ;;  %v2210_v34 = vmax.f32 %v7867_v29, %v8055_v46  ;;  %v8066_v6 = vmax.f32 %v1877_v28, %v2029_v39  ;;  %v2595_v58 = vsel %vm1390_vm11, %v2592_v62, %v2594_v8 }
 0x19a   : > { %v2597_v60 = vrot.slane %v2471_v9, 1  ;;  %2314 = vrot.lane.b32.xlu1 %v2243_v17, %s6388_s30  ;;  %v8072_v54 = vmax.f32 %v7904_v53, %v8060_v16  ;;  %v2599_v50 = vrot.slane %v2472_v5, 1  ;;  %v2601_v36 = vrot.slane %v2473_v57, 1 }
 0x19b   : > { %v2602_v11 = vrot.slane %v2474_v19, 1  ;;  %v2242_v14 = vpack.c.bf16 %v2210_v34, %v2210_v34  ;;  %2435 = vst.msk [vmem:[#allocation2 + $0x7a] sm:$0xff] %vm226_vm2, %v2210_v34  ;;  %v8077_v29 = vmax.f32 %v7977_v4, %v8066_v6  ;;  %v2604_v10 = vrot.slane %v2475_v52, 1 }
 0x19c   : > { %v2598_v28 = vsel %vm1390_vm11, %v2596_v15, %v2597_v60  ;;  %v8082_v44 = vmax.f32 %v7911_v56, %v8072_v54  ;;  %v2600_v53 = vsel %vm1390_vm11, %v2597_v60, %v2599_v50  ;;  %v2741_v17 = vmax.f32 %v6376_v61, %v8014_v37  ;;  %v6377_v60 = vld [vmem:[#allocation2 + $0x18] sm:$0xff] }
 0x19d   : > { %10854 = vst [vmem:[#allocation9_spill] sm:$0xff] %v8077_v29  ;;  %v2603_v62 = vsel %vm1390_vm11, %v2601_v36, %v2602_v11  ;;  %2312 = vrot.lane.b32.xlu0 %v2242_v14, %s6388_s30  ;;  %v8090_v4 = vmax.f32 %v7986_v41, %v8077_v29  ;;  %v2605_v15 = vsel %vm1390_vm11, %v2602_v11, %v2604_v10  ;;  %vm3585_vm14 = vcmask 93248  }
 0x19e   : > { %v2742_v39 = vmax.f32 %v7984_v3, %v2585_v18  ;;  %v8097_v56 = vmax.f32 %v8004_v2, %v2584_v31  ;;  %v2227_v34 = vmax.f32 %v7934_v23, %v8082_v44  ;;  %v2744_v37 = vmax.f32 %v6377_v60, %v2588_v24 }
 0x19f   : > { %v2745_v36 = vmax.f32 %v8006_v38, %v2590_v45  ;;  %v8103_v14 = vmax.f32 %v8027_v26, %v2589_v0  ;;  %v2226_v41 = vmax.f32 %v7999_v40, %v8090_v4  ;;  %v2747_v3 = vmax.f32 %v8029_v22, %v2593_v13 }
 0x1a0   : > { %v2748_v18 = vmax.f32 %v2468_v30, %v2595_v58  ;;  %v8108_v11 = vmax.f32 %v2469_v32, %v2594_v8  ;;  %v2259_v2 = vpack.c.bf16 %v2227_v34, %v2227_v34  ;;  %2452 = vst.msk [vmem:[#allocation2 + $0x142] sm:$0xff] %vm226_vm2, %v2227_v34  ;;  %v2750_v31 = vmax.f32 %v2470_v47, %v2598_v28 }
 0x1a1   : > { %v2751_v23 = vmax.f32 %v2471_v9, %v2600_v53  ;;  %v8111_v61 = vmax.f32 %v2472_v5, %v2599_v50  ;;  %v2258_v24 = vpack.c.bf16 %v2226_v41, %v2226_v41  ;;  %2451 = vst.msk [vmem:[#allocation2 + $0x13a] sm:$0xff] %vm226_vm2, %v2226_v41  ;;  %v2753_v38 = vmax.f32 %v2473_v57, %v2603_v62 }
 0x1a2   : > { %v2754_v26 = vmax.f32 %v2474_v19, %v2605_v15  ;;  %v8114_v0 = vmax.f32 %v2475_v52, %v2604_v10  ;;  %2346 = vrot.lane.b32.xlu1 %v2259_v2, %s6388_s30  ;;  %v2861_v40 = vrot.slane %v2741_v17, 2  ;;  %v2862_v22 = vrot.slane %v2742_v39, 2 }
 0x1a3   : > { %v2864_v30 = vrot.slane %v8097_v56, 2  ;;  %v2866_v32 = vrot.slane %v2744_v37, 2  ;;  %v2867_v8 = vrot.slane %v2745_v36, 2  ;;  %v2869_v47 = vrot.slane %v8103_v14, 2 }
 0x1a4   : > { %v2871_v9 = vrot.slane %v2747_v3, 2  ;;  %v2872_v5 = vrot.slane %v2748_v18, 2  ;;  %v2863_v45 = vsel %vm1671_vm12, %v2861_v40, %v2862_v22  ;;  %v2874_v57 = vrot.slane %v8108_v11, 2 }
 0x1a5   : > { %v2865_v13 = vsel %vm1671_vm12, %v2862_v22, %v2864_v30  ;;  %v2876_v19 = vrot.slane %v2750_v31, 2  ;;  %2344 = vrot.lane.b32.xlu0 %v2258_v24, %s6388_s30  ;;  %v2868_v52 = vsel %vm1671_vm12, %v2866_v32, %v2867_v8  ;;  %v2870_v58 = vsel %vm1671_vm12, %v2867_v8, %v2869_v47 }
 0x1a6   : > { %v2873_v50 = vsel %vm1671_vm12, %v2871_v9, %v2872_v5  ;;  %v2877_v28 = vrot.slane %v2751_v23, 2  ;;  %v2875_v10 = vsel %vm1671_vm12, %v2872_v5, %v2874_v57  ;;  %v2879_v53 = vrot.slane %v8111_v61, 2 }
 0x1a7   : > { %v2881_v62 = vrot.slane %v2753_v38, 2  ;;  %v2882_v15 = vrot.slane %v2754_v26, 2  ;;  %v2884_v60 = vrot.slane %v8114_v0, 2  ;;  %v3021_v41 = vmax.f32 %v2741_v17, %v2863_v45 }
 0x1a8   : > { %v2878_v34 = vsel %vm1671_vm12, %v2876_v19, %v2877_v28  ;;  %v8130_v2 = vmax.f32 %v2742_v39, %v2865_v13  ;;  %v2880_v24 = vsel %vm1671_vm12, %v2877_v28, %v2879_v53  ;;  %v3024_v22 = vmax.f32 %v2744_v37, %v2868_v52  ;;  %v8143_v39 = vld [vmem:[#allocation2 + $0xc8] sm:$0xff] }
 0x1a9   : > { %v2883_v40 = vsel %vm1671_vm12, %v2881_v62, %v2882_v15  ;;  %v8134_v32 = vmax.f32 %v2745_v36, %v2870_v58  ;;  %v2885_v8 = vsel %vm1671_vm12, %v2882_v15, %v2884_v60  ;;  %v3027_v9 = vmax.f32 %v2747_v3, %v2873_v50 }
 0x1aa   : > { %v8137_v5 = vmax.f32 %v2748_v18, %v2875_v10  ;;  %v3030_v29 = vmax.f32 %v2750_v31, %v2878_v34  ;;  %v8139_v48 = vmax.f32 %v2751_v23, %v2880_v24  ;;  %v3033_v19 = vmax.f32 %v2753_v38, %v2883_v40  ;;  %v1296_v23 = vld [vmem:[#allocation2 + $0xd0] sm:$0xf] }
 0x1ab   : > { %v8141_v42 = vmax.f32 %v2754_v26, %v2885_v8  ;;  %v3141_v17 = vrot.slane %v3021_v41, 1  ;;  %v3142_v45 = vrot.slane %v8130_v2, 1  ;;  %v3146_v13 = vrot.slane %v3024_v22, 1 }
 0x1ac   : > { %v3147_v37 = vrot.slane %v8134_v32, 1  ;;  %v3151_v36 = vrot.slane %v3027_v9, 1  ;;  %v3152_v52 = vrot.slane %v8137_v5, 1  ;;  %v3156_v3 = vrot.slane %v3030_v29, 1 }
 0x1ad   : > { %v3157_v18 = vrot.slane %v8139_v48, 1  ;;  %v3161_v31 = vrot.slane %v3033_v19, 1  ;;  %v3143_v38 = vsel %vm1390_vm11, %v3141_v17, %v3142_v45  ;;  %v3162_v58 = vrot.slane %v8141_v42, 1 }
 0x1ae   : > { %v3148_v26 = vsel %vm1390_vm11, %v3146_v13, %v3147_v37  ;;  %v3153_v28 = vsel %vm1390_vm11, %v3151_v36, %v3152_v52  ;;  %v3281_v62 = vmax.f32 %v3021_v41, %v3143_v38  ;;  %v1434_v8 = vrot.slane %v1296_v23, 1 }
 0x1af   : > { %v3158_v10 = vsel %vm1390_vm11, %v3156_v3, %v3157_v18  ;;  %v3283_v15 = vmax.f32 %v3024_v22, %v3148_v26  ;;  %v3163_v34 = vsel %vm1390_vm11, %v3161_v31, %v3162_v58  ;;  %v3285_v24 = vmax.f32 %v3027_v9, %v3153_v28 }
 0x1b0   : > { %v3287_v40 = vmax.f32 %v3030_v29, %v3158_v10  ;;  %v8156_v20 = vmax.f32 %v3033_v19, %v3163_v34  ;;  %v3023_v13 = vmax.f32 %v8097_v56, %v2864_v30  ;;  %v3026_v12 = vmax.f32 %v8103_v14, %v2869_v47  ;;  %v1320_v34 = vld [vmem:[#allocation2 + $0x190] sm:$0xf] }
 0x1b1   : > { %v3321_v17 = vmax.f32 %v3281_v62, %v3283_v15  ;;  %v3323_v35 = vmax.f32 %v3283_v15, %v3285_v24  ;;  %v10855_v36 = vrot.slane %v8143_v39, 1  ;;  %v1577_v22 = vmax.f32 %v1296_v23, %v1434_v8 }
 0x1b2   : > { %v8160_v50 = vmax.f32 %v3285_v24, %v3287_v40  ;;  %v8166_v3 = vmax.f32 %v3287_v40, %v8156_v20  ;;  %v3029_v9 = vmax.f32 %v8108_v11, %v2874_v57  ;;  %v3032_v56 = vmax.f32 %v8111_v61, %v2879_v53  ;;  %v8186_v53 = vld [vmem:[#allocation2 + $0x188] sm:$0xff]  ;;  %v1294_v24 = vld [vmem:[#allocation2 + $0xc0] sm:$0xff] }
 0x1b3   : > { %v1435_v41 = vsel %vm1390_vm11, %v10855_v36, %v1434_v8  ;;  %v1715_v30 = vrot.slane %v1577_v22, 2  ;;  %v3035_v47 = vmax.f32 %v8114_v0, %v2884_v60  ;;  %v3144_v19 = vrot.slane %v3023_v13, 1 }
 0x1b4   : > { %v8169_v29 = vmax.f32 %v8143_v39, %v1435_v41  ;;  %v3359_v14 = vmax.f32 %v3321_v17, %v8160_v50  ;;  %v8176_v31 = vmax.f32 %v3323_v35, %v8166_v3  ;;  %v3149_v38 = vrot.slane %v3026_v12, 1  ;;  %v2476_v17 = vld [vmem:[#allocation2 + $0x78] sm:$0xff] }
 0x1b5   : > { %v3154_v26 = vrot.slane %v3029_v9, 1  ;;  %v1858_v28 = vmax.f32 %v1577_v22, %v1715_v30  ;;  %v3145_v10 = vsel %vm1390_vm11, %v3142_v45, %v3144_v19  ;;  %v3159_v62 = vrot.slane %v3032_v56, 1  ;;  %v2478_v56 = vld [vmem:[#allocation2 + $0x88] sm:$0xf] }
 0x1b6   : > { %v1713_v23 = vrot.slane %v8169_v29, 2  ;;  %v3164_v11 = vrot.slane %v3035_v47, 1  ;;  %v3393_v61 = vmax.f32 %v3359_v14, %v8176_v31  ;;  %v3150_v0 = vsel %vm1390_vm11, %v3147_v37, %v3149_v38 }
 0x1b7   : > { %v3155_v35 = vsel %vm1390_vm11, %v3152_v52, %v3154_v26  ;;  %v1995_v60 = vrot.slane %v1858_v28, 1  ;;  %v3160_v45 = vsel %vm1390_vm11, %v3157_v18, %v3159_v62  ;;  %v3282_v8 = vmax.f32 %v8130_v2, %v3145_v10  ;;  %v8221_v28 = vld [vmem:[#allocation2 + $0xe0] sm:$0xff] }
 0x1b8   : > { %v1716_v57 = vsel %vm1671_vm12, %v1713_v23, %v1715_v30  ;;  %v3165_v15 = vsel %vm1390_vm11, %v3162_v58, %v3164_v11  ;;  %v3425_v40 = vpack.c.bf16 %v3393_v61, %v3393_v61  ;;  %3618 = vst.msk [vmem:[#allocation2 + $0x32] sm:$0xff] %vm226_vm2, %v3393_v61  ;;  %v3284_v37 = vmax.f32 %v8134_v32, %v3150_v0 }
 0x1b9   : > { %v8189_v12 = vmax.f32 %v8169_v29, %v1716_v57  ;;  %v3286_v52 = vmax.f32 %v8137_v5, %v3155_v35  ;;  %v3288_v36 = vmax.f32 %v8139_v48, %v3160_v45  ;;  %v8200_v18 = vmax.f32 %v8141_v42, %v3165_v15  ;;  %v2477_v42 = vld [vmem:[#allocation2 + $0x80] sm:$0xff] }
 0x1ba   : > { %v1472_v58 = vrot.slane %v8186_v53, 1  ;;  %3489 = vrot.lane.b32.xlu2 %v3425_v40, %s6389_s6  ;;  %v3322_v41 = vmax.f32 %v3282_v8, %v3284_v37  ;;  %v1474_v2 = vrot.slane %v1320_v34, 1  ;;  %v1431_v9 = vrot.slane %v1294_v24, 1 }
 0x1bb   : > { %v1993_v13 = vrot.slane %v8189_v12, 1  ;;  %v3324_v22 = vmax.f32 %v3284_v37, %v3286_v52  ;;  %v8207_v5 = vmax.f32 %v3286_v52, %v3288_v36  ;;  %v8210_v48 = vmax.f32 %v3288_v36, %v8200_v18  ;;  %v1299_v37 = vld [vmem:[#allocation2 + $0xe8] sm:$0xf] }
 0x1bc   : > { %v2606_v14 = vrot.slane %v2476_v17, 1  ;;  %v1475_v47 = vsel %vm1390_vm11, %v1472_v58, %v1474_v2  ;;  %v1601_v19 = vmax.f32 %v1320_v34, %v1474_v2  ;;  %v10856_v38 = vrot.slane %v8143_v39, 1 }
 0x1bd   : > { %v1996_v32 = vsel %vm1390_vm11, %v1993_v13, %v1995_v60  ;;  %v3360_v10 = vmax.f32 %v3322_v41, %v8207_v5  ;;  %v8225_v62 = vmax.f32 %v3324_v22, %v8210_v48  ;;  %v8228_v11 = vmax.f32 %v8186_v53, %v1475_v47 }
 0x1be   : > { %v8213_v30 = vmax.f32 %v8189_v12, %v1996_v32  ;;  %v1433_v26 = vsel %vm1390_vm11, %v1431_v9, %v10856_v38  ;;  %v1755_v0 = vrot.slane %v1601_v19, 2  ;;  %v2607_v35 = vrot.slane %v2477_v42, 1 }
 0x1bf   : > { %v1575_v61 = vmax.f32 %v1294_v24, %v1433_v26  ;;  %v2609_v39 = vrot.slane %v2478_v56, 1  ;;  %v3394_v60 = vmax.f32 %v3360_v10, %v8225_v62  ;;  %v1753_v45 = vrot.slane %v8228_v11, 2 }
 0x1c0   : > { %v8232_v57 = vmax.f32 %v8016_v33, %v8213_v30  ;;  %v1437_v34 = vrot.slane %v8221_v28, 1  ;;  %v1882_v8 = vmax.f32 %v1601_v19, %v1755_v0  ;;  %v2608_v24 = vsel %vm1390_vm11, %v2606_v14, %v2607_v35 }
 0x1c1   : > { %v1712_v15 = vrot.slane %v1575_v61, 2  ;;  %v2610_v33 = vsel %vm1390_vm11, %v2607_v35, %v2609_v39  ;;  %v3426_v52 = vpack.c.bf16 %v3394_v60, %v3394_v60  ;;  %3619 = vst.msk [vmem:[#allocation2 + $0x3a] sm:$0xff] %vm226_vm2, %v3394_v60  ;;  %v1756_v36 = vsel %vm1671_vm12, %v1753_v45, %v1755_v0 }
 0x1c2   : > { %v8239_v40 = vmax.f32 %v7802_v51, %v8232_v57  ;;  %v2756_v22 = vmax.f32 %v2476_v17, %v2608_v24  ;;  %v1318_v51 = vld [vmem:[#allocation2 + $0x180] sm:$0xff]  ;;  %v8253_v9 = vmax.f32 %v8228_v11, %v1756_v36  ;;  %v2035_v32 = vrot.slane %v1882_v8, 1 }
 0x1c3   : > { %v1714_v41 = vsel %vm1671_vm12, %v1712_v15, %v1713_v23  ;;  %3491 = vrot.lane.b32.xlu0 %v3426_v52, %s6389_s6  ;;  %v2757_v47 = vmax.f32 %v2477_v42, %v2610_v33  ;;  %v2758_v19 = vmax.f32 %v2478_v56, %v2609_v39  ;;  %v1439_v26 = vrot.slane %v1299_v37, 1 }
 0x1c4   : > { %v2213_v2 = vmax.f32 %v8040_v59, %v8239_v40  ;;  %v1856_v14 = vmax.f32 %v1575_v61, %v1714_v41  ;;  %v2886_v38 = vrot.slane %v2756_v22, 2  ;;  %v2033_v29 = vrot.slane %v8253_v9, 1 }
 0x1c5   : > { %v1471_v17 = vrot.slane %v1318_v51, 1  ;;  %v2887_v0 = vrot.slane %v2757_v47, 2  ;;  %v2889_v59 = vrot.slane %v2758_v19, 2  ;;  %v1440_v35 = vsel %vm1390_vm11, %v1437_v34, %v1439_v26 }
 0x1c6   : > { %v2245_v10 = vpack.c.bf16 %v2213_v2, %v2213_v2  ;;  %2438 = vst.msk [vmem:[#allocation2 + $0x9a] sm:$0xff] %vm226_vm2, %v2213_v2  ;;  %v1992_v23 = vrot.slane %v1856_v14, 1  ;;  %v1580_v61 = vmax.f32 %v1299_v37, %v1439_v26  ;;  %v2036_v42 = vsel %vm1390_vm11, %v2033_v29, %v2035_v32 }
 0x1c7   : > { %v8269_v39 = vmax.f32 %v8221_v28, %v1440_v35  ;;  %v1473_v60 = vsel %vm1390_vm11, %v1471_v17, %v1472_v58  ;;  %v8275_v15 = vmax.f32 %v8253_v9, %v2036_v42  ;;  %v2888_v24 = vsel %vm1671_vm12, %v2886_v38, %v2887_v0  ;;  %v8306_v38 = vld [vmem:[#allocation2 + $0xd8] sm:$0xff] }
 0x1c8   : > { %2318 = vrot.lane.b32.xlu1 %v2245_v10, %s6388_s30  ;;  %v1994_v56 = vsel %vm1390_vm11, %v1992_v23, %v1993_v13  ;;  %v2890_v33 = vsel %vm1671_vm12, %v2887_v0, %v2889_v59  ;;  %v3036_v37 = vmax.f32 %v2756_v22, %v2888_v24  ;;  %v1720_v52 = vrot.slane %v1580_v61, 2  ;;  %v1323_v24 = vld [vmem:[#allocation2 + $0x1a8] sm:$0xf] }
 0x1c9   : > { %v8277_v8 = vmax.f32 %v1856_v14, %v1994_v56  ;;  %v3037_v12 = vmax.f32 %v2757_v47, %v2890_v33  ;;  %v10664_v13 = vrot.slane %v8269_v39, 2  ;;  %v8284_v36 = vmax.f32 %v8060_v16, %v8275_v15  ;;  %v8337_v33 = vld [vmem:[#allocation2 + $0x1b8] sm:$0xff] }
 0x1ca   : > { %v1599_v58 = vmax.f32 %v1318_v51, %v1473_v60  ;;  %v3038_v41 = vmax.f32 %v2758_v19, %v2889_v59  ;;  %v3166_v2 = vrot.slane %v3036_v37, 1  ;;  %v1861_v14 = vmax.f32 %v1580_v61, %v1720_v52 }
 0x1cb   : > { %v8288_v53 = vmax.f32 %v8032_v63, %v8277_v8  ;;  %v3167_v32 = vrot.slane %v3037_v12, 1  ;;  %v1721_v22 = vsel %vm1671_vm12, %v10664_v13, %v1720_v52  ;;  %v8295_v47 = vmax.f32 %v7920_v1, %v8284_v36 }
 0x1cc   : > { %v8302_v63 = vmax.f32 %v8269_v39, %v1721_v22  ;;  %v1752_v51 = vrot.slane %v1599_v58, 2  ;;  %v2000_v10 = vrot.slane %v1861_v14, 1  ;;  %v3169_v17 = vrot.slane %v3038_v41, 1 }
 0x1cd   : > { %v8299_v16 = vmax.f32 %v7851_v55, %v8288_v53  ;;  %v8304_v19 = vld [vmem:[#allocation2 + $0xa0] sm:$0xf]  ;;  %v3168_v26 = vsel %vm1390_vm11, %v3166_v2, %v3167_v32  ;;  %v2229_v1 = vmax.f32 %v8082_v44, %v8295_v47  ;;  %v1436_v44 = vrot.slane %v8306_v38, 1 }
 0x1ce   : > { %v2614_v23 = vrot.slane %v8304_v19, 1  ;;  %v8314_v0 = vmax.f32 %v3036_v37, %v3168_v26  ;;  %v10662_v59 = vrot.slane %v8302_v63, 1  ;;  %v1754_v35 = vsel %vm1671_vm12, %v1752_v51, %v1753_v45  ;;  %v8335_v45 = vld [vmem:[#allocation2 + $0x1a0] sm:$0xff] }
 0x1cf   : > { %v2212_v55 = vmax.f32 %v8055_v46, %v8299_v16  ;;  %v3170_v42 = vsel %vm1390_vm11, %v3167_v32, %v3169_v17  ;;  %v2261_v56 = vpack.c.bf16 %v2229_v1, %v2229_v1  ;;  %2454 = vst.msk [vmem:[#allocation2 + $0x15a] sm:$0xff] %vm226_vm2, %v2229_v1  ;;  %v1880_v52 = vmax.f32 %v1599_v58, %v1754_v35 }
 0x1d0   : > { %v8323_v61 = vmax.f32 %v8304_v19, %v2614_v23  ;;  %v8330_v60 = vmax.f32 %v8156_v20, %v8314_v0  ;;  %v2001_v11 = vsel %vm1390_vm11, %v10662_v59, %v2000_v10  ;;  %v8342_v2 = vmax.f32 %v3037_v12, %v3170_v42  ;;  %v1326_v20 = vld [vmem:[#allocation2 + $0x1c0] sm:$0xf]  ;;  %v1329_v42 = vld [vmem:[#allocation2 + $0x1d8] sm:$0xf] }
 0x1d1   : > { %v2244_v46 = vpack.c.bf16 %v2212_v55, %v2212_v55  ;;  %2437 = vst.msk [vmem:[#allocation2 + $0x92] sm:$0xff] %vm226_vm2, %v2212_v55  ;;  %v2111_v37 = vmax.f32 %v8302_v63, %v2001_v11  ;;  %2350 = vrot.lane.b32.xlu1 %v2261_v56, %s6388_s30  ;;  %v10661_v22 = vrot.slane %v8335_v45, 1  ;;  %v1479_v14 = vrot.slane %v1323_v24, 1 }
 0x1d2   : > { %10857 = vst [vmem:[#allocation10_spill] sm:$0xff] %v8330_v60  ;;  %v2894_v41 = vrot.slane %v8323_v61, 2  ;;  %v8348_v32 = vmax.f32 %v8160_v50, %v8330_v60  ;;  %v10660_v51 = vrot.slane %v8337_v33, 1  ;;  %v2032_v26 = vrot.slane %v1880_v52, 1 }
 0x1d3   : > { %2316 = vrot.lane.b32.xlu0 %v2244_v46, %s6388_s30  ;;  %v2151_v58 = vmax.f32 %v2111_v37, %v7894_v21  ;;  %v8354_v12 = vmax.f32 %v8213_v30, %v2111_v37  ;;  %v8365_v17 = vmax.f32 %v8200_v18, %v8342_v2  ;;  %v1480_v21 = vsel %vm1390_vm11, %v10661_v22, %v1479_v14  ;;  %v8381_v18 = vld [vmem:[#allocation2 + $0x1d0] sm:$0xff] }
 0x1d4   : > { %v8359_v10 = vmax.f32 %v8323_v61, %v2894_v41  ;;  %v3395_v50 = vmax.f32 %v8176_v31, %v8348_v32  ;;  %v1484_v1 = vrot.slane %v1326_v20, 1  ;;  %v2034_v55 = vsel %vm1390_vm11, %v2032_v26, %v2033_v29  ;;  %v8410_v26 = vld [vmem:[#allocation2 + $0x120] sm:$0xff] }
 0x1d5   : > { %10858 = vst [vmem:[#allocation11_spill] sm:$0xff] %v8365_v17  ;;  %v8371_v30 = vmax.f32 %v2151_v58, %v7909_v27  ;;  %v2183_v35 = vmax.f32 %v8023_v7, %v8354_v12  ;;  %v8379_v31 = vmax.f32 %v8232_v57, %v2151_v58  ;;  %v8384_v46 = vmax.f32 %v1880_v52, %v2034_v55 }
 0x1d6   : > { %v3427_v56 = vpack.c.bf16 %v3395_v50, %v3395_v50  ;;  %3620 = vst.msk [vmem:[#allocation2 + $0x4a] sm:$0xff] %vm226_vm2, %v3395_v50  ;;  %v3174_v27 = vrot.slane %v8359_v10, 1  ;;  %v8389_v9 = vmax.f32 %v8207_v5, %v8365_v17  ;;  %v1485_v11 = vsel %vm1390_vm11, %v10660_v51, %v1484_v1 }
 0x1d7   : > { %10859 = vst [vmem:[#allocation12_spill] sm:$0xff] %v8384_v46  ;;  %v2223_v7 = vmax.f32 %v8371_v30, %v7927_v49  ;;  %v2215_v57 = vmax.f32 %v8239_v40, %v2183_v35  ;;  %v8395_v29 = vmax.f32 %v2183_v35, %v8379_v31  ;;  %v8403_v37 = vmax.f32 %v8066_v6, %v8384_v46 }
 0x1d8   : > { %3493 = vrot.lane.b32.xlu2 %v3427_v56, %s6389_s6  ;;  %v2480_v5 = vld [vmem:[#allocation2 + $0x98] sm:$0xff]  ;;  %v8407_v52 = vmax.f32 %v8225_v62, %v8389_v9  ;;  %v2479_v49 = vld [vmem:[#allocation2 + $0x90] sm:$0xff]  ;;  %v10663_v40 = vrot.slane %v8381_v18, 1  ;;  %v1489_v58 = vrot.slane %v1329_v42, 1  ;;  %v8424_v22 = vmax.f32 %v8335_v45, %v1480_v21 }
 0x1d9   : > { %10860 = vst [vmem:[#allocation13_spill] sm:$0xff] %v8395_v29  ;;  %v2255_v50 = vpack.c.bf16 %v2223_v7, %v2223_v7  ;;  %v2247_v55 = vpack.c.bf16 %v2215_v57, %v2215_v57  ;;  %v2612_v35 = vrot.slane %v2480_v5, 1  ;;  %v2611_v56 = vrot.slane %v2479_v49, 1 }
 0x1da   : > { %10861 = vst [vmem:[#allocation14_spill] sm:$0xff] %v8403_v37  ;;  %v8415_v6 = vmax.f32 %v7990_v43, %v8403_v37  ;;  %v1490_v51 = vsel %vm1390_vm11, %v10663_v40, %v1489_v58  ;;  %v2641_v59 = vrot.slane %v8410_v26, 1  ;;  %v1607_v62 = vmax.f32 %v1326_v20, %v1484_v1 }
 0x1db   : > { %2448 = vst.msk [vmem:[#allocation2 + $0x112] sm:$0xff] %vm226_vm2, %v2223_v7  ;;  %2338 = vrot.lane.b32.xlu1 %v2255_v50, %s6388_s30  ;;  %v2615_v43 = vsel %vm1390_vm11, %v2612_v35, %v2614_v23  ;;  %v2613_v7 = vsel %vm1390_vm11, %v2611_v56, %v2612_v35  ;;  %v8439_v50 = vmax.f32 %v8337_v33, %v1485_v11  ;;  %vm5741_vm4 = vcmask 60416  }
 0x1dc   : > { %10862 = vst [vmem:[#allocation15_spill] sm:$0xff] %v8415_v6  ;;  %v2228_v40 = vmax.f32 %v8090_v4, %v8415_v6  ;;  %v2760_v13 = vmax.f32 %v2480_v5, %v2615_v43  ;;  %v2759_v21 = vmax.f32 %v2479_v49, %v2613_v7  ;;  %v8442_v19 = vmax.f32 %v8381_v18, %v1490_v51 }
 0x1dd   : > { %2440 = vst.msk [vmem:[#allocation2 + $0xb2] sm:$0xff] %vm226_vm2, %v2215_v57  ;;  %v1604_v57 = vmax.f32 %v1323_v24, %v1479_v14  ;;  %v1610_v23 = vmax.f32 %v1329_v42, %v1489_v58  ;;  %v10670_v24 = vrot.slane %v8424_v22, 2  ;;  %v10669_v56 = vrot.slane %v8439_v50, 2 }
 0x1de   : > { %2442 = vst.msk [vmem:[#allocation2 + $0xca] sm:$0xff] %vm226_vm2, %v8395_v29  ;;  %v2260_v14 = vpack.c.bf16 %v2228_v40, %v2228_v40  ;;  %v2892_v35 = vrot.slane %v2760_v13, 2  ;;  %v2891_v4 = vrot.slane %v2759_v21, 2  ;;  %v1765_v43 = vrot.slane %v1607_v62, 2 }
 0x1df   : > { %3621 = vst.msk [vmem:[#allocation2 + $0x52] sm:$0xff] %vm226_vm2, %v8407_v52  ;;  %v1760_v5 = vrot.slane %v1604_v57, 2  ;;  %v10665_v49 = vrot.slane %v8442_v19, 2  ;;  %v1770_v11 = vrot.slane %v1610_v23, 2 }
 0x1e0   : > { %2453 = vst.msk [vmem:[#allocation2 + $0x152] sm:$0xff] %vm226_vm2, %v2228_v40  ;;  %2348 = vrot.lane.b32.xlu0 %v2260_v14, %s6388_s30  ;;  %v2895_v20 = vsel %vm1671_vm12, %v2892_v35, %v2894_v41  ;;  %v2893_v51 = vsel %vm1671_vm12, %v2891_v4, %v2892_v35  ;;  %v1766_v7 = vsel %vm1671_vm12, %v10669_v56, %v1765_v43  ;;  %v10879_v56 = vld [vmem:[#allocation6_spill] sm:$0xff] }
 0x1e1   : > { %v1761_v1 = vsel %vm1671_vm12, %v10670_v24, %v1760_v5  ;;  %v1885_v42 = vmax.f32 %v1604_v57, %v1760_v5  ;;  %v3040_v40 = vmax.f32 %v2760_v13, %v2895_v20  ;;  %v3039_v58 = vmax.f32 %v2759_v21, %v2893_v51 }
 0x1e2   : > { %v1771_v14 = vsel %vm1671_vm12, %v10665_v49, %v1770_v11  ;;  %v8463_v61 = vmax.f32 %v8424_v22, %v1761_v1  ;;  %v8466_v41 = vmax.f32 %v8439_v50, %v1766_v7  ;;  %v1888_v35 = vmax.f32 %v1607_v62, %v1765_v43 }
 0x1e3   : > { %v8469_v4 = vmax.f32 %v8442_v19, %v1771_v14  ;;  %2322 = vrot.lane.b32.xlu1 %v2247_v55, %s6388_s30  ;;  %v3172_v13 = vrot.slane %v3040_v40, 1  ;;  %v3171_v57 = vrot.slane %v3039_v58, 1  ;;  %v1891_v21 = vmax.f32 %v1610_v23, %v1770_v11 }
 0x1e4   : > { %10863 = vst [vmem:[#allocation16_spill] sm:$0xff] %v8466_v41  ;;  %v2040_v5 = vrot.slane %v1885_v42, 1  ;;  %v10668_v20 = vrot.slane %v8463_v61, 1  ;;  %v10667_v51 = vrot.slane %v8466_v41, 1  ;;  %v2045_v49 = vrot.slane %v1888_v35, 1 }
 0x1e5   : > { %10864 = vst [vmem:[#allocation17_spill] sm:$0xff] %v8469_v4  ;;  %v10666_v1 = vrot.slane %v8469_v4, 1  ;;  %v3175_v62 = vsel %vm1390_vm11, %v3172_v13, %v3174_v27  ;;  %v3173_v43 = vsel %vm1390_vm11, %v3171_v57, %v3172_v13  ;;  %v2050_v7 = vrot.slane %v1891_v21, 1  ;;  %v8494_v27 = vld [vmem:[#allocation2 + $0xd0] sm:$0xf] }
 0x1e6   : > { %v1438_v55 = vsel %vm1390_vm11, %v1436_v44, %v1437_v34  ;;  %v8484_v23 = vmax.f32 %v3040_v40, %v3175_v62  ;;  %v8486_v11 = vmax.f32 %v3039_v58, %v3173_v43  ;;  %v2041_v42 = vsel %vm1390_vm11, %v10668_v20, %v2040_v5  ;;  %v8530_v43 = vld [vmem:[#allocation2 + $0x118] sm:$0xf] }
 0x1e7   : > { %v2046_v10 = vsel %vm1390_vm11, %v10667_v51, %v2045_v49  ;;  %v2051_v28 = vsel %vm1390_vm11, %v10666_v1, %v2050_v7  ;;  %v2127_v34 = vmax.f32 %v8463_v61, %v2041_v42  ;;  %v1578_v40 = vmax.f32 %v8306_v38, %v1438_v55  ;;  %v2498_v55 = vld [vmem:[#allocation2 + $0x128] sm:$0xff]  ;;  %v10876_v1 = vld [vmem:[#allocation4_spill] sm:$0xff] }
 0x1e8   : > { %v2129_v44 = vmax.f32 %v8466_v41, %v2046_v10  ;;  %v8504_v58 = vmax.f32 %v8342_v2, %v8484_v23  ;;  %v10866_v49 = vpack.c.bf16 %v8407_v52, %v8407_v52  ;;  %v8512_v14 = vmax.f32 %v8314_v0, %v8486_v11 }
 0x1e9   : > { %v2131_v35 = vmax.f32 %v8469_v4, %v2051_v28  ;;  %v2187_v13 = vmax.f32 %v8354_v12, %v7907_v25  ;;  %v2165_v38 = vmax.f32 %v8275_v15, %v2127_v34  ;;  %v1717_v21 = vrot.slane %v1578_v40, 2  ;;  %v2500_v28 = vld [vmem:[#allocation2 + $0x138] sm:$0xff] }
 0x1ea   : > { %10865 = vst [vmem:[#allocation18_spill] sm:$0xff] %v8504_v58  ;;  %3495 = vrot.lane.b32.xlu0 %v10866_v49, %s6389_s6  ;;  %v2167_v57 = vmax.f32 %v2127_v34, %v2129_v44  ;;  %v10673_v2 = vrot.slane %v8494_v27, 1  ;;  %v8521_v5 = vmax.f32 %v8210_v48, %v8504_v58  ;;  %v8525_v52 = vmax.f32 %v8166_v3, %v8512_v14 }
 0x1eb   : > { %10867 = vst [vmem:[#allocation19_spill] sm:$0xff] %v8512_v14  ;;  %v2169_v0 = vmax.f32 %v2129_v44, %v2131_v35  ;;  %v8528_v62 = vmax.f32 %v8379_v31, %v2187_v13  ;;  %v2199_v25 = vmax.f32 %v8072_v54, %v2165_v38  ;;  %v10871_v12 = vrot.slane %v8269_v39, 2  ;;  %v2499_v54 = vld [vmem:[#allocation2 + $0x130] sm:$0xf] }
 0x1ec   : > { %10868 = vst [vmem:[#allocation20_spill] sm:$0xff] %v8521_v5  ;;  %v2201_v15 = vmax.f32 %v8284_v36, %v2167_v57  ;;  %v8538_v48 = vmax.f32 %v2187_v13, %v8371_v30  ;;  %v8542_v3 = vmax.f32 %v8389_v9, %v8521_v5  ;;  %v3397_v31 = vmax.f32 %v8348_v32, %v8525_v52  ;;  %v8556_v32 = vld [vmem:[#allocation2 + $0x140] sm:$0xff] }
 0x1ed   : > { %10869 = vst [vmem:[#allocation21_spill] sm:$0xff] %v8525_v52  ;;  %v1719_v7 = vsel %vm1671_vm12, %v1717_v21, %v10871_v12  ;;  %v2203_v42 = vmax.f32 %v2165_v38, %v2169_v0  ;;  %v2231_v39 = vmax.f32 %v8295_v47, %v2199_v25  ;;  %v10671_v9 = vrot.slane %v8530_v43, 1 }
 0x1ee   : > { %10870 = vst [vmem:[#allocation22_spill] sm:$0xff] %v8528_v62  ;;  %v1859_v10 = vmax.f32 %v1578_v40, %v1719_v7  ;;  %v8549_v36 = vmax.f32 %v2199_v25, %v2201_v15  ;;  %v3429_v34 = vpack.c.bf16 %v3397_v31, %v3397_v31  ;;  %v2642_v40 = vrot.slane %v2498_v55, 1  ;;  %v2502_v25 = vld [vmem:[#allocation2 + $0x148] sm:$0xf] }
 0x1ef   : > { %10872 = vst [vmem:[#allocation23_spill] sm:$0xff] %v8542_v3  ;;  %v8560_v44 = vmax.f32 %v2201_v15, %v2203_v42  ;;  %v2263_v49 = vpack.c.bf16 %v2231_v39, %v2231_v39  ;;  %v2644_v35 = vrot.slane %v2499_v54, 1  ;;  %v8566_v13 = vmax.f32 %v8494_v27, %v10673_v2  ;;  %v8627_v2 = vld [vmem:[#allocation2 + $0x150] sm:$0xff] }
 0x1f0   : > { %2444 = vst.msk [vmem:[#allocation2 + $0xe2] sm:$0xff] %vm226_vm2, %v8528_v62  ;;  %v1997_v47 = vrot.slane %v1859_v10, 1  ;;  %v8571_v38 = vmax.f32 %v8530_v43, %v10671_v9  ;;  %3497 = vrot.lane.b32.xlu2 %v3429_v34, %s6389_s6  ;;  %v10875_v57 = vrot.slane %v8302_v63, 1  ;;  %v2643_v0 = vsel %vm1390_vm11, %v2641_v59, %v2642_v40 }
 0x1f1   : > { %10873 = vst [vmem:[#allocation24_spill] sm:$0xff] %v8549_v36  ;;  %v2646_v15 = vrot.slane %v2500_v28, 1  ;;  %v2647_v12 = vrot.slane %v8556_v32, 1  ;;  %2354 = vrot.lane.b32.xlu1 %v2263_v49, %s6388_s30  ;;  %v2777_v63 = vmax.f32 %v8410_v26, %v2643_v0  ;;  %v10677_v42 = vrot.slane %v8566_v13, 2 }
 0x1f2   : > { %2446 = vst.msk [vmem:[#allocation2 + $0xfa] sm:$0xff] %vm226_vm2, %v8538_v48  ;;  %v1999_v21 = vsel %vm1390_vm11, %v1997_v47, %v10875_v57  ;;  %v10679_v34 = vrot.slane %v8571_v38, 2 }
 0x1f3   : > { %3623 = vst.msk [vmem:[#allocation2 + $0x6a] sm:$0xff] %vm226_vm2, %v8542_v3  ;;  %v2110_v7 = vmax.f32 %v1859_v10, %v1999_v21  ;;  %v2648_v47 = vsel %vm1390_vm11, %v2646_v15, %v2647_v12  ;;  %v2649_v21 = vrot.slane %v2502_v25, 1 }
 0x1f4   : > { %10874 = vst [vmem:[#allocation25_spill] sm:$0xff] %v8560_v44 }
 0x1f5   : > { %3622 = vst.msk [vmem:[#allocation2 + $0x62] sm:$0xff] %vm226_vm2, %v3397_v31  ;;  %v2645_v31 = vsel %vm1390_vm11, %v2642_v40, %v2644_v35  ;;  %v2148_v57 = vmax.f32 %v8277_v8, %v2110_v7  ;;  %v2150_v49 = vmax.f32 %v2110_v7, %v10876_v1  ;;  %v2921_v40 = vrot.slane %v2777_v63, 2 }
 0x1f6   : > { %2456 = vst.msk [vmem:[#allocation2 + $0x172] sm:$0xff] %vm226_vm2, %v2231_v39  ;;  %v2778_v59 = vmax.f32 %v2498_v55, %v2645_v31  ;;  %v2779_v39 = vmax.f32 %v2499_v54, %v2644_v35  ;;  %v2780_v55 = vmax.f32 %v2500_v28, %v2648_v47  ;;  %v10877_v54 = vld [vmem:[#allocation8_spill] sm:$0xff]  ;;  %v10878_v31 = vld [vmem:[#allocation5_spill] sm:$0xff] }
 0x1f7   : > { %2458 = vst.msk [vmem:[#allocation2 + $0x18a] sm:$0xff] %vm226_vm2, %v8549_v36  ;;  %v8594_v10 = vld [vmem:[#allocation2 + $0xe8] sm:$0xf]  ;;  %v8600_v35 = vmax.f32 %v10877_v54, %v2148_v57  ;;  %v2184_v15 = vmax.f32 %v8288_v53, %v2150_v49  ;;  %v2186_v8 = vmax.f32 %v2148_v57, %v10878_v31  ;;  %v2188_v1 = vmax.f32 %v2150_v49, %v10879_v56  ;;  %v10882_v57 = vld [vmem:[#allocation7_spill] sm:$0xff] }
 0x1f8   : > { %2460 = vst.msk [vmem:[#allocation2 + $0x1a2] sm:$0xff] %vm226_vm2, %v8560_v44  ;;  %v10672_v0 = vrot.slane %v8594_v10, 1  ;;  %v2922_v51 = vrot.slane %v2778_v59, 2  ;;  %v2924_v20 = vrot.slane %v2779_v39, 2 }
 0x1f9   : > { %v8596_v26 = vld [vmem:[#allocation2 + $0x100] sm:$0xf]  ;;  %v8614_v47 = vmax.f32 %v8600_v35, %v2184_v15  ;;  %v8616_v54 = vmax.f32 %v2184_v15, %v2186_v8  ;;  %v2220_v53 = vmax.f32 %v2186_v8, %v2188_v1  ;;  %v8619_v31 = vmax.f32 %v2188_v1, %v10882_v57 }
 0x1fa   : > { %v10674_v7 = vrot.slane %v8596_v26, 1  ;;  %v8609_v24 = vmax.f32 %v8594_v10, %v10672_v0  ;;  %v2923_v9 = vsel %vm1671_vm12, %v2921_v40, %v2922_v51  ;;  %v2925_v28 = vsel %vm1671_vm12, %v2922_v51, %v2924_v20 }
 0x1fb   : > { %10880 = vst [vmem:[#allocation4_spill] sm:$0xff] %v8614_v47  ;;  %v3057_v0 = vmax.f32 %v2777_v63, %v2923_v9  ;;  %v3058_v40 = vmax.f32 %v2778_v59, %v2925_v28  ;;  %v2252_v51 = vpack.c.bf16 %v2220_v53, %v2220_v53  ;;  %v2650_v15 = vsel %vm1390_vm11, %v2647_v12, %v2649_v21 }
 0x1fc   : > { %10881 = vst [vmem:[#allocation8_spill] sm:$0xff] %v8616_v54  ;;  %v8624_v56 = vmax.f32 %v8596_v26, %v10674_v7  ;;  %v10676_v49 = vrot.slane %v8609_v24, 2  ;;  %v8632_v8 = vmax.f32 %v2502_v25, %v2649_v21  ;;  %v2926_v1 = vrot.slane %v2780_v55, 2  ;;  %v8670_v25 = vld [vmem:[#allocation2 + $0x158] sm:$0xff] }
 0x1fd   : > { %2441 = vst.msk [vmem:[#allocation2 + $0xc2] sm:$0xff] %vm226_vm2, %v8614_v47  ;;  %v3201_v7 = vrot.slane %v3057_v0, 1  ;;  %v3202_v30 = vrot.slane %v3058_v40, 1  ;;  %v2781_v9 = vmax.f32 %v8556_v32, %v2650_v15  ;;  %2332 = vrot.lane.b32.xlu0 %v2252_v51, %s6388_s30  ;;  %v3059_v12 = vmax.f32 %v2779_v39, %v2924_v20  ;;  %v2303_v32 = vpop.permute.xlu1 %2302  ;;  %v2301_v15 = vpop.permute.xlu0 %2300 }
 0x1fe   : > { %2443 = vst.msk [vmem:[#allocation2 + $0xda] sm:$0xff] %vm226_vm2, %v8616_v54  ;;  %v10675_v57 = vrot.slane %v8624_v56, 2  ;;  %v10684_v63 = vrot.slane %v8632_v8, 2  ;;  %v2651_v59 = vrot.slane %v8627_v2, 1  ;;  %v8658_v20 = vmax.f32 %v8609_v24, %v10676_v49 }
 0x1ff   : > { %2445 = vst.msk [vmem:[#allocation2 + $0xf2] sm:$0xff] %vm226_vm2, %v2220_v53  ;;  %v3203_v21 = vsel %vm1390_vm11, %v3201_v7, %v3202_v30  ;;  %v2927_v28 = vrot.slane %v2781_v9, 2  ;;  %v8650_v53 = vmax.f32 %v8566_v13, %v10677_v42  ;;  %v8668_v7 = vmax.f32 %v8571_v38, %v10679_v34 }
 0x200   : > { %2447 = vst.msk [vmem:[#allocation2 + $0x10a] sm:$0xff] %vm226_vm2, %v8619_v31  ;;  %v8652_v51 = vmax.f32 %v3057_v0, %v3203_v21  ;;  %v8663_v39 = vmax.f32 %v8624_v56, %v10675_v57  ;;  %v8672_v0 = vld [vmem:[#allocation2 + $0x160] sm:$0xf]  ;;  %v3204_v49 = vrot.slane %v3059_v12, 1 }
 0x201   : > { %2398 = vst.msk [vmem:[#allocation3 + $0x4] sm:$0xf] %vm2396_vm1, %v2303_v32  ;;  %v2928_v21 = vsel %vm1671_vm12, %v2926_v1, %v2927_v28  ;;  %v2930_v32 = vsel %vm1671_vm12, %v2927_v28, %v10684_v63  ;;  %v10690_v28 = vrot.slane %v8670_v25, 1 }
 0x202   : > { %2397 = vst.msk [vmem:[#allocation3] sm:$0xf] %vm2396_vm1, %v2301_v15  ;;  %v8680_v42 = vmax.f32 %v2780_v55, %v2928_v21  ;;  %v8682_v62 = vmax.f32 %v2781_v9, %v2930_v32  ;;  %v3205_v47 = vsel %vm1390_vm11, %v3202_v30, %v3204_v49  ;;  %v10883_v49 = vpack.c.bf16 %v8538_v48, %v8538_v48 }
 0x203   : > { %v8692_v3 = vmax.f32 %v3058_v40, %v3205_v47  ;;  %v8697_v30 = vsel %vm1390_vm11, %v2651_v59, %v10690_v28  ;;  %v10884_v32 = vrot.slane %v8494_v27, 1  ;;  %v10885_v59 = vrot.slane %v8594_v10, 1 }
 0x204   : > { %v2485_v54 = vld [vmem:[#allocation2 + $0xc0] sm:$0xff]  ;;  %v2486_v29 = vld [vmem:[#allocation2 + $0xc8] sm:$0xff] }
 0x205   : > { %v2488_v63 = vld [vmem:[#allocation2 + $0xd8] sm:$0xff]  ;;  %v2489_v12 = vld [vmem:[#allocation2 + $0xe0] sm:$0xff]  ;;  %v2621_v55 = vrot.slane %v2485_v54, 1  ;;  %v2622_v21 = vrot.slane %v2486_v29, 1  ;;  %2334 = vrot.lane.b32.xlu0 %v10883_v49, %s6388_s30  ;;  %v10886_v49 = vrot.slane %v8596_v26, 1 }
 0x206   : > { %v2491_v34 = vld [vmem:[#allocation2 + $0xf0] sm:$0xff]  ;;  %v2492_v44 = vld [vmem:[#allocation2 + $0xf8] sm:$0xff]  ;;  %v2626_v57 = vrot.slane %v2488_v63, 1  ;;  %v2627_v36 = vrot.slane %v2489_v12, 1 }
 0x207   : > { %v2494_v15 = vld [vmem:[#allocation2 + $0x108] sm:$0xff]  ;;  %v2495_v1 = vld [vmem:[#allocation2 + $0x110] sm:$0xff]  ;;  %v2623_v9 = vsel %vm1390_vm11, %v2621_v55, %v2622_v21  ;;  %v2625_v6 = vsel %vm1390_vm11, %v2622_v21, %v10884_v32  ;;  %v2631_v47 = vrot.slane %v2491_v34, 1  ;;  %v2632_v40 = vrot.slane %v2492_v44, 1 }
 0x208   : > { %v2628_v37 = vsel %vm1390_vm11, %v2626_v57, %v2627_v36  ;;  %v2630_v28 = vsel %vm1390_vm11, %v2627_v36, %v10885_v59  ;;  %v2636_v14 = vrot.slane %v2494_v15, 1  ;;  %v2637_v46 = vrot.slane %v2495_v1, 1 }
 0x209   : > { %v2633_v48 = vsel %vm1390_vm11, %v2631_v47, %v2632_v40  ;;  %v2635_v55 = vsel %vm1390_vm11, %v2632_v40, %v10886_v49  ;;  %v2765_v5 = vmax.f32 %v2485_v54, %v2623_v9  ;;  %v2766_v27 = vmax.f32 %v2486_v29, %v2625_v6 }
 0x20a   : > { %v2638_v21 = vsel %vm1390_vm11, %v2636_v14, %v2637_v46  ;;  %v10887_v32 = vrot.slane %v8530_v43, 1  ;;  %v2768_v52 = vmax.f32 %v2488_v63, %v2628_v37  ;;  %v2769_v10 = vmax.f32 %v2489_v12, %v2630_v28 }
 0x20b   : > { %v2771_v4 = vmax.f32 %v2491_v34, %v2633_v48  ;;  %v2772_v36 = vmax.f32 %v2492_v44, %v2635_v55  ;;  %v2774_v59 = vmax.f32 %v2494_v15, %v2638_v21  ;;  %v2901_v58 = vrot.slane %v2765_v5, 2 }
 0x20c   : > { %v2640_v57 = vsel %vm1390_vm11, %v2637_v46, %v10887_v32  ;;  %v2902_v47 = vrot.slane %v2766_v27, 2  ;;  %v2906_v17 = vrot.slane %v2768_v52, 2  ;;  %v2907_v26 = vrot.slane %v2769_v10, 2 }
 0x20d   : > { %v2775_v41 = vmax.f32 %v2495_v1, %v2640_v57  ;;  %v2911_v60 = vrot.slane %v2771_v4, 2  ;;  %v2912_v40 = vrot.slane %v2772_v36, 2  ;;  %v2916_v54 = vrot.slane %v2774_v59, 2 }
 0x20e   : > { %v2903_v6 = vsel %vm1671_vm12, %v2901_v58, %v2902_v47  ;;  %v10888_v14 = vrot.slane %v8566_v13, 2  ;;  %v2908_v37 = vsel %vm1671_vm12, %v2906_v17, %v2907_v26  ;;  %v10889_v43 = vrot.slane %v8609_v24, 2 }
 0x20f   : > { %v2917_v29 = vrot.slane %v2775_v41, 2  ;;  %v2913_v34 = vsel %vm1671_vm12, %v2911_v60, %v2912_v40  ;;  %v10890_v63 = vrot.slane %v8624_v56, 2  ;;  %v10891_v58 = vrot.slane %v8571_v38, 2 }
 0x210   : > { %v2905_v46 = vsel %vm1671_vm12, %v2902_v47, %v10888_v14  ;;  %v2910_v44 = vsel %vm1671_vm12, %v2907_v26, %v10889_v43  ;;  %v10892_v17 = vpack.c.bf16 %v8619_v31, %v8619_v31  ;;  %v3045_v24 = vmax.f32 %v2765_v5, %v2903_v6 }
 0x211   : > { %v2915_v1 = vsel %vm1671_vm12, %v2912_v40, %v10890_v63  ;;  %v2918_v28 = vsel %vm1671_vm12, %v2916_v54, %v2917_v29  ;;  %v2920_v13 = vsel %vm1671_vm12, %v2917_v29, %v10891_v58  ;;  %v3046_v15 = vmax.f32 %v2766_v27, %v2905_v46 }
 0x212   : > { %2336 = vrot.lane.b32.xlu0 %v10892_v17, %s6388_s30  ;;  %v3048_v12 = vmax.f32 %v2768_v52, %v2908_v37  ;;  %v3049_v9 = vmax.f32 %v2769_v10, %v2910_v44  ;;  %v3051_v60 = vmax.f32 %v2771_v4, %v2913_v34  ;;  %v3052_v48 = vmax.f32 %v2772_v36, %v2915_v1 }
 0x213   : > { %v3054_v56 = vmax.f32 %v2774_v59, %v2918_v28  ;;  %v3055_v49 = vmax.f32 %v2775_v41, %v2920_v13  ;;  %v3181_v55 = vrot.slane %v3045_v24, 1  ;;  %v3182_v21 = vrot.slane %v3046_v15, 1 }
 0x214   : > { %v3186_v32 = vrot.slane %v3048_v12, 1  ;;  %v3187_v57 = vrot.slane %v3049_v9, 1  ;;  %v3191_v38 = vrot.slane %v3051_v60, 1  ;;  %v3192_v47 = vrot.slane %v3052_v48, 1 }
 0x215   : > { %v3196_v26 = vrot.slane %v3054_v56, 1  ;;  %v3197_v40 = vrot.slane %v3055_v49, 1  ;;  %v3183_v54 = vsel %vm1390_vm11, %v3181_v55, %v3182_v21  ;;  %v10893_v5 = vrot.slane %v8682_v62, 1 }
 0x216   : > { %v3188_v31 = vsel %vm1390_vm11, %v3186_v32, %v3187_v57  ;;  %v10894_v52 = vrot.slane %v8680_v42, 1  ;;  %v10895_v41 = vrot.slane %v8650_v53, 1  ;;  %v3193_v10 = vsel %vm1390_vm11, %v3191_v38, %v3192_v47 }
 0x217   : > { %v3198_v36 = vsel %vm1390_vm11, %v3196_v26, %v3197_v40  ;;  %v8751_v59 = vmax.f32 %v3045_v24, %v3183_v54  ;;  %v3299_v29 = vmax.f32 %v3048_v12, %v3188_v31  ;;  %v3301_v6 = vmax.f32 %v3051_v60, %v3193_v10  ;;  %v8814_v26 = vld [vmem:[#allocation2 + $0x8] sm:$0xff]  ;;  %v3654_v10 = vld [vmem:[#allocation2 + $0x20] sm:$0xff] }
 0x218   : > { %v3208_v4 = vsel %vm1390_vm11, %v10894_v52, %v10893_v5  ;;  %v3185_v27 = vsel %vm1390_vm11, %v3182_v21, %v10895_v41  ;;  %v3303_v14 = vmax.f32 %v3054_v56, %v3198_v36  ;;  %v10896_v37 = vrot.slane %v8658_v20, 1  ;;  %v8826_v5 = vld [vmem:[#allocation2 + $0x10] sm:$0xf] }
 0x219   : > { %v8754_v46 = vmax.f32 %v8680_v42, %v3208_v4  ;;  %v8760_v53 = vmax.f32 %v8751_v59, %v3299_v29  ;;  %v10897_v44 = vrot.slane %v8663_v39, 1  ;;  %v10898_v63 = vrot.slane %v8668_v7, 1 }
 0x21a   : > { %v3190_v43 = vsel %vm1390_vm11, %v3187_v57, %v10896_v37  ;;  %v8768_v28 = vmax.f32 %v3046_v15, %v3185_v27  ;;  %v8770_v58 = vmax.f32 %v3299_v29, %v3301_v6  ;;  %v3341_v42 = vmax.f32 %v3301_v6, %v3303_v14  ;;  %v3655_v6 = vld [vmem:[#allocation2 + $0x28] sm:$0xf] }
 0x21b   : > { %v3195_v34 = vsel %vm1390_vm11, %v3192_v47, %v10897_v44  ;;  %v3200_v1 = vsel %vm1390_vm11, %v3197_v40, %v10898_v63  ;;  %v8773_v20 = vmax.f32 %v3303_v14, %v8652_v51  ;;  %v8777_v13 = vmax.f32 %v8652_v51, %v8754_v46  ;;  %v3657_v44 = vld [vmem:[#allocation2 + $0x38] sm:$0xff] }
 0x21c   : > { %v3300_v17 = vmax.f32 %v3049_v9, %v3190_v43  ;;  %v3302_v39 = vmax.f32 %v3052_v48, %v3195_v34  ;;  %v3304_v24 = vmax.f32 %v3055_v49, %v3200_v1  ;;  %v10900_v12 = vrot.slane %v8672_v0, 1 }
 0x21d   : > { %10899 = vst [vmem:[#allocation5_spill] sm:$0xff] %v8777_v13  ;;  %v10901_v7 = vrot.slane %v8670_v25, 1  ;;  %v8785_v60 = vmax.f32 %v8760_v53, %v3341_v42  ;;  %v3377_v56 = vmax.f32 %v8770_v58, %v8773_v20  ;;  %v8790_v55 = vmax.f32 %v3341_v42, %v8777_v13 }
 0x21e   : > { %v2783_v51 = vmax.f32 %v8627_v2, %v8697_v30  ;;  %v8795_v9 = vmax.f32 %v8768_v28, %v3300_v17  ;;  %v8797_v48 = vmax.f32 %v3300_v17, %v3302_v39  ;;  %v8799_v49 = vmax.f32 %v3302_v39, %v3304_v24  ;;  %v8812_v30 = vld [vmem:[#allocation2] sm:$0xff] }
 0x21f   : > { %v2655_v15 = vsel %vm1390_vm11, %v10901_v7, %v10900_v12  ;;  %10902 = vst [vmem:[#allocation6_spill] sm:$0xff] %v8785_v60  ;;  %v8802_v21 = vmax.f32 %v3304_v24, %v8692_v3  ;;  %v3409_v32 = vmax.f32 %v8785_v60, %v3377_v56  ;;  %v3411_v57 = vmax.f32 %v3377_v56, %v8790_v55  ;;  %v3658_v39 = vld [vmem:[#allocation2 + $0x40] sm:$0xf]  ;;  %v3659_v24 = vld [vmem:[#allocation2 + $0x48] sm:$0xff] }
 0x220   : > { %10903 = vst [vmem:[#allocation7_spill] sm:$0xff] %v8799_v49  ;;  %v2784_v38 = vmax.f32 %v8670_v25, %v2655_v15  ;;  %v10905_v47 = vmov %v10900_v12  ;;  %v8818_v40 = vmax.f32 %v8795_v9, %v8799_v49  ;;  %v2931_v31 = vrot.slane %v2783_v51, 2  ;;  %v3660_v12 = vld [vmem:[#allocation2 + $0x50] sm:$0xff]  ;;  %v3661_v15 = vld [vmem:[#allocation2 + $0x58] sm:$0xf]  ;;  %v3662_v56 = vld [vmem:[#allocation2 + $0x60] sm:$0xff] }
 0x221   : > { %10904 = vst [vmem:[#allocation26_spill] sm:$0xff] %v8802_v21  ;;  %v8810_v2 = vmax.f32 %v8672_v0, %v10905_v47  ;;  %v8822_v54 = vmax.f32 %v8797_v48, %v8802_v21  ;;  %v2214_v25 = vmax.f32 %v8299_v16, %v8600_v35  ;;  %v8828_v0 = vld [vmem:[#allocation2 + $0x18] sm:$0xff]  ;;  %v3441_v52 = vpack.c.bf16 %v3409_v32, %v3409_v32  ;;  %v3656_v16 = vld [vmem:[#allocation2 + $0x30] sm:$0xff] }
 0x222   : > { %3634 = vst.msk [vmem:[#allocation2 + $0xf2] sm:$0xff] %vm226_vm2, %v3409_v32  ;;  %v3443_v4 = vpack.c.bf16 %v3411_v57, %v3411_v57  ;;  %v2932_v41 = vrot.slane %v2784_v38, 2  ;;  %v3770_v35 = vrot.slane %v8812_v30, 1  ;;  %v3771_v14 = vrot.slane %v8814_v26, 1 }
 0x223   : > { %10906 = vst [vmem:[#allocation27_spill] sm:$0xff] %v8810_v2  ;;  %v10700_v27 = vrot.slane %v8810_v2, 2  ;;  %v3410_v36 = vmax.f32 %v8818_v40, %v8822_v54  ;;  %v2246_v29 = vpack.c.bf16 %v2214_v25, %v2214_v25  ;;  %3521 = vrot.lane.b32.xlu1 %v3441_v52, %s6389_s6  ;;  %v3773_v34 = vrot.slane %v8826_v5, 1 }
 0x224   : > { %10907 = vst [vmem:[#allocation28_spill] sm:$0xff] %v8822_v54  ;;  %3525 = vrot.lane.b32.xlu2 %v3443_v4, %s6389_s6  ;;  %v2933_v37 = vsel %vm1671_vm12, %v2931_v31, %v2932_v41  ;;  %v3775_v63 = vrot.slane %v8828_v0, 1  ;;  %v3776_v7 = vrot.slane %v3654_v10, 1  ;;  %v3772_v32 = vsel %vm1390_vm11, %v3770_v35, %v3771_v14 }
 0x225   : > { %3636 = vst.msk [vmem:[#allocation2 + $0x10a] sm:$0xff] %vm226_vm2, %v3411_v57  ;;  %v2935_v43 = vsel %vm1671_vm12, %v2932_v41, %v10700_v27  ;;  %v3442_v1 = vpack.c.bf16 %v3410_v36, %v3410_v36  ;;  %v3063_v42 = vmax.f32 %v2783_v51, %v2933_v37  ;;  %2320 = vrot.lane.b32.xlu0 %v2246_v29, %s6388_s30  ;;  %v3778_v47 = vrot.slane %v3655_v6, 1  ;;  %v3663_v51 = vld [vmem:[#allocation2 + $0x68] sm:$0xff]  ;;  %v3664_v41 = vld [vmem:[#allocation2 + $0x70] sm:$0xf] }
 0x226   : > { %2439 = vst.msk [vmem:[#allocation2 + $0xaa] sm:$0xff] %vm226_vm2, %v2214_v25  ;;  %v8847_v17 = vmax.f32 %v2784_v38, %v2935_v43  ;;  %v3774_v57 = vsel %vm1390_vm11, %v3771_v14, %v3773_v34  ;;  %v3780_v31 = vrot.slane %v3656_v16, 1  ;;  %v3777_v38 = vsel %vm1390_vm11, %v3775_v63, %v3776_v7 }
 0x227   : > { %3635 = vst.msk [vmem:[#allocation2 + $0xfa] sm:$0xff] %vm226_vm2, %v3410_v36  ;;  %v3211_v25 = vrot.slane %v3063_v42, 1  ;;  %v3781_v4 = vrot.slane %v3657_v44, 1  ;;  %v3779_v36 = vsel %vm1390_vm11, %v3776_v7, %v3778_v47  ;;  %v3783_v29 = vrot.slane %v3658_v39, 1 }
 0x228   : > { %10908 = vst [vmem:[#allocation29_spill] sm:$0xff] %v8847_v17  ;;  %v3212_v52 = vrot.slane %v8847_v17, 1  ;;  %v3785_v37 = vrot.slane %v3659_v24, 1  ;;  %v3786_v43 = vrot.slane %v3660_v12, 1  ;;  %v3788_v27 = vrot.slane %v3661_v15, 1 }
 0x229   : > { %v3782_v14 = vsel %vm1390_vm11, %v3780_v31, %v3781_v4  ;;  %v3790_v13 = vrot.slane %v3662_v56, 1  ;;  %v3784_v60 = vsel %vm1390_vm11, %v3781_v4, %v3783_v29  ;;  %v3791_v54 = vrot.slane %v3663_v51, 1 }
 0x22a   : > { %v3213_v35 = vsel %vm1390_vm11, %v3211_v25, %v3212_v52  ;;  %v3787_v63 = vsel %vm1390_vm11, %v3785_v37, %v3786_v43  ;;  %v3789_v7 = vsel %vm1390_vm11, %v3786_v43, %v3788_v27  ;;  %v3793_v2 = vrot.slane %v3664_v41, 1 }
 0x22b   : > { %v8859_v21 = vmax.f32 %v3063_v42, %v3213_v35  ;;  %v3930_v49 = vmax.f32 %v8812_v30, %v3772_v32  ;;  %v3931_v17 = vmax.f32 %v8814_v26, %v3774_v57  ;;  %3523 = vrot.lane.b32.xlu1 %v3442_v1, %s6389_s6  ;;  %v3792_v42 = vsel %vm1390_vm11, %v3790_v13, %v3791_v54 }
 0x22c   : > { %v8873_v25 = vmax.f32 %v8826_v5, %v3773_v34  ;;  %v3933_v4 = vmax.f32 %v8828_v0, %v3777_v38  ;;  %v3794_v37 = vsel %vm1390_vm11, %v3791_v54, %v3793_v2  ;;  %v3934_v43 = vmax.f32 %v3654_v10, %v3779_v36 }
 0x22d   : > { %v8869_v31 = vmax.f32 %v8754_v46, %v8859_v21  ;;  %v8877_v35 = vmax.f32 %v3655_v6, %v3778_v47  ;;  %v3936_v30 = vmax.f32 %v3656_v16, %v3782_v14  ;;  %v3937_v1 = vmax.f32 %v3657_v44, %v3784_v60 }
 0x22e   : > { %v8883_v46 = vmax.f32 %v3658_v39, %v3783_v29  ;;  %v3939_v32 = vmax.f32 %v3659_v24, %v3787_v63  ;;  %v3940_v13 = vmax.f32 %v3660_v12, %v3789_v7  ;;  %v8885_v57 = vmax.f32 %v3661_v15, %v3788_v27 }
 0x22f   : > { %v8881_v26 = vmax.f32 %v8773_v20, %v8869_v31  ;;  %v3942_v5 = vmax.f32 %v3662_v56, %v3792_v42  ;;  %v3943_v34 = vmax.f32 %v3663_v51, %v3794_v37  ;;  %v8889_v0 = vmax.f32 %v3664_v41, %v3793_v2 }
 0x230   : > { %v4050_v10 = vrot.slane %v3930_v49, 2  ;;  %v4051_v6 = vrot.slane %v3931_v17, 2  ;;  %v10719_v16 = vrot.slane %v8873_v25, 2  ;;  %v4055_v20 = vrot.slane %v3933_v4, 2 }
 0x231   : > { %v3413_v54 = vmax.f32 %v8790_v55, %v8881_v26  ;;  %v4056_v47 = vrot.slane %v3934_v43, 2  ;;  %v10718_v60 = vrot.slane %v8877_v35, 2  ;;  %v4060_v39 = vrot.slane %v3936_v30, 2 }
 0x232   : > { %v4052_v27 = vsel %vm1671_vm12, %v4050_v10, %v4051_v6  ;;  %v4061_v24 = vrot.slane %v3937_v1, 2  ;;  %v4054_v55 = vsel %vm1671_vm12, %v4051_v6, %v10719_v16  ;;  %v10710_v15 = vrot.slane %v8883_v46, 2 }
 0x233   : > { %v3445_v44 = vpack.c.bf16 %v3413_v54, %v3413_v54  ;;  %3638 = vst.msk [vmem:[#allocation2 + $0x122] sm:$0xff] %vm226_vm2, %v3413_v54  ;;  %v4057_v2 = vsel %vm1671_vm12, %v4055_v20, %v4056_v47  ;;  %v4059_v12 = vsel %vm1671_vm12, %v4056_v47, %v10718_v60  ;;  %v4065_v51 = vrot.slane %v3939_v32, 2 }
 0x234   : > { %v4062_v56 = vsel %vm1671_vm12, %v4060_v39, %v4061_v24  ;;  %v4066_v38 = vrot.slane %v3940_v13, 2  ;;  %v10715_v41 = vrot.slane %v8885_v57, 2  ;;  %v4064_v36 = vsel %vm1671_vm12, %v4061_v24, %v10710_v15 }
 0x235   : > { %3529 = vrot.lane.b32.xlu2 %v3445_v44, %s6389_s6  ;;  %v4070_v29 = vrot.slane %v3942_v5, 2  ;;  %v4071_v14 = vrot.slane %v3943_v34, 2  ;;  %v10714_v63 = vrot.slane %v8889_v0, 2  ;;  %v4210_v37 = vmax.f32 %v3930_v49, %v4052_v27 }
 0x236   : > { %v4067_v7 = vsel %vm1671_vm12, %v4065_v51, %v4066_v38  ;;  %v4069_v42 = vsel %vm1671_vm12, %v4066_v38, %v10715_v41  ;;  %v8914_v54 = vmax.f32 %v3931_v17, %v4054_v55  ;;  %v4213_v20 = vmax.f32 %v3933_v4, %v4057_v2  ;;  %v2307_v2 = vpop.permute.xlu1 %2306  ;;  %v8954_v41 = vld [vmem:[#allocation2 + $0x1c8] sm:$0xff] }
 0x237   : > { %v4072_v10 = vsel %vm1671_vm12, %v4070_v29, %v4071_v14  ;;  %v4074_v6 = vsel %vm1671_vm12, %v4071_v14, %v10714_v63  ;;  %v8920_v47 = vmax.f32 %v3934_v43, %v4059_v12  ;;  %v4216_v44 = vmax.f32 %v3936_v30, %v4062_v56  ;;  %v2482_v43 = vld [vmem:[#allocation2 + $0xa8] sm:$0xff]  ;;  %v2305_v12 = vpop.permute.xlu0 %2304  ;;  %2400 = vst.msk [vmem:[#allocation3 + $0xc] sm:$0xf] %vm2396_vm1, %v2307_v2  ;;  %v8952_v63 = vld [vmem:[#allocation2 + $0x1b0] sm:$0xff] }
 0x238   : > { %v8922_v39 = vmax.f32 %v3937_v1, %v4064_v36  ;;  %v4219_v24 = vmax.f32 %v3939_v32, %v4067_v7  ;;  %v8924_v51 = vmax.f32 %v3940_v13, %v4069_v42  ;;  %v4222_v15 = vmax.f32 %v3942_v5, %v4072_v10  ;;  %v2483_v5 = vld [vmem:[#allocation2 + $0xb0] sm:$0xff]  ;;  %v1321_v42 = vld [vmem:[#allocation2 + $0x198] sm:$0xff]  ;;  %2399 = vst.msk [vmem:[#allocation3 + $0x8] sm:$0xf] %vm2396_vm1, %v2305_v12 }
 0x239   : > { %10909 = vst [vmem:[#allocation30_spill] sm:$0xff] %v8920_v47  ;;  %v8926_v38 = vmax.f32 %v3943_v34, %v4074_v6  ;;  %v4330_v49 = vrot.slane %v4210_v37, 1  ;;  %v10711_v17 = vrot.slane %v8914_v54, 1  ;;  %v4335_v27 = vrot.slane %v4213_v20, 1  ;;  %v2484_v34 = vld [vmem:[#allocation2 + $0xb8] sm:$0xf] }
 0x23a   : > { %10910 = vst [vmem:[#allocation31_spill] sm:$0xff] %v8922_v39  ;;  %v10713_v55 = vrot.slane %v8920_v47, 1  ;;  %v4340_v29 = vrot.slane %v4216_v44, 1  ;;  %v10712_v4 = vrot.slane %v8922_v39, 1  ;;  %v4345_v1 = vrot.slane %v4219_v24, 1 }
 0x23b   : > { %10911 = vst [vmem:[#allocation32_spill] sm:$0xff] %v8924_v51  ;;  %v4332_v30 = vsel %vm1390_vm11, %v4330_v49, %v10711_v17  ;;  %v10717_v32 = vrot.slane %v8924_v51, 1  ;;  %v4350_v13 = vrot.slane %v4222_v15, 1  ;;  %v10716_v14 = vrot.slane %v8926_v38, 1 }
 0x23c   : > { %10912 = vst [vmem:[#allocation33_spill] sm:$0xff] %v8926_v38  ;;  %v4337_v56 = vsel %vm1390_vm11, %v4335_v27, %v10713_v55  ;;  %v4342_v36 = vsel %vm1390_vm11, %v4340_v29, %v10712_v4  ;;  %v4470_v7 = vmax.f32 %v4210_v37, %v4332_v30  ;;  %v2616_v17 = vrot.slane %v2482_v43, 1 }
 0x23d   : > { %v4347_v10 = vsel %vm1390_vm11, %v4345_v1, %v10717_v32  ;;  %v4472_v6 = vmax.f32 %v4213_v20, %v4337_v56  ;;  %v4474_v49 = vmax.f32 %v4216_v44, %v4342_v36  ;;  %v4352_v27 = vsel %vm1390_vm11, %v4350_v13, %v10716_v14 }
 0x23e   : > { %v4476_v29 = vmax.f32 %v4219_v24, %v4347_v10  ;;  %v2617_v4 = vrot.slane %v2483_v5, 1  ;;  %v2619_v55 = vrot.slane %v2484_v34, 1  ;;  %v8950_v37 = vmax.f32 %v4222_v15, %v4352_v27 }
 0x23f   : > { %v4510_v30 = vmax.f32 %v4470_v7, %v4472_v6  ;;  %v4512_v2 = vmax.f32 %v4472_v6, %v4474_v49  ;;  %v1476_v20 = vrot.slane %v1321_v42, 1  ;;  %v10913_v36 = vrot.slane %v8335_v45, 1 }
 0x240   : > { %v8956_v44 = vmax.f32 %v4474_v49, %v4476_v29  ;;  %v2618_v1 = vsel %vm1390_vm11, %v2616_v17, %v2617_v4  ;;  %v2620_v12 = vsel %vm1390_vm11, %v2617_v4, %v2619_v55  ;;  %v2764_v56 = vmax.f32 %v2484_v34, %v2619_v55 }
 0x241   : > { %v8961_v24 = vmax.f32 %v4476_v29, %v8950_v37  ;;  %v2762_v13 = vmax.f32 %v2482_v43, %v2618_v1  ;;  %v2763_v15 = vmax.f32 %v2483_v5, %v2620_v12  ;;  %v1478_v7 = vsel %vm1390_vm11, %v1476_v20, %v10913_v36  ;;  %v8987_v36 = vld [vmem:[#allocation2 + $0x178] sm:$0xf] }
 0x242   : > { %v4548_v10 = vmax.f32 %v4510_v30, %v8956_v44  ;;  %v2899_v6 = vrot.slane %v2764_v56, 2  ;;  %v10725_v49 = vrot.slane %v8952_v63, 1  ;;  %v10720_v27 = vrot.slane %v8954_v41, 1 }
 0x243   : > { %v8970_v17 = vmax.f32 %v4512_v2, %v8961_v24  ;;  %v2896_v55 = vrot.slane %v2762_v13, 2  ;;  %v2897_v4 = vrot.slane %v2763_v15, 2  ;;  %v1602_v34 = vmax.f32 %v1321_v42, %v1478_v7 }
 0x244   : > { %v3044_v29 = vmax.f32 %v2764_v56, %v2899_v6  ;;  %v10914_v43 = vrot.slane %v8337_v33, 1  ;;  %v10915_v5 = vrot.slane %v8381_v18, 1  ;;  %v10916_v14 = vrot.slane %v8632_v8, 2 }
 0x245   : > { %v4582_v20 = vmax.f32 %v4548_v10, %v8970_v17  ;;  %v2898_v2 = vsel %vm1671_vm12, %v2896_v55, %v2897_v4  ;;  %v2900_v1 = vsel %vm1671_vm12, %v2897_v4, %v2899_v6  ;;  %v1757_v18 = vrot.slane %v1602_v34, 2 }
 0x246   : > { %v1483_v45 = vsel %vm1390_vm11, %v10725_v49, %v10914_v43  ;;  %v1488_v30 = vsel %vm1390_vm11, %v10720_v27, %v10915_v5  ;;  %v3042_v12 = vmax.f32 %v2762_v13, %v2898_v2  ;;  %v3043_v33 = vmax.f32 %v2763_v15, %v2900_v1 }
 0x247   : > { %v1605_v42 = vmax.f32 %v8952_v63, %v1483_v45  ;;  %v1608_v56 = vmax.f32 %v8954_v41, %v1488_v30  ;;  %v4614_v7 = vpack.c.bf16 %v4582_v20, %v4582_v20  ;;  %v3062_v5 = vmax.f32 %v8632_v8, %v10916_v14  ;;  %v9000_v20 = vld [vmem:[#allocation2 + $0x190] sm:$0xf] }
 0x248   : > { %v3176_v10 = vrot.slane %v3042_v12, 1  ;;  %v3177_v32 = vrot.slane %v3043_v33, 1  ;;  %v3179_v55 = vrot.slane %v3044_v29, 1  ;;  %v10917_v13 = vrot.slane %v8424_v22, 2 }
 0x249   : > { %v1762_v43 = vrot.slane %v1605_v42, 2  ;;  %v1767_v60 = vrot.slane %v1608_v56, 2  ;;  %4678 = vrot.lane.b32.xlu1 %v4614_v7, %s6390_s7  ;;  %v10918_v6 = vrot.slane %v8439_v50, 2  ;;  %v3209_v45 = vrot.slane %v3062_v5, 1 }
 0x24a   : > { %v1759_v15 = vsel %vm1671_vm12, %v1757_v18, %v10917_v13  ;;  %v10724_v30 = vrot.slane %v8987_v36, 1  ;;  %v3178_v8 = vsel %vm1390_vm11, %v3176_v10, %v3177_v32  ;;  %v3180_v14 = vsel %vm1390_vm11, %v3177_v32, %v3179_v55 }
 0x24b   : > { %v1764_v4 = vsel %vm1671_vm12, %v1762_v43, %v10918_v6  ;;  %v10919_v29 = vrot.slane %v8442_v19, 2  ;;  %v1883_v22 = vmax.f32 %v1602_v34, %v1759_v15  ;;  %v3295_v1 = vmax.f32 %v3042_v12, %v3178_v8  ;;  %v10925_v8 = vld [vmem:[#allocation16_spill] sm:$0xff] }
 0x24c   : > { %v3296_v7 = vmax.f32 %v3043_v33, %v3180_v14  ;;  %v1886_v18 = vmax.f32 %v1605_v42, %v1764_v4  ;;  %v10920_v43 = vrot.slane %v8682_v62, 1  ;;  %v10723_v6 = vrot.slane %v9000_v20, 1 }
 0x24d   : > { %v1769_v2 = vsel %vm1671_vm12, %v1767_v60, %v10919_v29  ;;  %v2037_v13 = vrot.slane %v1883_v22, 1  ;;  %v3333_v10 = vmax.f32 %v8486_v11, %v3295_v1  ;;  %v10921_v60 = vrot.slane %v8463_v61, 1  ;;  %v10923_v11 = vld [vmem:[#allocation11_spill] sm:$0xff] }
 0x24e   : > { %v1889_v50 = vmax.f32 %v1608_v56, %v1769_v2  ;;  %v3210_v5 = vsel %vm1390_vm11, %v10920_v43, %v3209_v45  ;;  %v3334_v32 = vmax.f32 %v8484_v23, %v3296_v7  ;;  %v3336_v19 = vmax.f32 %v3296_v7, %v8768_v28  ;;  %v10922_v56 = vld [vmem:[#allocation10_spill] sm:$0xff] }
 0x24f   : > { %v2042_v55 = vrot.slane %v1886_v18, 1  ;;  %v2039_v34 = vsel %vm1390_vm11, %v2037_v13, %v10921_v60  ;;  %v3335_v12 = vmax.f32 %v3295_v1, %v8751_v59  ;;  %v9021_v33 = vmax.f32 %v8987_v36, %v10724_v30  ;;  %v10924_v23 = vld [vmem:[#allocation18_spill] sm:$0xff]  ;;  %v10927_v59 = vld [vmem:[#allocation17_spill] sm:$0xff]  ;;  %v10930_v60 = vld [vmem:[#allocation20_spill] sm:$0xff] }
 0x250   : > { %v2047_v42 = vrot.slane %v1889_v50, 1  ;;  %v3367_v15 = vmax.f32 %v10922_v56, %v3333_v10  ;;  %v3368_v4 = vmax.f32 %v10923_v11, %v3334_v32  ;;  %v3370_v45 = vmax.f32 %v10924_v23, %v3336_v19  ;;  %v10929_v13 = vld [vmem:[#allocation21_spill] sm:$0xff] }
 0x251   : > { %v3372_v28 = vmax.f32 %v3334_v32, %v8795_v9  ;;  %v3374_v61 = vmax.f32 %v3336_v19, %v8797_v48  ;;  %v10926_v14 = vrot.slane %v10925_v8, 1  ;;  %v10928_v2 = vrot.slane %v10927_v59, 1 }
 0x252   : > { %v2126_v7 = vmax.f32 %v1883_v22, %v2039_v34  ;;  %v3399_v43 = vmax.f32 %v10929_v13, %v3367_v15  ;;  %v9036_v56 = vmax.f32 %v10930_v60, %v3368_v4  ;;  %v9038_v11 = vmax.f32 %v3368_v4, %v3370_v45  ;;  %v10932_v22 = vld [vmem:[#allocation12_spill] sm:$0xff]  ;;  %v10938_v13 = vld [vmem:[#allocation23_spill] sm:$0xff] }
 0x253   : > { %v2044_v29 = vsel %vm1390_vm11, %v2042_v55, %v10926_v14  ;;  %v2049_v1 = vsel %vm1390_vm11, %v2047_v42, %v10928_v2  ;;  %v9041_v9 = vmax.f32 %v8682_v62, %v3210_v5  ;;  %v9043_v48 = vmax.f32 %v3370_v45, %v3372_v28  ;;  %v10933_v42 = vld [vmem:[#allocation19_spill] sm:$0xff]  ;;  %v9056_v45 = vpop.permute.xlu1 %2310 }
 0x254   : > { %v9045_v32 = vmax.f32 %v3372_v28, %v3374_v61  ;;  %v2128_v19 = vmax.f32 %v1886_v18, %v2044_v29  ;;  %v2130_v55 = vmax.f32 %v1889_v50, %v2049_v1  ;;  %v3431_v23 = vpack.c.bf16 %v3399_v43, %v3399_v43  ;;  %3624 = vst.msk [vmem:[#allocation2 + $0x7a] sm:$0xff] %vm226_vm2, %v3399_v43  ;;  %v10937_v1 = vld [vmem:[#allocation15_spill] sm:$0xff] }
 0x255   : > { %v2164_v34 = vmax.f32 %v10932_v22, %v2126_v7  ;;  %v3369_v8 = vmax.f32 %v10933_v42, %v3335_v12  ;;  %v3371_v14 = vmax.f32 %v3333_v10, %v8760_v53  ;;  %v9052_v4 = vmax.f32 %v3374_v61, %v8818_v40  ;;  %3625 = vst.msk [vmem:[#allocation2 + $0x82] sm:$0xff] %vm226_vm2, %v9036_v56  ;;  %v10935_v53 = vld [vmem:[#allocation9_spill] sm:$0xff]  ;;  %v10936_v61 = vld [vmem:[#allocation14_spill] sm:$0xff] }
 0x256   : > { %10931 = vst [vmem:[#allocation10_spill] sm:$0xff] %v9045_v32  ;;  %v2166_v62 = vmax.f32 %v2126_v7, %v2128_v19  ;;  %v2168_v5 = vmax.f32 %v2128_v19, %v2130_v55  ;;  %v9061_v18 = vmax.f32 %v9000_v20, %v10723_v6  ;;  %3501 = vrot.lane.b32.xlu2 %v3431_v23, %s6389_s6  ;;  %v10722_v28 = vrot.slane %v9021_v33, 2  ;;  %v10942_v55 = vld [vmem:[#allocation27_spill] sm:$0xff] }
 0x257   : > { %10934 = vst [vmem:[#allocation11_spill] sm:$0xff] %v9052_v4  ;;  %v2198_v40 = vmax.f32 %v10935_v53, %v2164_v34  ;;  %v3373_v50 = vmax.f32 %v3335_v12, %v8770_v58  ;;  %v9070_v10 = vmax.f32 %v8692_v3, %v9041_v9  ;;  %v3401_v2 = vmax.f32 %v3367_v15, %v3369_v8  ;;  %v10939_v3 = vld [vmem:[#allocation7_spill] sm:$0xff] }
 0x258   : > { %3627 = vst.msk [vmem:[#allocation2 + $0x9a] sm:$0xff] %vm226_vm2, %v9038_v11  ;;  %v2200_v29 = vmax.f32 %v10936_v61, %v2166_v62  ;;  %v2202_v59 = vmax.f32 %v2164_v34, %v2168_v5  ;;  %v9081_v12 = vmax.f32 %v3369_v8, %v3371_v14  ;;  %v10721_v19 = vrot.slane %v9061_v18, 2  ;;  %v10945_v8 = vld [vmem:[#allocation28_spill] sm:$0xff]  ;;  %v10946_v61 = vld [vmem:[#allocation6_spill] sm:$0xff] }
 0x259   : > { %3629 = vst.msk [vmem:[#allocation2 + $0xb2] sm:$0xff] %vm226_vm2, %v9043_v48  ;;  %v2230_v7 = vmax.f32 %v10937_v1, %v2198_v40  ;;  %v9085_v43 = vmax.f32 %v10939_v3, %v9070_v10  ;;  %v10943_v23 = vrot.slane %v10942_v55, 2  ;;  %v9098_v42 = vmax.f32 %v3371_v14, %v3373_v50  ;;  %v9119_v1 = vld [vmem:[#allocation2 + $0x1a8] sm:$0xf] }
 0x25a   : > { %3631 = vst.msk [vmem:[#allocation2 + $0xca] sm:$0xff] %vm226_vm2, %v9045_v32  ;;  %v9089_v60 = vmax.f32 %v2198_v40, %v2200_v29  ;;  %v9091_v15 = vmax.f32 %v2200_v29, %v2202_v59  ;;  %v9107_v5 = vmax.f32 %v9021_v33, %v10722_v28  ;;  %v3433_v53 = vpack.c.bf16 %v3401_v2, %v3401_v2 }
 0x25b   : > { %3633 = vst.msk [vmem:[#allocation2 + $0xe2] sm:$0xff] %vm226_vm2, %v9052_v4  ;;  %v3065_v22 = vmax.f32 %v10942_v55, %v10943_v23  ;;  %v2262_v34 = vpack.c.bf16 %v2230_v7, %v2230_v7  ;;  %v9102_v62 = vmax.f32 %v10945_v8, %v9085_v43  ;;  %v3665_v40 = vld [vmem:[#allocation2 + $0x78] sm:$0xff]  ;;  %v9112_v29 = vmax.f32 %v3373_v50, %v10946_v61  ;;  %v2309_v8 = vpop.permute.xlu0 %2308 }
 0x25c   : > { %10940 = vst [vmem:[#allocation18_spill] sm:$0xff] %v9089_v60  ;;  %v9117_v14 = vmax.f32 %v9061_v18, %v10721_v19  ;;  %v3667_v3 = vld [vmem:[#allocation2 + $0x88] sm:$0xf]  ;;  %v3795_v55 = vrot.slane %v3665_v40, 1  ;;  %v3435_v50 = vpack.c.bf16 %v9081_v12, %v9081_v12 }
 0x25d   : > { %10941 = vst [vmem:[#allocation16_spill] sm:$0xff] %v9091_v15  ;;  %v3214_v59 = vrot.slane %v3065_v22, 1  ;;  %2352 = vrot.lane.b32.xlu0 %v2262_v34, %s6388_s30  ;;  %v9129_v22 = vld [vmem:[#allocation2 + $0x1b8] sm:$0xff]  ;;  %v3798_v27 = vrot.slane %v3667_v3, 1  ;;  %v10948_v34 = vld [vmem:[#allocation29_spill] sm:$0xff] }
 0x25e   : > { %2455 = vst.msk [vmem:[#allocation2 + $0x16a] sm:$0xff] %vm226_vm2, %v2230_v7  ;;  %v3666_v7 = vld [vmem:[#allocation2 + $0x80] sm:$0xff]  ;;  %3505 = vrot.lane.b32.xlu2 %v3433_v53, %s6389_s6 }
 0x25f   : > { %10944 = vst [vmem:[#allocation17_spill] sm:$0xff] %v9098_v42  ;;  %v3796_v16 = vrot.slane %v3666_v7, 1  ;;  %v9132_v19 = vld [vmem:[#allocation2 + $0xa0] sm:$0xf]  ;;  %v3215_v28 = vsel %vm1390_vm11, %v3212_v52, %v3214_v59  ;;  %v9150_v59 = vmax.f32 %v3667_v3, %v3798_v27 }
 0x260   : > { %2457 = vst.msk [vmem:[#allocation2 + $0x182] sm:$0xff] %vm226_vm2, %v9089_v60  ;;  %v3803_v61 = vrot.slane %v9132_v19, 1  ;;  %v9145_v6 = vld [vmem:[#allocation2 + $0xb8] sm:$0xf] }
 0x261   : > { %10947 = vst [vmem:[#allocation21_spill] sm:$0xff] %v9112_v29  ;;  %v3797_v58 = vsel %vm1390_vm11, %v3795_v55, %v3796_v16  ;;  %v3799_v52 = vsel %vm1390_vm11, %v3796_v16, %v3798_v27  ;;  %v10727_v53 = vrot.slane %v9145_v6, 1 }
 0x262   : > { %2459 = vst.msk [vmem:[#allocation2 + $0x19a] sm:$0xff] %vm226_vm2, %v9091_v15  ;;  %v3945_v23 = vmax.f32 %v3665_v40, %v3797_v58  ;;  %v3946_v49 = vmax.f32 %v3666_v7, %v3799_v52  ;;  %v10739_v40 = vrot.slane %v9129_v22, 1  ;;  %v10951_v15 = vrot.slane %v8952_v63, 1 }
 0x263   : > { %3626 = vst.msk [vmem:[#allocation2 + $0x92] sm:$0xff] %vm226_vm2, %v3401_v2  ;;  %v9143_v2 = vmax.f32 %v10948_v34, %v3215_v28  ;;  %v9158_v28 = vmax.f32 %v9132_v19, %v3803_v61  ;;  %v3490_v34 = vpop.permute.xlu2 %3489  ;;  %v9170_v58 = vmax.f32 %v9145_v6, %v10727_v53  ;;  %v10950_v53 = vld [vmem:[#allocation26_spill] sm:$0xff] }
 0x264   : > { %3628 = vst.msk [vmem:[#allocation2 + $0xaa] sm:$0xff] %vm226_vm2, %v9081_v12  ;;  %v2343_v12 = vpop.permute.xlu1 %2342  ;;  %v4076_v7 = vrot.slane %v3946_v49, 2 }
 0x265   : > { %3630 = vst.msk [vmem:[#allocation2 + $0xc2] sm:$0xff] %vm226_vm2, %v9098_v42  ;;  %v9162_v55 = vmax.f32 %v9041_v9, %v9143_v2  ;;  %v2506_v27 = vld [vmem:[#allocation2 + $0x168] sm:$0xff]  ;;  %v2507_v3 = vld [vmem:[#allocation2 + $0x170] sm:$0xff]  ;;  %v4075_v9 = vrot.slane %v3945_v23, 2 }
 0x266   : > { %3632 = vst.msk [vmem:[#allocation2 + $0xda] sm:$0xff] %vm226_vm2, %v9112_v29  ;;  %v2656_v30 = vrot.slane %v2506_v27, 1  ;;  %v2657_v16 = vrot.slane %v2507_v3, 1  ;;  %3509 = vrot.lane.b32.xlu2 %v3435_v50, %s6389_s6 }
 0x267   : > { %3637 = vst.msk [vmem:[#allocation2 + $0x112] sm:$0xff] %vm226_vm2, %v9102_v62  ;;  %v2510_v29 = vld [vmem:[#allocation2 + $0x188] sm:$0xff]  ;;  %v9181_v42 = vmax.f32 %v10950_v53, %v9162_v55  ;;  %v2509_v4 = vld [vmem:[#allocation2 + $0x180] sm:$0xff]  ;;  %v4077_v52 = vsel %vm1671_vm12, %v4075_v9, %v4076_v7  ;;  %v10953_v53 = vrot.slane %v9150_v59, 2  ;;  %v10954_v9 = vrot.slane %v8987_v36, 1 }
 0x268   : > { %10949 = vst [vmem:[#allocation20_spill] sm:$0xff] %v9170_v58  ;;  %v2662_v38 = vrot.slane %v2510_v29, 1  ;;  %v2661_v51 = vrot.slane %v2509_v4, 1  ;;  %v4225_v39 = vmax.f32 %v3945_v23, %v4077_v52  ;;  %v2341_v23 = vpop.permute.xlu0 %2340 }
 0x269   : > { %2402 = vst.msk [vmem:[#allocation3 + $0x14] sm:$0xf] %vm2396_vm1, %v9056_v45  ;;  %v9189_v45 = vsel %vm1390_vm11, %v10951_v15, %v10739_v40  ;;  %v4079_v32 = vsel %vm1671_vm12, %v4076_v7, %v10953_v53  ;;  %v2660_v7 = vsel %vm1390_vm11, %v2657_v16, %v10954_v9 }
 0x26a   : > { %2401 = vst.msk [vmem:[#allocation3 + $0x10] sm:$0xf] %vm2396_vm1, %v2309_v8  ;;  %v10952_v8 = vpack.c.bf16 %v10938_v13, %v10938_v13  ;;  %v3668_v19 = vld [vmem:[#allocation2 + $0x90] sm:$0xff]  ;;  %v3669_v60 = vld [vmem:[#allocation2 + $0x98] sm:$0xff]  ;;  %v9200_v15 = vmax.f32 %v3946_v49, %v4079_v32  ;;  %v2658_v13 = vsel %vm1390_vm11, %v2656_v30, %v2657_v16  ;;  %v9213_v49 = vmax.f32 %v9085_v43, %v9181_v42 }
 0x26b   : > { %3586 = vst.msk [vmem:[#allocation3] sm:$0xf] %vm3585_vm14, %v3490_v34  ;;  %v3800_v40 = vrot.slane %v3668_v19, 1  ;;  %v3801_v47 = vrot.slane %v3669_v60, 1  ;;  %v3671_v32 = vld [vmem:[#allocation2 + $0xa8] sm:$0xff]  ;;  %v4355_v52 = vrot.slane %v4225_v39, 1  ;;  %v2787_v53 = vmax.f32 %v2507_v3, %v2660_v7 }
 0x26c   : > { %3499 = vrot.lane.b32.xlu0 %v10952_v8, %s6389_s6  ;;  %2418 = vst.msk [vmem:[#allocation3 + $0x54] sm:$0xf] %vm2396_vm1, %v2343_v12  ;;  %v10955_v8 = vrot.slane %v9000_v20, 1  ;;  %v10742_v12 = vrot.slane %v9200_v15, 1  ;;  %v2786_v20 = vmax.f32 %v2506_v27, %v2658_v13  ;;  %v3672_v43 = vld [vmem:[#allocation2 + $0xb0] sm:$0xff] }
 0x26d   : > { %v3802_v50 = vsel %vm1390_vm11, %v3800_v40, %v3801_v47  ;;  %v3804_v30 = vsel %vm1390_vm11, %v3801_v47, %v3803_v61  ;;  %2417 = vst.msk [vmem:[#allocation3 + $0x50] sm:$0xf] %vm2396_vm1, %v2341_v23  ;;  %v3446_v40 = vpack.c.bf16 %v9213_v49, %v9213_v49  ;;  %v3805_v47 = vrot.slane %v3671_v32, 1  ;;  %v2315_v61 = vpop.permute.xlu1 %2314 }
 0x26e   : > { %v2665_v34 = vsel %vm1390_vm11, %v2662_v38, %v10955_v8  ;;  %v3948_v36 = vmax.f32 %v3668_v19, %v3802_v50  ;;  %v3949_v16 = vmax.f32 %v3669_v60, %v3804_v30  ;;  %3639 = vst.msk [vmem:[#allocation2 + $0x12a] sm:$0xff] %vm226_vm2, %v9213_v49  ;;  %v4357_v9 = vsel %vm1390_vm11, %v4355_v52, %v10742_v12 }
 0x26f   : > { %v9224_v8 = vmax.f32 %v2510_v29, %v2665_v34  ;;  %v4480_v23 = vmax.f32 %v4225_v39, %v4357_v9  ;;  %v2936_v27 = vrot.slane %v2786_v20, 2  ;;  %2404 = vst.msk [vmem:[#allocation3 + $0x1c] sm:$0xf] %vm2396_vm1, %v2315_v61  ;;  %v2937_v3 = vrot.slane %v2787_v53, 2 }
 0x270   : > { %v4080_v19 = vrot.slane %v3948_v36, 2  ;;  %v4081_v60 = vrot.slane %v3949_v16, 2  ;;  %v3806_v7 = vrot.slane %v3672_v43, 1  ;;  %v2663_v50 = vsel %vm1390_vm11, %v2661_v51, %v2662_v38 }
 0x271   : > { %v2942_v13 = vrot.slane %v9224_v8, 2  ;;  %v9232_v29 = vmax.f32 %v8950_v37, %v4480_v23  ;;  %v10956_v34 = vpack.c.bf16 %v9102_v62, %v9102_v62  ;;  %v10957_v49 = vrot.slane %v9158_v28, 2 }
 0x272   : > { %v4082_v39 = vsel %vm1671_vm12, %v4080_v19, %v4081_v60  ;;  %v9242_v30 = vmax.f32 %v2509_v4, %v2663_v50  ;;  %v2938_v51 = vsel %vm1671_vm12, %v2936_v27, %v2937_v3  ;;  %v10959_v38 = vrot.slane %v9021_v33, 2 }
 0x273   : > { %v4084_v52 = vsel %vm1671_vm12, %v4081_v60, %v10957_v49  ;;  %v4228_v9 = vmax.f32 %v3948_v36, %v4082_v39  ;;  %v4552_v62 = vmax.f32 %v8956_v44, %v9232_v29  ;;  %v10960_v12 = vrot.slane %v9061_v18, 2 }
 0x274   : > { %3527 = vrot.lane.b32.xlu0 %v10956_v34, %s6389_s6  ;;  %v9244_v61 = vmax.f32 %v3949_v16, %v4084_v52  ;;  %v2940_v37 = vsel %vm1671_vm12, %v2937_v3, %v10959_v38  ;;  %v3066_v34 = vmax.f32 %v2786_v20, %v2938_v51  ;;  %v3807_v27 = vsel %vm1390_vm11, %v3805_v47, %v3806_v7  ;;  %v3674_v51 = vld [vmem:[#allocation2 + $0xc0] sm:$0xff] }
 0x275   : > { %v3067_v19 = vmax.f32 %v2787_v53, %v2940_v37  ;;  %v2945_v60 = vsel %vm1671_vm12, %v2942_v13, %v10960_v12  ;;  %v4360_v4 = vrot.slane %v4228_v9, 1  ;;  %v4584_v33 = vmax.f32 %v8970_v17, %v4552_v62 }
 0x276   : > { %10958 = vst [vmem:[#allocation12_spill] sm:$0xff] %v9244_v61  ;;  %v10744_v36 = vrot.slane %v9244_v61, 1  ;;  %v9257_v16 = vmax.f32 %v9224_v8, %v2945_v60  ;;  %v3216_v3 = vrot.slane %v3066_v34, 1  ;;  %v10961_v44 = vrot.slane %v9145_v6, 1  ;;  %v2313_v8 = vpop.permute.xlu0 %2312 }
 0x277   : > { %v3217_v50 = vrot.slane %v3067_v19, 1  ;;  %v3951_v53 = vmax.f32 %v3671_v32, %v3807_v27  ;;  %v4616_v49 = vpack.c.bf16 %v4584_v33, %v4584_v33  ;;  %v10962_v47 = vrot.slane %v9107_v5, 1  ;;  %2403 = vst.msk [vmem:[#allocation3 + $0x18] sm:$0xf] %vm2396_vm1, %v2313_v8 }
 0x278   : > { %v3809_v20 = vsel %vm1390_vm11, %v3806_v7, %v10961_v44  ;;  %v4362_v18 = vsel %vm1390_vm11, %v4360_v4, %v10744_v36  ;;  %v3222_v12 = vrot.slane %v9257_v16, 1  ;;  %v3675_v7 = vld [vmem:[#allocation2 + $0xc8] sm:$0xff]  ;;  %v10963_v37 = vrot.slane %v9117_v14, 1 }
 0x279   : > { %v3952_v39 = vmax.f32 %v3672_v43, %v3809_v20  ;;  %v9268_v52 = vmax.f32 %v4228_v9, %v4362_v18  ;;  %v3218_v17 = vsel %vm1390_vm11, %v3216_v3, %v3217_v50  ;;  %v3220_v6 = vsel %vm1390_vm11, %v3217_v50, %v10962_v47  ;;  %4682 = vrot.lane.b32.xlu1 %v4616_v49, %s6390_s7 }
 0x27a   : > { %v9275_v38 = vmax.f32 %v3066_v34, %v3218_v17  ;;  %v3225_v32 = vsel %vm1390_vm11, %v3222_v12, %v10963_v37  ;;  %v3312_v43 = vmax.f32 %v3067_v19, %v3220_v6  ;;  %v4085_v9 = vrot.slane %v3951_v53, 2  ;;  %v2512_v37 = vld [vmem:[#allocation2 + $0x198] sm:$0xff] }
 0x27b   : > { %v9284_v5 = vmax.f32 %v4480_v23, %v9268_v52  ;;  %v9287_v60 = vmax.f32 %v9257_v16, %v3225_v32  ;;  %v4086_v34 = vrot.slane %v3952_v39, 2  ;;  %v2941_v4 = vrot.slane %v9242_v30, 2 }
 0x27c   : > { %3531 = vrot.lane.b32.xlu0 %v3446_v40, %s6389_s6  ;;  %v9293_v14 = vmax.f32 %v8859_v21, %v9275_v38  ;;  %v9296_v19 = vmax.f32 %v9143_v2, %v3312_v43  ;;  %v3810_v27 = vrot.slane %v3674_v51, 1  ;;  %v3811_v33 = vrot.slane %v3675_v7, 1  ;;  %v10968_v21 = vld [vmem:[#allocation5_spill] sm:$0xff] }
 0x27d   : > { %10964 = vst [vmem:[#allocation19_spill] sm:$0xff] %v9287_v60  ;;  %v9300_v23 = vmax.f32 %v8961_v24, %v9284_v5  ;;  %v9303_v3 = vmax.f32 %v3312_v43, %v9287_v60  ;;  %v4087_v40 = vsel %vm1671_vm12, %v4085_v9, %v4086_v34  ;;  %v10967_v50 = vrot.slane %v9170_v58, 2  ;;  %v3676_v24 = vld [vmem:[#allocation2 + $0xd0] sm:$0xf]  ;;  %v2513_v43 = vld [vmem:[#allocation2 + $0x1a0] sm:$0xff] }
 0x27e   : > { %10965 = vst [vmem:[#allocation9_spill] sm:$0xff] %v9296_v19  ;;  %v9311_v20 = vmax.f32 %v10968_v21, %v9293_v14  ;;  %v3384_v2 = vmax.f32 %v9070_v10, %v9296_v19  ;;  %v4231_v18 = vmax.f32 %v3951_v53, %v4087_v40  ;;  %v2943_v47 = vsel %vm1671_vm12, %v2941_v4, %v2942_v13  ;;  %v3494_v40 = vpop.permute.xlu2 %3493 }
 0x27f   : > { %10966 = vst [vmem:[#allocation14_spill] sm:$0xff] %v9303_v3  ;;  %v4089_v44 = vsel %vm1671_vm12, %v4086_v34, %v10967_v50  ;;  %v4586_v49 = vmax.f32 %v4552_v62, %v9300_v23  ;;  %v9320_v17 = vmax.f32 %v9162_v55, %v9303_v3  ;;  %v3812_v6 = vsel %vm1390_vm11, %v3810_v27, %v3811_v33  ;;  %v2517_v34 = vld [vmem:[#allocation2 + $0x1c0] sm:$0xf] }
 0x280   : > { %v9315_v8 = vmax.f32 %v3952_v39, %v4089_v44  ;;  %v3415_v32 = vmax.f32 %v8881_v26, %v9311_v20  ;;  %v9327_v10 = vmax.f32 %v9181_v42, %v3384_v2  ;;  %v4365_v53 = vrot.slane %v4231_v18, 1  ;;  %3588 = vst.msk [vmem:[#allocation3 + $0x8] sm:$0xf] %vm3585_vm14, %v3494_v40 }
 0x281   : > { %10970 = vst [vmem:[#allocation23_spill] sm:$0xff] %v9320_v17  ;;  %v4618_v62 = vpack.c.bf16 %v4586_v49, %v4586_v49  ;;  %v9331_v9 = vmax.f32 %v3384_v2, %v9320_v17  ;;  %v3069_v55 = vmax.f32 %v9242_v30, %v2943_v47  ;;  %v3813_v13 = vrot.slane %v3676_v24, 1  ;;  %v2347_v49 = vpop.permute.xlu1 %2346 }
 0x282   : > { %10969 = vst [vmem:[#allocation15_spill] sm:$0xff] %v9315_v8  ;;  %v10743_v39 = vrot.slane %v9315_v8, 1  ;;  %v3447_v4 = vpack.c.bf16 %v3415_v32, %v3415_v32  ;;  %v3954_v42 = vmax.f32 %v3674_v51, %v3812_v6  ;;  %v2666_v27 = vrot.slane %v2512_v37, 1  ;;  %v2519_v6 = vld [vmem:[#allocation2 + $0x1d0] sm:$0xff] }
 0x283   : > { %3640 = vst.msk [vmem:[#allocation2 + $0x13a] sm:$0xff] %vm226_vm2, %v3415_v32  ;;  %4686 = vrot.lane.b32.xlu1 %v4618_v62, %s6390_s7  ;;  %v3221_v30 = vrot.slane %v3069_v55, 1  ;;  %v10971_v44 = vpack.c.bf16 %v9036_v56, %v9036_v56  ;;  %v3814_v21 = vsel %vm1390_vm11, %v3811_v33, %v3813_v13  ;;  %v2667_v2 = vrot.slane %v2513_v43, 1  ;;  %v2520_v32 = vld [vmem:[#allocation2 + $0x1d8] sm:$0xf] }
 0x284   : > { %v4367_v26 = vsel %vm1390_vm11, %v4365_v53, %v10743_v39  ;;  %3641 = vst.msk [vmem:[#allocation2 + $0x142] sm:$0xff] %vm226_vm2, %v9327_v10  ;;  %3533 = vrot.lane.b32.xlu2 %v3447_v4, %s6389_s6  ;;  %v3955_v51 = vmax.f32 %v3675_v7, %v3814_v21  ;;  %v9351_v47 = vmax.f32 %v3676_v24, %v3813_v13  ;;  %v2674_v53 = vrot.slane %v2517_v34, 1 }
 0x285   : > { %v9341_v50 = vmax.f32 %v4231_v18, %v4367_v26  ;;  %3503 = vrot.lane.b32.xlu0 %v10971_v44, %s6389_s6  ;;  %3643 = vst.msk [vmem:[#allocation2 + $0x15a] sm:$0xff] %vm226_vm2, %v9331_v9  ;;  %v4090_v18 = vrot.slane %v3954_v42, 2  ;;  %v3223_v33 = vsel %vm1390_vm11, %v3221_v30, %v3222_v12  ;;  %v2668_v62 = vsel %vm1390_vm11, %v2666_v27, %v2667_v2 }
 0x286   : > { %v10972_v4 = vrot.slane %v9119_v1, 1  ;;  %v9365_v24 = vmax.f32 %v3069_v55, %v3223_v33  ;;  %v4091_v13 = vrot.slane %v3955_v51, 2  ;;  %v10750_v26 = vrot.slane %v9351_v47, 2  ;;  %2420 = vst.msk [vmem:[#allocation3 + $0x5c] sm:$0xf] %vm2396_vm1, %v2347_v49 }
 0x287   : > { %v9355_v56 = vmax.f32 %v9268_v52, %v9341_v50  ;;  %v10973_v52 = vrot.slane %v9129_v22, 1  ;;  %v2677_v12 = vrot.slane %v2519_v6, 1  ;;  %v2679_v27 = vrot.slane %v2520_v32, 1 }
 0x288   : > { %v2670_v7 = vsel %vm1390_vm11, %v2667_v2, %v10972_v4  ;;  %v2792_v30 = vmax.f32 %v2512_v37, %v2668_v62  ;;  %v9376_v40 = vmax.f32 %v9275_v38, %v9365_v24  ;;  %v4092_v55 = vsel %vm1671_vm12, %v4090_v18, %v4091_v13 }
 0x289   : > { %v2675_v44 = vsel %vm1390_vm11, %v10973_v52, %v2674_v53  ;;  %v4556_v16 = vmax.f32 %v9232_v29, %v9355_v56  ;;  %v4094_v21 = vsel %vm1671_vm12, %v4091_v13, %v10750_v26  ;;  %v2793_v2 = vmax.f32 %v2513_v43, %v2670_v7 }
 0x28a   : > { %v4234_v49 = vmax.f32 %v3954_v42, %v4092_v55  ;;  %v9383_v4 = vmax.f32 %v3955_v51, %v4094_v21  ;;  %v10974_v29 = vrot.slane %v8954_v41, 1  ;;  %v9390_v38 = vmax.f32 %v8869_v31, %v9376_v40  ;;  %v3689_v58 = vld [vmem:[#allocation2 + $0x138] sm:$0xff] }
 0x28b   : > { %v4588_v33 = vmax.f32 %v9300_v23, %v4556_v16  ;;  %v2680_v18 = vsel %vm1390_vm11, %v2677_v12, %v2679_v27  ;;  %v10975_v62 = vrot.slane %v9119_v1, 1  ;;  %v2795_v23 = vmax.f32 %v8952_v63, %v9189_v45 }
 0x28c   : > { %v2678_v37 = vsel %vm1390_vm11, %v10974_v29, %v2677_v12  ;;  %v4370_v42 = vrot.slane %v4234_v49, 1  ;;  %v10749_v51 = vrot.slane %v9383_v4, 1  ;;  %v2796_v7 = vmax.f32 %v9129_v22, %v2675_v44 }
 0x28d   : > { %v9396_v13 = vmax.f32 %v9119_v1, %v10975_v62  ;;  %v4620_v43 = vpack.c.bf16 %v4588_v33, %v4588_v33  ;;  %v3417_v31 = vmax.f32 %v9311_v20, %v9390_v38  ;;  %v9404_v52 = vmax.f32 %v2517_v34, %v2674_v53 }
 0x28e   : > { %v2798_v12 = vmax.f32 %v8954_v41, %v2678_v37  ;;  %v2799_v55 = vmax.f32 %v2519_v6, %v2680_v18  ;;  %v4372_v63 = vsel %vm1390_vm11, %v4370_v42, %v10749_v51  ;;  %v9411_v1 = vmax.f32 %v2520_v32, %v2679_v27  ;;  %v3686_v51 = vld [vmem:[#allocation2 + $0x120] sm:$0xff] }
 0x28f   : > { %4690 = vrot.lane.b32.xlu1 %v4620_v43, %s6390_s7  ;;  %v2946_v45 = vrot.slane %v2792_v30, 2  ;;  %v2947_v21 = vrot.slane %v2793_v2, 2  ;;  %v3449_v33 = vpack.c.bf16 %v3417_v31, %v3417_v31  ;;  %3642 = vst.msk [vmem:[#allocation2 + $0x152] sm:$0xff] %vm226_vm2, %v3417_v31  ;;  %v9414_v22 = vmax.f32 %v4234_v49, %v4372_v63 }
 0x290   : > { %10976 = vst [vmem:[#allocation7_spill] sm:$0xff] %v9411_v1  ;;  %v10748_v20 = vrot.slane %v9396_v13, 2  ;;  %v2951_v34 = vrot.slane %v2795_v23, 2  ;;  %v2952_v6 = vrot.slane %v2796_v7, 2  ;;  %v10746_v53 = vrot.slane %v9404_v52, 2 }
 0x291   : > { %v2948_v41 = vsel %vm1671_vm12, %v2946_v45, %v2947_v21  ;;  %v2956_v44 = vrot.slane %v2798_v12, 2  ;;  %3537 = vrot.lane.b32.xlu2 %v3449_v33, %s6389_s6  ;;  %v9422_v32 = vmax.f32 %v9341_v50, %v9414_v22  ;;  %v2957_v49 = vrot.slane %v2799_v55, 2  ;;  %v9442_v45 = vld [vmem:[#allocation2 + $0xd8] sm:$0xff] }
 0x292   : > { %v2950_v27 = vsel %vm1671_vm12, %v2947_v21, %v10748_v20  ;;  %v10745_v29 = vrot.slane %v9411_v1, 2  ;;  %v2953_v37 = vsel %vm1671_vm12, %v2951_v34, %v2952_v6  ;;  %v2955_v18 = vsel %vm1671_vm12, %v2952_v6, %v10746_v53  ;;  %v3684_v53 = vld [vmem:[#allocation2 + $0x110] sm:$0xff] }
 0x293   : > { %10977 = vst [vmem:[#allocation27_spill] sm:$0xff] %v9422_v32  ;;  %v3072_v62 = vmax.f32 %v2792_v30, %v2948_v41  ;;  %v9432_v43 = vmax.f32 %v2793_v2, %v2950_v27  ;;  %v9436_v50 = vmax.f32 %v9284_v5, %v9422_v32  ;;  %v2958_v42 = vsel %vm1671_vm12, %v2956_v44, %v2957_v49  ;;  %v9448_v2 = vld [vmem:[#allocation2 + $0xe0] sm:$0xff]  ;;  %v9450_v41 = vld [vmem:[#allocation2 + $0xe8] sm:$0xf]  ;;  %v9456_v27 = vld [vmem:[#allocation2 + $0xf0] sm:$0xff] }
 0x294   : > { %v2960_v31 = vsel %vm1671_vm12, %v2957_v49, %v10745_v29  ;;  %v3075_v63 = vmax.f32 %v2795_v23, %v2953_v37  ;;  %v9444_v21 = vmax.f32 %v2796_v7, %v2955_v18  ;;  %v3078_v33 = vmax.f32 %v2798_v12, %v2958_v42  ;;  %v3681_v18 = vld [vmem:[#allocation2 + $0xf8] sm:$0xff]  ;;  %v3682_v42 = vld [vmem:[#allocation2 + $0x100] sm:$0xf] }
 0x295   : > { %v9446_v34 = vmax.f32 %v2799_v55, %v2960_v31  ;;  %v3226_v30 = vrot.slane %v3072_v62, 1  ;;  %v4590_v5 = vmax.f32 %v4556_v16, %v9436_v50  ;;  %v10747_v6 = vrot.slane %v9432_v43, 1  ;;  %v3683_v31 = vld [vmem:[#allocation2 + $0x108] sm:$0xff] }
 0x296   : > { %10978 = vst [vmem:[#allocation28_spill] sm:$0xff] %v9444_v21  ;;  %v3231_v44 = vrot.slane %v3075_v63, 1  ;;  %v3434_v23 = vpack.c.bf16 %v9038_v11, %v9038_v11  ;;  %v10752_v7 = vrot.slane %v9444_v21, 1  ;;  %v3236_v12 = vrot.slane %v3078_v33, 1 }
 0x297   : > { %10979 = vst [vmem:[#allocation6_spill] sm:$0xff] %v9446_v34  ;;  %v10756_v55 = vrot.slane %v9446_v34, 1  ;;  %v3815_v49 = vrot.slane %v9442_v45, 1  ;;  %v4622_v37 = vpack.c.bf16 %v4590_v5, %v4590_v5  ;;  %v3228_v16 = vsel %vm1390_vm11, %v3226_v30, %v10747_v6  ;;  %v3685_v30 = vld [vmem:[#allocation2 + $0x118] sm:$0xf] }
 0x298   : > { %3507 = vrot.lane.b32.xlu0 %v3434_v23, %s6389_s6  ;;  %v3816_v11 = vrot.slane %v9448_v2, 1  ;;  %v3818_v39 = vrot.slane %v9450_v41, 1  ;;  %v3233_v36 = vsel %vm1390_vm11, %v3231_v44, %v10752_v7  ;;  %v3315_v29 = vmax.f32 %v3072_v62, %v3228_v16  ;;  %v3687_v16 = vld [vmem:[#allocation2 + $0x128] sm:$0xff] }
 0x299   : > { %v3238_v5 = vsel %vm1390_vm11, %v3236_v12, %v10756_v55  ;;  %v3820_v23 = vrot.slane %v9456_v27, 1  ;;  %4694 = vrot.lane.b32.xlu1 %v4622_v37, %s6390_s7  ;;  %v3317_v6 = vmax.f32 %v3075_v63, %v3233_v36  ;;  %v3821_v7 = vrot.slane %v3681_v18, 1  ;;  %v3688_v55 = vld [vmem:[#allocation2 + $0x130] sm:$0xf]  ;;  %v3690_v63 = vld [vmem:[#allocation2 + $0x140] sm:$0xff] }
 0x29a   : > { %v3319_v20 = vmax.f32 %v3078_v33, %v3238_v5  ;;  %v3817_v26 = vsel %vm1390_vm11, %v3815_v49, %v3816_v11  ;;  %v3819_v32 = vsel %vm1390_vm11, %v3816_v11, %v3818_v39  ;;  %v3353_v44 = vmax.f32 %v9365_v24, %v3315_v29  ;;  %v3691_v33 = vld [vmem:[#allocation2 + $0x148] sm:$0xf] }
 0x29b   : > { %v3823_v8 = vrot.slane %v3682_v42, 1  ;;  %v3825_v3 = vrot.slane %v3683_v31, 1  ;;  %v3355_v12 = vmax.f32 %v3315_v29, %v3317_v6  ;;  %v3826_v17 = vrot.slane %v3684_v53, 1 }
 0x29c   : > { %v3357_v62 = vmax.f32 %v3317_v6, %v3319_v20  ;;  %v3828_v61 = vrot.slane %v3685_v30, 1  ;;  %v3387_v36 = vmax.f32 %v9293_v14, %v3353_v44  ;;  %v3822_v49 = vsel %vm1390_vm11, %v3820_v23, %v3821_v7  ;;  %v2345_v6 = vpop.permute.xlu0 %2344 }
 0x29d   : > { %v3824_v37 = vsel %vm1390_vm11, %v3821_v7, %v3823_v8  ;;  %v3830_v11 = vrot.slane %v3686_v51, 1  ;;  %v3389_v24 = vmax.f32 %v9376_v40, %v3355_v12  ;;  %v3827_v29 = vsel %vm1390_vm11, %v3825_v3, %v3826_v17  ;;  %2419 = vst.msk [vmem:[#allocation3 + $0x58] sm:$0xf] %vm2396_vm1, %v2345_v6 }
 0x29e   : > { %v3391_v5 = vmax.f32 %v3353_v44, %v3357_v62  ;;  %v3829_v20 = vsel %vm1390_vm11, %v3826_v17, %v3828_v61  ;;  %v3419_v34 = vmax.f32 %v9390_v38, %v3387_v36  ;;  %v3831_v19 = vrot.slane %v3687_v16, 1 }
 0x29f   : > { %v3833_v21 = vrot.slane %v3688_v55, 1  ;;  %v3835_v14 = vrot.slane %v3689_v58, 1  ;;  %v9486_v60 = vmax.f32 %v3387_v36, %v3389_v24  ;;  %v3836_v7 = vrot.slane %v3690_v63, 1 }
 0x2a0   : > { %v9488_v23 = vmax.f32 %v3389_v24, %v3391_v5  ;;  %v3838_v1 = vrot.slane %v3691_v33, 1  ;;  %v3451_v40 = vpack.c.bf16 %v3419_v34, %v3419_v34  ;;  %3644 = vst.msk [vmem:[#allocation2 + $0x16a] sm:$0xff] %vm226_vm2, %v3419_v34  ;;  %v3832_v3 = vsel %vm1390_vm11, %v3830_v11, %v3831_v19 }
 0x2a1   : > { %v3834_v17 = vsel %vm1390_vm11, %v3831_v19, %v3833_v21  ;;  %v3957_v38 = vmax.f32 %v9442_v45, %v3817_v26  ;;  %3646 = vst.msk [vmem:[#allocation2 + $0x182] sm:$0xff] %vm226_vm2, %v9486_v60  ;;  %v3837_v44 = vsel %vm1390_vm11, %v3835_v14, %v3836_v7  ;;  %v3958_v62 = vmax.f32 %v9448_v2, %v3819_v32  ;;  %v2319_v32 = vpop.permute.xlu1 %2318 }
 0x2a2   : > { %v3839_v12 = vsel %vm1390_vm11, %v3836_v7, %v3838_v1  ;;  %v9500_v36 = vmax.f32 %v9450_v41, %v3818_v39  ;;  %3648 = vst.msk [vmem:[#allocation2 + $0x19a] sm:$0xff] %vm226_vm2, %v9488_v23  ;;  %3541 = vrot.lane.b32.xlu2 %v3451_v40, %s6389_s6  ;;  %v3960_v19 = vmax.f32 %v9456_v27, %v3822_v49 }
 0x2a3   : > { %v3961_v26 = vmax.f32 %v3681_v18, %v3824_v37  ;;  %v9506_v45 = vmax.f32 %v3682_v42, %v3823_v8  ;;  %v4095_v34 = vrot.slane %v3957_v38, 2  ;;  %v3963_v11 = vmax.f32 %v3683_v31, %v3827_v29  ;;  %2406 = vst.msk [vmem:[#allocation3 + $0x24] sm:$0xf] %vm2396_vm1, %v2319_v32 }
 0x2a4   : > { %v3964_v24 = vmax.f32 %v3684_v53, %v3829_v20  ;;  %v9508_v5 = vmax.f32 %v3685_v30, %v3828_v61  ;;  %v3966_v6 = vmax.f32 %v3686_v51, %v3832_v3  ;;  %v3967_v2 = vmax.f32 %v3687_v16, %v3834_v17  ;;  %v3492_v42 = vpop.permute.xlu0 %3491 }
 0x2a5   : > { %v9510_v39 = vmax.f32 %v3688_v55, %v3833_v21  ;;  %v3969_v41 = vmax.f32 %v3689_v58, %v3837_v44  ;;  %v3970_v14 = vmax.f32 %v3690_v63, %v3839_v12  ;;  %v9513_v7 = vmax.f32 %v3691_v33, %v3838_v1  ;;  %3587 = vst.msk [vmem:[#allocation3 + $0x4] sm:$0xf] %vm3585_vm14, %v3492_v42 }
 0x2a6   : > { %v4096_v27 = vrot.slane %v3958_v62, 2  ;;  %v4098_v8 = vrot.slane %v9500_v36, 2  ;;  %v4100_v18 = vrot.slane %v3960_v19, 2  ;;  %v4101_v31 = vrot.slane %v3961_v26, 2 }
 0x2a7   : > { %v4103_v61 = vrot.slane %v9506_v45, 2  ;;  %v4105_v53 = vrot.slane %v3963_v11, 2  ;;  %v4106_v51 = vrot.slane %v3964_v24, 2  ;;  %v4108_v1 = vrot.slane %v9508_v5, 2 }
 0x2a8   : > { %v4097_v21 = vsel %vm1671_vm12, %v4095_v34, %v4096_v27  ;;  %v4099_v58 = vsel %vm1671_vm12, %v4096_v27, %v4098_v8  ;;  %v4110_v55 = vrot.slane %v3966_v6, 2  ;;  %v4102_v30 = vsel %vm1671_vm12, %v4100_v18, %v4101_v31  ;;  %v3498_v18 = vpop.permute.xlu2 %3497 }
 0x2a9   : > { %v4104_v16 = vsel %vm1671_vm12, %v4101_v31, %v4103_v61  ;;  %v4107_v63 = vsel %vm1671_vm12, %v4105_v53, %v4106_v51  ;;  %v4111_v33 = vrot.slane %v3967_v2, 2  ;;  %v4109_v49 = vsel %vm1671_vm12, %v4106_v51, %v4108_v1  ;;  %v2351_v42 = vpop.permute.xlu1 %2350  ;;  %3590 = vst.msk [vmem:[#allocation3 + $0x10] sm:$0xf] %vm3585_vm14, %v3498_v18 }
 0x2aa   : > { %v4113_v37 = vrot.slane %v9510_v39, 2  ;;  %v4115_v29 = vrot.slane %v3969_v41, 2  ;;  %v4116_v20 = vrot.slane %v3970_v14, 2  ;;  %v10771_v3 = vrot.slane %v9513_v7, 2  ;;  %2422 = vst.msk [vmem:[#allocation3 + $0x64] sm:$0xf] %vm2396_vm1, %v2351_v42 }
 0x2ab   : > { %v4112_v40 = vsel %vm1671_vm12, %v4110_v55, %v4111_v33  ;;  %v4237_v17 = vmax.f32 %v3957_v38, %v4097_v21  ;;  %v9534_v44 = vmax.f32 %v3958_v62, %v4099_v58  ;;  %v4240_v32 = vmax.f32 %v3960_v19, %v4102_v30 }
 0x2ac   : > { %v4114_v12 = vsel %vm1671_vm12, %v4111_v33, %v4113_v37  ;;  %v4117_v34 = vsel %vm1671_vm12, %v4115_v29, %v4116_v20  ;;  %v9540_v27 = vmax.f32 %v3961_v26, %v4104_v16  ;;  %v4119_v31 = vsel %vm1671_vm12, %v4116_v20, %v10771_v3 }
 0x2ad   : > { %v4243_v53 = vmax.f32 %v3963_v11, %v4107_v63  ;;  %v9545_v51 = vmax.f32 %v3964_v24, %v4109_v49  ;;  %v4246_v38 = vmax.f32 %v3966_v6, %v4112_v40  ;;  %v9548_v62 = vmax.f32 %v3967_v2, %v4114_v12 }
 0x2ae   : > { %v4249_v21 = vmax.f32 %v3969_v41, %v4117_v34  ;;  %v9550_v58 = vmax.f32 %v3970_v14, %v4119_v31  ;;  %v4375_v19 = vrot.slane %v4237_v17, 1  ;;  %v4376_v26 = vrot.slane %v9534_v44, 1 }
 0x2af   : > { %v4380_v55 = vrot.slane %v4240_v32, 1  ;;  %v4381_v30 = vrot.slane %v9540_v27, 1  ;;  %v4385_v16 = vrot.slane %v4243_v53, 1  ;;  %v4386_v11 = vrot.slane %v9545_v51, 1 }
 0x2b0   : > { %v4390_v24 = vrot.slane %v4246_v38, 1  ;;  %v4391_v6 = vrot.slane %v9548_v62, 1  ;;  %v4395_v63 = vrot.slane %v4249_v21, 1  ;;  %v4377_v2 = vsel %vm1390_vm11, %v4375_v19, %v4376_v26 }
 0x2b1   : > { %v4382_v41 = vsel %vm1390_vm11, %v4380_v55, %v4381_v30  ;;  %v10770_v14 = vrot.slane %v9550_v58, 1  ;;  %v10980_v33 = vrot.slane %v8873_v25, 2  ;;  %v4387_v29 = vsel %vm1390_vm11, %v4385_v16, %v4386_v11 }
 0x2b2   : > { %v4392_v20 = vsel %vm1390_vm11, %v4390_v24, %v4391_v6  ;;  %v4488_v40 = vmax.f32 %v4237_v17, %v4377_v2  ;;  %v4490_v12 = vmax.f32 %v4240_v32, %v4382_v41  ;;  %v4492_v18 = vmax.f32 %v4243_v53, %v4387_v29  ;;  %v2317_v2 = vpop.permute.xlu0 %2316 }
 0x2b3   : > { %v4212_v49 = vmax.f32 %v8873_v25, %v10980_v33  ;;  %v4397_v34 = vsel %vm1390_vm11, %v4395_v63, %v10770_v14  ;;  %v4494_v42 = vmax.f32 %v4246_v38, %v4392_v20  ;;  %v10981_v31 = vrot.slane %v8877_v35, 2  ;;  %v2339_v63 = vpop.permute.xlu1 %2338  ;;  %2405 = vst.msk [vmem:[#allocation3 + $0x20] sm:$0xf] %vm2396_vm1, %v2317_v2 }
 0x2b4   : > { %v9579_v19 = vmax.f32 %v4249_v21, %v4397_v34  ;;  %v9581_v55 = vmax.f32 %v4488_v40, %v4490_v12  ;;  %v10982_v16 = vrot.slane %v8883_v46, 2  ;;  %v10983_v17 = vrot.slane %v8885_v57, 2  ;;  %2416 = vst.msk [vmem:[#allocation3 + $0x4c] sm:$0xf] %vm2396_vm1, %v2339_v63 }
 0x2b5   : > { %v4215_v25 = vmax.f32 %v8877_v35, %v10981_v31  ;;  %v4530_v53 = vmax.f32 %v4490_v12, %v4492_v18  ;;  %v9589_v38 = vmax.f32 %v4492_v18, %v4494_v42  ;;  %v10984_v41 = vrot.slane %v8889_v0, 2 }
 0x2b6   : > { %v4218_v24 = vmax.f32 %v8883_v46, %v10982_v16  ;;  %v4221_v32 = vmax.f32 %v8885_v57, %v10983_v17  ;;  %v4333_v21 = vrot.slane %v4212_v49, 1  ;;  %v9596_v33 = vmax.f32 %v4494_v42, %v9579_v19  ;;  %v10986_v42 = vld [vmem:[#allocation30_spill] sm:$0xff]  ;;  %v10988_v16 = vld [vmem:[#allocation31_spill] sm:$0xff] }
 0x2b7   : > { %v4224_v35 = vmax.f32 %v8889_v0, %v10984_v41  ;;  %v4338_v46 = vrot.slane %v4215_v25, 1  ;;  %v4566_v57 = vmax.f32 %v9581_v55, %v9589_v38  ;;  %v10985_v12 = vrot.slane %v8914_v54, 1  ;;  %v3692_v41 = vld [vmem:[#allocation2 + $0x150] sm:$0xff] }
 0x2b8   : > { %v4343_v29 = vrot.slane %v4218_v24, 1  ;;  %v4348_v20 = vrot.slane %v4221_v32, 1  ;;  %v3436_v0 = vpack.c.bf16 %v9043_v48, %v9043_v48  ;;  %v9607_v49 = vmax.f32 %v4530_v53, %v9596_v33  ;;  %v10990_v32 = vld [vmem:[#allocation32_spill] sm:$0xff] }
 0x2b9   : > { %v4334_v34 = vsel %vm1390_vm11, %v10985_v12, %v4333_v21  ;;  %v4353_v18 = vrot.slane %v4224_v35, 1  ;;  %v10987_v31 = vrot.slane %v10986_v42, 1  ;;  %v10989_v24 = vrot.slane %v10988_v16, 1  ;;  %v10992_v35 = vld [vmem:[#allocation33_spill] sm:$0xff] }
 0x2ba   : > { %v10991_v2 = vrot.slane %v10990_v32, 1  ;;  %v10993_v21 = vrot.slane %v10992_v35, 1  ;;  %v4471_v12 = vmax.f32 %v8914_v54, %v4334_v34  ;;  %3511 = vrot.lane.b32.xlu0 %v3436_v0, %s6389_s6  ;;  %v3840_v54 = vrot.slane %v3692_v41, 1 }
 0x2bb   : > { %v4339_v25 = vsel %vm1390_vm11, %v10987_v31, %v4338_v46  ;;  %v4344_v17 = vsel %vm1390_vm11, %v10989_v24, %v4343_v29  ;;  %v4600_v46 = vmax.f32 %v4566_v57, %v9607_v49  ;;  %v3693_v24 = vld [vmem:[#allocation2 + $0x158] sm:$0xff] }
 0x2bc   : > { %v4349_v63 = vsel %vm1390_vm11, %v10991_v2, %v4348_v20  ;;  %v4354_v48 = vsel %vm1390_vm11, %v10993_v21, %v4353_v18  ;;  %v4473_v14 = vmax.f32 %v10986_v42, %v4339_v25  ;;  %v4475_v3 = vmax.f32 %v10988_v16, %v4344_v17  ;;  %v3694_v2 = vld [vmem:[#allocation2 + $0x160] sm:$0xf]  ;;  %v2349_v16 = vpop.permute.xlu0 %2348 }
 0x2bd   : > { %v4477_v29 = vmax.f32 %v10990_v32, %v4349_v63  ;;  %v9628_v31 = vmax.f32 %v10992_v35, %v4354_v48  ;;  %v4526_v20 = vmax.f32 %v9414_v22, %v4488_v40  ;;  %v4632_v34 = vpack.c.bf16 %v4600_v46, %v4600_v46  ;;  %2421 = vst.msk [vmem:[#allocation3 + $0x60] sm:$0xf] %vm2396_vm1, %v2349_v16 }
 0x2be   : > { %v4511_v18 = vmax.f32 %v4471_v12, %v4473_v14  ;;  %v4513_v21 = vmax.f32 %v4473_v14, %v4475_v3  ;;  %v3448_v22 = vpack.c.bf16 %v9327_v10, %v9327_v10  ;;  %v3841_v40 = vrot.slane %v3693_v24, 1  ;;  %v2323_v14 = vpop.permute.xlu1 %2322 }
 0x2bf   : > { %v9631_v42 = vmax.f32 %v4475_v3, %v4477_v29  ;;  %v9634_v25 = vmax.f32 %v4477_v29, %v9628_v31  ;;  %v9637_v0 = vmax.f32 %v9355_v56, %v4526_v20  ;;  %v9639_v17 = vmax.f32 %v4526_v20, %v4530_v53  ;;  %4714 = vrot.lane.b32.xlu1 %v4632_v34, %s6390_s7 }
 0x2c0   : > { %v3843_v32 = vrot.slane %v3694_v2, 1  ;;  %v10994_v53 = vrot.slane %v9351_v47, 2  ;;  %v3842_v10 = vsel %vm1390_vm11, %v3840_v54, %v3841_v40  ;;  %v4239_v46 = vmax.f32 %v9500_v36, %v4098_v8  ;;  %2408 = vst.msk [vmem:[#allocation3 + $0x2c] sm:$0xf] %vm2396_vm1, %v2323_v14 }
 0x2c1   : > { %v4549_v3 = vmax.f32 %v4511_v18, %v9631_v42  ;;  %v9647_v63 = vmax.f32 %v4513_v21, %v9634_v25  ;;  %v4592_v56 = vmax.f32 %v9436_v50, %v9637_v0  ;;  %v4598_v50 = vmax.f32 %v9639_v17, %v4566_v57 }
 0x2c2   : > { %v4236_v35 = vmax.f32 %v9351_v47, %v10994_v53  ;;  %v3844_v48 = vsel %vm1390_vm11, %v3841_v40, %v3843_v32  ;;  %v9656_v12 = vmax.f32 %v3694_v2, %v3843_v32  ;;  %v3972_v20 = vmax.f32 %v3692_v41, %v3842_v10  ;;  %3535 = vrot.lane.b32.xlu0 %v3448_v22, %s6389_s6 }
 0x2c3   : > { %v4583_v29 = vmax.f32 %v4549_v3, %v9647_v63  ;;  %v3973_v18 = vmax.f32 %v3693_v24, %v3844_v48  ;;  %v4624_v21 = vpack.c.bf16 %v4592_v56, %v4592_v56  ;;  %v4242_v2 = vmax.f32 %v9506_v45, %v4103_v61 }
 0x2c4   : > { %v4123_v47 = vrot.slane %v9656_v12, 2  ;;  %v4245_v36 = vmax.f32 %v9508_v5, %v4108_v1  ;;  %v4120_v54 = vrot.slane %v3972_v20, 2  ;;  %v4248_v57 = vmax.f32 %v9510_v39, %v4113_v37 }
 0x2c5   : > { %v4615_v8 = vpack.c.bf16 %v4583_v29, %v4583_v29  ;;  %v4121_v34 = vrot.slane %v3973_v18, 2  ;;  %v4373_v41 = vrot.slane %v4236_v35, 1  ;;  %v4378_v24 = vrot.slane %v4239_v46, 1 }
 0x2c6   : > { %v4383_v16 = vrot.slane %v4242_v2, 1  ;;  %v4388_v22 = vrot.slane %v4245_v36, 1  ;;  %v4393_v5 = vrot.slane %v4248_v57, 1  ;;  %v3450_v61 = vpack.c.bf16 %v9331_v9, %v9331_v9 }
 0x2c7   : > { %4680 = vrot.lane.b32.xlu2 %v4615_v8, %s6390_s7  ;;  %v4122_v40 = vsel %vm1671_vm12, %v4120_v54, %v4121_v34  ;;  %v4124_v45 = vsel %vm1671_vm12, %v4121_v34, %v4123_v47  ;;  %v10995_v39 = vrot.slane %v9383_v4, 1  ;;  %v4379_v14 = vsel %vm1390_vm11, %v4376_v26, %v4378_v24  ;;  %4698 = vrot.lane.b32.xlu1 %v4624_v21, %s6390_s7  ;;  %v9732_v21 = vpop.permute.xlu2 %3525 }
 0x2c8   : > { %v4252_v1 = vmax.f32 %v3972_v20, %v4122_v40  ;;  %v9682_v32 = vmax.f32 %v3973_v18, %v4124_v45  ;;  %v4384_v3 = vsel %vm1390_vm11, %v4381_v30, %v4383_v16  ;;  %v4389_v9 = vsel %vm1390_vm11, %v4386_v11, %v4388_v22 }
 0x2c9   : > { %v4374_v37 = vsel %vm1390_vm11, %v10995_v39, %v4373_v41  ;;  %v4394_v56 = vsel %vm1390_vm11, %v4391_v6, %v4393_v5  ;;  %v4489_v10 = vmax.f32 %v9534_v44, %v4379_v14  ;;  %v4491_v48 = vmax.f32 %v9540_v27, %v4384_v3  ;;  %v11004_v14 = vld [vmem:[#allocation19_spill] sm:$0xff] }
 0x2ca   : > { %v9701_v53 = vmax.f32 %v9383_v4, %v4374_v37  ;;  %v4400_v35 = vrot.slane %v4252_v1, 1  ;;  %v4401_v26 = vrot.slane %v9682_v32, 1  ;;  %v4630_v46 = vpack.c.bf16 %v4598_v50, %v4598_v50  ;;  %3539 = vrot.lane.b32.xlu0 %v3450_v61, %s6389_s6  ;;  %v11002_v61 = vld [vmem:[#allocation7_spill] sm:$0xff] }
 0x2cb   : > { %v4493_v30 = vmax.f32 %v9545_v51, %v4389_v9  ;;  %v9708_v29 = vmax.f32 %v9548_v62, %v4394_v56  ;;  %v10996_v11 = vrot.slane %v9150_v59, 2  ;;  %v9719_v44 = vmax.f32 %v4489_v10, %v4491_v48 }
 0x2cc   : > { %v4402_v4 = vsel %vm1390_vm11, %v4400_v35, %v4401_v26  ;;  %v9717_v20 = vmax.f32 %v9701_v53, %v4489_v10  ;;  %v10997_v27 = vrot.slane %v9396_v13, 2  ;;  %v10998_v54 = vrot.slane %v9200_v15, 1 }
 0x2cd   : > { %v4227_v6 = vmax.f32 %v9150_v59, %v10996_v11  ;;  %v9725_v62 = vmax.f32 %v4252_v1, %v4402_v4  ;;  %v9727_v50 = vmax.f32 %v4491_v48, %v4493_v30  ;;  %v9730_v59 = vmax.f32 %v4493_v30, %v9708_v29  ;;  %v11007_v30 = vld [vmem:[#allocation9_spill] sm:$0xff]  ;;  %v11008_v11 = vld [vmem:[#allocation6_spill] sm:$0xff] }
 0x2ce   : > { %v3074_v51 = vmax.f32 %v9396_v13, %v10997_v27  ;;  %v10999_v41 = vrot.slane %v9432_v43, 1  ;;  %v11001_v22 = vrot.slane %v9404_v52, 2  ;;  %v11003_v1 = vrot.slane %v11002_v61, 2  ;;  %v11010_v27 = vld [vmem:[#allocation12_spill] sm:$0xff] }
 0x2cf   : > { %v4358_v18 = vrot.slane %v4227_v6, 1  ;;  %4710 = vrot.lane.b32.xlu2 %v4630_v46, %s6390_s7  ;;  %v9737_v36 = vmax.f32 %v9579_v19, %v9725_v62  ;;  %v9741_v13 = vmax.f32 %v9717_v20, %v9727_v50  ;;  %v9745_v8 = vmax.f32 %v9719_v44, %v9730_v59 }
 0x2d0   : > { %v3229_v2 = vrot.slane %v3074_v51, 1  ;;  %v11000_v19 = vrot.slane %v9158_v28, 2  ;;  %v3077_v40 = vmax.f32 %v9404_v52, %v11001_v22  ;;  %v3080_v39 = vmax.f32 %v11002_v61, %v11003_v1  ;;  %v2355_v61 = vpop.permute.xlu1 %2354  ;;  %v11013_v1 = vld [vmem:[#allocation20_spill] sm:$0xff] }
 0x2d1   : > { %v4359_v34 = vsel %vm1390_vm11, %v10998_v54, %v4358_v18  ;;  %v9762_v45 = vmax.f32 %v9589_v38, %v9737_v36  ;;  %v4599_v5 = vmax.f32 %v9741_v13, %v9745_v8  ;;  %v11009_v6 = vrot.slane %v11008_v11, 1  ;;  %2424 = vst.msk [vmem:[#allocation3 + $0x6c] sm:$0xf] %vm2396_vm1, %v2355_v61 }
 0x2d2   : > { %v4481_v57 = vmax.f32 %v9200_v15, %v4359_v34  ;;  %v3230_v24 = vsel %vm1390_vm11, %v10999_v41, %v3229_v2  ;;  %v4230_v16 = vmax.f32 %v9158_v28, %v11000_v19  ;;  %v3234_v28 = vrot.slane %v3077_v40, 1  ;;  %v11012_v2 = vld [vmem:[#allocation23_spill] sm:$0xff]  ;;  %v3496_v19 = vpop.permute.xlu0 %3495 }
 0x2d3   : > { %v3316_v15 = vmax.f32 %v9432_v43, %v3230_v24  ;;  %v4602_v52 = vmax.f32 %v9607_v49, %v9762_v45  ;;  %v3239_v38 = vrot.slane %v3080_v39, 1  ;;  %v4631_v9 = vpack.c.bf16 %v4599_v5, %v4599_v5  ;;  %v11005_v43 = vld [vmem:[#allocation28_spill] sm:$0xff]  ;;  %3589 = vst.msk [vmem:[#allocation3 + $0xc] sm:$0xf] %vm3585_vm14, %v3496_v19 }
 0x2d4   : > { %v9771_v37 = vmax.f32 %v9628_v31, %v4481_v57  ;;  %v4363_v35 = vrot.slane %v4230_v16, 1  ;;  %v11006_v10 = vrot.slane %v11005_v43, 1  ;;  %v11011_v51 = vrot.slane %v11010_v27, 1  ;;  %v3530_v16 = vpop.permute.xlu2 %3529 }
 0x2d5   : > { %v3354_v3 = vmax.f32 %v11004_v14, %v3316_v15  ;;  %v4634_v46 = vpack.c.bf16 %v4602_v52, %v4602_v52  ;;  %v3240_v4 = vsel %vm1390_vm11, %v11009_v6, %v3239_v38  ;;  %v11014_v39 = vrot.slane %v11013_v1, 2  ;;  %v11015_v52 = vld [vmem:[#allocation14_spill] sm:$0xff]  ;;  %3606 = vst.msk [vmem:[#allocation3 + $0x50] sm:$0xf] %vm3585_vm14, %v3530_v16  ;;  %v3695_v38 = vld [vmem:[#allocation2 + $0x168] sm:$0xff] }
 0x2d6   : > { %v4553_v56 = vmax.f32 %v9631_v42, %v9771_v37  ;;  %v3235_v48 = vsel %vm1390_vm11, %v11006_v10, %v3234_v28  ;;  %v4364_v18 = vsel %vm1390_vm11, %v11011_v51, %v4363_v35  ;;  %v3320_v42 = vmax.f32 %v11008_v11, %v3240_v4  ;;  %v3698_v11 = vld [vmem:[#allocation2 + $0x180] sm:$0xff] }
 0x2d7   : > { %v3388_v31 = vmax.f32 %v11007_v30, %v3354_v3  ;;  %v3318_v49 = vmax.f32 %v11005_v43, %v3235_v48  ;;  %4718 = vrot.lane.b32.xlu1 %v4634_v46, %s6390_s7  ;;  %4712 = vrot.lane.b32.xlu2 %v4631_v9, %s6390_s7  ;;  %v4483_v34 = vmax.f32 %v11010_v27, %v4364_v18  ;;  %v11016_v9 = vld [vmem:[#allocation24_spill] sm:$0xff]  ;;  %v11017_v46 = vld [vmem:[#allocation15_spill] sm:$0xff]  ;;  %v3850_v16 = vrot.slane %v3698_v11, 1 }
 0x2d8   : > { %v4585_v24 = vmax.f32 %v9647_v63, %v4553_v56  ;;  %v4233_v28 = vmax.f32 %v11013_v1, %v11014_v39  ;;  %v2265_v35 = vpack.c.bf16 %v11016_v9, %v11016_v9  ;;  %v11018_v30 = vrot.slane %v11017_v46, 1 }
 0x2d9   : > { %v3420_v54 = vmax.f32 %v11012_v2, %v3388_v31  ;;  %v3356_v41 = vmax.f32 %v3316_v15, %v3318_v49  ;;  %v3358_v22 = vmax.f32 %v3318_v49, %v3320_v42  ;;  %v9796_v5 = vmax.f32 %v4481_v57, %v4483_v34  ;;  %v11019_v2 = vld [vmem:[#allocation18_spill] sm:$0xff] }
 0x2da   : > { %v4617_v43 = vpack.c.bf16 %v4585_v24, %v4585_v24  ;;  %v4368_v48 = vrot.slane %v4233_v28, 1  ;;  %v11020_v61 = vrot.slane %v9513_v7, 2 }
 0x2db   : > { %v3452_v40 = vpack.c.bf16 %v3420_v54, %v3420_v54  ;;  %3645 = vst.msk [vmem:[#allocation2 + $0x172] sm:$0xff] %vm226_vm2, %v3420_v54  ;;  %v3390_v14 = vmax.f32 %v11015_v52, %v3356_v41  ;;  %v3392_v15 = vmax.f32 %v3354_v3, %v3358_v22  ;;  %v4555_v10 = vmax.f32 %v9634_v25, %v9796_v5  ;;  %v2333_v25 = vpop.permute.xlu0 %2332  ;;  %v9827_v41 = vld [vmem:[#allocation2 + $0x198] sm:$0xff] }
 0x2dc   : > { %v3845_v3 = vrot.slane %v3695_v38, 1  ;;  %v3502_v27 = vpop.permute.xlu2 %3501  ;;  %v2264_v54 = vpack.c.bf16 %v11019_v2, %v11019_v2  ;;  %2413 = vst.msk [vmem:[#allocation3 + $0x40] sm:$0xf] %vm2396_vm1, %v2333_v25  ;;  %v4251_v1 = vmax.f32 %v9513_v7, %v11020_v61 }
 0x2dd   : > { %3543 = vrot.lane.b32.xlu0 %v3452_v40, %s6389_s6  ;;  %v9805_v63 = vmax.f32 %v3388_v31, %v3390_v14  ;;  %v9808_v57 = vmax.f32 %v3390_v14, %v3392_v15  ;;  %v4369_v31 = vsel %vm1390_vm11, %v11018_v30, %v4368_v48  ;;  %v4587_v42 = vmax.f32 %v4553_v56, %v4555_v10 }
 0x2de   : > { %v4485_v49 = vmax.f32 %v11017_v46, %v4369_v31  ;;  %3592 = vst.msk [vmem:[#allocation3 + $0x18] sm:$0xf] %vm3585_vm14, %v3502_v27  ;;  %v3855_v15 = vrot.slane %v9827_v41, 1  ;;  %v4398_v7 = vrot.slane %v4251_v1, 1 }
 0x2df   : > { %3647 = vst.msk [vmem:[#allocation2 + $0x18a] sm:$0xff] %vm226_vm2, %v9805_v63  ;;  %2358 = vrot.lane.b32.xlu1 %v2265_v35, %s6388_s30  ;;  %4684 = vrot.lane.b32.xlu2 %v4617_v43, %s6390_s7  ;;  %v3454_v19 = vpack.c.bf16 %v9805_v63, %v9805_v63  ;;  %v4619_v9 = vpack.c.bf16 %v4587_v42, %v4587_v42 }
 0x2e0   : > { %3649 = vst.msk [vmem:[#allocation2 + $0x1a2] sm:$0xff] %vm226_vm2, %v9808_v57  ;;  %v9829_v24 = vmax.f32 %v4483_v34, %v4485_v49  ;;  %v9847_v30 = vmax.f32 %v4485_v49, %v9701_v53  ;;  %v3522_v53 = vpop.permute.xlu1 %3521  ;;  %vm4774_vm2 = vcmask 126048  }
 0x2e1   : > { %3602 = vst.msk [vmem:[#allocation3 + $0x40] sm:$0xf] %vm3585_vm14, %v3522_v53 }
 0x2e2   : > { %v3696_v6 = vld [vmem:[#allocation2 + $0x170] sm:$0xff]  ;;  %v3697_v4 = vld [vmem:[#allocation2 + $0x178] sm:$0xf]  ;;  %v4557_v28 = vmax.f32 %v9771_v37, %v9829_v24 }
 0x2e3   : > { %v3846_v51 = vrot.slane %v3696_v6, 1  ;;  %v3848_v18 = vrot.slane %v3697_v4, 1 }
 0x2e5   : > { %v3847_v22 = vsel %vm1390_vm11, %v3845_v3, %v3846_v51  ;;  %v3849_v40 = vsel %vm1390_vm11, %v3846_v51, %v3848_v18  ;;  %v9836_v56 = vmax.f32 %v3697_v4, %v3848_v18  ;;  %2356 = vrot.lane.b32.xlu0 %v2264_v54, %s6388_s30  ;;  %v2335_v51 = vpop.permute.xlu0 %2334  ;;  %v3506_v54 = vpop.permute.xlu2 %3505 }
 0x2e6   : > { %v3975_v34 = vmax.f32 %v3695_v38, %v3847_v22  ;;  %v3976_v39 = vmax.f32 %v3696_v6, %v3849_v40  ;;  %v3699_v52 = vld [vmem:[#allocation2 + $0x188] sm:$0xff]  ;;  %v3700_v14 = vld [vmem:[#allocation2 + $0x190] sm:$0xf]  ;;  %v4589_v38 = vmax.f32 %v4555_v10, %v4557_v28  ;;  %2414 = vst.msk [vmem:[#allocation3 + $0x44] sm:$0xf] %vm2396_vm1, %v2335_v51  ;;  %v11021_v40 = vld [vmem:[#allocation27_spill] sm:$0xff] }
 0x2e7   : > { %v4128_v63 = vrot.slane %v9836_v56, 2  ;;  %v3851_v35 = vrot.slane %v3699_v52, 1  ;;  %v3853_v43 = vrot.slane %v3700_v14, 1  ;;  %v3702_v48 = vld [vmem:[#allocation2 + $0x1a0] sm:$0xff]  ;;  %4688 = vrot.lane.b32.xlu2 %v4619_v9, %s6390_s7  ;;  %v9865_v61 = vmax.f32 %v11021_v40, %v9581_v55  ;;  %3594 = vst.msk [vmem:[#allocation3 + $0x20] sm:$0xf] %vm3585_vm14, %v3506_v54 }
 0x2e8   : > { %v4125_v3 = vrot.slane %v3975_v34, 2  ;;  %v4126_v46 = vrot.slane %v3976_v39, 2  ;;  %v3856_v49 = vrot.slane %v3702_v48, 1  ;;  %v9878_v9 = vmax.f32 %v9796_v5, %v9847_v30  ;;  %v3524_v53 = vpop.permute.xlu1 %3523  ;;  %v3704_v40 = vld [vmem:[#allocation2 + $0x1b0] sm:$0xff] }
 0x2e9   : > { %v3852_v37 = vsel %vm1390_vm11, %v3850_v16, %v3851_v35  ;;  %v3854_v31 = vsel %vm1390_vm11, %v3851_v35, %v3853_v43  ;;  %v9852_v6 = vmax.f32 %v3700_v14, %v3853_v43  ;;  %v3703_v16 = vld [vmem:[#allocation2 + $0x1a8] sm:$0xf]  ;;  %v9882_v55 = vmax.f32 %v9637_v0, %v9865_v61  ;;  %3603 = vst.msk [vmem:[#allocation3 + $0x44] sm:$0xf] %vm3585_vm14, %v3524_v53 }
 0x2ea   : > { %v4127_v4 = vsel %vm1671_vm12, %v4125_v3, %v4126_v46  ;;  %v4129_v25 = vsel %vm1671_vm12, %v4126_v46, %v4128_v63  ;;  %v3978_v27 = vmax.f32 %v3698_v11, %v3852_v37  ;;  %v3979_v10 = vmax.f32 %v3699_v52, %v3854_v31 }
 0x2eb   : > { %v4255_v18 = vmax.f32 %v3975_v34, %v4127_v4  ;;  %v9858_v42 = vmax.f32 %v3976_v39, %v4129_v25  ;;  %v4133_v2 = vrot.slane %v9852_v6, 2  ;;  %v11022_v11 = vrot.slane %v9550_v58, 1 }
 0x2ec   : > { %v4130_v22 = vrot.slane %v3978_v27, 2  ;;  %v4131_v52 = vrot.slane %v3979_v10, 2  ;;  %v3857_v35 = vsel %vm1390_vm11, %v3855_v15, %v3856_v49  ;;  %v3858_v43 = vrot.slane %v3703_v16, 1 }
 0x2ed   : > { %v4399_v1 = vsel %vm1390_vm11, %v11022_v11, %v4398_v7  ;;  %v4405_v34 = vrot.slane %v4255_v18, 1  ;;  %v4406_v39 = vrot.slane %v9858_v42, 1  ;;  %3547 = vrot.lane.b32.xlu0 %v3454_v19, %s6389_s6  ;;  %v4621_v3 = vpack.c.bf16 %v4589_v38, %v4589_v38  ;;  %v2337_v51 = vpop.permute.xlu0 %2336  ;;  %v3706_v11 = vld [vmem:[#allocation2 + $0x1c0] sm:$0xf] }
 0x2ee   : > { %v9874_v14 = vmax.f32 %v9550_v58, %v4399_v1  ;;  %v4132_v46 = vsel %vm1671_vm12, %v4130_v22, %v4131_v52  ;;  %v4134_v58 = vsel %vm1671_vm12, %v4131_v52, %v4133_v2  ;;  %v3859_v0 = vsel %vm1390_vm11, %v3856_v49, %v3858_v43  ;;  %2415 = vst.msk [vmem:[#allocation3 + $0x48] sm:$0xf] %vm2396_vm1, %v2337_v51  ;;  %v3510_v49 = vpop.permute.xlu2 %3509 }
 0x2ef   : > { %v4407_v19 = vsel %vm1390_vm11, %v4405_v34, %v4406_v39  ;;  %v4258_v7 = vmax.f32 %v3978_v27, %v4132_v46  ;;  %v9892_v37 = vmax.f32 %v3979_v10, %v4134_v58  ;;  %4692 = vrot.lane.b32.xlu2 %v4621_v3, %s6390_s7  ;;  %v3981_v15 = vmax.f32 %v9827_v41, %v3857_v35  ;;  %v11023_v10 = vld [vmem:[#allocation4_spill] sm:$0xff] }
 0x2f0   : > { %v4500_v5 = vmax.f32 %v4255_v18, %v4407_v19  ;;  %v9897_v31 = vmax.f32 %v3703_v16, %v3858_v43  ;;  %v3982_v18 = vmax.f32 %v3702_v48, %v3859_v0  ;;  %v4591_v27 = vmax.f32 %v4557_v28, %v9878_v9  ;;  %3604 = vst.msk [vmem:[#allocation3 + $0x48] sm:$0xf] %vm3585_vm14, %v9732_v21  ;;  %v3705_v21 = vld [vmem:[#allocation2 + $0x1b8] sm:$0xff] }
 0x2f1   : > { %v4410_v4 = vrot.slane %v4258_v7, 1  ;;  %v4411_v25 = vrot.slane %v9892_v37, 1  ;;  %v2248_v54 = vpack.c.bf16 %v11023_v10, %v11023_v10  ;;  %v9909_v41 = vmax.f32 %v9708_v29, %v9874_v14 }
 0x2f2   : > { %v9900_v38 = vmax.f32 %v9725_v62, %v4500_v5  ;;  %v4135_v48 = vrot.slane %v3981_v15, 2  ;;  %v4136_v29 = vrot.slane %v3982_v18, 2  ;;  %v4138_v22 = vrot.slane %v9897_v31, 2 }
 0x2f3   : > { %v4412_v28 = vsel %vm1390_vm11, %v4410_v4, %v4411_v25  ;;  %v4623_v1 = vpack.c.bf16 %v4591_v27, %v4591_v27  ;;  %v9927_v34 = vmax.f32 %v9727_v50, %v9909_v41  ;;  %v3861_v43 = vrot.slane %v3705_v21, 1  ;;  %v4679_v50 = vpop.permute.xlu1 %4678 }
 0x2f4   : > { %v4572_v62 = vmax.f32 %v9596_v33, %v9900_v38  ;;  %v4254_v33 = vmax.f32 %v9656_v12, %v4123_v47  ;;  %v9929_v35 = vmax.f32 %v4258_v7, %v4412_v28  ;;  %v3863_v19 = vrot.slane %v3706_v11, 1  ;;  %v11024_v7 = vld [vmem:[#allocation10_spill] sm:$0xff]  ;;  %4775 = vst.msk [vmem:[#allocation3] sm:$0xf] %vm4774_vm2, %v4679_v50 }
 0x2f5   : > { %2324 = vrot.lane.b32.xlu0 %v2248_v54, %s6388_s30  ;;  %v4137_v12 = vsel %vm1671_vm12, %v4135_v48, %v4136_v29  ;;  %v4139_v47 = vsel %vm1671_vm12, %v4136_v29, %v4138_v22  ;;  %v2321_v3 = vpop.permute.xlu0 %2320  ;;  %v4601_v58 = vmax.f32 %v9745_v8, %v9927_v34  ;;  %v3438_v0 = vpack.c.bf16 %v11024_v7, %v11024_v7 }
 0x2f6   : > { %v4604_v16 = vmax.f32 %v9762_v45, %v4572_v62  ;;  %v3860_v45 = vrot.slane %v3704_v40, 1  ;;  %v4403_v46 = vrot.slane %v4254_v33, 1  ;;  %2407 = vst.msk [vmem:[#allocation3 + $0x28] sm:$0xf] %vm2396_vm1, %v2321_v3  ;;  %v3534_v4 = vpop.permute.xlu2 %3533  ;;  %v9943_v51 = vmax.f32 %v4500_v5, %v9929_v35  ;;  %v3709_v3 = vld [vmem:[#allocation2 + $0x1d8] sm:$0xf] }
 0x2f7   : > { %4696 = vrot.lane.b32.xlu2 %v4623_v1, %s6390_s7  ;;  %3596 = vst.msk [vmem:[#allocation3 + $0x28] sm:$0xf] %vm3585_vm14, %v3510_v49  ;;  %v4261_v27 = vmax.f32 %v3981_v15, %v4137_v12  ;;  %v9950_v10 = vmax.f32 %v3982_v18, %v4139_v47  ;;  %v3864_v5 = vsel %vm1390_vm11, %v3861_v43, %v3863_v19  ;;  %v11025_v18 = vld [vmem:[#allocation13_spill] sm:$0xff]  ;;  %v3708_v47 = vld [vmem:[#allocation2 + $0x1d0] sm:$0xff] }
 0x2f8   : > { %v4636_v52 = vpack.c.bf16 %v4604_v16, %v4604_v16  ;;  %v4404_v53 = vsel %vm1390_vm11, %v4401_v26, %v4403_v46  ;;  %3608 = vst.msk [vmem:[#allocation3 + $0x58] sm:$0xf] %vm3585_vm14, %v3534_v4  ;;  %v3862_v8 = vsel %vm1390_vm11, %v3860_v45, %v3861_v43  ;;  %v4633_v54 = vpack.c.bf16 %v4601_v58, %v4601_v58 }
 0x2f9   : > { %v9958_v49 = vmax.f32 %v9829_v24, %v9717_v20  ;;  %v9961_v26 = vmax.f32 %v9682_v32, %v4404_v53  ;;  %v9965_v15 = vmax.f32 %v9865_v61, %v9639_v17  ;;  %v2249_v28 = vpack.c.bf16 %v11025_v18, %v11025_v18  ;;  %v11026_v61 = vld [vmem:[#allocation16_spill] sm:$0xff] }
 0x2fa   : > { %4722 = vrot.lane.b32.xlu1 %v4636_v52, %s6390_s7  ;;  %v9971_v48 = vmax.f32 %v9737_v36, %v9943_v51  ;;  %v4415_v16 = vrot.slane %v4261_v27, 1  ;;  %v4416_v20 = vrot.slane %v9950_v10, 1  ;;  %v3984_v24 = vmax.f32 %v3704_v40, %v3862_v8 }
 0x2fb   : > { %v3985_v29 = vmax.f32 %v3705_v21, %v3864_v5  ;;  %v9976_v33 = vmax.f32 %v3706_v11, %v3863_v19  ;;  %v4593_v17 = vmax.f32 %v9878_v9, %v9958_v49  ;;  %v2266_v1 = vpack.c.bf16 %v11026_v61, %v11026_v61  ;;  %v4683_v46 = vpop.permute.xlu1 %4682 }
 0x2fc   : > { %v9985_v36 = vmax.f32 %v9874_v14, %v9961_v26  ;;  %v4606_v45 = vmax.f32 %v4572_v62, %v9971_v48  ;;  %v9991_v40 = vmax.f32 %v9847_v30, %v9719_v44  ;;  %v4417_v9 = vsel %vm1390_vm11, %v4415_v16, %v4416_v20  ;;  %v3707_v44 = vld [vmem:[#allocation2 + $0x1c8] sm:$0xff]  ;;  %4777 = vst.msk [vmem:[#allocation3 + $0x8] sm:$0xf] %vm4774_vm2, %v4683_v46 }
 0x2fd   : > { %3515 = vrot.lane.b32.xlu0 %v3438_v0, %s6389_s6  ;;  %v2353_v32 = vpop.permute.xlu0 %2352  ;;  %v4140_v21 = vrot.slane %v3984_v24, 2  ;;  %v4141_v11 = vrot.slane %v3985_v29, 2  ;;  %v4143_v14 = vrot.slane %v9976_v33, 2  ;;  %v4257_v62 = vmax.f32 %v9836_v56, %v4128_v63 }
 0x2fe   : > { %2423 = vst.msk [vmem:[#allocation3 + $0x68] sm:$0xf] %vm2396_vm1, %v2353_v32  ;;  %v3538_v52 = vpop.permute.xlu2 %3537  ;;  %v4625_v43 = vpack.c.bf16 %v4593_v17, %v4593_v17  ;;  %v10003_v19 = vmax.f32 %v9730_v59, %v9985_v36  ;;  %v4638_v30 = vpack.c.bf16 %v4606_v45, %v4606_v45  ;;  %v10005_v12 = vmax.f32 %v4261_v27, %v4417_v9 }
 0x2ff   : > { %4716 = vrot.lane.b32.xlu2 %v4633_v54, %s6390_s7  ;;  %3610 = vst.msk [vmem:[#allocation3 + $0x60] sm:$0xf] %vm3585_vm14, %v3538_v52  ;;  %v3456_v50 = vpack.c.bf16 %v9808_v57, %v9808_v57  ;;  %v4142_v56 = vsel %vm1671_vm12, %v4140_v21, %v4141_v11  ;;  %v4144_v59 = vsel %vm1671_vm12, %v4141_v11, %v4143_v14  ;;  %v4408_v58 = vrot.slane %v4257_v62, 1  ;;  %v11027_v52 = vld [vmem:[#allocation8_spill] sm:$0xff] }
 0x300   : > { %v3865_v7 = vrot.slane %v3707_v44, 1  ;;  %v4603_v0 = vmax.f32 %v9927_v34, %v10003_v19  ;;  %v3866_v53 = vrot.slane %v3708_v47, 1  ;;  %v3868_v57 = vrot.slane %v3709_v3, 1 }
 0x301   : > { %v10020_v27 = vmax.f32 %v9991_v40, %v9741_v13  ;;  %v10024_v8 = vmax.f32 %v9929_v35, %v10005_v12  ;;  %v4409_v5 = vsel %vm1390_vm11, %v4406_v39, %v4408_v58  ;;  %v4264_v34 = vmax.f32 %v3984_v24, %v4142_v56  ;;  %v11028_v56 = vld [vmem:[#allocation11_spill] sm:$0xff] }
 0x302   : > { %2326 = vrot.lane.b32.xlu1 %v2249_v28, %s6388_s30  ;;  %v10031_v54 = vmax.f32 %v3985_v29, %v4144_v59  ;;  %v4635_v18 = vpack.c.bf16 %v4603_v0, %v4603_v0  ;;  %v4501_v13 = vmax.f32 %v9858_v42, %v4409_v5  ;;  %v3867_v28 = vsel %vm1390_vm11, %v3865_v7, %v3866_v53 }
 0x303   : > { %v3869_v35 = vsel %vm1390_vm11, %v3866_v53, %v3868_v57  ;;  %v4626_v16 = vpack.c.bf16 %v9882_v55, %v9882_v55  ;;  %v4576_v39 = vmax.f32 %v9900_v38, %v10024_v8  ;;  %v4420_v32 = vrot.slane %v4264_v34, 1  ;;  %v4687_v17 = vpop.permute.xlu1 %4686 }
 0x304   : > { %v4421_v24 = vrot.slane %v10031_v54, 1  ;;  %v3987_v42 = vmax.f32 %v3707_v44, %v3867_v28  ;;  %v3988_v61 = vmax.f32 %v3708_v47, %v3869_v35  ;;  %v2250_v45 = vpack.c.bf16 %v11027_v52, %v11027_v52  ;;  %4779 = vst.msk [vmem:[#allocation3 + $0x10] sm:$0xf] %vm4774_vm2, %v4687_v17 }
 0x305   : > { %2360 = vrot.lane.b32.xlu0 %v2266_v1, %s6388_s30  ;;  %v3500_v63 = vpop.permute.xlu0 %3499  ;;  %v10044_v1 = vmax.f32 %v3709_v3, %v3868_v57  ;;  %v10050_v55 = vmax.f32 %v9961_v26, %v4501_v13  ;;  %v4608_v38 = vmax.f32 %v9971_v48, %v4576_v39  ;;  %v3453_v26 = vpack.c.bf16 %v9486_v60, %v9486_v60  ;;  %v6102_v60 = vld [vmem:[%s10650_s3] sm:$0xff] }
 0x306   : > { %3591 = vst.msk [vmem:[#allocation3 + $0x14] sm:$0xf] %vm3585_vm14, %v3500_v63  ;;  %v3542_v4 = vpop.permute.xlu2 %3541  ;;  %v4422_v9 = vsel %vm1390_vm11, %v4420_v32, %v4421_v24  ;;  %v4145_v21 = vrot.slane %v3987_v42, 2  ;;  %v4146_v11 = vrot.slane %v3988_v61, 2  ;;  %v3440_v59 = vpack.c.bf16 %v11028_v56, %v11028_v56  ;;  %4987 = vmatpush.bf16.msra.mxu1 %v6102_v60  ;;  %6104 = vmatpush.bf16.msra.mxu3 %v6102_v60 }
 0x307   : > { %4700 = vrot.lane.b32.xlu2 %v4625_v43, %s6390_s7  ;;  %3612 = vst.msk [vmem:[#allocation3 + $0x68] sm:$0xf] %vm3585_vm14, %v3542_v4  ;;  %v4148_v62 = vrot.slane %v10044_v1, 2  ;;  %v4260_v43 = vmax.f32 %v9852_v6, %v4133_v2  ;;  %v4573_v48 = vmax.f32 %v9909_v41, %v10050_v55  ;;  %v4640_v44 = vpack.c.bf16 %v4608_v38, %v4608_v38  ;;  %v11029_v4 = vld [vmem:[#allocation25_spill] sm:$0xff] }
 0x308   : > { %v4147_v47 = vsel %vm1671_vm12, %v4145_v21, %v4146_v11  ;;  %v2267_v53 = vpack.c.bf16 %v11029_v4, %v11029_v4  ;;  %v4263_v35 = vmax.f32 %v9897_v31, %v4138_v22 }
 0x309   : > { %v4149_v3 = vsel %vm1671_vm12, %v4146_v11, %v4148_v62  ;;  %v4413_v2 = vrot.slane %v4260_v43, 1  ;;  %v4605_v41 = vmax.f32 %v10003_v19, %v4573_v48  ;;  %v4267_v58 = vmax.f32 %v3987_v42, %v4147_v47 }
 0x30a   : > { %4726 = vrot.lane.b32.xlu1 %v4638_v30, %s6390_s7  ;;  %v4506_v30 = vmax.f32 %v4264_v34, %v4422_v9  ;;  %v10085_v7 = vmax.f32 %v3988_v61, %v4149_v3  ;;  %vm4931_vm12 = vcmask 130048   ;;  %v4418_v42 = vrot.slane %v4263_v35, 1  ;;  %v11031_v9 = vld [vmem:[#allocation22_spill] sm:$0xff] }
 0x30b   : > { %v4691_v6 = vpop.permute.xlu1 %4690  ;;  %v4414_v46 = vsel %vm1390_vm11, %v4411_v25, %v4413_v2  ;;  %v4637_v19 = vpack.c.bf16 %v4605_v41, %v4605_v41  ;;  %v4425_v57 = vrot.slane %v4267_v58, 1  ;;  %v2251_v21 = vpack.c.bf16 %v11031_v9, %v11031_v9 }
 0x30c   : > { %v4544_v63 = vmax.f32 %v10005_v12, %v4506_v30  ;;  %4781 = vst.msk [vmem:[#allocation3 + $0x18] sm:$0xf] %vm4774_vm2, %v4691_v6  ;;  %v4503_v0 = vmax.f32 %v9892_v37, %v4414_v46  ;;  %v4426_v5 = vrot.slane %v10085_v7, 1  ;;  %v4419_v22 = vsel %vm1390_vm11, %v4416_v20, %v4418_v42 }
 0x30d   : > { %3551 = vrot.lane.b32.xlu0 %v3456_v50, %s6389_s6  ;;  %v3528_v29 = vpop.permute.xlu0 %3527  ;;  %v4505_v38 = vmax.f32 %v9950_v10, %v4419_v22  ;;  %v4266_v10 = vmax.f32 %v9976_v33, %v4143_v14  ;;  %v4628_v41 = vpack.c.bf16 %v9965_v15, %v9965_v15  ;;  %v4269_v46 = vmax.f32 %v10044_v1, %v4148_v62 }
 0x30e   : > { %3605 = vst.msk [vmem:[#allocation3 + $0x4c] sm:$0xf] %vm3585_vm14, %v3528_v29  ;;  %v4578_v12 = vmax.f32 %v9943_v51, %v4544_v63  ;;  %v10095_v28 = vmax.f32 %v4501_v13, %v4503_v0  ;;  %v4427_v51 = vsel %vm1390_vm11, %v4425_v57, %v4426_v5  ;;  %v3455_v15 = vpack.c.bf16 %v9488_v23, %v9488_v23 }
 0x30f   : > { %4720 = vrot.lane.b32.xlu2 %v4635_v18, %s6390_s7  ;;  %v10126_v20 = vmax.f32 %v4503_v0, %v4505_v38 }
 0x310   : > { %v4610_v37 = vmax.f32 %v4576_v39, %v4578_v12  ;;  %v4575_v13 = vmax.f32 %v9985_v36, %v10095_v28  ;;  %v4508_v39 = vmax.f32 %v4267_v58, %v4427_v51  ;;  %v4428_v58 = vrot.slane %v4269_v46, 1 }
 0x311   : > { %v4577_v47 = vmax.f32 %v10050_v55, %v10126_v20 }
 0x312   : > { %4702 = vrot.lane.b32.xlu1 %v4626_v16, %s6390_s7  ;;  %v11030_v16 = vld [vmem:[#allocation17_spill] sm:$0xff]  ;;  %v4642_v29 = vpack.c.bf16 %v4610_v37, %v4610_v37  ;;  %v4546_v31 = vmax.f32 %v4506_v30, %v4508_v39  ;;  %v4629_v39 = vpack.c.bf16 %v10020_v27, %v10020_v27 }
 0x313   : > { %v4695_v34 = vpop.permute.xlu1 %4694  ;;  %v3437_v32 = vpack.c.bf16 %v11030_v16, %v11030_v16  ;;  %v4609_v60 = vmax.f32 %v4575_v13, %v4577_v47 }
 0x314   : > { %4783 = vst.msk [vmem:[#allocation3 + $0x20] sm:$0xf] %vm4774_vm2, %v4695_v34  ;;  %v4580_v11 = vmax.f32 %v10024_v8, %v4546_v31 }
 0x315   : > { %2328 = vrot.lane.b32.xlu0 %v2250_v45, %s6388_s30  ;;  %v3532_v50 = vpop.permute.xlu0 %3531  ;;  %v4607_v45 = vmax.f32 %v4573_v48, %v4575_v13  ;;  %v4595_v48 = vmax.f32 %v9958_v49, %v9991_v40  ;;  %v4423_v49 = vrot.slane %v4266_v10, 1  ;;  %v4641_v55 = vpack.c.bf16 %v4609_v60, %v4609_v60 }
 0x316   : > { %3607 = vst.msk [vmem:[#allocation3 + $0x54] sm:$0xf] %vm3585_vm14, %v3532_v50 }
 0x317   : > { %3545 = vrot.lane.b32.xlu2 %v3453_v26, %s6389_s6  ;;  %v4639_v36 = vpack.c.bf16 %v4607_v45, %v4607_v45  ;;  %v4627_v30 = vpack.c.bf16 %v4595_v48, %v4595_v48  ;;  %v4424_v33 = vsel %vm1390_vm11, %v4421_v24, %v4423_v49 }
 0x318   : > { %v4507_v2 = vmax.f32 %v10031_v54, %v4424_v33 }
 0x31a   : > { %4730 = vrot.lane.b32.xlu1 %v4640_v44, %s6390_s7  ;;  %v4612_v44 = vmax.f32 %v4578_v12, %v4580_v11  ;;  %v4545_v24 = vmax.f32 %v4505_v38, %v4507_v2 }
 0x31c   : > { %v4644_v3 = vpack.c.bf16 %v4612_v44, %v4612_v44  ;;  %v4579_v54 = vmax.f32 %v10095_v28, %v4545_v24 }
 0x31d   : > { %3519 = vrot.lane.b32.xlu0 %v3440_v59, %s6389_s6  ;;  %v3504_v25 = vpop.permute.xlu0 %3503 }
 0x31e   : > { %3593 = vst.msk [vmem:[#allocation3 + $0x1c] sm:$0xf] %vm3585_vm14, %v3504_v25  ;;  %v4611_v4 = vmax.f32 %v4577_v47, %v4579_v54 }
 0x31f   : > { %4724 = vrot.lane.b32.xlu2 %v4637_v19, %s6390_s7 }
 0x320   : > { %v4643_v1 = vpack.c.bf16 %v4611_v4, %v4611_v4 }
 0x321   : > { %v4681_v18 = vpop.permute.xlu2 %4680 }
 0x322   : > { %2362 = vrot.lane.b32.xlu1 %v2267_v53, %s6388_s30  ;;  %4776 = vst.msk [vmem:[#allocation3 + $0x4] sm:$0xf] %vm4774_vm2, %v4681_v18  ;;  %v4429_v53 = vsel %vm1390_vm11, %v4426_v5, %v4428_v58  ;;  %v11032_v5 = vld [vmem:[#allocation21_spill] sm:$0xff] }
 0x323   : > { %v4509_v23 = vmax.f32 %v10085_v7, %v4429_v53  ;;  %v3439_v18 = vpack.c.bf16 %v11032_v5, %v11032_v5 }
 0x325   : > { %v3508_v17 = vpop.permute.xlu0 %3507  ;;  %v4547_v34 = vmax.f32 %v4507_v2, %v4509_v23 }
 0x326   : > { %3595 = vst.msk [vmem:[#allocation3 + $0x24] sm:$0xf] %vm3585_vm14, %v3508_v17 }
 0x327   : > { %3513 = vrot.lane.b32.xlu2 %v3437_v32, %s6389_s6  ;;  %v4581_v7 = vmax.f32 %v10126_v20, %v4547_v34 }
 0x329   : > { %v4711_v61 = vpop.permute.xlu2 %4710  ;;  %v6086_v52 = vld [vmem:[#allocation3] sm:$0xff]  ;;  %v4613_v51 = vmax.f32 %v4579_v54, %v4581_v7 }
 0x32a   : > { %4734 = vrot.lane.b32.xlu1 %v4642_v29, %s6390_s7  ;;  %4791 = vst.msk [vmem:[#allocation3 + $0x40] sm:$0xf] %vm4774_vm2, %v4711_v61  ;;  %6018 = vmatmul.msk.bf16.vlgmr.msra.gmra.mxu1 %vm4931_vm12, %v6086_v52 }
 0x32b   : > { %v4645_v35 = vpack.c.bf16 %v4613_v51, %v4613_v51 }
 0x32d   : > { %v3512_v43 = vpop.permute.xlu0 %3511 }
 0x32e   : > { %3597 = vst.msk [vmem:[#allocation3 + $0x2c] sm:$0xf] %vm3585_vm14, %v3512_v43 }
 0x32f   : > { %4728 = vrot.lane.b32.xlu2 %v4639_v36, %s6390_s7 }
 0x331   : > { %v4713_v26 = vpop.permute.xlu2 %4712  ;;  %v4715_v8 = vpop.permute.xlu1 %4714 }
 0x332   : > { %2330 = vrot.lane.b32.xlu1 %v2251_v21, %s6388_s30  ;;  %4792 = vst.msk [vmem:[#allocation3 + $0x44] sm:$0xf] %vm4774_vm2, %v4713_v26 }
 0x333   : > { %4793 = vst.msk [vmem:[#allocation3 + $0x48] sm:$0xf] %vm4774_vm2, %v4715_v8 }
 0x335   : > { %v3536_v40 = vpop.permute.xlu0 %3535 }
 0x336   : > { %3609 = vst.msk [vmem:[#allocation3 + $0x5c] sm:$0xf] %vm3585_vm14, %v3536_v40 }
 0x337   : > { %4704 = vrot.lane.b32.xlu2 %v4627_v30, %s6390_s7 }
 0x339   : > { %v4685_v50 = vpop.permute.xlu2 %4684  ;;  %v6094_v6 = vld [vmem:[#allocation3 + $0x40] sm:$0xff]  ;;  %v4699_v14 = vpop.permute.xlu1 %4698 }
 0x33a   : > { %4738 = vrot.lane.b32.xlu1 %v4644_v3, %s6390_s7  ;;  %4778 = vst.msk [vmem:[#allocation3 + $0xc] sm:$0xf] %vm4774_vm2, %v4685_v50  ;;  %6026 = vmatmul.msk.bf16.vlgmr.msra.gmra.mxu3 %vm4931_vm12, %v6094_v6 }
 0x33b   : > { %4785 = vst.msk [vmem:[#allocation3 + $0x28] sm:$0xf] %vm4774_vm2, %v4699_v14  ;;  %v10216_v14 = vld [vmem:[%s10651_s4] ss:$0 sm:$0xff] }
 0x33d   : > { %v3540_v56 = vpop.permute.xlu0 %3539 }
 0x33e   : > { %3611 = vst.msk [vmem:[#allocation3 + $0x64] sm:$0xf] %vm3585_vm14, %v3540_v56 }
 0x33f   : > { %4732 = vrot.lane.b32.xlu2 %v4641_v55, %s6390_s7 }
 0x341   : > { %v4689_v59 = vpop.permute.xlu2 %4688  ;;  %v6087_v63 = vld [vmem:[#allocation3 + $0x8] sm:$0xff] }
 0x342   : > { %4706 = vrot.lane.b32.xlu1 %v4628_v41, %s6390_s7  ;;  %4780 = vst.msk [vmem:[#allocation3 + $0x14] sm:$0xf] %vm4774_vm2, %v4689_v59  ;;  %6019 = vmatmul.msk.bf16.gmra.mxu1 %vm4931_vm12, %v6087_v63 }
 0x347   : > { %3549 = vrot.lane.b32.xlu2 %v3455_v15, %s6389_s6 }
 0x349   : > { %v4719_v19 = vpop.permute.xlu1 %4718  ;;  %v4693_v0 = vpop.permute.xlu2 %4692  ;;  %v6088_v25 = vld [vmem:[#allocation3 + $0x10] sm:$0xff] }
 0x34a   : > { %4795 = vst.msk [vmem:[#allocation3 + $0x50] sm:$0xf] %vm4774_vm2, %v4719_v19 }
 0x34b   : > { %4782 = vst.msk [vmem:[#allocation3 + $0x1c] sm:$0xf] %vm4774_vm2, %v4693_v0 }
 0x34f   : > { %v3544_v62 = vpop.permute.xlu0 %3543  ;;  %4736 = vrot.lane.b32.xlu2 %v4643_v1, %s6390_s7 }
 0x350   : > { %3613 = vst.msk [vmem:[#allocation3 + $0x6c] sm:$0xf] %vm3585_vm14, %v3544_v62 }
 0x351   : > { %v2359_v12 = vpop.permute.xlu1 %2358  ;;  %v4697_v57 = vpop.permute.xlu2 %4696 }
 0x352   : > { %2426 = vst.msk [vmem:[#allocation3 + $0x74] sm:$0xf] %vm2396_vm1, %v2359_v12  ;;  %6020 = vmatmul.msk.bf16.gmra.mxu1 %vm4931_vm12, %v6088_v25  ;;  %v6089_v29 = vld [vmem:[#allocation3 + $0x18] sm:$0xff] }
 0x353   : > { %4784 = vst.msk [vmem:[#allocation3 + $0x24] sm:$0xf] %vm4774_vm2, %v4697_v57 }
 0x357   : > { %v2357_v28 = vpop.permute.xlu0 %2356  ;;  %3517 = vrot.lane.b32.xlu2 %v3439_v18, %s6389_s6 }
 0x358   : > { %2425 = vst.msk [vmem:[#allocation3 + $0x70] sm:$0xf] %vm2396_vm1, %v2357_v28 }
 0x359   : > { %v4717_v37 = vpop.permute.xlu2 %4716 }
 0x35a   : > { %4794 = vst.msk [vmem:[#allocation3 + $0x4c] sm:$0xf] %vm4774_vm2, %v4717_v37  ;;  %v6090_v22 = vld [vmem:[#allocation3 + $0x20] sm:$0xff] }
 0x35f   : > { %v3548_v16 = vpop.permute.xlu0 %3547  ;;  %4740 = vrot.lane.b32.xlu2 %v4645_v35, %s6390_s7 }
 0x360   : > { %3615 = vst.msk [vmem:[#allocation3 + $0x74] sm:$0xf] %vm3585_vm14, %v3548_v16 }
 0x361   : > { %v4701_v32 = vpop.permute.xlu2 %4700  ;;  %v6095_v13 = vld [vmem:[#allocation3 + $0x48] sm:$0xff] }
 0x362   : > { %4786 = vst.msk [vmem:[#allocation3 + $0x2c] sm:$0xf] %vm4774_vm2, %v4701_v32  ;;  %6027 = vmatmul.msk.bf16.gmra.mxu3 %vm4931_vm12, %v6095_v13  ;;  %6021 = vmatmul.msk.bf16.gmra.mxu1 %vm4931_vm12, %v6089_v29 }
 0x367   : > { %v2325_v17 = vpop.permute.xlu0 %2324  ;;  %4708 = vrot.lane.b32.xlu2 %v4629_v39, %s6390_s7 }
 0x368   : > { %2409 = vst.msk [vmem:[#allocation3 + $0x30] sm:$0xf] %vm2396_vm1, %v2325_v17 }
 0x369   : > { %v4721_v42 = vpop.permute.xlu2 %4720  ;;  %v6091_v26 = vld [vmem:[#allocation3 + $0x28] sm:$0xff] }
 0x36a   : > { %4796 = vst.msk [vmem:[#allocation3 + $0x54] sm:$0xf] %vm4774_vm2, %v4721_v42 }
 0x36c   : > { %v4723_v61 = vpop.permute.xlu1 %4722 }
 0x36d   : > { %4797 = vst.msk [vmem:[#allocation3 + $0x58] sm:$0xf] %vm4774_vm2, %v4723_v61 }
 0x36f   : > { %v3516_v52 = vpop.permute.xlu0 %3515 }
 0x371   : > { %v3546_v45 = vpop.permute.xlu2 %3545  ;;  %v6096_v31 = vld [vmem:[#allocation3 + $0x50] sm:$0xff] }
 0x372   : > { %3614 = vst.msk [vmem:[#allocation3 + $0x70] sm:$0xf] %vm3585_vm14, %v3546_v45  ;;  %6028 = vmatmul.msk.bf16.gmra.mxu3 %vm4931_vm12, %v6096_v31  ;;  %6022 = vmatmul.msk.bf16.gmra.mxu1 %vm4931_vm12, %v6090_v22 }
 0x374   : > { %v2327_v36 = vpop.permute.xlu1 %2326 }
 0x375   : > { %2410 = vst.msk [vmem:[#allocation3 + $0x34] sm:$0xf] %vm2396_vm1, %v2327_v36 }
 0x376   : > { %3599 = vst.msk [vmem:[#allocation3 + $0x34] sm:$0xf] %vm3585_vm14, %v3516_v52 }
 0x377   : > { %v2361_v27 = vpop.permute.xlu0 %2360 }
 0x378   : > { %2427 = vst.msk [vmem:[#allocation3 + $0x78] sm:$0xf] %vm2396_vm1, %v2361_v27 }
 0x379   : > { %v4725_v38 = vpop.permute.xlu2 %4724 }
 0x37a   : > { %4798 = vst.msk [vmem:[#allocation3 + $0x5c] sm:$0xf] %vm4774_vm2, %v4725_v38 }
 0x37c   : > { %v4727_v9 = vpop.permute.xlu1 %4726 }
 0x37d   : > { %4799 = vst.msk [vmem:[#allocation3 + $0x60] sm:$0xf] %vm4774_vm2, %v4727_v9 }
 0x37f   : > { %v3552_v21 = vpop.permute.xlu0 %3551 }
 0x381   : > { %v3514_v11 = vpop.permute.xlu2 %3513  ;;  %v6097_v43 = vld [vmem:[#allocation3 + $0x58] sm:$0xff] }
 0x382   : > { %3598 = vst.msk [vmem:[#allocation3 + $0x30] sm:$0xf] %vm3585_vm14, %v3514_v11  ;;  %6029 = vmatmul.msk.bf16.gmra.mxu3 %vm4931_vm12, %v6097_v43  ;;  %6023 = vmatmul.msk.bf16.gmra.mxu1 %vm4931_vm12, %v6091_v26 }
 0x384   : > { %v4703_v48 = vpop.permute.xlu1 %4702 }
 0x385   : > { %4787 = vst.msk [vmem:[#allocation3 + $0x30] sm:$0xf] %vm4774_vm2, %v4703_v48 }
 0x387   : > { %v2329_v20 = vpop.permute.xlu0 %2328 }
 0x388   : > { %2411 = vst.msk [vmem:[#allocation3 + $0x38] sm:$0xf] %vm2396_vm1, %v2329_v20 }
 0x389   : > { %v4729_v44 = vpop.permute.xlu2 %4728 }
 0x38a   : > { %4800 = vst.msk [vmem:[#allocation3 + $0x64] sm:$0xf] %vm4774_vm2, %v4729_v44 }
 0x38c   : > { %v4731_v10 = vpop.permute.xlu1 %4730 }
 0x38d   : > { %4801 = vst.msk [vmem:[#allocation3 + $0x68] sm:$0xf] %vm4774_vm2, %v4731_v10 }
 0x38f   : > { %v3520_v50 = vpop.permute.xlu0 %3519 }
 0x391   : > { %v4705_v8 = vpop.permute.xlu2 %4704  ;;  %v6098_v30 = vld [vmem:[#allocation3 + $0x60] sm:$0xff] }
 0x392   : > { %4788 = vst.msk [vmem:[#allocation3 + $0x34] sm:$0xf] %vm4774_vm2, %v4705_v8  ;;  %6030 = vmatmul.msk.bf16.gmra.mxu3 %vm4931_vm12, %v6098_v30 }
 0x394   : > { %v2363_v47 = vpop.permute.xlu1 %2362 }
 0x395   : > { %2428 = vst.msk [vmem:[#allocation3 + $0x7c] sm:$0xf] %vm2396_vm1, %v2363_v47 }
 0x396   : > { %3617 = vst.msk [vmem:[#allocation3 + $0x7c] sm:$0xf] %vm3585_vm14, %v3552_v21 }
 0x399   : > { %v4733_v3 = vpop.permute.xlu2 %4732  ;;  %v6092_v49 = vld [vmem:[#allocation3 + $0x30] sm:$0xff] }
 0x39a   : > { %4802 = vst.msk [vmem:[#allocation3 + $0x6c] sm:$0xf] %vm4774_vm2, %v4733_v3  ;;  %6024 = vmatmul.msk.bf16.gmra.mxu1 %vm4931_vm12, %v6092_v49 }
 0x39c   : > { %v4735_v40 = vpop.permute.xlu1 %4734 }
 0x39d   : > { %4803 = vst.msk [vmem:[#allocation3 + $0x70] sm:$0xf] %vm4774_vm2, %v4735_v40 }
 0x3a1   : > { %v3550_v6 = vpop.permute.xlu2 %3549  ;;  %v6099_v60 = vld [vmem:[#allocation3 + $0x68] sm:$0xff] }
 0x3a2   : > { %3616 = vst.msk [vmem:[#allocation3 + $0x78] sm:$0xf] %vm3585_vm14, %v3550_v6  ;;  %6031 = vmatmul.msk.bf16.gmra.mxu3 %vm4931_vm12, %v6099_v60 }
 0x3a4   : > { %v2331_v33 = vpop.permute.xlu1 %2330 }
 0x3a5   : > { %2412 = vst.msk [vmem:[#allocation3 + $0x3c] sm:$0xf] %vm2396_vm1, %v2331_v33 }
 0x3a6   : > { %3601 = vst.msk [vmem:[#allocation3 + $0x3c] sm:$0xf] %vm3585_vm14, %v3520_v50 }
 0x3a7   : > { %v4989_v55 = vpop.f32.mrf.mxu1 }
 0x3a8   : > { %v4990_v41 = vadd.f32 %v10216_v14, %v4989_v55 }
 0x3a9   : > { %v4737_v2 = vpop.permute.xlu2 %4736 }
 0x3aa   : > { %4804 = vst.msk [vmem:[#allocation3 + $0x74] sm:$0xf] %vm4774_vm2, %v4737_v2  ;;  %v6034_v59 = vmul.f32 -1.442695, %v4990_v41 }
 0x3ac   : > { %v4739_v56 = vpop.permute.xlu1 %4738  ;;  %6247 = vpow2.f32 %v6034_v59 }
 0x3ad   : > { %4805 = vst.msk [vmem:[#allocation3 + $0x78] sm:$0xf] %vm4774_vm2, %v4739_v56 }
 0x3af   : > { %v4991_v63 = vpop.f32.mrf.mxu1 }
 0x3b0   : > { %v10222_v46 = vadd.f32 %v10216_v14, %v4991_v63 }
 0x3b1   : > { %v3518_v24 = vpop.permute.xlu2 %3517  ;;  %v6100_v19 = vld [vmem:[#allocation3 + $0x70] sm:$0xff] }
 0x3b2   : > { %3600 = vst.msk [vmem:[#allocation3 + $0x38] sm:$0xf] %vm3585_vm14, %v3518_v24  ;;  %v6248_v54 = vpop.eup %6247  ;;  %v6035_v58 = vmul.f32 -1.442695, %v10222_v46  ;;  %6032 = vmatmul.msk.bf16.gmra.mxu3 %vm4931_vm12, %v6100_v19 }
 0x3b3   : > { %v5165_v0 = vadd.f32 1.0, %v6248_v54 }
 0x3b4   : > { %v4707_v15 = vpop.permute.xlu1 %4706  ;;  %6249 = vpow2.f32 %v6035_v58 }
 0x3b5   : > { %4789 = vst.msk [vmem:[#allocation3 + $0x38] sm:$0xf] %vm4774_vm2, %v4707_v15  ;;  %6251 = vrcp.f32 %v5165_v0  ;;  %v5208_v34 = vand.u32 2147483648, %v5165_v0  ;;  %v5206_v18 = vand.u32 2147483647, %v5165_v0  ;;  %vm5202_vm15 = vweird.f32 %v5165_v0 }
 0x3b7   : > { %v5209_v32 = vor.u32 1.1754944e-38, %v5208_v34  ;;  %vm5207_vm0 = vcmp.eq.f32.partialorder %v5206_v18, 8.507059e+37 }
 0x3b9   : > { %v4741_v4 = vpop.permute.xlu2 %4740 }
 0x3ba   : > { %4806 = vst.msk [vmem:[#allocation3 + $0x7c] sm:$0xf] %vm4774_vm2, %v4741_v4  ;;  %v6250_v53 = vpop.eup %6249 }
 0x3bb   : > { %v6252_v1 = vpop.eup %6251  ;;  %v5166_v62 = vadd.f32 1.0, %v6250_v53 }
 0x3bc   : > { %v5198_v23 = vmul.f32 %v6252_v1, %v5165_v0  ;;  %vm5203_vm11 = vweird.f32 %v6252_v1 }
 0x3bd   : > { %6253 = vrcp.f32 %v5166_v62  ;;  %v5029_v12 = vpop.f32.mrf.mxu3  ;;  %vm5204_vm3 = vmor %vm5202_vm15, %vm5203_vm11  ;;  %v5221_v22 = vand.u32 2147483647, %v5166_v62  ;;  %v5223_v36 = vand.u32 2147483648, %v5166_v62  ;;  %vm5217_vm8 = vweird.f32 %v5166_v62 }
 0x3be   : > { %v5199_v57 = vsub.f32 1.0, %v5198_v23  ;;  %v10230_v25 = vadd.f32 %v10216_v14, %v5029_v12 }
 0x3bf   : > { %v4994_v37 = vpop.f32.mrf.mxu1  ;;  %v5224_v44 = vor.u32 1.1754944e-38, %v5223_v36  ;;  %vm5222_vm9 = vcmp.eq.f32.partialorder %v5221_v22, 8.507059e+37 }
 0x3c0   : > { %v5200_v5 = vmul.f32 %v6252_v1, %v5199_v57  ;;  %v6050_v28 = vmul.f32 -1.442695, %v10230_v25  ;;  %v10235_v51 = vadd.f32 %v10216_v14, %v4994_v37 }
 0x3c1   : > { %v4709_v7 = vpop.permute.xlu2 %4708  ;;  %v6101_v29 = vld [vmem:[#allocation3 + $0x78] sm:$0xff] }
 0x3c2   : > { %4790 = vst.msk [vmem:[#allocation3 + $0x3c] sm:$0xf] %vm4774_vm2, %v4709_v7  ;;  %v5201_v35 = vadd.f32 %v6252_v1, %v5200_v5  ;;  %6255 = vpow2.f32 %v6050_v28  ;;  %v6036_v13 = vmul.f32 -1.442695, %v10235_v51  ;;  %6033 = vmatmul.msk.bf16.gmra.mxu3 %vm4931_vm12, %v6101_v29 }
 0x3c3   : > { %v6254_v16 = vpop.eup %6253 }
 0x3c4   : > { %v5205_v39 = vsel %vm5204_vm3, %v6252_v1, %v5201_v35  ;;  %v5213_v17 = vmul.f32 %v6254_v16, %v5166_v62  ;;  %6257 = vpow2.f32 %v6036_v13  ;;  %vm5218_vm7 = vweird.f32 %v6254_v16 }
 0x3c5   : > { %v5210_v42 = vsel %vm5207_vm0, %v5209_v32, %v5205_v39  ;;  %v5031_v61 = vpop.f32.mrf.mxu3  ;;  %vm5219_vm6 = vmor %vm5217_vm8, %vm5218_vm7 }
 0x3c6   : > { %v5677_v52 = vmul.f32 %v5210_v42, %v4990_v41  ;;  %v5214_v45 = vsub.f32 1.0, %v5213_v17  ;;  %v10240_v31 = vadd.f32 %v10216_v14, %v5031_v61 }
 0x3c7   : > { %v4996_v11 = vpop.f32.mrf.mxu1 }
 0x3c8   : > { %v6256_v27 = vpop.eup %6255  ;;  %v5709_v38 = vpack.c.bf16 %v5677_v52, %v5677_v52  ;;  %v5215_v9 = vmul.f32 %v6254_v16, %v5214_v45  ;;  %v6051_v21 = vmul.f32 -1.442695, %v10240_v31  ;;  %v10251_v26 = vadd.f32 %v10216_v14, %v4996_v11 }
 0x3c9   : > { %v5181_v43 = vadd.f32 1.0, %v6256_v27  ;;  %v6093_v3 = vld [vmem:[#allocation3 + $0x38] sm:$0xff] }
 0x3ca   : > { %5742 = vst.msk [vmem:[%s10247_s14] sm:$0xf] %vm5741_vm4, %v5709_v38  ;;  %v5216_v48 = vadd.f32 %v6254_v16, %v5215_v9  ;;  %6259 = vpow2.f32 %v6051_v21  ;;  %v6258_v20 = vpop.eup %6257  ;;  %v6037_v30 = vmul.f32 -1.442695, %v10251_v26  ;;  %6025 = vmatmul.msk.bf16.gmra.mxu1 %vm4931_vm12, %v6093_v3 }
 0x3cb   : > { %6261 = vrcp.f32 %v5181_v43  ;;  %v5167_v8 = vadd.f32 1.0, %v6258_v20  ;;  %v5446_v24 = vand.u32 2147483647, %v5181_v43  ;;  %vm5442_vm13 = vweird.f32 %v5181_v43 }
 0x3cc   : > { %v5220_v10 = vsel %vm5219_vm6, %v6254_v16, %v5216_v48 }
 0x3cd   : > { %v5225_v47 = vsel %vm5222_vm9, %v5224_v44, %v5220_v10  ;;  %6263 = vrcp.f32 %v5167_v8  ;;  %v5236_v0 = vand.u32 2147483647, %v5167_v8  ;;  %v5238_v53 = vand.u32 2147483648, %v5167_v8 }
 0x3ce   : > { %v5678_v49 = vmul.f32 %v5225_v47, %v10222_v46  ;;  %6265 = vpow2.f32 %v6037_v30  ;;  %v5448_v46 = vand.u32 2147483648, %v5181_v43  ;;  %vm5447_vm14 = vcmp.eq.f32.partialorder %v5446_v24, 8.507059e+37 }
 0x3cf   : > { %v4999_v6 = vpop.f32.mrf.mxu1  ;;  %vm5232_vm2 = vweird.f32 %v5167_v8  ;;  %vm5237_vm12 = vcmp.eq.f32.partialorder %v5236_v0, 8.507059e+37  ;;  %v5239_v16 = vor.u32 1.1754944e-38, %v5238_v53 }
 0x3d0   : > { %v6260_v40 = vpop.eup %6259  ;;  %v5710_v50 = vpack.c.bf16 %v5678_v49, %v5678_v49  ;;  %v10261_v55 = vadd.f32 %v10216_v14, %v4999_v6  ;;  %v5449_v23 = vor.u32 1.1754944e-38, %v5448_v46 }
 0x3d1   : > { %v6262_v60 = vpop.eup %6261  ;;  %v10258_v33 = vadd.f32 1.0, %v6260_v40 }
 0x3d2   : > { %5743 = vst.msk [vmem:[%s10247_s14 + $0x4] sm:$0xf] %vm5741_vm4, %v5710_v50  ;;  %v5438_v2 = vmul.f32 %v6262_v60, %v5181_v43  ;;  %v6038_v59 = vmul.f32 -1.442695, %v10261_v55  ;;  %vm5443_vm10 = vweird.f32 %v6262_v60 }
 0x3d3   : > { %6267 = vrcp.f32 %v10258_v33  ;;  %v6264_v41 = vpop.eup %6263  ;;  %vm5444_vm5 = vmor %vm5442_vm13, %vm5443_vm10  ;;  %v5461_v13 = vand.u32 2147483647, %v10258_v33  ;;  %v5463_v39 = vand.u32 2147483648, %v10258_v33  ;;  %vm5457_vm3 = vweird.f32 %v10258_v33 }
 0x3d4   : > { %v5439_v56 = vsub.f32 1.0, %v5438_v2  ;;  %v6266_v63 = vpop.eup %6265  ;;  %v5228_v15 = vmul.f32 %v6264_v41, %v5167_v8  ;;  %6269 = vpow2.f32 %v6038_v59  ;;  %vm5233_vm1 = vweird.f32 %v6264_v41 }
 0x3d5   : > { %v10267_v58 = vadd.f32 1.0, %v6266_v63  ;;  %vm5234_vm11 = vmor %vm5232_vm2, %vm5233_vm1  ;;  %v5464_v9 = vor.u32 1.1754944e-38, %v5463_v39  ;;  %vm5462_vm7 = vcmp.eq.f32.partialorder %v5461_v13, 8.507059e+37 }
 0x3d6   : > { %v5440_v54 = vmul.f32 %v6262_v60, %v5439_v56  ;;  %v5229_v19 = vsub.f32 1.0, %v5228_v15 }
 0x3d7   : > { %6271 = vrcp.f32 %v10267_v58  ;;  %v5001_v1 = vpop.f32.mrf.mxu1  ;;  %v5253_v48 = vand.u32 2147483648, %v10267_v58  ;;  %vm5247_vm6 = vweird.f32 %v10267_v58 }
 0x3d8   : > { %v5441_v4 = vadd.f32 %v6262_v60, %v5440_v54  ;;  %v5230_v12 = vmul.f32 %v6264_v41, %v5229_v19  ;;  %v10271_v57 = vadd.f32 %v10216_v14, %v5001_v1 }
 0x3d9   : > { %v6268_v62 = vpop.eup %6267  ;;  %v5254_v6 = vor.u32 1.1754944e-38, %v5253_v48 }
 0x3da   : > { %v5445_v34 = vsel %vm5444_vm5, %v6262_v60, %v5441_v4  ;;  %v5453_v5 = vmul.f32 %v6268_v62, %v10258_v33  ;;  %v5231_v28 = vadd.f32 %v6264_v41, %v5230_v12  ;;  %v6039_v7 = vmul.f32 -1.442695, %v10271_v57  ;;  %v6270_v37 = vpop.eup %6269 }
 0x3db   : > { %v5450_v18 = vsel %vm5447_vm14, %v5449_v23, %v5445_v34  ;;  %v10278_v17 = vadd.f32 1.0, %v6270_v37  ;;  %vm5458_vm15 = vweird.f32 %v6268_v62 }
 0x3dc   : > { %v5693_v35 = vmul.f32 %v5450_v18, %v10230_v25  ;;  %v5454_v32 = vsub.f32 1.0, %v5453_v5  ;;  %v5235_v29 = vsel %vm5234_vm11, %v6264_v41, %v5231_v28  ;;  %6273 = vpow2.f32 %v6039_v7  ;;  %vm5459_vm0 = vmor %vm5457_vm3, %vm5458_vm15 }
 0x3dd   : > { %v6272_v42 = vpop.eup %6271  ;;  %v5240_v52 = vsel %vm5237_vm12, %v5239_v16, %v5235_v29  ;;  %6275 = vrcp.f32 %v10278_v17  ;;  %v5268_v59 = vand.u32 2147483648, %v10278_v17  ;;  %v5266_v24 = vand.u32 2147483647, %v10278_v17 }
 0x3de   : > { %v5725_v61 = vpack.c.bf16 %v5693_v35, %v5693_v35  ;;  %v5455_v45 = vmul.f32 %v6268_v62, %v5454_v32  ;;  %v5679_v22 = vmul.f32 %v5240_v52, %v10235_v51  ;;  %v5243_v25 = vmul.f32 %v6272_v42, %v10267_v58 }
 0x3df   : > { %v5004_v27 = vpop.f32.mrf.mxu1  ;;  %v5251_v51 = vand.u32 2147483647, %v10267_v58  ;;  %vm5248_vm8 = vweird.f32 %v6272_v42  ;;  %vm5262_vm5 = vweird.f32 %v10278_v17  ;;  %vm5267_vm14 = vcmp.eq.f32.partialorder %v5266_v24, 8.507059e+37 }
 0x3e0   : > { %5758 = vst.msk [vmem:[%s10247_s14 + $0x40] sm:$0xf] %vm5741_vm4, %v5725_v61  ;;  %v5456_v36 = vadd.f32 %v6268_v62, %v5455_v45  ;;  %v5711_v38 = vpack.c.bf16 %v5679_v22, %v5679_v22  ;;  %v5244_v21 = vsub.f32 1.0, %v5243_v25  ;;  %v10287_v11 = vadd.f32 %v10216_v14, %v5004_v27  ;;  %vm5249_vm9 = vmor %vm5247_vm6, %vm5248_vm8 }
 0x3e1   : > { %vm5252_vm10 = vcmp.eq.f32.partialorder %v5251_v51, 8.507059e+37 }
 0x3e2   : > { %v5460_v43 = vsel %vm5459_vm0, %v6268_v62, %v5456_v36  ;;  %v6274_v20 = vpop.eup %6273  ;;  %5744 = vst.msk [vmem:[%s10247_s14 + $0x8] sm:$0xf] %vm5741_vm4, %v5711_v38  ;;  %v5245_v10 = vmul.f32 %v6272_v42, %v5244_v21  ;;  %v6040_v8 = vmul.f32 -1.442695, %v10287_v11 }
 0x3e3   : > { %v5465_v44 = vsel %vm5462_vm7, %v5464_v9, %v5460_v43  ;;  %v10295_v47 = vadd.f32 1.0, %v6274_v20  ;;  %v6276_v3 = vpop.eup %6275 }
 0x3e4   : > { %v5694_v30 = vmul.f32 %v5465_v44, %v10240_v31  ;;  %v5246_v49 = vadd.f32 %v6272_v42, %v5245_v10  ;;  %6277 = vpow2.f32 %v6040_v8  ;;  %v5258_v60 = vmul.f32 %v6276_v3, %v10278_v17 }
 0x3e5   : > { %v5034_v40 = vpop.f32.mrf.mxu3  ;;  %6279 = vrcp.f32 %v10295_v47  ;;  %vm5263_vm13 = vweird.f32 %v6276_v3  ;;  %v5283_v28 = vand.u32 2147483648, %v10295_v47  ;;  %v5281_v35 = vand.u32 2147483647, %v10295_v47 }
 0x3e6   : > { %v5726_v50 = vpack.c.bf16 %v5694_v30, %v5694_v30  ;;  %v5250_v33 = vsel %vm5249_vm9, %v6272_v42, %v5246_v49  ;;  %v5259_v2 = vsub.f32 1.0, %v5258_v60  ;;  %v10303_v41 = vadd.f32 %v10216_v14, %v5034_v40  ;;  %vm5264_vm1 = vmor %vm5262_vm5, %vm5263_vm13 }
 0x3e7   : > { %v5255_v31 = vsel %vm5252_vm10, %v5254_v6, %v5250_v33  ;;  %v5006_v15 = vpop.f32.mrf.mxu1  ;;  %vm5277_vm12 = vweird.f32 %v10295_v47  ;;  %v5284_v61 = vor.u32 1.1754944e-38, %v5283_v28  ;;  %vm5282_vm15 = vcmp.eq.f32.partialorder %v5281_v35, 8.507059e+37 }
 0x3e8   : > { %5759 = vst.msk [vmem:[%s10247_s14 + $0x44] sm:$0xf] %vm5741_vm4, %v5726_v50  ;;  %v5680_v56 = vmul.f32 %v5255_v31, %v10251_v26  ;;  %v5260_v63 = vmul.f32 %v6276_v3, %v5259_v2  ;;  %v6052_v46 = vmul.f32 -1.442695, %v10303_v41  ;;  %v10310_v19 = vadd.f32 %v10216_v14, %v5006_v15 }
 0x3e9   : > { %v5269_v26 = vor.u32 1.1754944e-38, %v5268_v59 }
 0x3ea   : > { %v6278_v54 = vpop.eup %6277  ;;  %v5712_v58 = vpack.c.bf16 %v5680_v56, %v5680_v56  ;;  %v5261_v4 = vadd.f32 %v6276_v3, %v5260_v63  ;;  %6281 = vpow2.f32 %v6052_v46  ;;  %v6041_v62 = vmul.f32 -1.442695, %v10310_v19 }
 0x3eb   : > { %v6280_v0 = vpop.eup %6279  ;;  %v10313_v53 = vadd.f32 1.0, %v6278_v54 }
 0x3ec   : > { %5745 = vst.msk [vmem:[%s10247_s14 + $0xc] sm:$0xf] %vm5741_vm4, %v5712_v58  ;;  %v5273_v1 = vmul.f32 %v6280_v0, %v10295_v47  ;;  %v5265_v23 = vsel %vm5264_vm1, %v6276_v3, %v5261_v4  ;;  %vm5278_vm2 = vweird.f32 %v6280_v0 }
 0x3ed   : > { %6283 = vrcp.f32 %v10313_v53  ;;  %v5036_v12 = vpop.f32.mrf.mxu3  ;;  %v5270_v34 = vsel %vm5267_vm14, %v5269_v26, %v5265_v23  ;;  %vm5279_vm11 = vmor %vm5277_vm12, %vm5278_vm2  ;;  %v5296_v21 = vand.u32 2147483647, %v10313_v53  ;;  %v5298_v43 = vand.u32 2147483648, %v10313_v53 }
 0x3ee   : > { %v5274_v5 = vsub.f32 1.0, %v5273_v1  ;;  %6285 = vpow2.f32 %v6041_v62  ;;  %v5681_v18 = vmul.f32 %v5270_v34, %v10261_v55  ;;  %v10323_v7 = vadd.f32 %v10216_v14, %v5036_v12 }
 0x3ef   : > { %v5009_v29 = vpop.f32.mrf.mxu1  ;;  %vm5292_vm0 = vweird.f32 %v10313_v53  ;;  %v5299_v47 = vor.u32 1.1754944e-38, %v5298_v43  ;;  %vm5297_vm8 = vcmp.eq.f32.partialorder %v5296_v21, 8.507059e+37 }
 0x3f0   : > { %v5275_v37 = vmul.f32 %v6280_v0, %v5274_v5  ;;  %v6282_v16 = vpop.eup %6281  ;;  %v5713_v32 = vpack.c.bf16 %v5681_v18, %v5681_v18  ;;  %v6053_v13 = vmul.f32 -1.442695, %v10323_v7  ;;  %v10331_v55 = vadd.f32 %v10216_v14, %v5009_v29 }
 0x3f1   : > { %v10328_v17 = vadd.f32 1.0, %v6282_v16 }
 0x3f2   : > { %v5276_v39 = vadd.f32 %v6280_v0, %v5275_v37  ;;  %5746 = vst.msk [vmem:[%s10247_s14 + $0x10] sm:$0xf] %vm5741_vm4, %v5713_v32  ;;  %6287 = vpow2.f32 %v6053_v13  ;;  %v6042_v9 = vmul.f32 -1.442695, %v10331_v55 }
 0x3f3   : > { %v6284_v42 = vpop.eup %6283  ;;  %6289 = vrcp.f32 %v10328_v17  ;;  %v5476_v31 = vand.u32 2147483647, %v10328_v17  ;;  %v5478_v2 = vand.u32 2147483648, %v10328_v17  ;;  %vm5472_vm9 = vweird.f32 %v10328_v17 }
 0x3f4   : > { %v6286_v52 = vpop.eup %6285  ;;  %v5280_v45 = vsel %vm5279_vm11, %v6280_v0, %v5276_v39  ;;  %v5288_v22 = vmul.f32 %v6284_v42, %v10313_v53  ;;  %vm5293_vm3 = vweird.f32 %v6284_v42 }
 0x3f5   : > { %v5285_v25 = vsel %vm5282_vm15, %v5284_v61, %v5280_v45  ;;  %v10338_v38 = vadd.f32 1.0, %v6286_v52  ;;  %v5039_v51 = vpop.f32.mrf.mxu3  ;;  %vm5294_vm7 = vmor %vm5292_vm0, %vm5293_vm3  ;;  %vm5477_vm13 = vcmp.eq.f32.partialorder %v5476_v31, 8.507059e+37  ;;  %v5479_v26 = vor.u32 1.1754944e-38, %v5478_v2 }
 0x3f6   : > { %v5682_v36 = vmul.f32 %v5285_v25, %v10271_v57  ;;  %v5289_v27 = vsub.f32 1.0, %v5288_v22  ;;  %v10345_v10 = vadd.f32 %v10216_v14, %v5039_v51 }
 0x3f7   : > { %6291 = vrcp.f32 %v10338_v38  ;;  %v5311_v56 = vand.u32 2147483647, %v10338_v38  ;;  %v5313_v46 = vand.u32 2147483648, %v10338_v38  ;;  %v5011_v15 = vpop.f32.mrf.mxu1  ;;  %vm5307_vm5 = vweird.f32 %v10338_v38 }
 0x3f8   : > { %v5714_v48 = vpack.c.bf16 %v5682_v36, %v5682_v36  ;;  %v5290_v20 = vmul.f32 %v6284_v42, %v5289_v27  ;;  %v6288_v44 = vpop.eup %6287  ;;  %6293 = vpow2.f32 %v6042_v9  ;;  %v6054_v6 = vmul.f32 -1.442695, %v10345_v10 }
 0x3f9   : > { %v6290_v57 = vpop.eup %6289  ;;  %v10350_v30 = vadd.f32 1.0, %v6288_v44  ;;  %vm10372_vm14 = vcmp.eq.f32.partialorder %v5311_v56, 8.507059e+37  ;;  %v5314_v5 = vor.u32 1.1754944e-38, %v5313_v46 }
 0x3fa   : > { %5747 = vst.msk [vmem:[%s10247_s14 + $0x14] sm:$0xf] %vm5741_vm4, %v5714_v48  ;;  %v5291_v8 = vadd.f32 %v6284_v42, %v5290_v20  ;;  %v5468_v3 = vmul.f32 %v6290_v57, %v10328_v17  ;;  %vm5473_vm6 = vweird.f32 %v6290_v57 }
 0x3fb   : > { %6295 = vrcp.f32 %v10350_v30  ;;  %vm5474_vm10 = vmor %vm5472_vm9, %vm5473_vm6  ;;  %v5491_v29 = vand.u32 2147483647, %v10350_v30  ;;  %v5493_v39 = vand.u32 2147483648, %v10350_v30  ;;  %vm5487_vm11 = vweird.f32 %v10350_v30 }
 0x3fc   : > { %v5295_v49 = vsel %vm5294_vm7, %v6284_v42, %v5291_v8  ;;  %v5469_v50 = vsub.f32 1.0, %v5468_v3  ;;  %6297 = vpow2.f32 %v6054_v6 }
 0x3fd   : > { %v5300_v40 = vsel %vm5297_vm8, %v5299_v47, %v5295_v49  ;;  %v6292_v60 = vpop.eup %6291  ;;  %v5041_v28 = vpop.f32.mrf.mxu3  ;;  %vm5492_vm3 = vcmp.eq.f32.partialorder %v5491_v29, 8.507059e+37  ;;  %v5494_v9 = vor.u32 1.1754944e-38, %v5493_v39 }
 0x3fe   : > { %v5683_v33 = vmul.f32 %v5300_v40, %v10287_v11  ;;  %v6294_v59 = vpop.eup %6293  ;;  %v5470_v63 = vmul.f32 %v6290_v57, %v5469_v50  ;;  %v5303_v24 = vmul.f32 %v6292_v60, %v10338_v38  ;;  %v10364_v11 = vadd.f32 %v10216_v14, %v5011_v15 }
 0x3ff   : > { %v10361_v58 = vadd.f32 1.0, %v6294_v59  ;;  %vm5308_vm1 = vweird.f32 %v6292_v60  ;;  %v10379_v32 = vadd.f32 %v10216_v14, %v5041_v28  ;;  %v5014_v38 = vpop.f32.mrf.mxu1 }
 0x400   : > { %v5715_v54 = vpack.c.bf16 %v5683_v33, %v5683_v33  ;;  %v5471_v0 = vadd.f32 %v6290_v57, %v5470_v63  ;;  %v5304_v4 = vsub.f32 1.0, %v5303_v24  ;;  %v6043_v18 = vmul.f32 -1.442695, %v10364_v11  ;;  %vm5309_vm2 = vmor %vm5307_vm5, %vm5308_vm1 }
 0x401   : > { %v6296_v53 = vpop.eup %6295  ;;  %6299 = vrcp.f32 %v10361_v58  ;;  %v6055_v22 = vmul.f32 -1.442695, %v10379_v32  ;;  %v5328_v44 = vand.u32 2147483648, %v10361_v58  ;;  %vm5322_vm7 = vweird.f32 %v10361_v58 }
 0x402   : > { %5748 = vst.msk [vmem:[%s10247_s14 + $0x18] sm:$0xf] %vm5741_vm4, %v5715_v54  ;;  %v5475_v1 = vsel %vm5474_vm10, %v6290_v57, %v5471_v0  ;;  %v5305_v62 = vmul.f32 %v6292_v60, %v5304_v4  ;;  %v5483_v23 = vmul.f32 %v6296_v53, %v10350_v30  ;;  %v6298_v13 = vpop.eup %6297  ;;  %vm5488_vm12 = vweird.f32 %v6296_v53 }
 0x403   : > { %v5480_v12 = vsel %vm5477_vm13, %v5479_v26, %v5475_v1  ;;  %6301 = vpow2.f32 %v6043_v18  ;;  %vm5489_vm15 = vmor %vm5487_vm11, %vm5488_vm12  ;;  %v10400_v57 = vadd.f32 %v10216_v14, %v5014_v38 }
 0x404   : > { %v5695_v37 = vmul.f32 %v5480_v12, %v10303_v41  ;;  %v5306_v35 = vadd.f32 %v6292_v60, %v5305_v62  ;;  %v5484_v16 = vsub.f32 1.0, %v5483_v23  ;;  %v10385_v41 = vadd.f32 1.0, %v6298_v13 }
 0x405   : > { %v6044_v3 = vmul.f32 -1.442695, %v10400_v57  ;;  %v5044_v49 = vpop.f32.mrf.mxu3 }
 0x406   : > { %v5727_v17 = vpack.c.bf16 %v5695_v37, %v5695_v37  ;;  %v5310_v42 = vsel %vm5309_vm2, %v6292_v60, %v5306_v35  ;;  %v5485_v61 = vmul.f32 %v6296_v53, %v5484_v16  ;;  %6303 = vrcp.f32 %v10385_v41 }
 0x407   : > { %v6300_v52 = vpop.eup %6299  ;;  %v5315_v45 = vsel %vm10372_vm14, %v5314_v5, %v5310_v42  ;;  %6305 = vpow2.f32 %v6055_v22  ;;  %v5329_v60 = vor.u32 1.1754944e-38, %v5328_v44  ;;  %v5016_v15 = vpop.f32.mrf.mxu1  ;;  %v5506_v54 = vand.u32 2147483647, %v10385_v41 }
 0x408   : > { %5760 = vst.msk [vmem:[%s10247_s14 + $0x48] sm:$0xf] %vm5741_vm4, %v5727_v17  ;;  %v5684_v25 = vmul.f32 %v5315_v45, %v10310_v19  ;;  %v5486_v36 = vadd.f32 %v6296_v53, %v5485_v61  ;;  %v5318_v27 = vmul.f32 %v6300_v52, %v10361_v58  ;;  %v5326_v19 = vand.u32 2147483647, %v10361_v58 }
 0x409   : > { %v6302_v48 = vpop.eup %6301  ;;  %vm5323_vm0 = vweird.f32 %v6300_v52  ;;  %v5508_v58 = vand.u32 2147483648, %v10385_v41  ;;  %v10424_v26 = vadd.f32 %v10216_v14, %v5016_v15  ;;  %vm5502_vm10 = vweird.f32 %v10385_v41 }
 0x40a   : > { %v5716_v21 = vpack.c.bf16 %v5684_v25, %v5684_v25  ;;  %v5490_v43 = vsel %vm5489_vm15, %v6296_v53, %v5486_v36  ;;  %v5319_v51 = vsub.f32 1.0, %v5318_v27  ;;  %v10405_v47 = vadd.f32 1.0, %v6302_v48  ;;  %vm5324_vm8 = vmor %vm5322_vm7, %vm5323_vm0 }
 0x40b   : > { %v5495_v20 = vsel %vm5492_vm3, %v5494_v9, %v5490_v43  ;;  %vm5327_vm6 = vcmp.eq.f32.partialorder %v5326_v19, 8.507059e+37  ;;  %v6045_v12 = vmul.f32 -1.442695, %v10424_v26  ;;  %vm5507_vm5 = vcmp.eq.f32.partialorder %v5506_v54, 8.507059e+37 }
 0x40c   : > { %5749 = vst.msk [vmem:[%s10247_s14 + $0x1c] sm:$0xf] %vm5741_vm4, %v5716_v21  ;;  %v5696_v8 = vmul.f32 %v5495_v20, %v10323_v7  ;;  %v5320_v30 = vmul.f32 %v6300_v52, %v5319_v51  ;;  %6307 = vrcp.f32 %v10405_v47  ;;  %v6304_v6 = vpop.eup %6303  ;;  %v10411_v7 = vadd.f32 %v10216_v14, %v5044_v49 }
 0x40d   : > { %6309 = vpow2.f32 %v6044_v3  ;;  %v6306_v33 = vpop.eup %6305  ;;  %v5498_v2 = vmul.f32 %v6304_v6, %v10385_v41  ;;  %vm5503_vm9 = vweird.f32 %v6304_v6  ;;  %v5509_v34 = vor.u32 1.1754944e-38, %v5508_v58  ;;  %v5046_v18 = vpop.f32.mrf.mxu3 }
 0x40e   : > { %v5728_v40 = vpack.c.bf16 %v5696_v8, %v5696_v8  ;;  %v5321_v50 = vadd.f32 %v6300_v52, %v5320_v30  ;;  %v10416_v59 = vadd.f32 1.0, %v6306_v33  ;;  %v6056_v46 = vmul.f32 -1.442695, %v10411_v7  ;;  %vm5504_vm13 = vmor %vm5502_vm10, %vm5503_vm9 }
 0x40f   : > { %v5499_v24 = vsub.f32 1.0, %v5498_v2  ;;  %v5341_v37 = vand.u32 2147483647, %v10405_v47  ;;  %v5343_v35 = vand.u32 2147483648, %v10405_v47  ;;  %vm5337_vm14 = vweird.f32 %v10405_v47 }
 0x410   : > { %5761 = vst.msk [vmem:[%s10247_s14 + $0x4c] sm:$0xf] %vm5741_vm4, %v5728_v40  ;;  %v5325_v31 = vsel %vm5324_vm8, %v6300_v52, %v5321_v50  ;;  %6311 = vrcp.f32 %v10416_v59  ;;  %v10443_v52 = vadd.f32 %v10216_v14, %v5046_v18  ;;  %v5523_v36 = vand.u32 2147483648, %v10416_v59 }
 0x411   : > { %v5330_v56 = vsel %vm5327_vm6, %v5329_v60, %v5325_v31  ;;  %v5500_v53 = vmul.f32 %v6304_v6, %v5499_v24  ;;  %6313 = vpow2.f32 %v6056_v46  ;;  %v5344_v22 = vor.u32 1.1754944e-38, %v5343_v35 }
 0x412   : > { %v5685_v63 = vmul.f32 %v5330_v56, %v10331_v55  ;;  %v6308_v0 = vpop.eup %6307  ;;  %vm5342_vm12 = vcmp.eq.f32.partialorder %v5341_v37, 8.507059e+37  ;;  %v6057_v43 = vmul.f32 -1.442695, %v10443_v52  ;;  %vm5517_vm15 = vweird.f32 %v10416_v59 }
 0x413   : > { %v6310_v1 = vpop.eup %6309  ;;  %v5333_v55 = vmul.f32 %v6308_v0, %v10405_v47  ;;  %v5501_v62 = vadd.f32 %v6304_v6, %v5500_v53  ;;  %vm5338_vm1 = vweird.f32 %v6308_v0  ;;  %v5524_v8 = vor.u32 1.1754944e-38, %v5523_v36 }
 0x414   : > { %v5717_v4 = vpack.c.bf16 %v5685_v63, %v5685_v63  ;;  %v10430_v23 = vadd.f32 1.0, %v6310_v1  ;;  %vm5339_vm2 = vmor %vm5337_vm14, %vm5338_vm1 }
 0x415   : > { %v5334_v5 = vsub.f32 1.0, %v5333_v55  ;;  %v5505_v28 = vsel %vm5504_vm13, %v6304_v6, %v5501_v62  ;;  %v5049_v19 = vpop.f32.mrf.mxu3 }
 0x416   : > { %5750 = vst.msk [vmem:[%s10247_s14 + $0x20] sm:$0xf] %vm5741_vm4, %v5717_v4  ;;  %6315 = vrcp.f32 %v10430_v23  ;;  %v6312_v16 = vpop.eup %6311  ;;  %v5510_v13 = vsel %vm5507_vm5, %v5509_v34, %v5505_v28  ;;  %v5358_v49 = vand.u32 2147483648, %v10430_v23  ;;  %v10458_v40 = vadd.f32 %v10216_v14, %v5049_v19 }
 0x417   : > { %v5335_v29 = vmul.f32 %v6308_v0, %v5334_v5  ;;  %6317 = vpow2.f32 %v6045_v12  ;;  %v6314_v39 = vpop.eup %6313  ;;  %v5697_v17 = vmul.f32 %v5510_v13, %v10345_v10  ;;  %v5513_v42 = vmul.f32 %v6312_v16, %v10416_v59  ;;  %v5019_v2 = vpop.f32.mrf.mxu1 }
 0x418   : > { %v10440_v41 = vadd.f32 1.0, %v6314_v39  ;;  %v5521_v10 = vand.u32 2147483647, %v10416_v59  ;;  %vm5518_vm11 = vweird.f32 %v6312_v16  ;;  %v5356_v50 = vand.u32 2147483647, %v10430_v23 }
 0x419   : > { %v5336_v61 = vadd.f32 %v6308_v0, %v5335_v29  ;;  %v5729_v45 = vpack.c.bf16 %v5697_v17, %v5697_v17  ;;  %v5514_v25 = vsub.f32 1.0, %v5513_v42  ;;  %vm5519_vm3 = vmor %vm5517_vm15, %vm5518_vm11  ;;  %v6058_v31 = vmul.f32 -1.442695, %v10458_v40 }
 0x41a   : > { %6319 = vrcp.f32 %v10440_v41  ;;  %vm5522_vm0 = vcmp.eq.f32.partialorder %v5521_v10, 8.507059e+37  ;;  %vm5352_vm8 = vweird.f32 %v10430_v23  ;;  %v5359_v24 = vor.u32 1.1754944e-38, %v5358_v49 }
 0x41b   : > { %v5340_v27 = vsel %vm5339_vm2, %v6308_v0, %v5336_v61  ;;  %5762 = vst.msk [vmem:[%s10247_s14 + $0x50] sm:$0xf] %vm5741_vm4, %v5729_v45  ;;  %v5515_v21 = vmul.f32 %v6312_v16, %v5514_v25  ;;  %6321 = vpow2.f32 %v6057_v43  ;;  %v10469_v46 = vadd.f32 %v10216_v14, %v5019_v2 }
 0x41c   : > { %v6316_v38 = vpop.eup %6315  ;;  %v5345_v9 = vsel %vm5342_vm12, %v5344_v22, %v5340_v27  ;;  %v5536_v0 = vand.u32 2147483647, %v10440_v41  ;;  %v5538_v4 = vand.u32 2147483648, %v10440_v41  ;;  %vm5357_vm9 = vcmp.eq.f32.partialorder %v5356_v50, 8.507059e+37 }
 0x41d   : > { %v6318_v51 = vpop.eup %6317  ;;  %v5686_v48 = vmul.f32 %v5345_v9, %v10364_v11  ;;  %v5348_v20 = vmul.f32 %v6316_v38, %v10430_v23  ;;  %v5516_v44 = vadd.f32 %v6312_v16, %v5515_v21  ;;  %vm5353_vm7 = vweird.f32 %v6316_v38  ;;  %v5051_v5 = vpop.f32.mrf.mxu3 }
 0x41e   : > { %v10454_v30 = vadd.f32 1.0, %v6318_v51  ;;  %vm5354_vm6 = vmor %vm5352_vm8, %vm5353_vm7  ;;  %v6046_v1 = vmul.f32 -1.442695, %v10469_v46  ;;  %vm5532_vm13 = vweird.f32 %v10440_v41  ;;  %vm5537_vm5 = vcmp.eq.f32.partialorder %v5536_v0, 8.507059e+37 }
 0x41f   : > { %v5718_v47 = vpack.c.bf16 %v5686_v48, %v5686_v48  ;;  %v5349_v3 = vsub.f32 1.0, %v5348_v20  ;;  %v5520_v11 = vsel %vm5519_vm3, %v6312_v16, %v5516_v44  ;;  %v5539_v28 = vor.u32 1.1754944e-38, %v5538_v4  ;;  %v5021_v45 = vpop.f32.mrf.mxu1 }
 0x420   : > { %6323 = vrcp.f32 %v10454_v30  ;;  %v6320_v6 = vpop.eup %6319  ;;  %v5525_v60 = vsel %vm5522_vm0, %v5524_v8, %v5520_v11  ;;  %v10483_v13 = vadd.f32 %v10216_v14, %v5051_v5  ;;  %v5371_v29 = vand.u32 2147483647, %v10454_v30 }
 0x421   : > { %5751 = vst.msk [vmem:[%s10247_s14 + $0x24] sm:$0xf] %vm5741_vm4, %v5718_v47  ;;  %v5350_v33 = vmul.f32 %v6316_v38, %v5349_v3  ;;  %v5698_v56 = vmul.f32 %v5525_v60, %v10379_v32  ;;  %v5528_v59 = vmul.f32 %v6320_v6, %v10440_v41  ;;  %6325 = vpow2.f32 %v6058_v31  ;;  %v6322_v15 = vpop.eup %6321 }
 0x422   : > { %v10473_v53 = vadd.f32 1.0, %v6322_v15  ;;  %vm5533_vm10 = vweird.f32 %v6320_v6  ;;  %v5373_v39 = vand.u32 2147483648, %v10454_v30  ;;  %v6059_v41 = vmul.f32 -1.442695, %v10483_v13 }
 0x423   : > { %v5351_v63 = vadd.f32 %v6316_v38, %v5350_v33  ;;  %v5730_v54 = vpack.c.bf16 %v5698_v56, %v5698_v56  ;;  %v5529_v58 = vsub.f32 1.0, %v5528_v59  ;;  %vm5534_vm1 = vmor %vm5532_vm13, %vm5533_vm10  ;;  %vm5367_vm2 = vweird.f32 %v10454_v30 }
 0x424   : > { %6327 = vrcp.f32 %v10473_v53  ;;  %v10496_v27 = vadd.f32 %v10216_v14, %v5021_v45  ;;  %vm5372_vm11 = vcmp.eq.f32.partialorder %v5371_v29, 8.507059e+37  ;;  %v5553_v47 = vand.u32 2147483648, %v10473_v53 }
 0x425   : > { %v5355_v32 = vsel %vm5354_vm6, %v6316_v38, %v5351_v63  ;;  %5763 = vst.msk [vmem:[%s10247_s14 + $0x54] sm:$0xf] %vm5741_vm4, %v5730_v54  ;;  %v5530_v23 = vmul.f32 %v6320_v6, %v5529_v58  ;;  %6329 = vpow2.f32 %v6046_v1  ;;  %v5374_v38 = vor.u32 1.1754944e-38, %v5373_v39  ;;  %v5054_v51 = vpop.f32.mrf.mxu3 }
 0x426   : > { %v6324_v55 = vpop.eup %6323  ;;  %v5360_v62 = vsel %vm5357_vm9, %v5359_v24, %v5355_v32  ;;  %v10505_v44 = vadd.f32 %v10216_v14, %v5054_v51  ;;  %vm5547_vm3 = vweird.f32 %v10473_v53  ;;  %v5554_v33 = vor.u32 1.1754944e-38, %v5553_v47  ;;  %v10527_v32 = vld [vmem:[%s10651_s4] ss:$0 sm:$0xff] }
 0x427   : > { %v5687_v12 = vmul.f32 %v5360_v62, %v10400_v57  ;;  %v5363_v34 = vmul.f32 %v6324_v55, %v10454_v30  ;;  %v5531_v18 = vadd.f32 %v6320_v6, %v5530_v23  ;;  %v6326_v37 = vpop.eup %6325  ;;  %vm5368_vm14 = vweird.f32 %v6324_v55 }
 0x428   : > { %v10487_v17 = vadd.f32 1.0, %v6326_v37  ;;  %vm5369_vm12 = vmor %vm5367_vm2, %vm5368_vm14  ;;  %v5551_v30 = vand.u32 2147483647, %v10473_v53 }
 0x429   : > { %v5719_v35 = vpack.c.bf16 %v5687_v12, %v5687_v12  ;;  %v5364_v16 = vsub.f32 1.0, %v5363_v34  ;;  %v5535_v57 = vsel %vm5534_vm1, %v6320_v6, %v5531_v18 }
 0x42a   : > { %v5540_v42 = vsel %vm5537_vm5, %v5539_v28, %v5535_v57  ;;  %6331 = vrcp.f32 %v10487_v17  ;;  %v6328_v25 = vpop.eup %6327  ;;  %vm5552_vm7 = vcmp.eq.f32.partialorder %v5551_v30, 8.507059e+37  ;;  %v5566_v56 = vand.u32 2147483647, %v10487_v17 }
 0x42b   : > { %5752 = vst.msk [vmem:[%s10247_s14 + $0x28] sm:$0xf] %vm5741_vm4, %v5719_v35  ;;  %v5365_v61 = vmul.f32 %v6324_v55, %v5364_v16  ;;  %v5699_v22 = vmul.f32 %v5540_v42, %v10411_v7  ;;  %6333 = vpow2.f32 %v6059_v41  ;;  %v5543_v9 = vmul.f32 %v6328_v25, %v10473_v53  ;;  %v6330_v21 = vpop.eup %6329 }
 0x42c   : > { %v6047_v7 = vmul.f32 -1.442695, %v10496_v27  ;;  %v10502_v19 = vadd.f32 1.0, %v6330_v21  ;;  %vm5548_vm15 = vweird.f32 %v6328_v25  ;;  %v5568_v59 = vand.u32 2147483648, %v10487_v17 }
 0x42d   : > { %v5366_v36 = vadd.f32 %v6324_v55, %v5365_v61  ;;  %v5731_v10 = vpack.c.bf16 %v5699_v22, %v5699_v22  ;;  %v5544_v20 = vsub.f32 1.0, %v5543_v9  ;;  %vm5549_vm0 = vmor %vm5547_vm3, %vm5548_vm15  ;;  %v5056_v54 = vpop.f32.mrf.mxu3  ;;  %vm5562_vm6 = vweird.f32 %v10487_v17 }
 0x42e   : > { %6335 = vpow2.f32 %v6047_v7  ;;  %v10530_v53 = vadd.f32 %v10527_v32, %v5056_v54  ;;  %v5569_v23 = vor.u32 1.1754944e-38, %v5568_v59  ;;  %vm5567_vm10 = vcmp.eq.f32.partialorder %v5566_v56, 8.507059e+37 }
 0x42f   : > { %v5370_v43 = vsel %vm5369_vm12, %v6324_v55, %v5366_v36  ;;  %5764 = vst.msk [vmem:[%s10247_s14 + $0x58] sm:$0xf] %vm5741_vm4, %v5731_v10  ;;  %v5545_v49 = vmul.f32 %v6328_v25, %v5544_v20  ;;  %6337 = vrcp.f32 %v10502_v19  ;;  %v5386_v28 = vand.u32 2147483647, %v10502_v19 }
 0x430   : > { %v5375_v48 = vsel %vm5372_vm11, %v5374_v38, %v5370_v43  ;;  %v6332_v3 = vpop.eup %6331  ;;  %v6061_v34 = vmul.f32 -1.442695, %v10530_v53  ;;  %v5388_v37 = vand.u32 2147483648, %v10502_v19  ;;  %vm5382_vm5 = vweird.f32 %v10502_v19 }
 0x431   : > { %v5688_v8 = vmul.f32 %v5375_v48, %v10424_v26  ;;  %v6334_v11 = vpop.eup %6333  ;;  %v5558_v6 = vmul.f32 %v6332_v3, %v10487_v17  ;;  %v5546_v60 = vadd.f32 %v6328_v25, %v5545_v49  ;;  %v6060_v26 = vmul.f32 -1.442695, %v10505_v44 }
 0x432   : > { %v10513_v14 = vadd.f32 1.0, %v6334_v11  ;;  %vm5563_vm8 = vweird.f32 %v6332_v3  ;;  %vm5387_vm14 = vcmp.eq.f32.partialorder %v5386_v28, 8.507059e+37 }
 0x433   : > { %v5720_v50 = vpack.c.bf16 %v5688_v8, %v5688_v8  ;;  %v5559_v31 = vsub.f32 1.0, %v5558_v6  ;;  %v5550_v2 = vsel %vm5549_vm0, %v6328_v25, %v5546_v60  ;;  %vm5564_vm9 = vmor %vm5562_vm6, %vm5563_vm8 }
 0x434   : > { %6339 = vrcp.f32 %v10513_v14  ;;  %v6336_v63 = vpop.eup %6335  ;;  %v5555_v24 = vsel %vm5552_vm7, %v5554_v33, %v5550_v2  ;;  %v5581_v39 = vand.u32 2147483647, %v10513_v14  ;;  %v5583_v45 = vand.u32 2147483648, %v10513_v14 }
 0x435   : > { %5753 = vst.msk [vmem:[%s10247_s14 + $0x2c] sm:$0xf] %vm5741_vm4, %v5720_v50  ;;  %v5560_v15 = vmul.f32 %v6332_v3, %v5559_v31  ;;  %6341 = vpow2.f32 %v6060_v26  ;;  %v6338_v58 = vpop.eup %6337  ;;  %v5700_v0 = vmul.f32 %v5555_v24, %v10443_v52  ;;  %v10522_v4 = vadd.f32 1.0, %v6336_v63  ;;  %v5059_v22 = vpop.f32.mrf.mxu3 }
 0x436   : > { %v5378_v55 = vmul.f32 %v6338_v58, %v10502_v19  ;;  %vm5383_vm13 = vweird.f32 %v6338_v58  ;;  %vm5577_vm12 = vweird.f32 %v10513_v14  ;;  %vm10552_vm11 = vcmp.eq.f32.partialorder %v5581_v39, 8.507059e+37 }
 0x437   : > { %v5561_v1 = vadd.f32 %v6332_v3, %v5560_v15  ;;  %v5732_v62 = vpack.c.bf16 %v5700_v0, %v5700_v0  ;;  %6343 = vrcp.f32 %v10522_v4  ;;  %vm5384_vm1 = vmor %vm5382_vm5, %vm5383_vm13  ;;  %v10557_v43 = vadd.f32 %v10527_v32, %v5059_v22 }
 0x438   : > { %v5379_v12 = vsub.f32 1.0, %v5378_v55  ;;  %6345 = vpow2.f32 %v6061_v34  ;;  %v5584_v48 = vor.u32 1.1754944e-38, %v5583_v45  ;;  %v5401_v8 = vand.u32 2147483647, %v10522_v4 }
 0x439   : > { %v5565_v52 = vsel %vm5564_vm9, %v6332_v3, %v5561_v1  ;;  %5765 = vst.msk [vmem:[%s10247_s14 + $0x5c] sm:$0xf] %vm5741_vm4, %v5732_v62  ;;  %v5403_v30 = vand.u32 2147483648, %v10522_v4  ;;  %v6062_v47 = vmul.f32 -1.442695, %v10557_v43  ;;  %vm5397_vm0 = vweird.f32 %v10522_v4 }
 0x43a   : > { %v6340_v5 = vpop.eup %6339  ;;  %v5570_v18 = vsel %vm5567_vm10, %v5569_v23, %v5565_v52  ;;  %v5380_v57 = vmul.f32 %v6338_v58, %v5379_v12  ;;  %vm5402_vm8 = vcmp.eq.f32.partialorder %v5401_v8, 8.507059e+37 }
 0x43b   : > { %v6342_v35 = vpop.eup %6341  ;;  %v5701_v16 = vmul.f32 %v5570_v18, %v10458_v40  ;;  %v5573_v29 = vmul.f32 %v6340_v5, %v10513_v14  ;;  %v5389_v40 = vor.u32 1.1754944e-38, %v5388_v37  ;;  %vm5578_vm2 = vweird.f32 %v6340_v5 }
 0x43c   : > { %v10544_v17 = vadd.f32 1.0, %v6342_v35  ;;  %v5381_v61 = vadd.f32 %v6338_v58, %v5380_v57  ;;  %vm5579_vm15 = vmor %vm5577_vm12, %vm5578_vm2  ;;  %v5404_v31 = vor.u32 1.1754944e-38, %v5403_v30 }
 0x43d   : > { %v5733_v42 = vpack.c.bf16 %v5701_v16, %v5701_v16  ;;  %v5574_v41 = vsub.f32 1.0, %v5573_v29  ;;  %v6344_v25 = vpop.eup %6343  ;;  %v5061_v33 = vpop.f32.mrf.mxu3 }
 0x43e   : > { %6347 = vrcp.f32 %v10544_v17  ;;  %v5385_v36 = vsel %vm5384_vm1, %v6338_v58, %v5381_v61  ;;  %v5393_v38 = vmul.f32 %v6344_v25, %v10522_v4  ;;  %v6346_v19 = vpop.eup %6345  ;;  %vm5398_vm3 = vweird.f32 %v6344_v25 }
 0x43f   : > { %5766 = vst.msk [vmem:[%s10247_s14 + $0x60] sm:$0xf] %vm5741_vm4, %v5733_v42  ;;  %v5575_v10 = vmul.f32 %v6340_v5, %v5574_v41  ;;  %v5390_v9 = vsel %vm5387_vm14, %v5389_v40, %v5385_v36  ;;  %v10563_v50 = vadd.f32 1.0, %v6346_v19  ;;  %6349 = vpow2.f32 %v6062_v47  ;;  %vm5399_vm7 = vmor %vm5397_vm0, %vm5398_vm3 }
 0x440   : > { %v5689_v7 = vmul.f32 %v5390_v9, %v10469_v46  ;;  %v5394_v20 = vsub.f32 1.0, %v5393_v38  ;;  %v10575_v63 = vadd.f32 %v10527_v32, %v5061_v33  ;;  %v5596_v24 = vand.u32 2147483647, %v10544_v17 }
 0x441   : > { %v5576_v51 = vadd.f32 %v6340_v5, %v5575_v10  ;;  %6351 = vrcp.f32 %v10563_v50  ;;  %v5598_v15 = vand.u32 2147483648, %v10544_v17  ;;  %vm5592_vm9 = vweird.f32 %v10544_v17 }
 0x442   : > { %v5721_v3 = vpack.c.bf16 %v5689_v7, %v5689_v7  ;;  %v5395_v11 = vmul.f32 %v6344_v25, %v5394_v20  ;;  %v6063_v0 = vmul.f32 -1.442695, %v10575_v63  ;;  %vm5597_vm13 = vcmp.eq.f32.partialorder %v5596_v24, 8.507059e+37 }
 0x443   : > { %v5580_v49 = vsel %vm5579_vm15, %v6340_v5, %v5576_v51  ;;  %v5599_v52 = vor.u32 1.1754944e-38, %v5598_v15  ;;  %v5611_v35 = vand.u32 2147483647, %v10563_v50  ;;  %v5613_v16 = vand.u32 2147483648, %v10563_v50 }
 0x444   : > { %v6348_v6 = vpop.eup %6347  ;;  %v5585_v46 = vsel %vm10552_vm11, %v5584_v48, %v5580_v49  ;;  %5754 = vst.msk [vmem:[%s10247_s14 + $0x30] sm:$0xf] %vm5741_vm4, %v5721_v3  ;;  %v5396_v14 = vadd.f32 %v6344_v25, %v5395_v11  ;;  %6353 = vpow2.f32 %v6063_v0  ;;  %vm5607_vm1 = vweird.f32 %v10563_v50 }
 0x445   : > { %v5702_v60 = vmul.f32 %v5585_v46, %v10483_v13  ;;  %v5588_v26 = vmul.f32 %v6348_v6, %v10544_v17  ;;  %vm5593_vm6 = vweird.f32 %v6348_v6  ;;  %v6350_v4 = vpop.eup %6349  ;;  %v5064_v34 = vpop.f32.mrf.mxu3  ;;  %v5614_v22 = vor.u32 1.1754944e-38, %v5613_v16 }
 0x446   : > { %v5400_v56 = vsel %vm5399_vm7, %v6344_v25, %v5396_v14  ;;  %v10584_v62 = vadd.f32 1.0, %v6350_v4  ;;  %vm5594_vm10 = vmor %vm5592_vm9, %vm5593_vm6  ;;  %v10592_v37 = vadd.f32 %v10527_v32, %v5064_v34  ;;  %vm5612_vm2 = vcmp.eq.f32.partialorder %v5611_v35, 8.507059e+37 }
 0x447   : > { %v5734_v2 = vpack.c.bf16 %v5702_v60, %v5702_v60  ;;  %v5589_v59 = vsub.f32 1.0, %v5588_v26  ;;  %v5405_v13 = vsel %vm5402_vm8, %v5404_v31, %v5400_v56  ;;  %v6352_v23 = vpop.eup %6351  ;;  %v5024_v42 = vpop.f32.mrf.mxu1 }
 0x448   : > { %v5690_v54 = vmul.f32 %v5405_v13, %v10496_v27  ;;  %v5603_v27 = vmul.f32 %v6352_v23, %v10563_v50  ;;  %6355 = vrcp.f32 %v10584_v62  ;;  %vm5608_vm5 = vweird.f32 %v6352_v23 }
 0x449   : > { %5767 = vst.msk [vmem:[%s10247_s14 + $0x64] sm:$0xf] %vm5741_vm4, %v5734_v2  ;;  %v5590_v58 = vmul.f32 %v6348_v6, %v5589_v59  ;;  %v6064_v17 = vmul.f32 -1.442695, %v10592_v37  ;;  %v10600_v41 = vadd.f32 %v10527_v32, %v5024_v42  ;;  %vm5609_vm14 = vmor %vm5607_vm1, %vm5608_vm5  ;;  %v5628_v51 = vand.u32 2147483648, %v10584_v62 }
 0x44a   : > { %v5722_v1 = vpack.c.bf16 %v5690_v54, %v5690_v54  ;;  %v5604_v28 = vsub.f32 1.0, %v5603_v27  ;;  %v6354_v57 = vpop.eup %6353  ;;  %v5626_v20 = vand.u32 2147483647, %v10584_v62  ;;  %vm5622_vm11 = vweird.f32 %v10584_v62 }
 0x44b   : > { %v5591_v55 = vadd.f32 %v6348_v6, %v5590_v58  ;;  %v10597_v61 = vadd.f32 1.0, %v6354_v57  ;;  %6357 = vpow2.f32 %v6064_v17  ;;  %v6048_v36 = vmul.f32 -1.442695, %v10600_v41 }
 0x44c   : > { %5755 = vst.msk [vmem:[%s10247_s14 + $0x34] sm:$0xf] %vm5741_vm4, %v5722_v1  ;;  %v5605_v39 = vmul.f32 %v6352_v23, %v5604_v28  ;;  %v5629_v50 = vor.u32 1.1754944e-38, %v5628_v51  ;;  %vm5627_vm3 = vcmp.eq.f32.partialorder %v5626_v20, 8.507059e+37 }
 0x44d   : > { %v5595_v12 = vsel %vm5594_vm10, %v6348_v6, %v5591_v55  ;;  %6359 = vrcp.f32 %v10597_v61  ;;  %v5066_v10 = vpop.f32.mrf.mxu3  ;;  %v5641_v59 = vand.u32 2147483647, %v10597_v61  ;;  %vm5637_vm7 = vweird.f32 %v10597_v61 }
 0x44e   : > { %v5600_v5 = vsel %vm5597_vm13, %v5599_v52, %v5595_v12  ;;  %v5606_v45 = vadd.f32 %v6352_v23, %v5605_v39  ;;  %v10609_v21 = vadd.f32 %v10527_v32, %v5066_v10  ;;  %6361 = vpow2.f32 %v6048_v36 }
 0x44f   : > { %v5703_v18 = vmul.f32 %v5600_v5, %v10505_v44  ;;  %v6356_v44 = vpop.eup %6355  ;;  %v5026_v47 = vpop.f32.mrf.mxu1  ;;  %vm5642_vm6 = vcmp.eq.f32.partialorder %v5641_v59, 8.507059e+37 }
 0x450   : > { %v5618_v25 = vmul.f32 %v6356_v44, %v10584_v62  ;;  %v5610_v40 = vsel %vm5609_vm14, %v6352_v23, %v5606_v45  ;;  %vm5623_vm12 = vweird.f32 %v6356_v44  ;;  %v6065_v19 = vmul.f32 -1.442695, %v10609_v21 }
 0x451   : > { %v5735_v29 = vpack.c.bf16 %v5703_v18, %v5703_v18  ;;  %v5615_v38 = vsel %vm5612_vm2, %v5614_v22, %v5610_v40  ;;  %v6358_v8 = vpop.eup %6357  ;;  %vm5624_vm15 = vmor %vm5622_vm11, %vm5623_vm12 }
 0x452   : > { %v5619_v9 = vsub.f32 1.0, %v5618_v25  ;;  %v5704_v7 = vmul.f32 %v5615_v38, %v10530_v53  ;;  %v5195_v11 = vadd.f32 1.0, %v6358_v8  ;;  %6363 = vpow2.f32 %v6065_v19 }
 0x453   : > { %5768 = vst.msk [vmem:[%s10247_s14 + $0x68] sm:$0xf] %vm5741_vm4, %v5735_v29  ;;  %v6360_v3 = vpop.eup %6359  ;;  %v10617_v53 = vadd.f32 %v10527_v32, %v5026_v47  ;;  %v5643_v32 = vand.u32 2147483648, %v10597_v61 }
 0x454   : > { %v5620_v48 = vmul.f32 %v6356_v44, %v5619_v9  ;;  %v5736_v30 = vpack.c.bf16 %v5704_v7, %v5704_v7  ;;  %v5633_v6 = vmul.f32 %v6360_v3, %v10597_v61  ;;  %6365 = vrcp.f32 %v5195_v11  ;;  %v6362_v60 = vpop.eup %6361 }
 0x455   : > { %v6049_v33 = vmul.f32 -1.442695, %v10617_v53  ;;  %v5179_v2 = vadd.f32 1.0, %v6362_v60  ;;  %vm5638_vm0 = vweird.f32 %v6360_v3  ;;  %v5656_v12 = vand.u32 2147483647, %v5195_v11 }
 0x456   : > { %v5621_v49 = vadd.f32 %v6356_v44, %v5620_v48  ;;  %5769 = vst.msk [vmem:[%s10247_s14 + $0x6c] sm:$0xf] %vm5741_vm4, %v5736_v30  ;;  %v5634_v26 = vsub.f32 1.0, %v5633_v6  ;;  %vm5639_vm8 = vmor %vm5637_vm7, %vm5638_vm0  ;;  %v5658_v27 = vand.u32 2147483648, %v5195_v11  ;;  %vm5652_vm10 = vweird.f32 %v5195_v11 }
 0x457   : > { %6367 = vpow2.f32 %v6049_v33  ;;  %v5416_v57 = vand.u32 2147483647, %v5179_v2  ;;  %vm5657_vm5 = vcmp.eq.f32.partialorder %v5656_v12, 8.507059e+37  ;;  %v5418_v39 = vand.u32 2147483648, %v5179_v2 }
 0x458   : > { %v5625_v46 = vsel %vm5624_vm15, %v6356_v44, %v5621_v49  ;;  %v5635_v56 = vmul.f32 %v6360_v3, %v5634_v26  ;;  %v6364_v13 = vpop.eup %6363  ;;  %6369 = vrcp.f32 %v5179_v2  ;;  %vm5412_vm14 = vweird.f32 %v5179_v2 }
 0x459   : > { %v5630_v14 = vsel %vm5627_vm3, %v5629_v50, %v5625_v46  ;;  %v5196_v54 = vadd.f32 1.0, %v6364_v13  ;;  %vm5417_vm2 = vcmp.eq.f32.partialorder %v5416_v57, 8.507059e+37  ;;  %v5419_v36 = vor.u32 1.1754944e-38, %v5418_v39 }
 0x45a   : > { %v5705_v31 = vmul.f32 %v5630_v14, %v10557_v43  ;;  %v5636_v15 = vadd.f32 %v6360_v3, %v5635_v56  ;;  %v6366_v58 = vpop.eup %6365  ;;  %v5644_v43 = vor.u32 1.1754944e-38, %v5643_v32 }
 0x45b   : > { %v5648_v4 = vmul.f32 %v6366_v58, %v5195_v11  ;;  %6371 = vrcp.f32 %v5196_v54  ;;  %vm5653_vm9 = vweird.f32 %v6366_v58  ;;  %v5671_v10 = vand.u32 2147483647, %v5196_v54 }
 0x45c   : > { %v5737_v24 = vpack.c.bf16 %v5705_v31, %v5705_v31  ;;  %v5640_v0 = vsel %vm5639_vm8, %v6360_v3, %v5636_v15  ;;  %vm5654_vm13 = vmor %vm5652_vm10, %vm5653_vm9  ;;  %v5673_v38 = vand.u32 2147483648, %v5196_v54  ;;  %vm5667_vm15 = vweird.f32 %v5196_v54 }
 0x45d   : > { %v5645_v1 = vsel %vm5642_vm6, %v5644_v43, %v5640_v0  ;;  %v6368_v55 = vpop.eup %6367  ;;  %v5649_v23 = vsub.f32 1.0, %v5648_v4  ;;  %vm5672_vm0 = vcmp.eq.f32.partialorder %v5671_v10, 8.507059e+37 }
 0x45e   : > { %5770 = vst.msk [vmem:[%s10247_s14 + $0x70] sm:$0xf] %vm5741_vm4, %v5737_v24  ;;  %v5706_v62 = vmul.f32 %v5645_v1, %v10575_v63  ;;  %v6370_v52 = vpop.eup %6369  ;;  %v5180_v34 = vadd.f32 1.0, %v6368_v55  ;;  %v5659_v63 = vor.u32 1.1754944e-38, %v5658_v27  ;;  %v5674_v30 = vor.u32 1.1754944e-38, %v5673_v38 }
 0x45f   : > { %v5650_v18 = vmul.f32 %v6366_v58, %v5649_v23  ;;  %v5408_v28 = vmul.f32 %v6370_v52, %v5179_v2  ;;  %vm5413_vm1 = vweird.f32 %v6370_v52 }
 0x460   : > { %v5738_v5 = vpack.c.bf16 %v5706_v62, %v5706_v62  ;;  %6373 = vrcp.f32 %v5180_v34  ;;  %vm5414_vm12 = vmor %vm5412_vm14, %vm5413_vm1  ;;  %v5431_v47 = vand.u32 2147483647, %v5180_v34  ;;  %v5433_v3 = vand.u32 2147483648, %v5180_v34 }
 0x461   : > { %v5651_v35 = vadd.f32 %v6366_v58, %v5650_v18  ;;  %v5409_v16 = vsub.f32 1.0, %v5408_v28  ;;  %v6372_v29 = vpop.eup %6371  ;;  %vm5427_vm8 = vweird.f32 %v5180_v34 }
 0x462   : > { %5771 = vst.msk [vmem:[%s10247_s14 + $0x74] sm:$0xf] %vm5741_vm4, %v5738_v5  ;;  %v5663_v61 = vmul.f32 %v6372_v29, %v5196_v54  ;;  %vm5668_vm11 = vweird.f32 %v6372_v29  ;;  %v5434_v60 = vor.u32 1.1754944e-38, %v5433_v3  ;;  %vm5432_vm9 = vcmp.eq.f32.partialorder %v5431_v47, 8.507059e+37 }
 0x463   : > { %v5655_v17 = vsel %vm5654_vm13, %v6366_v58, %v5651_v35  ;;  %v5410_v42 = vmul.f32 %v6370_v52, %v5409_v16  ;;  %vm5669_vm3 = vmor %vm5667_vm15, %vm5668_vm11 }
 0x464   : > { %v5660_v44 = vsel %vm5657_vm5, %v5659_v63, %v5655_v17  ;;  %v5664_v25 = vsub.f32 1.0, %v5663_v61 }
 0x465   : > { %v5707_v45 = vmul.f32 %v5660_v44, %v10592_v37  ;;  %v5411_v22 = vadd.f32 %v6370_v52, %v5410_v42 }
 0x466   : > { %v6374_v40 = vpop.eup %6373  ;;  %v5665_v51 = vmul.f32 %v6372_v29, %v5664_v25 }
 0x467   : > { %v5739_v9 = vpack.c.bf16 %v5707_v45, %v5707_v45  ;;  %v5415_v7 = vsel %vm5414_vm12, %v6370_v52, %v5411_v22  ;;  %v5423_v48 = vmul.f32 %v6374_v40, %v5180_v34  ;;  %vm5428_vm7 = vweird.f32 %v6374_v40 }
 0x468   : > { %v5420_v20 = vsel %vm5417_vm2, %v5419_v36, %v5415_v7  ;;  %v5666_v37 = vadd.f32 %v6372_v29, %v5665_v51  ;;  %vm5429_vm6 = vmor %vm5427_vm8, %vm5428_vm7 }
 0x469   : > { %5772 = vst.msk [vmem:[%s10247_s14 + $0x78] sm:$0xf] %vm5741_vm4, %v5739_v9  ;;  %v5691_v19 = vmul.f32 %v5420_v20, %v10600_v41  ;;  %v5424_v8 = vsub.f32 1.0, %v5423_v48 }
 0x46a   : > { %v5670_v11 = vsel %vm5669_vm3, %v6372_v29, %v5666_v37 }
 0x46b   : > { %v5723_v49 = vpack.c.bf16 %v5691_v19, %v5691_v19  ;;  %v5425_v50 = vmul.f32 %v6374_v40, %v5424_v8  ;;  %v5675_v6 = vsel %vm5672_vm0, %v5674_v30, %v5670_v11 }
 0x46c   : > { %v5708_v46 = vmul.f32 %v5675_v6, %v10609_v21 }
 0x46d   : > { %5756 = vst.msk [vmem:[%s10247_s14 + $0x38] sm:$0xf] %vm5741_vm4, %v5723_v49  ;;  %v5426_v41 = vadd.f32 %v6374_v40, %v5425_v50 }
 0x46e   : > { %v5740_v14 = vpack.c.bf16 %v5708_v46, %v5708_v46 }
 0x46f   : > { %v5430_v26 = vsel %vm5429_vm6, %v6374_v40, %v5426_v41 }
 0x470   : > { %v5435_v33 = vsel %vm5432_vm9, %v5434_v60, %v5430_v26  ;;  %5773 = vst.msk [vmem:[%s10247_s14 + $0x7c] sm:$0xf] %vm5741_vm4, %v5740_v14 }
 0x471   : > { %v5692_v31 = vmul.f32 %v5435_v33, %v10617_v53 }
 0x473   : > { %v5724_v32 = vpack.c.bf16 %v5692_v31, %v5692_v31 }
 0x475   : > { %5757 = vst.msk [vmem:[%s10247_s14 + $0x3c] sm:$0xf] %vm5741_vm4, %v5724_v32 }
 0x476 PF: > { %s15_s18 = sadd.s32 1, %s6385_s18  }
 0x477   : > { %p12_p4 = scmp.ge.s32.totalorder %s15_s18, 4  }
 0x479   :  { %14 = sbr.rel (!%p12_p4) target bundleno = 1 (0x1), region = 72 }

</bundles_post_ra>
